<compile_context>
chip_gen: v5e
topology: v5e:2x2
jax: 0.10.0
libtpu: 0.0.40
codegen_flags: <defaults>
</compile_context>

<pallas_src>
import functools

import jax
import jax.numpy as jnp
from jax.experimental import pallas as pl
from jax.experimental.pallas import tpu as pltpu


# ----------------------------------------------------------------------------
# Kernel 1: conv1 (1 -> 32, 3x3, valid) + ReLU as a single im2col matmul.
#   x_ref : (1, S1, 9)   im2col patches (K = 3*3*Cin = 9, built in the wrapper)
#   w_ref : (9, 32)      HWIO conv weight flattened over (dy, dx, cin)
#   b_ref : (1, 32)
#   o_ref : (1, S1, 32)  flattened-spatial output slab (one full-tile store)
# ----------------------------------------------------------------------------
def _conv1_kernel(x_ref, w_ref, b_ref, o_ref):
    y = jnp.dot(x_ref[0], w_ref[...], preferred_element_type=jnp.float32)
    o_ref[0] = jnp.maximum(y + b_ref[...], 0.0)


def conv1_relu(patches, w, b):
    B, S, K = patches.shape
    C = w.shape[-1]
    return pl.pallas_call(
        _conv1_kernel,
        out_shape=jax.ShapeDtypeStruct((B, S, C), jnp.float32),
        grid=(B,),
        in_specs=[
            pl.BlockSpec((1, S, K), lambda i: (i, 0, 0)),
            pl.BlockSpec((K, C), lambda i: (0, 0)),
            pl.BlockSpec((1, C), lambda i: (0, 0)),
        ],
        out_specs=pl.BlockSpec((1, S, C), lambda i: (i, 0, 0)),
        compiler_params=pltpu.CompilerParams(dimension_semantics=("parallel",)),
    )(patches, w, b.reshape(1, C))


# ----------------------------------------------------------------------------
# Kernel 2: conv2 (32 -> 64, 3x3, valid) + ReLU.
# Input is the pooled conv1 activation flattened over (y, x) with row width Wp
# (plus 2 zero rows of padding), so the 3x3 window of output position
# q = y*Wp + x is the 9 constant shifts q + dy*Wp + dx.  Each tap is one
# (S2, 32) x (32, 64) MXU matmul accumulated in f32; bias + ReLU + one
# full-slab store at the end.  Rows with x >= Wp-2 are junk and dropped later.
#   x_ref : (1, S2 + 2*Wp + 2, 32)    w_ref : (9, 32, 64)
#   b_ref : (1, 64)                   o_ref : (1, S2, 64)
# ----------------------------------------------------------------------------
def _conv2_kernel(x_ref, w_ref, b_ref, o_ref, *, S2, Wp):
    acc = None
    for dy in range(3):
        for dx in range(3):
            sh = dy * Wp + dx
            part = jnp.dot(x_ref[0, sh:sh + S2, :], w_ref[dy * 3 + dx],
                           preferred_element_type=jnp.float32)
            acc = part if acc is None else acc + part
    o_ref[0] = jnp.maximum(acc + b_ref[...], 0.0)


def conv2_relu(xflat, w, b, *, S2, Wp):
    B, L, Cin = xflat.shape
    Cout = w.shape[-1]
    kern = functools.partial(_conv2_kernel, S2=S2, Wp=Wp)
    return pl.pallas_call(
        kern,
        out_shape=jax.ShapeDtypeStruct((B, S2, Cout), jnp.float32),
        grid=(B,),
        in_specs=[
            pl.BlockSpec((1, L, Cin), lambda i: (i, 0, 0)),
            pl.BlockSpec((9, Cin, Cout), lambda i: (0, 0, 0)),
            pl.BlockSpec((1, Cout), lambda i: (0, 0)),
        ],
        out_specs=pl.BlockSpec((1, S2, Cout), lambda i: (i, 0, 0)),
        compiler_params=pltpu.CompilerParams(dimension_semantics=("parallel",)),
    )(xflat, w, b.reshape(1, Cout))


# ----------------------------------------------------------------------------
# Kernel 3: fc1 + ReLU + fc2 fused, single step (whole 7744x128 weight resident
# in VMEM: no K tiling, no per-call padding, no separate fc2 launch).
#   x_ref  : (B, 7744)   pooled features in HWC-flatten order (fc1 weight rows
#                        were permuted once at init, so no activation transpose)
#   w1_ref : (7744, 128)   b1_ref : (1, 128)
#   w2_ref : (128, 2)      b2_ref : (1, 2)
#   o_ref  : (B, 2)
# ----------------------------------------------------------------------------
def _mlp_kernel(x_ref, w1_ref, b1_ref, w2_ref, b2_ref, o_ref):
    h = jnp.dot(x_ref[...], w1_ref[...], preferred_element_type=jnp.float32)
    h = jnp.maximum(h + b1_ref[...], 0.0)
    o_ref[...] = (jnp.dot(h, w2_ref[...], preferred_element_type=jnp.float32)
                  + b2_ref[...]).astype(o_ref.dtype)


def mlp(x, w1, b1, w2, b2):
    B, K = x.shape
    N1 = w1.shape[1]
    N2 = w2.shape[1]
    return pl.pallas_call(
        _mlp_kernel,
        out_shape=jax.ShapeDtypeStruct((B, N2), jnp.float32),
        grid=(1,),
        in_specs=[
            pl.BlockSpec((B, K), lambda i: (0, 0)),
            pl.BlockSpec((K, N1), lambda i: (0, 0)),
            pl.BlockSpec((1, N1), lambda i: (0, 0)),
            pl.BlockSpec((N1, N2), lambda i: (0, 0)),
            pl.BlockSpec((1, N2), lambda i: (0, 0)),
        ],
        out_specs=pl.BlockSpec((B, N2), lambda i: (0, 0)),
        compiler_params=pltpu.CompilerParams(dimension_semantics=("arbitrary",)),
    )(x, w1, b1.reshape(1, N1), w2, b2.reshape(1, N2))


# ----------------------------------------------------------------------------
# Wrapper-side layout plumbing + parameters + forward.
# ----------------------------------------------------------------------------
def _maxpool2x2(x):
    """F.max_pool2d(x, 2, 2) on NHWC with even H, W."""
    B, H, W, C = x.shape
    return jnp.max(x.reshape(B, H // 2, 2, W // 2, 2, C), axis=(2, 4))


def init_params(key, H, W):
    # Spatial bookkeeping matches CNN1: conv(3x3) -> pool(2) -> conv(3x3) -> pool(2).
    H1, W1 = H - 2, W - 2            # 48, 48
    Hp1, Wp1 = H1 // 2, W1 // 2      # 24, 24
    H2, W2 = Hp1 - 2, Wp1 - 2        # 22, 22
    Hp2, Wp2 = H2 // 2, W2 // 2      # 11, 11
    fc1_in = 64 * Hp2 * Wp2          # 7744 for the 50x50 input CNN1 implies

    ks = jax.random.split(key, 8)

    def u(k, shape, fan_in):
        bound = 1.0 / (fan_in ** 0.5)
        return jax.random.uniform(k, shape, jnp.float32, -bound, bound)

    # Conv weights drawn in HWIO, stored in the matmul-friendly shapes the kernels use.
    w_conv1 = u(ks[0], (3, 3, 1, 32), 1 * 9).reshape(9, 32)
    b_conv1 = u(ks[1], (32,), 1 * 9)
    w_conv2 = u(ks[2], (3, 3, 32, 64), 32 * 9).reshape(9, 32, 64)
    b_conv2 = u(ks[3], (64,), 32 * 9)

    # fc1 weight drawn in torch's (C, H, W)-flatten row order, then permuted
    # ONCE so it consumes our (H, W, C)-flatten order directly (this replaces
    # the per-forward activation transpose of the previous version).
    w_fc1_chw = u(ks[4], (fc1_in, 128), fc1_in)
    w_fc1 = (w_fc1_chw.reshape(64, Hp2, Wp2, 128)
             .transpose(1, 2, 0, 3).reshape(fc1_in, 128))
    b_fc1 = u(ks[5], (128,), fc1_in)
    w_fc2 = u(ks[6], (128, 2), 128)
    b_fc2 = u(ks[7], (2,), 128)

    return {
        "w_conv1": w_conv1, "b_conv1": b_conv1,
        "w_conv2": w_conv2, "b_conv2": b_conv2,
        "w_fc1": w_fc1, "b_fc1": b_fc1,
        "w_fc2": w_fc2, "b_fc2": b_fc2,
    }


def cnn1_forward(params, x_nchw):
    """CNN1.forward: relu(conv1) -> maxpool2 -> relu(conv2) -> maxpool2
    -> flatten -> relu(fc1) -> fc2."""
    B, _, H, W = x_nchw.shape
    H1, W1 = H - 2, W - 2
    Hp1, Wp1 = H1 // 2, W1 // 2
    H2, W2 = Hp1 - 2, Wp1 - 2
    Hp2, Wp2 = H2 // 2, W2 // 2

    x = x_nchw.astype(jnp.float32)

    # --- conv1 + relu: im2col built here (Cin=1 => 9 shifted views of the
    #     flattened image), one (S1, 9) x (9, 32) dot inside the kernel.
    S1 = H1 * W                                       # full-width rows; x >= W1 columns are junk
    pad1 = (2 * W + 2 + S1) - H * W
    xf = jnp.pad(x.reshape(B, H * W), ((0, 0), (0, pad1)))
    patches = jnp.stack(
        [xf[:, dy * W + dx: dy * W + dx + S1] for dy in range(3) for dx in range(3)],
        axis=-1)                                      # (B, S1, 9)
    a1 = conv1_relu(patches, params["w_conv1"], params["b_conv1"])     # (B, S1, 32)

    # --- maxpool 2x2 (wrapper-side)
    a1 = a1.reshape(B, H1, W, 32)[:, :, :W1, :]       # drop junk columns
    p1 = _maxpool2x2(a1)                              # (B, 24, 24, 32)

    # --- conv2 + relu (per-tap shifted slabs taken inside the kernel)
    S2 = H2 * Wp1                                     # full-width rows again
    pad2 = (S2 + 2 * Wp1 + 2) - Hp1 * Wp1
    p1f = jnp.pad(p1.reshape(B, Hp1 * Wp1, 32), ((0, 0), (0, pad2), (0, 0)))
    a2 = conv2_relu(p1f, params["w_conv2"], params["b_conv2"], S2=S2, Wp=Wp1)  # (B, S2, 64)

    # --- maxpool 2x2 + flatten (HWC order; fc1 weight rows are pre-permuted)
    a2 = a2.reshape(B, H2, Wp1, 64)[:, :, :W2, :]
    p2 = _maxpool2x2(a2)                              # (B, 11, 11, 64)
    feat = p2.reshape(B, Hp2 * Wp2 * 64)              # (B, 7744)

    # --- fc1 + relu + fc2 fused in one single-step kernel
    return mlp(feat, params["w_fc1"], params["b_fc1"],
               params["w_fc2"], params["b_fc2"])


if __name__ == "__main__":
    # CNN1's fc1.in_features == 7744 == 64 * 11 * 11  =>  50x50 single-channel input.
    B, H, W = 2, 50, 50
    key = jax.random.PRNGKey(0)
    kp, kx = jax.random.split(key)

    params = init_params(kp, H, W)
    x = jax.random.normal(kx, (B, 1, H, W), jnp.float32)   # NCHW, like PyTorch

    fwd = jax.jit(cnn1_forward)
    out = jax.block_until_ready(fwd(params, x))
    assert out.shape == (B, 2) and out.dtype == jnp.float32
    print("KERNEL_OK")
</pallas_src>

<mosaic_0001>
module attributes {stable_mosaic.version = 11 : i64} {
  func.func @_conv1_kernel(%arg0: i32, %arg1: memref<1x2400x9xf32, #tpu.memory_space<vmem>>, %arg2: memref<9x32xf32, #tpu.memory_space<vmem>>, %arg3: memref<1x32xf32, #tpu.memory_space<vmem>>, %arg4: memref<1x2400x32xf32, #tpu.memory_space<vmem>>) attributes {dimension_semantics = [#tpu.dimension_semantics<parallel>], iteration_bounds = array<i64: 2>, scalar_prefetch = 0 : i64, scratch_operands = 0 : i64, tpu.core_type = #tpu.core_type<tc>, window_params = [{transform_indices = @transform_0, window_bounds = array<i64: 1, 2400, 9>}, {pipeline_mode = #tpu.pipeline_mode<synchronous>, transform_indices = @transform_1, window_bounds = array<i64: 9, 32>}, {pipeline_mode = #tpu.pipeline_mode<synchronous>, transform_indices = @transform_2, window_bounds = array<i64: 1, 32>}, {transform_indices = @transform_3, window_bounds = array<i64: 1, 2400, 32>}]} {
    %c0 = arith.constant 0 : index
    %c0_0 = arith.constant 0 : index
    %c0_1 = arith.constant 0 : index
    %0 = vector.load %arg1[%c0, %c0_0, %c0_1] : memref<1x2400x9xf32, #tpu.memory_space<vmem>>, vector<1x2400x9xf32>
    %1 = vector.shape_cast %0 : vector<1x2400x9xf32> to vector<2400x9xf32>
    %c0_2 = arith.constant 0 : index
    %c0_3 = arith.constant 0 : index
    %2 = vector.load %arg2[%c0_2, %c0_3] : memref<9x32xf32, #tpu.memory_space<vmem>>, vector<9x32xf32>
    %cst = arith.constant dense<0.000000e+00> : vector<2400x32xf32>
    %3 = tpu.matmul %1, %2, %cst {dimension_numbers = #tpu.dot_dimension_numbers<[1], [0], [0], [1], [0, 0, 1, 1], [], []>} : vector<2400x9xf32>, vector<9x32xf32>, vector<2400x32xf32> -> vector<2400x32xf32>
    %c0_4 = arith.constant 0 : index
    %c0_5 = arith.constant 0 : index
    %4 = vector.load %arg3[%c0_4, %c0_5] : memref<1x32xf32, #tpu.memory_space<vmem>>, vector<1x32xf32>
    %5 = vector.broadcast %4 : vector<1x32xf32> to vector<2400x32xf32>
    %6 = arith.addf %3, %5 : vector<2400x32xf32>
    %cst_6 = arith.constant 0.000000e+00 : f32
    %7 = vector.broadcast %cst_6 : f32 to vector<2400x32xf32>
    %8 = arith.maximumf %6, %7 : vector<2400x32xf32>
    %c0_7 = arith.constant 0 : index
    %c0_8 = arith.constant 0 : index
    %c0_9 = arith.constant 0 : index
    %9 = vector.load %arg4[%c0_7, %c0_8, %c0_9] : memref<1x2400x32xf32, #tpu.memory_space<vmem>>, vector<1x2400x32xf32>
    %10 = vector.shape_cast %9 : vector<1x2400x32xf32> to vector<2400x32xf32>
    %11 = vector.shape_cast %8 : vector<2400x32xf32> to vector<1x2400x32xf32>
    tpu.vector_store %arg4[%c0_7, %c0_8, %c0_9], %11 {strides = array<i32>} : memref<1x2400x32xf32, #tpu.memory_space<vmem>>, vector<1x2400x32xf32>,
    return
  }
  func.func @transform_0(%arg0: i32) -> (i32, i32, i32) {
    %c0_i32 = arith.constant 0 : i32
    %c0_i32_0 = arith.constant 0 : i32
    %c0_i32_1 = arith.constant 0 : i32
    return %arg0, %c0_i32, %c0_i32_0 : i32, i32, i32
  }
  func.func @transform_1(%arg0: i32) -> (i32, i32) {
    %c0_i32 = arith.constant 0 : i32
    %c0_i32_0 = arith.constant 0 : i32
    %c0_i32_1 = arith.constant 0 : i32
    return %c0_i32, %c0_i32_0 : i32, i32
  }
  func.func @transform_2(%arg0: i32) -> (i32, i32) {
    %c0_i32 = arith.constant 0 : i32
    %c0_i32_0 = arith.constant 0 : i32
    %c0_i32_1 = arith.constant 0 : i32
    return %c0_i32, %c0_i32_0 : i32, i32
  }
  func.func @transform_3(%arg0: i32) -> (i32, i32, i32) {
    %c0_i32 = arith.constant 0 : i32
    %c0_i32_0 = arith.constant 0 : i32
    %c0_i32_1 = arith.constant 0 : i32
    return %arg0, %c0_i32, %c0_i32_0 : i32, i32, i32
  }
}

module attributes {stable_mosaic.version = 11 : i64} {
  func.func @_conv2_kernel(%arg0: i32, %arg1: memref<1x578x32xf32, #tpu.memory_space<vmem>>, %arg2: memref<9x32x64xf32, #tpu.memory_space<vmem>>, %arg3: memref<1x64xf32, #tpu.memory_space<vmem>>, %arg4: memref<1x528x64xf32, #tpu.memory_space<vmem>>) attributes {dimension_semantics = [#tpu.dimension_semantics<parallel>], iteration_bounds = array<i64: 2>, scalar_prefetch = 0 : i64, scratch_operands = 0 : i64, tpu.core_type = #tpu.core_type<tc>, window_params = [{transform_indices = @transform_0, window_bounds = array<i64: 1, 578, 32>}, {pipeline_mode = #tpu.pipeline_mode<synchronous>, transform_indices = @transform_1, window_bounds = array<i64: 9, 32, 64>}, {pipeline_mode = #tpu.pipeline_mode<synchronous>, transform_indices = @transform_2, window_bounds = array<i64: 1, 64>}, {transform_indices = @transform_3, window_bounds = array<i64: 1, 528, 64>}]} {
    %c0 = arith.constant 0 : index
    %c0_0 = arith.constant 0 : index
    %c0_1 = arith.constant 0 : index
    %0 = vector.load %arg1[%c0, %c0_0, %c0_1] : memref<1x578x32xf32, #tpu.memory_space<vmem>>, vector<1x528x32xf32>
    %1 = vector.shape_cast %0 : vector<1x528x32xf32> to vector<528x32xf32>
    %c0_2 = arith.constant 0 : index
    %c0_3 = arith.constant 0 : index
    %c0_4 = arith.constant 0 : index
    %2 = vector.load %arg2[%c0_2, %c0_3, %c0_4] : memref<9x32x64xf32, #tpu.memory_space<vmem>>, vector<1x32x64xf32>
    %3 = vector.shape_cast %2 : vector<1x32x64xf32> to vector<32x64xf32>
    %cst = arith.constant dense<0.000000e+00> : vector<528x64xf32>
    %4 = tpu.matmul %1, %3, %cst {dimension_numbers = #tpu.dot_dimension_numbers<[1], [0], [0], [1], [0, 0, 1, 1], [], []>} : vector<528x32xf32>, vector<32x64xf32>, vector<528x64xf32> -> vector<528x64xf32>
    %c0_5 = arith.constant 0 : index
    %c1 = arith.constant 1 : index
    %c0_6 = arith.constant 0 : index
    %5 = vector.load %arg1[%c0_5, %c1, %c0_6] : memref<1x578x32xf32, #tpu.memory_space<vmem>>, vector<1x528x32xf32>
    %6 = vector.shape_cast %5 : vector<1x528x32xf32> to vector<528x32xf32>
    %c1_7 = arith.constant 1 : index
    %c0_8 = arith.constant 0 : index
    %c0_9 = arith.constant 0 : index
    %7 = vector.load %arg2[%c1_7, %c0_8, %c0_9] : memref<9x32x64xf32, #tpu.memory_space<vmem>>, vector<1x32x64xf32>
    %8 = vector.shape_cast %7 : vector<1x32x64xf32> to vector<32x64xf32>
    %cst_10 = arith.constant dense<0.000000e+00> : vector<528x64xf32>
    %9 = tpu.matmul %6, %8, %cst_10 {dimension_numbers = #tpu.dot_dimension_numbers<[1], [0], [0], [1], [0, 0, 1, 1], [], []>} : vector<528x32xf32>, vector<32x64xf32>, vector<528x64xf32> -> vector<528x64xf32>
    %10 = arith.addf %4, %9 : vector<528x64xf32>
    %c0_11 = arith.constant 0 : index
    %c2 = arith.constant 2 : index
    %c0_12 = arith.constant 0 : index
    %11 = vector.load %arg1[%c0_11, %c2, %c0_12] : memref<1x578x32xf32, #tpu.memory_space<vmem>>, vector<1x528x32xf32>
    %12 = vector.shape_cast %11 : vector<1x528x32xf32> to vector<528x32xf32>
    %c2_13 = arith.constant 2 : index
    %c0_14 = arith.constant 0 : index
    %c0_15 = arith.constant 0 : index
    %13 = vector.load %arg2[%c2_13, %c0_14, %c0_15] : memref<9x32x64xf32, #tpu.memory_space<vmem>>, vector<1x32x64xf32>
    %14 = vector.shape_cast %13 : vector<1x32x64xf32> to vector<32x64xf32>
    %cst_16 = arith.constant dense<0.000000e+00> : vector<528x64xf32>
    %15 = tpu.matmul %12, %14, %cst_16 {dimension_numbers = #tpu.dot_dimension_numbers<[1], [0], [0], [1], [0, 0, 1, 1], [], []>} : vector<528x32xf32>, vector<32x64xf32>, vector<528x64xf32> -> vector<528x64xf32>
    %16 = arith.addf %10, %15 : vector<528x64xf32>
    %c0_17 = arith.constant 0 : index
    %c24 = arith.constant 24 : index
    %c0_18 = arith.constant 0 : index
    %17 = vector.load %arg1[%c0_17, %c24, %c0_18] : memref<1x578x32xf32, #tpu.memory_space<vmem>>, vector<1x528x32xf32>
    %18 = vector.shape_cast %17 : vector<1x528x32xf32> to vector<528x32xf32>
    %c3 = arith.constant 3 : index
    %c0_19 = arith.constant 0 : index
    %c0_20 = arith.constant 0 : index
    %19 = vector.load %arg2[%c3, %c0_19, %c0_20] : memref<9x32x64xf32, #tpu.memory_space<vmem>>, vector<1x32x64xf32>
    %20 = vector.shape_cast %19 : vector<1x32x64xf32> to vector<32x64xf32>
    %cst_21 = arith.constant dense<0.000000e+00> : vector<528x64xf32>
    %21 = tpu.matmul %18, %20, %cst_21 {dimension_numbers = #tpu.dot_dimension_numbers<[1], [0], [0], [1], [0, 0, 1, 1], [], []>} : vector<528x32xf32>, vector<32x64xf32>, vector<528x64xf32> -> vector<528x64xf32>
    %22 = arith.addf %16, %21 : vector<528x64xf32>
    %c0_22 = arith.constant 0 : index
    %c25 = arith.constant 25 : index
    %c0_23 = arith.constant 0 : index
    %23 = vector.load %arg1[%c0_22, %c25, %c0_23] : memref<1x578x32xf32, #tpu.memory_space<vmem>>, vector<1x528x32xf32>
    %24 = vector.shape_cast %23 : vector<1x528x32xf32> to vector<528x32xf32>
    %c4 = arith.constant 4 : index
    %c0_24 = arith.constant 0 : index
    %c0_25 = arith.constant 0 : index
    %25 = vector.load %arg2[%c4, %c0_24, %c0_25] : memref<9x32x64xf32, #tpu.memory_space<vmem>>, vector<1x32x64xf32>
    %26 = vector.shape_cast %25 : vector<1x32x64xf32> to vector<32x64xf32>
    %cst_26 = arith.constant dense<0.000000e+00> : vector<528x64xf32>
    %27 = tpu.matmul %24, %26, %cst_26 {dimension_numbers = #tpu.dot_dimension_numbers<[1], [0], [0], [1], [0, 0, 1, 1], [], []>} : vector<528x32xf32>, vector<32x64xf32>, vector<528x64xf32> -> vector<528x64xf32>
    %28 = arith.addf %22, %27 : vector<528x64xf32>
    %c0_27 = arith.constant 0 : index
    %c26 = arith.constant 26 : index
    %c0_28 = arith.constant 0 : index
    %29 = vector.load %arg1[%c0_27, %c26, %c0_28] : memref<1x578x32xf32, #tpu.memory_space<vmem>>, vector<1x528x32xf32>
    %30 = vector.shape_cast %29 : vector<1x528x32xf32> to vector<528x32xf32>
    %c5 = arith.constant 5 : index
    %c0_29 = arith.constant 0 : index
    %c0_30 = arith.constant 0 : index
    %31 = vector.load %arg2[%c5, %c0_29, %c0_30] : memref<9x32x64xf32, #tpu.memory_space<vmem>>, vector<1x32x64xf32>
    %32 = vector.shape_cast %31 : vector<1x32x64xf32> to vector<32x64xf32>
    %cst_31 = arith.constant dense<0.000000e+00> : vector<528x64xf32>
    %33 = tpu.matmul %30, %32, %cst_31 {dimension_numbers = #tpu.dot_dimension_numbers<[1], [0], [0], [1], [0, 0, 1, 1], [], []>} : vector<528x32xf32>, vector<32x64xf32>, vector<528x64xf32> -> vector<528x64xf32>
    %34 = arith.addf %28, %33 : vector<528x64xf32>
    %c0_32 = arith.constant 0 : index
    %c48 = arith.constant 48 : index
    %c0_33 = arith.constant 0 : index
    %35 = vector.load %arg1[%c0_32, %c48, %c0_33] : memref<1x578x32xf32, #tpu.memory_space<vmem>>, vector<1x528x32xf32>
    %36 = vector.shape_cast %35 : vector<1x528x32xf32> to vector<528x32xf32>
    %c6 = arith.constant 6 : index
    %c0_34 = arith.constant 0 : index
    %c0_35 = arith.constant 0 : index
    %37 = vector.load %arg2[%c6, %c0_34, %c0_35] : memref<9x32x64xf32, #tpu.memory_space<vmem>>, vector<1x32x64xf32>
    %38 = vector.shape_cast %37 : vector<1x32x64xf32> to vector<32x64xf32>
    %cst_36 = arith.constant dense<0.000000e+00> : vector<528x64xf32>
    %39 = tpu.matmul %36, %38, %cst_36 {dimension_numbers = #tpu.dot_dimension_numbers<[1], [0], [0], [1], [0, 0, 1, 1], [], []>} : vector<528x32xf32>, vector<32x64xf32>, vector<528x64xf32> -> vector<528x64xf32>
    %40 = arith.addf %34, %39 : vector<528x64xf32>
    %c0_37 = arith.constant 0 : index
    %c49 = arith.constant 49 : index
    %c0_38 = arith.constant 0 : index
    %41 = vector.load %arg1[%c0_37, %c49, %c0_38] : memref<1x578x32xf32, #tpu.memory_space<vmem>>, vector<1x528x32xf32>
    %42 = vector.shape_cast %41 : vector<1x528x32xf32> to vector<528x32xf32>
    %c7 = arith.constant 7 : index
    %c0_39 = arith.constant 0 : index
    %c0_40 = arith.constant 0 : index
    %43 = vector.load %arg2[%c7, %c0_39, %c0_40] : memref<9x32x64xf32, #tpu.memory_space<vmem>>, vector<1x32x64xf32>
    %44 = vector.shape_cast %43 : vector<1x32x64xf32> to vector<32x64xf32>
    %cst_41 = arith.constant dense<0.000000e+00> : vector<528x64xf32>
    %45 = tpu.matmul %42, %44, %cst_41 {dimension_numbers = #tpu.dot_dimension_numbers<[1], [0], [0], [1], [0, 0, 1, 1], [], []>} : vector<528x32xf32>, vector<32x64xf32>, vector<528x64xf32> -> vector<528x64xf32>
    %46 = arith.addf %40, %45 : vector<528x64xf32>
    %c0_42 = arith.constant 0 : index
    %c50 = arith.constant 50 : index
    %c0_43 = arith.constant 0 : index
    %47 = vector.load %arg1[%c0_42, %c50, %c0_43] : memref<1x578x32xf32, #tpu.memory_space<vmem>>, vector<1x528x32xf32>
    %48 = vector.shape_cast %47 : vector<1x528x32xf32> to vector<528x32xf32>
    %c8 = arith.constant 8 : index
    %c0_44 = arith.constant 0 : index
    %c0_45 = arith.constant 0 : index
    %49 = vector.load %arg2[%c8, %c0_44, %c0_45] : memref<9x32x64xf32, #tpu.memory_space<vmem>>, vector<1x32x64xf32>
    %50 = vector.shape_cast %49 : vector<1x32x64xf32> to vector<32x64xf32>
    %cst_46 = arith.constant dense<0.000000e+00> : vector<528x64xf32>
    %51 = tpu.matmul %48, %50, %cst_46 {dimension_numbers = #tpu.dot_dimension_numbers<[1], [0], [0], [1], [0, 0, 1, 1], [], []>} : vector<528x32xf32>, vector<32x64xf32>, vector<528x64xf32> -> vector<528x64xf32>
    %52 = arith.addf %46, %51 : vector<528x64xf32>
    %c0_47 = arith.constant 0 : index
    %c0_48 = arith.constant 0 : index
    %53 = vector.load %arg3[%c0_47, %c0_48] : memref<1x64xf32, #tpu.memory_space<vmem>>, vector<1x64xf32>
    %54 = vector.broadcast %53 : vector<1x64xf32> to vector<528x64xf32>
    %55 = arith.addf %52, %54 : vector<528x64xf32>
    %cst_49 = arith.constant 0.000000e+00 : f32
    %56 = vector.broadcast %cst_49 : f32 to vector<528x64xf32>
    %57 = arith.maximumf %55, %56 : vector<528x64xf32>
    %c0_50 = arith.constant 0 : index
    %c0_51 = arith.constant 0 : index
    %c0_52 = arith.constant 0 : index
    %58 = vector.load %arg4[%c0_50, %c0_51, %c0_52] : memref<1x528x64xf32, #tpu.memory_space<vmem>>, vector<1x528x64xf32>
    %59 = vector.shape_cast %58 : vector<1x528x64xf32> to vector<528x64xf32>
    %60 = vector.shape_cast %57 : vector<528x64xf32> to vector<1x528x64xf32>
    tpu.vector_store %arg4[%c0_50, %c0_51, %c0_52], %60 {strides = array<i32>} : memref<1x528x64xf32, #tpu.memory_space<vmem>>, vector<1x528x64xf32>,
    return
  }
  func.func @transform_0(%arg0: i32) -> (i32, i32, i32) {
    %c0_i32 = arith.constant 0 : i32
    %c0_i32_0 = arith.constant 0 : i32
    %c0_i32_1 = arith.constant 0 : i32
    return %arg0, %c0_i32, %c0_i32_0 : i32, i32, i32
  }
  func.func @transform_1(%arg0: i32) -> (i32, i32, i32) {
    %c0_i32 = arith.constant 0 : i32
    %c0_i32_0 = arith.constant 0 : i32
    %c0_i32_1 = arith.constant 0 : i32
    %c0_i32_2 = arith.constant 0 : i32
    return %c0_i32, %c0_i32_0, %c0_i32_1 : i32, i32, i32
  }
  func.func @transform_2(%arg0: i32) -> (i32, i32) {
    %c0_i32 = arith.constant 0 : i32
    %c0_i32_0 = arith.constant 0 : i32
    %c0_i32_1 = arith.constant 0 : i32
    return %c0_i32, %c0_i32_0 : i32, i32
  }
  func.func @transform_3(%arg0: i32) -> (i32, i32, i32) {
    %c0_i32 = arith.constant 0 : i32
    %c0_i32_0 = arith.constant 0 : i32
    %c0_i32_1 = arith.constant 0 : i32
    return %arg0, %c0_i32, %c0_i32_0 : i32, i32, i32
  }
}

module attributes {stable_mosaic.version = 11 : i64} {
  func.func @_mlp_kernel(%arg0: i32, %arg1: memref<2x7744xf32, #tpu.memory_space<vmem>>, %arg2: memref<7744x128xf32, #tpu.memory_space<vmem>>, %arg3: memref<1x128xf32, #tpu.memory_space<vmem>>, %arg4: memref<128x2xf32, #tpu.memory_space<vmem>>, %arg5: memref<1x2xf32, #tpu.memory_space<vmem>>, %arg6: memref<2x2xf32, #tpu.memory_space<vmem>>) attributes {dimension_semantics = [#tpu.dimension_semantics<arbitrary>], iteration_bounds = array<i64: 1>, scalar_prefetch = 0 : i64, scratch_operands = 0 : i64, tpu.core_type = #tpu.core_type<tc>, window_params = [{pipeline_mode = #tpu.pipeline_mode<synchronous>, transform_indices = @transform_0, window_bounds = array<i64: 2, 7744>}, {pipeline_mode = #tpu.pipeline_mode<synchronous>, transform_indices = @transform_1, window_bounds = array<i64: 7744, 128>}, {pipeline_mode = #tpu.pipeline_mode<synchronous>, transform_indices = @transform_2, window_bounds = array<i64: 1, 128>}, {pipeline_mode = #tpu.pipeline_mode<synchronous>, transform_indices = @transform_3, window_bounds = array<i64: 128, 2>}, {pipeline_mode = #tpu.pipeline_mode<synchronous>, transform_indices = @transform_4, window_bounds = array<i64: 1, 2>}, {pipeline_mode = #tpu.pipeline_mode<synchronous>, transform_indices = @transform_5, window_bounds = array<i64: 2, 2>}]} {
    %c0 = arith.constant 0 : index
    %c0_0 = arith.constant 0 : index
    %0 = vector.load %arg1[%c0, %c0_0] : memref<2x7744xf32, #tpu.memory_space<vmem>>, vector<2x7744xf32>
    %c0_1 = arith.constant 0 : index
    %c0_2 = arith.constant 0 : index
    %1 = vector.load %arg2[%c0_1, %c0_2] : memref<7744x128xf32, #tpu.memory_space<vmem>>, vector<7744x128xf32>
    %cst = arith.constant dense<0.000000e+00> : vector<2x128xf32>
    %2 = tpu.matmul %0, %1, %cst {dimension_numbers = #tpu.dot_dimension_numbers<[1], [0], [0], [1], [0, 0, 1, 1], [], []>} : vector<2x7744xf32>, vector<7744x128xf32>, vector<2x128xf32> -> vector<2x128xf32>
    %c0_3 = arith.constant 0 : index
    %c0_4 = arith.constant 0 : index
    %3 = vector.load %arg3[%c0_3, %c0_4] : memref<1x128xf32, #tpu.memory_space<vmem>>, vector<1x128xf32>
    %4 = vector.broadcast %3 : vector<1x128xf32> to vector<2x128xf32>
    %5 = arith.addf %2, %4 : vector<2x128xf32>
    %cst_5 = arith.constant 0.000000e+00 : f32
    %6 = vector.broadcast %cst_5 : f32 to vector<2x128xf32>
    %7 = arith.maximumf %5, %6 : vector<2x128xf32>
    %c0_6 = arith.constant 0 : index
    %c0_7 = arith.constant 0 : index
    %8 = vector.load %arg4[%c0_6, %c0_7] : memref<128x2xf32, #tpu.memory_space<vmem>>, vector<128x2xf32>
    %cst_8 = arith.constant dense<0.000000e+00> : vector<2x2xf32>
    %9 = tpu.matmul %7, %8, %cst_8 {dimension_numbers = #tpu.dot_dimension_numbers<[1], [0], [0], [1], [0, 0, 1, 1], [], []>} : vector<2x128xf32>, vector<128x2xf32>, vector<2x2xf32> -> vector<2x2xf32>
    %c0_9 = arith.constant 0 : index
    %c0_10 = arith.constant 0 : index
    %10 = vector.load %arg5[%c0_9, %c0_10] : memref<1x2xf32, #tpu.memory_space<vmem>>, vector<1x2xf32>
    %11 = vector.broadcast %10 : vector<1x2xf32> to vector<2x2xf32>
    %12 = arith.addf %9, %11 : vector<2x2xf32>
    %c0_11 = arith.constant 0 : index
    %c0_12 = arith.constant 0 : index
    %13 = vector.load %arg6[%c0_11, %c0_12] : memref<2x2xf32, #tpu.memory_space<vmem>>, vector<2x2xf32>
    tpu.vector_store %arg6[%c0_11, %c0_12], %12 {strides = array<i32>} : memref<2x2xf32, #tpu.memory_space<vmem>>, vector<2x2xf32>,
    return
  }
  func.func @transform_0(%arg0: i32) -> (i32, i32) {
    %c0_i32 = arith.constant 0 : i32
    %c0_i32_0 = arith.constant 0 : i32
    %c0_i32_1 = arith.constant 0 : i32
    return %c0_i32, %c0_i32_0 : i32, i32
  }
  func.func @transform_1(%arg0: i32) -> (i32, i32) {
    %c0_i32 = arith.constant 0 : i32
    %c0_i32_0 = arith.constant 0 : i32
    %c0_i32_1 = arith.constant 0 : i32
    return %c0_i32, %c0_i32_0 : i32, i32
  }
  func.func @transform_2(%arg0: i32) -> (i32, i32) {
    %c0_i32 = arith.constant 0 : i32
    %c0_i32_0 = arith.constant 0 : i32
    %c0_i32_1 = arith.constant 0 : i32
    return %c0_i32, %c0_i32_0 : i32, i32
  }
  func.func @transform_3(%arg0: i32) -> (i32, i32) {
    %c0_i32 = arith.constant 0 : i32
    %c0_i32_0 = arith.constant 0 : i32
    %c0_i32_1 = arith.constant 0 : i32
    return %c0_i32, %c0_i32_0 : i32, i32
  }
  func.func @transform_4(%arg0: i32) -> (i32, i32) {
    %c0_i32 = arith.constant 0 : i32
    %c0_i32_0 = arith.constant 0 : i32
    %c0_i32_1 = arith.constant 0 : i32
    return %c0_i32, %c0_i32_0 : i32, i32
  }
  func.func @transform_5(%arg0: i32) -> (i32, i32) {
    %c0_i32 = arith.constant 0 : i32
    %c0_i32_0 = arith.constant 0 : i32
    %c0_i32_1 = arith.constant 0 : i32
    return %c0_i32, %c0_i32_0 : i32, i32
  }
}

</mosaic_0001>

<bundles_post_ra>
// kernel: cnn1_forward.3
= control target key start
LH: loop header
LB: loop body
LE: loop exit
PB: predicated region body
PF: predicated region fallthrough
CT: control target
= control target key end

     0   :  { %s3312_s12 = smov 0   ;;  %s4866_s0 = inlined_call_operand.vmem [shape: f32[2,2400,9], index: 0, kind: input, shape index: {}]   ;;  %s4867_s1 = inlined_call_operand.vmem [shape: f32[9,32], index: 1, kind: input, shape index: {}]   ;;  %s4868_s2 = inlined_call_operand.vmem [shape: f32[1,32], index: 2, kind: input, shape index: {}]   ;;  %s4869_s3 = inlined_call_operand.vmem [shape: f32[2,2400,32], index: 3, kind: output, shape index: {}]  }
   0x1 LB: > { %s2955_s13 = sadd.s32 4294967295, %s3290_s12   ;;  %p2959_p0 = scmp.ge.s32.totalorder %s3290_s12, 1  ;;  %s3290_s12 = sphi %s3312_s12, %s13_s12  }
   0x2   : > { %p137_p1 = scmp.lt.s32.totalorder %s3290_s12, 3 }
   0x4   : > { %p138_p2 = pnand %p2959_p0, %p137_p1 }
   0x5   : > { %p161_p3 = scmp.lt.s32.totalorder (!%p138_p2), %s2955_s13, 1 }
   0x6   : > { %141 = sbr.rel (%p138_p2) target bundleno = 746 (0x2ea), region = 32 }
   0xb   : > { %v472_v0 = vld [vmem:[%s4867_s1 + $0x8] sm:$0x1]  ;;  %vm1378_vm0 = vcmask 1040384   ;;  %v471_v1 = vld [vmem:[%s4867_s1] sm:$0xff]  ;;  %s4871_s13 = smov (!%p161_p3, %s2955_s13), 1  ;;  %vm477_vm1 = vcmask 72704  }
   0xc   : > { %3266 = vmatpush.msk.msra.mxu2 %vm1378_vm0, %v472_v0  ;;  %3267 = vmatpush.msk.msra.mxu3 %vm1378_vm0, %v472_v0  ;;  %s3271_s18 = smul.u32 2400, %s4871_s13  ;;  %vm2599_vm2 = vcmask 261120  }
   0xd   : > { %2962 = vmatpush.msk.msra.mxu0 %vm1378_vm0, %v472_v0  ;;  %3265 = vmatpush.msk.msra.mxu1 %vm1378_vm0, %v472_v0 }
   0xe   : > { %3269 = vmatpush.msra.mxu2 %v471_v1  ;;  %3270 = vmatpush.msra.mxu3 %v471_v1  ;;  %s3334_s21 = scalar_lea.vmem %s4866_s0, %s3271_s18  ;;  %s3480_s26 = scalar_lea.vmem %s4869_s3, %s3271_s18 }
   0xf   : > { %1397 = vmatpush.msra.mxu0 %v471_v1  ;;  %3268 = vmatpush.msra.mxu1 %v471_v1  ;;  %v321_v2 = vld [vmem:[%s3334_s21 + $0x4b0] sm:$0xff]  ;;  %v396_v3 = vld [vmem:[%s3334_s21 + $0x708] sm:$0xff]  ;;  %v171_v4 = vld [vmem:[%s3334_s21] sm:$0xff] }
  0x10   : > { %3113 = vmatmul.msk.f32.vlgmr.msra.gmra.mxu2 %vm477_vm1, %v321_v2  ;;  %3188 = vmatmul.msk.f32.vlgmr.msra.gmra.mxu3 %vm477_vm1, %v396_v3  ;;  %v246_v5 = vld [vmem:[%s3334_s21 + $0x258] sm:$0xff]  ;;  %v397_v7 = vld [vmem:[%s3334_s21 + $0x710] sm:$0xff]  ;;  %v172_v8 = vld [vmem:[%s3334_s21 + $0x8] sm:$0xff] }
  0x11   : > { %2963 = vmatmul.msk.f32.vlgmr.msra.gmra.mxu0 %vm477_vm1, %v171_v4  ;;  %3038 = vmatmul.msk.f32.vlgmr.msra.gmra.mxu1 %vm477_vm1, %v246_v5  ;;  %v322_v6 = vld [vmem:[%s3334_s21 + $0x4b8] sm:$0xff]  ;;  %v247_v9 = vld [vmem:[%s3334_s21 + $0x260] sm:$0xff]  ;;  %v173_v12 = vld [vmem:[%s3334_s21 + $0x10] sm:$0xff] }
  0x12   : > { %v323_v10 = vld [vmem:[%s3334_s21 + $0x4c0] sm:$0xff]  ;;  %v398_v11 = vld [vmem:[%s3334_s21 + $0x718] sm:$0xff]  ;;  %v248_v13 = vld [vmem:[%s3334_s21 + $0x268] sm:$0xff] }
  0x13   : > { %v324_v14 = vld [vmem:[%s3334_s21 + $0x4c8] sm:$0xff]  ;;  %v399_v15 = vld [vmem:[%s3334_s21 + $0x720] sm:$0xff]  ;;  %v174_v16 = vld [vmem:[%s3334_s21 + $0x18] sm:$0xff] }
  0x14   : > { %v249_v17 = vld [vmem:[%s3334_s21 + $0x270] sm:$0xff]  ;;  %v400_v19 = vld [vmem:[%s3334_s21 + $0x728] sm:$0xff]  ;;  %v175_v20 = vld [vmem:[%s3334_s21 + $0x20] sm:$0xff] }
  0x15   : > { %v325_v18 = vld [vmem:[%s3334_s21 + $0x4d0] sm:$0xff]  ;;  %v250_v21 = vld [vmem:[%s3334_s21 + $0x278] sm:$0xff]  ;;  %v176_v24 = vld [vmem:[%s3334_s21 + $0x28] sm:$0xff] }
  0x16   : > { %v326_v22 = vld [vmem:[%s3334_s21 + $0x4d8] sm:$0xff]  ;;  %v401_v23 = vld [vmem:[%s3334_s21 + $0x730] sm:$0xff]  ;;  %v251_v25 = vld [vmem:[%s3334_s21 + $0x280] sm:$0xff] }
  0x17   : > { %v327_v26 = vld [vmem:[%s3334_s21 + $0x4e0] sm:$0xff]  ;;  %v402_v27 = vld [vmem:[%s3334_s21 + $0x738] sm:$0xff]  ;;  %v177_v28 = vld [vmem:[%s3334_s21 + $0x30] sm:$0xff] }
  0x18   : > { %3114 = vmatmul.msk.f32.gmra.mxu2 %vm477_vm1, %v322_v6  ;;  %3189 = vmatmul.msk.f32.gmra.mxu3 %vm477_vm1, %v397_v7  ;;  %v252_v29 = vld [vmem:[%s3334_s21 + $0x288] sm:$0xff]  ;;  %v403_v31 = vld [vmem:[%s3334_s21 + $0x740] sm:$0xff]  ;;  %v178_v32 = vld [vmem:[%s3334_s21 + $0x38] sm:$0xff] }
  0x19   : > { %2964 = vmatmul.msk.f32.gmra.mxu0 %vm477_vm1, %v172_v8  ;;  %3039 = vmatmul.msk.f32.gmra.mxu1 %vm477_vm1, %v247_v9  ;;  %v328_v30 = vld [vmem:[%s3334_s21 + $0x4e8] sm:$0xff]  ;;  %v253_v33 = vld [vmem:[%s3334_s21 + $0x290] sm:$0xff]  ;;  %v179_v36 = vld [vmem:[%s3334_s21 + $0x40] sm:$0xff] }
  0x1a   : > { %v329_v34 = vld [vmem:[%s3334_s21 + $0x4f0] sm:$0xff]  ;;  %v404_v35 = vld [vmem:[%s3334_s21 + $0x748] sm:$0xff]  ;;  %v254_v37 = vld [vmem:[%s3334_s21 + $0x298] sm:$0xff] }
  0x1b   : > { %v330_v38 = vld [vmem:[%s3334_s21 + $0x4f8] sm:$0xff]  ;;  %v405_v39 = vld [vmem:[%s3334_s21 + $0x750] sm:$0xff]  ;;  %v180_v40 = vld [vmem:[%s3334_s21 + $0x48] sm:$0xff] }
  0x1c   : > { %v255_v41 = vld [vmem:[%s3334_s21 + $0x2a0] sm:$0xff]  ;;  %v406_v43 = vld [vmem:[%s3334_s21 + $0x758] sm:$0xff]  ;;  %v181_v44 = vld [vmem:[%s3334_s21 + $0x50] sm:$0xff] }
  0x1d   : > { %v331_v42 = vld [vmem:[%s3334_s21 + $0x500] sm:$0xff]  ;;  %v256_v45 = vld [vmem:[%s3334_s21 + $0x2a8] sm:$0xff]  ;;  %v182_v48 = vld [vmem:[%s3334_s21 + $0x58] sm:$0xff] }
  0x1e   : > { %v332_v46 = vld [vmem:[%s3334_s21 + $0x508] sm:$0xff]  ;;  %v407_v47 = vld [vmem:[%s3334_s21 + $0x760] sm:$0xff]  ;;  %v257_v49 = vld [vmem:[%s3334_s21 + $0x2b0] sm:$0xff] }
  0x1f   : > { %v333_v50 = vld [vmem:[%s3334_s21 + $0x510] sm:$0xff]  ;;  %v408_v51 = vld [vmem:[%s3334_s21 + $0x768] sm:$0xff]  ;;  %v183_v52 = vld [vmem:[%s3334_s21 + $0x60] sm:$0xff] }
  0x20   : > { %3115 = vmatmul.msk.f32.gmra.mxu2 %vm477_vm1, %v323_v10  ;;  %3190 = vmatmul.msk.f32.gmra.mxu3 %vm477_vm1, %v398_v11  ;;  %v258_v53 = vld [vmem:[%s3334_s21 + $0x2b8] sm:$0xff]  ;;  %v409_v55 = vld [vmem:[%s3334_s21 + $0x770] sm:$0xff]  ;;  %v184_v56 = vld [vmem:[%s3334_s21 + $0x68] sm:$0xff] }
  0x21   : > { %2965 = vmatmul.msk.f32.gmra.mxu0 %vm477_vm1, %v173_v12  ;;  %3040 = vmatmul.msk.f32.gmra.mxu1 %vm477_vm1, %v248_v13  ;;  %v334_v54 = vld [vmem:[%s3334_s21 + $0x518] sm:$0xff]  ;;  %v259_v57 = vld [vmem:[%s3334_s21 + $0x2c0] sm:$0xff]  ;;  %v185_v60 = vld [vmem:[%s3334_s21 + $0x70] sm:$0xff] }
  0x22   : > { %v335_v58 = vld [vmem:[%s3334_s21 + $0x520] sm:$0xff]  ;;  %v410_v59 = vld [vmem:[%s3334_s21 + $0x778] sm:$0xff]  ;;  %v260_v61 = vld [vmem:[%s3334_s21 + $0x2c8] sm:$0xff] }
  0x23   : > { %v336_v62 = vld [vmem:[%s3334_s21 + $0x528] sm:$0xff]  ;;  %v411_v63 = vld [vmem:[%s3334_s21 + $0x780] sm:$0xff]  ;;  %v186_v0 = vld [vmem:[%s3334_s21 + $0x78] sm:$0xff] }
  0x24   : > { %v261_v1 = vld [vmem:[%s3334_s21 + $0x2d0] sm:$0xff]  ;;  %v3467_v2 = vld [vmem:[%s4868_s2] ss:$0 sm:$0xff]  ;;  %v412_v4 = vld [vmem:[%s3334_s21 + $0x788] sm:$0xff] }
  0x25   : > { %v337_v3 = vld [vmem:[%s3334_s21 + $0x530] sm:$0xff]  ;;  %v187_v7 = vld [vmem:[%s3334_s21 + $0x80] sm:$0xff]  ;;  %v262_v8 = vld [vmem:[%s3334_s21 + $0x2d8] sm:$0xff] }
  0x28   : > { %3116 = vmatmul.msk.f32.gmra.mxu2 %vm477_vm1, %v324_v14  ;;  %3191 = vmatmul.msk.f32.gmra.mxu3 %vm477_vm1, %v399_v15 }
  0x29   : > { %2966 = vmatmul.msk.f32.gmra.mxu0 %vm477_vm1, %v174_v16  ;;  %3041 = vmatmul.msk.f32.gmra.mxu1 %vm477_vm1, %v249_v17  ;;  %v338_v17 = vld [vmem:[%s3334_s21 + $0x538] sm:$0xff] }
  0x30   : > { %3117 = vmatmul.msk.f32.gmra.mxu2 %vm477_vm1, %v325_v18  ;;  %3192 = vmatmul.msk.f32.gmra.mxu3 %vm477_vm1, %v400_v19  ;;  %v413_v18 = vld [vmem:[%s3334_s21 + $0x790] sm:$0xff] }
  0x31   : > { %2967 = vmatmul.msk.f32.gmra.mxu0 %vm477_vm1, %v175_v20  ;;  %3042 = vmatmul.msk.f32.gmra.mxu1 %vm477_vm1, %v250_v21 }
  0x38   : > { %3118 = vmatmul.msk.f32.gmra.mxu2 %vm477_vm1, %v326_v22  ;;  %3193 = vmatmul.msk.f32.gmra.mxu3 %vm477_vm1, %v401_v23  ;;  %v188_v23 = vld [vmem:[%s3334_s21 + $0x88] sm:$0xff] }
  0x39   : > { %2968 = vmatmul.msk.f32.gmra.mxu0 %vm477_vm1, %v176_v24  ;;  %3043 = vmatmul.msk.f32.gmra.mxu1 %vm477_vm1, %v251_v25  ;;  %v263_v24 = vld [vmem:[%s3334_s21 + $0x2e0] sm:$0xff] }
  0x40   : > { %3119 = vmatmul.msk.f32.gmra.mxu2 %vm477_vm1, %v327_v26  ;;  %3194 = vmatmul.msk.f32.gmra.mxu3 %vm477_vm1, %v402_v27 }
  0x41   : > { %2969 = vmatmul.msk.f32.gmra.mxu0 %vm477_vm1, %v177_v28  ;;  %3044 = vmatmul.msk.f32.gmra.mxu1 %vm477_vm1, %v252_v29 }
  0x48   : > { %3120 = vmatmul.msk.f32.gmra.mxu2 %vm477_vm1, %v328_v30  ;;  %3195 = vmatmul.msk.f32.gmra.mxu3 %vm477_vm1, %v403_v31 }
  0x49   : > { %2970 = vmatmul.msk.f32.gmra.mxu0 %vm477_vm1, %v178_v32  ;;  %3045 = vmatmul.msk.f32.gmra.mxu1 %vm477_vm1, %v253_v33  ;;  %v339_v33 = vld [vmem:[%s3334_s21 + $0x540] sm:$0xff] }
  0x50   : > { %3121 = vmatmul.msk.f32.gmra.mxu2 %vm477_vm1, %v329_v34  ;;  %3196 = vmatmul.msk.f32.gmra.mxu3 %vm477_vm1, %v404_v35  ;;  %v414_v34 = vld [vmem:[%s3334_s21 + $0x798] sm:$0xff] }
  0x51   : > { %2971 = vmatmul.msk.f32.gmra.mxu0 %vm477_vm1, %v179_v36  ;;  %3046 = vmatmul.msk.f32.gmra.mxu1 %vm477_vm1, %v254_v37 }
  0x58   : > { %3122 = vmatmul.msk.f32.gmra.mxu2 %vm477_vm1, %v330_v38  ;;  %3197 = vmatmul.msk.f32.gmra.mxu3 %vm477_vm1, %v405_v39  ;;  %v189_v39 = vld [vmem:[%s3334_s21 + $0x90] sm:$0xff] }
  0x59   : > { %2972 = vmatmul.msk.f32.gmra.mxu0 %vm477_vm1, %v180_v40  ;;  %3047 = vmatmul.msk.f32.gmra.mxu1 %vm477_vm1, %v255_v41  ;;  %v264_v40 = vld [vmem:[%s3334_s21 + $0x2e8] sm:$0xff] }
  0x60   : > { %3123 = vmatmul.msk.f32.gmra.mxu2 %vm477_vm1, %v331_v42  ;;  %3198 = vmatmul.msk.f32.gmra.mxu3 %vm477_vm1, %v406_v43 }
  0x61   : > { %2973 = vmatmul.msk.f32.gmra.mxu0 %vm477_vm1, %v181_v44  ;;  %3048 = vmatmul.msk.f32.gmra.mxu1 %vm477_vm1, %v256_v45 }
  0x68   : > { %3124 = vmatmul.msk.f32.gmra.mxu2 %vm477_vm1, %v332_v46  ;;  %3199 = vmatmul.msk.f32.gmra.mxu3 %vm477_vm1, %v407_v47 }
  0x69   : > { %2974 = vmatmul.msk.f32.gmra.mxu0 %vm477_vm1, %v182_v48  ;;  %3049 = vmatmul.msk.f32.gmra.mxu1 %vm477_vm1, %v257_v49  ;;  %v340_v49 = vld [vmem:[%s3334_s21 + $0x548] sm:$0xff] }
  0x70   : > { %3125 = vmatmul.msk.f32.gmra.mxu2 %vm477_vm1, %v333_v50  ;;  %3200 = vmatmul.msk.f32.gmra.mxu3 %vm477_vm1, %v408_v51  ;;  %v415_v50 = vld [vmem:[%s3334_s21 + $0x7a0] sm:$0xff] }
  0x71   : > { %2975 = vmatmul.msk.f32.gmra.mxu0 %vm477_vm1, %v183_v52  ;;  %3050 = vmatmul.msk.f32.gmra.mxu1 %vm477_vm1, %v258_v53 }
  0x78   : > { %3126 = vmatmul.msk.f32.gmra.mxu2 %vm477_vm1, %v334_v54  ;;  %3201 = vmatmul.msk.f32.gmra.mxu3 %vm477_vm1, %v409_v55  ;;  %v190_v55 = vld [vmem:[%s3334_s21 + $0x98] sm:$0xff] }
  0x79   : > { %2976 = vmatmul.msk.f32.gmra.mxu0 %vm477_vm1, %v184_v56  ;;  %3051 = vmatmul.msk.f32.gmra.mxu1 %vm477_vm1, %v259_v57  ;;  %v265_v56 = vld [vmem:[%s3334_s21 + $0x2f0] sm:$0xff] }
  0x80   : > { %3127 = vmatmul.msk.f32.gmra.mxu2 %vm477_vm1, %v335_v58  ;;  %3202 = vmatmul.msk.f32.gmra.mxu3 %vm477_vm1, %v410_v59 }
  0x81   : > { %2977 = vmatmul.msk.f32.gmra.mxu0 %vm477_vm1, %v185_v60  ;;  %3052 = vmatmul.msk.f32.gmra.mxu1 %vm477_vm1, %v260_v61 }
  0x88   : > { %3128 = vmatmul.msk.f32.gmra.mxu2 %vm477_vm1, %v336_v62  ;;  %3203 = vmatmul.msk.f32.gmra.mxu3 %vm477_vm1, %v411_v63 }
  0x89   : > { %2978 = vmatmul.msk.f32.gmra.mxu0 %vm477_vm1, %v186_v0  ;;  %3053 = vmatmul.msk.f32.gmra.mxu1 %vm477_vm1, %v261_v1  ;;  %v341_v1 = vld [vmem:[%s3334_s21 + $0x550] sm:$0xff] }
  0x8e   : > { %v1399_v5 = vpop.f32.mrf.mxu0  ;;  %v1624_v6 = vpop.f32.mrf.mxu1 }
  0x8f   : > { %v1400_v9 = vadd.f32 %v3467_v2, %v1399_v5  ;;  %v1625_v10 = vadd.f32 %v3467_v2, %v1624_v6 }
  0x90   : > { %3129 = vmatmul.msk.f32.gmra.mxu2 %vm477_vm1, %v337_v3  ;;  %3204 = vmatmul.msk.f32.gmra.mxu3 %vm477_vm1, %v412_v4  ;;  %v416_v3 = vld [vmem:[%s3334_s21 + $0x7a8] sm:$0xff] }
  0x91   : > { %v2299_v11 = vmax.f32 %v1400_v9, 0.0  ;;  %v2374_v12 = vmax.f32 %v1625_v10, 0.0  ;;  %2979 = vmatmul.msk.f32.gmra.mxu0 %vm477_vm1, %v187_v7  ;;  %3054 = vmatmul.msk.f32.gmra.mxu1 %vm477_vm1, %v262_v8  ;;  %v191_v8 = vld [vmem:[%s3334_s21 + $0xa0] sm:$0xff]  ;;  %v266_v9 = vld [vmem:[%s3334_s21 + $0x2f8] sm:$0xff] }
  0x93   : > { %2600 = vst.msk [vmem:[%s3480_s26] sm:$0xff] %vm2599_vm2, %v2299_v11  ;;  %v1849_v13 = vpop.f32.mrf.mxu2  ;;  %v2074_v14 = vpop.f32.mrf.mxu3 }
  0x94   : > { %2675 = vst.msk [vmem:[%s3480_s26 + $0x258] sm:$0xff] %vm2599_vm2, %v2374_v12  ;;  %v1850_v15 = vadd.f32 %v3467_v2, %v1849_v13  ;;  %v2075_v16 = vadd.f32 %v3467_v2, %v2074_v14 }
  0x96   : > { %v2449_v19 = vmax.f32 %v1850_v15, 0.0  ;;  %v2524_v20 = vmax.f32 %v2075_v16, 0.0  ;;  %v1402_v21 = vpop.f32.mrf.mxu0  ;;  %v1627_v22 = vpop.f32.mrf.mxu1 }
  0x97   : > { %v1403_v25 = vadd.f32 %v3467_v2, %v1402_v21  ;;  %v1628_v26 = vadd.f32 %v3467_v2, %v1627_v22 }
  0x98   : > { %2750 = vst.msk [vmem:[%s3480_s26 + $0x4b0] sm:$0xff] %vm2599_vm2, %v2449_v19  ;;  %3130 = vmatmul.msk.f32.gmra.mxu2 %vm477_vm1, %v338_v17  ;;  %3205 = vmatmul.msk.f32.gmra.mxu3 %vm477_vm1, %v413_v18  ;;  %v342_v18 = vld [vmem:[%s3334_s21 + $0x558] sm:$0xff]  ;;  %v417_v19 = vld [vmem:[%s3334_s21 + $0x7b0] sm:$0xff] }
  0x99   : > { %2825 = vst.msk [vmem:[%s3480_s26 + $0x708] sm:$0xff] %vm2599_vm2, %v2524_v20  ;;  %v2300_v27 = vmax.f32 %v1403_v25, 0.0  ;;  %v2375_v28 = vmax.f32 %v1628_v26, 0.0  ;;  %2980 = vmatmul.msk.f32.gmra.mxu0 %vm477_vm1, %v188_v23  ;;  %3055 = vmatmul.msk.f32.gmra.mxu1 %vm477_vm1, %v263_v24  ;;  %v192_v24 = vld [vmem:[%s3334_s21 + $0xa8] sm:$0xff]  ;;  %v267_v25 = vld [vmem:[%s3334_s21 + $0x300] sm:$0xff] }
  0x9b   : > { %2601 = vst.msk [vmem:[%s3480_s26 + $0x8] sm:$0xff] %vm2599_vm2, %v2300_v27  ;;  %v1852_v29 = vpop.f32.mrf.mxu2  ;;  %v2077_v30 = vpop.f32.mrf.mxu3 }
  0x9c   : > { %2676 = vst.msk [vmem:[%s3480_s26 + $0x260] sm:$0xff] %vm2599_vm2, %v2375_v28  ;;  %v1853_v31 = vadd.f32 %v3467_v2, %v1852_v29  ;;  %v2078_v32 = vadd.f32 %v3467_v2, %v2077_v30 }
  0x9e   : > { %v2450_v35 = vmax.f32 %v1853_v31, 0.0  ;;  %v2525_v36 = vmax.f32 %v2078_v32, 0.0  ;;  %v1405_v37 = vpop.f32.mrf.mxu0  ;;  %v1630_v38 = vpop.f32.mrf.mxu1 }
  0x9f   : > { %v1406_v41 = vadd.f32 %v3467_v2, %v1405_v37  ;;  %v1631_v42 = vadd.f32 %v3467_v2, %v1630_v38 }
  0xa0   : > { %2751 = vst.msk [vmem:[%s3480_s26 + $0x4b8] sm:$0xff] %vm2599_vm2, %v2450_v35  ;;  %3131 = vmatmul.msk.f32.gmra.mxu2 %vm477_vm1, %v339_v33  ;;  %3206 = vmatmul.msk.f32.gmra.mxu3 %vm477_vm1, %v414_v34  ;;  %v343_v34 = vld [vmem:[%s3334_s21 + $0x560] sm:$0xff]  ;;  %v418_v35 = vld [vmem:[%s3334_s21 + $0x7b8] sm:$0xff] }
  0xa1   : > { %2826 = vst.msk [vmem:[%s3480_s26 + $0x710] sm:$0xff] %vm2599_vm2, %v2525_v36  ;;  %v2301_v43 = vmax.f32 %v1406_v41, 0.0  ;;  %v2376_v44 = vmax.f32 %v1631_v42, 0.0  ;;  %2981 = vmatmul.msk.f32.gmra.mxu0 %vm477_vm1, %v189_v39  ;;  %3056 = vmatmul.msk.f32.gmra.mxu1 %vm477_vm1, %v264_v40  ;;  %v193_v40 = vld [vmem:[%s3334_s21 + $0xb0] sm:$0xff]  ;;  %v268_v41 = vld [vmem:[%s3334_s21 + $0x308] sm:$0xff] }
  0xa3   : > { %2602 = vst.msk [vmem:[%s3480_s26 + $0x10] sm:$0xff] %vm2599_vm2, %v2301_v43  ;;  %v1855_v45 = vpop.f32.mrf.mxu2  ;;  %v2080_v46 = vpop.f32.mrf.mxu3 }
  0xa4   : > { %2677 = vst.msk [vmem:[%s3480_s26 + $0x268] sm:$0xff] %vm2599_vm2, %v2376_v44  ;;  %v1856_v47 = vadd.f32 %v3467_v2, %v1855_v45  ;;  %v2081_v48 = vadd.f32 %v3467_v2, %v2080_v46 }
  0xa6   : > { %v2451_v51 = vmax.f32 %v1856_v47, 0.0  ;;  %v2526_v52 = vmax.f32 %v2081_v48, 0.0  ;;  %v1408_v53 = vpop.f32.mrf.mxu0  ;;  %v1633_v54 = vpop.f32.mrf.mxu1 }
  0xa7   : > { %v1409_v57 = vadd.f32 %v3467_v2, %v1408_v53  ;;  %v1634_v58 = vadd.f32 %v3467_v2, %v1633_v54 }
  0xa8   : > { %2752 = vst.msk [vmem:[%s3480_s26 + $0x4c0] sm:$0xff] %vm2599_vm2, %v2451_v51  ;;  %3132 = vmatmul.msk.f32.gmra.mxu2 %vm477_vm1, %v340_v49  ;;  %3207 = vmatmul.msk.f32.gmra.mxu3 %vm477_vm1, %v415_v50  ;;  %v344_v50 = vld [vmem:[%s3334_s21 + $0x568] sm:$0xff]  ;;  %v419_v51 = vld [vmem:[%s3334_s21 + $0x7c0] sm:$0xff] }
  0xa9   : > { %2827 = vst.msk [vmem:[%s3480_s26 + $0x718] sm:$0xff] %vm2599_vm2, %v2526_v52  ;;  %v2302_v59 = vmax.f32 %v1409_v57, 0.0  ;;  %v2377_v60 = vmax.f32 %v1634_v58, 0.0  ;;  %2982 = vmatmul.msk.f32.gmra.mxu0 %vm477_vm1, %v190_v55  ;;  %3057 = vmatmul.msk.f32.gmra.mxu1 %vm477_vm1, %v265_v56  ;;  %v194_v56 = vld [vmem:[%s3334_s21 + $0xb8] sm:$0xff]  ;;  %v269_v57 = vld [vmem:[%s3334_s21 + $0x310] sm:$0xff] }
  0xab   : > { %2603 = vst.msk [vmem:[%s3480_s26 + $0x18] sm:$0xff] %vm2599_vm2, %v2302_v59  ;;  %v1858_v61 = vpop.f32.mrf.mxu2  ;;  %v2083_v62 = vpop.f32.mrf.mxu3 }
  0xac   : > { %2678 = vst.msk [vmem:[%s3480_s26 + $0x270] sm:$0xff] %vm2599_vm2, %v2377_v60  ;;  %v1859_v63 = vadd.f32 %v3467_v2, %v1858_v61  ;;  %v2084_v0 = vadd.f32 %v3467_v2, %v2083_v62 }
  0xae   : > { %v2452_v4 = vmax.f32 %v1859_v63, 0.0  ;;  %v2527_v5 = vmax.f32 %v2084_v0, 0.0  ;;  %v1411_v6 = vpop.f32.mrf.mxu0  ;;  %v1636_v7 = vpop.f32.mrf.mxu1 }
  0xaf   : > { %v1412_v10 = vadd.f32 %v3467_v2, %v1411_v6  ;;  %v1637_v11 = vadd.f32 %v3467_v2, %v1636_v7 }
  0xb0   : > { %2753 = vst.msk [vmem:[%s3480_s26 + $0x4c8] sm:$0xff] %vm2599_vm2, %v2452_v4  ;;  %3133 = vmatmul.msk.f32.gmra.mxu2 %vm477_vm1, %v341_v1  ;;  %3208 = vmatmul.msk.f32.gmra.mxu3 %vm477_vm1, %v416_v3  ;;  %v345_v3 = vld [vmem:[%s3334_s21 + $0x570] sm:$0xff]  ;;  %v420_v4 = vld [vmem:[%s3334_s21 + $0x7c8] sm:$0xff] }
  0xb1   : > { %2828 = vst.msk [vmem:[%s3480_s26 + $0x720] sm:$0xff] %vm2599_vm2, %v2527_v5  ;;  %v2303_v12 = vmax.f32 %v1412_v10, 0.0  ;;  %v2378_v13 = vmax.f32 %v1637_v11, 0.0  ;;  %2983 = vmatmul.msk.f32.gmra.mxu0 %vm477_vm1, %v191_v8  ;;  %3058 = vmatmul.msk.f32.gmra.mxu1 %vm477_vm1, %v266_v9  ;;  %v195_v9 = vld [vmem:[%s3334_s21 + $0xc0] sm:$0xff]  ;;  %v270_v10 = vld [vmem:[%s3334_s21 + $0x318] sm:$0xff] }
  0xb3   : > { %2604 = vst.msk [vmem:[%s3480_s26 + $0x20] sm:$0xff] %vm2599_vm2, %v2303_v12  ;;  %v1861_v14 = vpop.f32.mrf.mxu2  ;;  %v2086_v15 = vpop.f32.mrf.mxu3 }
  0xb4   : > { %2679 = vst.msk [vmem:[%s3480_s26 + $0x278] sm:$0xff] %vm2599_vm2, %v2378_v13  ;;  %v1862_v16 = vadd.f32 %v3467_v2, %v1861_v14  ;;  %v2087_v17 = vadd.f32 %v3467_v2, %v2086_v15 }
  0xb6   : > { %v2453_v20 = vmax.f32 %v1862_v16, 0.0  ;;  %v2528_v21 = vmax.f32 %v2087_v17, 0.0  ;;  %v1414_v22 = vpop.f32.mrf.mxu0  ;;  %v1639_v23 = vpop.f32.mrf.mxu1 }
  0xb7   : > { %v1415_v26 = vadd.f32 %v3467_v2, %v1414_v22  ;;  %v1640_v27 = vadd.f32 %v3467_v2, %v1639_v23 }
  0xb8   : > { %2754 = vst.msk [vmem:[%s3480_s26 + $0x4d0] sm:$0xff] %vm2599_vm2, %v2453_v20  ;;  %3134 = vmatmul.msk.f32.gmra.mxu2 %vm477_vm1, %v342_v18  ;;  %3209 = vmatmul.msk.f32.gmra.mxu3 %vm477_vm1, %v417_v19  ;;  %v346_v19 = vld [vmem:[%s3334_s21 + $0x578] sm:$0xff]  ;;  %v421_v20 = vld [vmem:[%s3334_s21 + $0x7d0] sm:$0xff] }
  0xb9   : > { %2829 = vst.msk [vmem:[%s3480_s26 + $0x728] sm:$0xff] %vm2599_vm2, %v2528_v21  ;;  %v2304_v28 = vmax.f32 %v1415_v26, 0.0  ;;  %v2379_v29 = vmax.f32 %v1640_v27, 0.0  ;;  %2984 = vmatmul.msk.f32.gmra.mxu0 %vm477_vm1, %v192_v24  ;;  %3059 = vmatmul.msk.f32.gmra.mxu1 %vm477_vm1, %v267_v25  ;;  %v196_v25 = vld [vmem:[%s3334_s21 + $0xc8] sm:$0xff]  ;;  %v271_v26 = vld [vmem:[%s3334_s21 + $0x320] sm:$0xff] }
  0xbb   : > { %2605 = vst.msk [vmem:[%s3480_s26 + $0x28] sm:$0xff] %vm2599_vm2, %v2304_v28  ;;  %v1864_v30 = vpop.f32.mrf.mxu2  ;;  %v2089_v31 = vpop.f32.mrf.mxu3 }
  0xbc   : > { %2680 = vst.msk [vmem:[%s3480_s26 + $0x280] sm:$0xff] %vm2599_vm2, %v2379_v29  ;;  %v1865_v32 = vadd.f32 %v3467_v2, %v1864_v30  ;;  %v2090_v33 = vadd.f32 %v3467_v2, %v2089_v31 }
  0xbe   : > { %v2454_v36 = vmax.f32 %v1865_v32, 0.0  ;;  %v2529_v37 = vmax.f32 %v2090_v33, 0.0  ;;  %v1417_v38 = vpop.f32.mrf.mxu0  ;;  %v1642_v39 = vpop.f32.mrf.mxu1 }
  0xbf   : > { %v1418_v42 = vadd.f32 %v3467_v2, %v1417_v38  ;;  %v1643_v43 = vadd.f32 %v3467_v2, %v1642_v39 }
  0xc0   : > { %2755 = vst.msk [vmem:[%s3480_s26 + $0x4d8] sm:$0xff] %vm2599_vm2, %v2454_v36  ;;  %3135 = vmatmul.msk.f32.gmra.mxu2 %vm477_vm1, %v343_v34  ;;  %3210 = vmatmul.msk.f32.gmra.mxu3 %vm477_vm1, %v418_v35  ;;  %v347_v35 = vld [vmem:[%s3334_s21 + $0x580] sm:$0xff]  ;;  %v422_v36 = vld [vmem:[%s3334_s21 + $0x7d8] sm:$0xff] }
  0xc1   : > { %2830 = vst.msk [vmem:[%s3480_s26 + $0x730] sm:$0xff] %vm2599_vm2, %v2529_v37  ;;  %v2305_v44 = vmax.f32 %v1418_v42, 0.0  ;;  %v2380_v45 = vmax.f32 %v1643_v43, 0.0  ;;  %2985 = vmatmul.msk.f32.gmra.mxu0 %vm477_vm1, %v193_v40  ;;  %3060 = vmatmul.msk.f32.gmra.mxu1 %vm477_vm1, %v268_v41  ;;  %v197_v41 = vld [vmem:[%s3334_s21 + $0xd0] sm:$0xff]  ;;  %v272_v42 = vld [vmem:[%s3334_s21 + $0x328] sm:$0xff] }
  0xc3   : > { %2606 = vst.msk [vmem:[%s3480_s26 + $0x30] sm:$0xff] %vm2599_vm2, %v2305_v44  ;;  %v1867_v46 = vpop.f32.mrf.mxu2  ;;  %v2092_v47 = vpop.f32.mrf.mxu3 }
  0xc4   : > { %2681 = vst.msk [vmem:[%s3480_s26 + $0x288] sm:$0xff] %vm2599_vm2, %v2380_v45  ;;  %v1868_v48 = vadd.f32 %v3467_v2, %v1867_v46  ;;  %v2093_v49 = vadd.f32 %v3467_v2, %v2092_v47 }
  0xc6   : > { %v2455_v52 = vmax.f32 %v1868_v48, 0.0  ;;  %v2530_v53 = vmax.f32 %v2093_v49, 0.0  ;;  %v1420_v54 = vpop.f32.mrf.mxu0  ;;  %v1645_v55 = vpop.f32.mrf.mxu1 }
  0xc7   : > { %v1421_v58 = vadd.f32 %v3467_v2, %v1420_v54  ;;  %v1646_v59 = vadd.f32 %v3467_v2, %v1645_v55 }
  0xc8   : > { %2756 = vst.msk [vmem:[%s3480_s26 + $0x4e0] sm:$0xff] %vm2599_vm2, %v2455_v52  ;;  %3136 = vmatmul.msk.f32.gmra.mxu2 %vm477_vm1, %v344_v50  ;;  %3211 = vmatmul.msk.f32.gmra.mxu3 %vm477_vm1, %v419_v51  ;;  %v348_v51 = vld [vmem:[%s3334_s21 + $0x588] sm:$0xff]  ;;  %v423_v52 = vld [vmem:[%s3334_s21 + $0x7e0] sm:$0xff] }
  0xc9   : > { %2831 = vst.msk [vmem:[%s3480_s26 + $0x738] sm:$0xff] %vm2599_vm2, %v2530_v53  ;;  %v2306_v60 = vmax.f32 %v1421_v58, 0.0  ;;  %v2381_v61 = vmax.f32 %v1646_v59, 0.0  ;;  %2986 = vmatmul.msk.f32.gmra.mxu0 %vm477_vm1, %v194_v56  ;;  %3061 = vmatmul.msk.f32.gmra.mxu1 %vm477_vm1, %v269_v57  ;;  %v198_v57 = vld [vmem:[%s3334_s21 + $0xd8] sm:$0xff]  ;;  %v273_v58 = vld [vmem:[%s3334_s21 + $0x330] sm:$0xff] }
  0xcb   : > { %2607 = vst.msk [vmem:[%s3480_s26 + $0x38] sm:$0xff] %vm2599_vm2, %v2306_v60  ;;  %v1870_v62 = vpop.f32.mrf.mxu2  ;;  %v2095_v63 = vpop.f32.mrf.mxu3 }
  0xcc   : > { %2682 = vst.msk [vmem:[%s3480_s26 + $0x290] sm:$0xff] %vm2599_vm2, %v2381_v61  ;;  %v1871_v0 = vadd.f32 %v3467_v2, %v1870_v62  ;;  %v2096_v1 = vadd.f32 %v3467_v2, %v2095_v63 }
  0xce   : > { %v2456_v5 = vmax.f32 %v1871_v0, 0.0  ;;  %v2531_v6 = vmax.f32 %v2096_v1, 0.0  ;;  %v1423_v7 = vpop.f32.mrf.mxu0  ;;  %v1648_v8 = vpop.f32.mrf.mxu1 }
  0xcf   : > { %v1424_v11 = vadd.f32 %v3467_v2, %v1423_v7  ;;  %v1649_v12 = vadd.f32 %v3467_v2, %v1648_v8 }
  0xd0   : > { %2757 = vst.msk [vmem:[%s3480_s26 + $0x4e8] sm:$0xff] %vm2599_vm2, %v2456_v5  ;;  %3137 = vmatmul.msk.f32.gmra.mxu2 %vm477_vm1, %v345_v3  ;;  %3212 = vmatmul.msk.f32.gmra.mxu3 %vm477_vm1, %v420_v4  ;;  %v349_v4 = vld [vmem:[%s3334_s21 + $0x590] sm:$0xff]  ;;  %v424_v5 = vld [vmem:[%s3334_s21 + $0x7e8] sm:$0xff] }
  0xd1   : > { %2832 = vst.msk [vmem:[%s3480_s26 + $0x740] sm:$0xff] %vm2599_vm2, %v2531_v6  ;;  %v2307_v13 = vmax.f32 %v1424_v11, 0.0  ;;  %v2382_v14 = vmax.f32 %v1649_v12, 0.0  ;;  %2987 = vmatmul.msk.f32.gmra.mxu0 %vm477_vm1, %v195_v9  ;;  %3062 = vmatmul.msk.f32.gmra.mxu1 %vm477_vm1, %v270_v10  ;;  %v199_v10 = vld [vmem:[%s3334_s21 + $0xe0] sm:$0xff]  ;;  %v274_v11 = vld [vmem:[%s3334_s21 + $0x338] sm:$0xff] }
  0xd3   : > { %2608 = vst.msk [vmem:[%s3480_s26 + $0x40] sm:$0xff] %vm2599_vm2, %v2307_v13  ;;  %v1873_v15 = vpop.f32.mrf.mxu2  ;;  %v2098_v16 = vpop.f32.mrf.mxu3 }
  0xd4   : > { %2683 = vst.msk [vmem:[%s3480_s26 + $0x298] sm:$0xff] %vm2599_vm2, %v2382_v14  ;;  %v1874_v17 = vadd.f32 %v3467_v2, %v1873_v15  ;;  %v2099_v18 = vadd.f32 %v3467_v2, %v2098_v16 }
  0xd6   : > { %v2457_v21 = vmax.f32 %v1874_v17, 0.0  ;;  %v2532_v22 = vmax.f32 %v2099_v18, 0.0  ;;  %v1426_v23 = vpop.f32.mrf.mxu0  ;;  %v1651_v24 = vpop.f32.mrf.mxu1 }
  0xd7   : > { %v1427_v27 = vadd.f32 %v3467_v2, %v1426_v23  ;;  %v1652_v28 = vadd.f32 %v3467_v2, %v1651_v24 }
  0xd8   : > { %2758 = vst.msk [vmem:[%s3480_s26 + $0x4f0] sm:$0xff] %vm2599_vm2, %v2457_v21  ;;  %3138 = vmatmul.msk.f32.gmra.mxu2 %vm477_vm1, %v346_v19  ;;  %3213 = vmatmul.msk.f32.gmra.mxu3 %vm477_vm1, %v421_v20  ;;  %v350_v20 = vld [vmem:[%s3334_s21 + $0x598] sm:$0xff]  ;;  %v425_v21 = vld [vmem:[%s3334_s21 + $0x7f0] sm:$0xff] }
  0xd9   : > { %2833 = vst.msk [vmem:[%s3480_s26 + $0x748] sm:$0xff] %vm2599_vm2, %v2532_v22  ;;  %v2308_v29 = vmax.f32 %v1427_v27, 0.0  ;;  %v2383_v30 = vmax.f32 %v1652_v28, 0.0  ;;  %2988 = vmatmul.msk.f32.gmra.mxu0 %vm477_vm1, %v196_v25  ;;  %3063 = vmatmul.msk.f32.gmra.mxu1 %vm477_vm1, %v271_v26  ;;  %v200_v26 = vld [vmem:[%s3334_s21 + $0xe8] sm:$0xff]  ;;  %v275_v27 = vld [vmem:[%s3334_s21 + $0x340] sm:$0xff] }
  0xdb   : > { %2609 = vst.msk [vmem:[%s3480_s26 + $0x48] sm:$0xff] %vm2599_vm2, %v2308_v29  ;;  %v1876_v31 = vpop.f32.mrf.mxu2  ;;  %v2101_v32 = vpop.f32.mrf.mxu3 }
  0xdc   : > { %2684 = vst.msk [vmem:[%s3480_s26 + $0x2a0] sm:$0xff] %vm2599_vm2, %v2383_v30  ;;  %v1877_v33 = vadd.f32 %v3467_v2, %v1876_v31  ;;  %v2102_v34 = vadd.f32 %v3467_v2, %v2101_v32 }
  0xde   : > { %v2458_v37 = vmax.f32 %v1877_v33, 0.0  ;;  %v2533_v38 = vmax.f32 %v2102_v34, 0.0  ;;  %v1429_v39 = vpop.f32.mrf.mxu0  ;;  %v1654_v40 = vpop.f32.mrf.mxu1 }
  0xdf   : > { %v1430_v43 = vadd.f32 %v3467_v2, %v1429_v39  ;;  %v1655_v44 = vadd.f32 %v3467_v2, %v1654_v40 }
  0xe0   : > { %2759 = vst.msk [vmem:[%s3480_s26 + $0x4f8] sm:$0xff] %vm2599_vm2, %v2458_v37  ;;  %3139 = vmatmul.msk.f32.gmra.mxu2 %vm477_vm1, %v347_v35  ;;  %3214 = vmatmul.msk.f32.gmra.mxu3 %vm477_vm1, %v422_v36  ;;  %v351_v36 = vld [vmem:[%s3334_s21 + $0x5a0] sm:$0xff]  ;;  %v426_v37 = vld [vmem:[%s3334_s21 + $0x7f8] sm:$0xff] }
  0xe1   : > { %2834 = vst.msk [vmem:[%s3480_s26 + $0x750] sm:$0xff] %vm2599_vm2, %v2533_v38  ;;  %v2309_v45 = vmax.f32 %v1430_v43, 0.0  ;;  %v2384_v46 = vmax.f32 %v1655_v44, 0.0  ;;  %2989 = vmatmul.msk.f32.gmra.mxu0 %vm477_vm1, %v197_v41  ;;  %3064 = vmatmul.msk.f32.gmra.mxu1 %vm477_vm1, %v272_v42  ;;  %v201_v42 = vld [vmem:[%s3334_s21 + $0xf0] sm:$0xff]  ;;  %v276_v43 = vld [vmem:[%s3334_s21 + $0x348] sm:$0xff] }
  0xe3   : > { %2610 = vst.msk [vmem:[%s3480_s26 + $0x50] sm:$0xff] %vm2599_vm2, %v2309_v45  ;;  %v1879_v47 = vpop.f32.mrf.mxu2  ;;  %v2104_v48 = vpop.f32.mrf.mxu3 }
  0xe4   : > { %2685 = vst.msk [vmem:[%s3480_s26 + $0x2a8] sm:$0xff] %vm2599_vm2, %v2384_v46  ;;  %v1880_v49 = vadd.f32 %v3467_v2, %v1879_v47  ;;  %v2105_v50 = vadd.f32 %v3467_v2, %v2104_v48 }
  0xe6   : > { %v2459_v53 = vmax.f32 %v1880_v49, 0.0  ;;  %v2534_v54 = vmax.f32 %v2105_v50, 0.0  ;;  %v1432_v55 = vpop.f32.mrf.mxu0  ;;  %v1657_v56 = vpop.f32.mrf.mxu1 }
  0xe7   : > { %v1433_v59 = vadd.f32 %v3467_v2, %v1432_v55  ;;  %v1658_v60 = vadd.f32 %v3467_v2, %v1657_v56 }
  0xe8   : > { %2760 = vst.msk [vmem:[%s3480_s26 + $0x500] sm:$0xff] %vm2599_vm2, %v2459_v53  ;;  %3140 = vmatmul.msk.f32.gmra.mxu2 %vm477_vm1, %v348_v51  ;;  %3215 = vmatmul.msk.f32.gmra.mxu3 %vm477_vm1, %v423_v52  ;;  %v352_v52 = vld [vmem:[%s3334_s21 + $0x5a8] sm:$0xff]  ;;  %v427_v53 = vld [vmem:[%s3334_s21 + $0x800] sm:$0xff] }
  0xe9   : > { %2835 = vst.msk [vmem:[%s3480_s26 + $0x758] sm:$0xff] %vm2599_vm2, %v2534_v54  ;;  %v2310_v61 = vmax.f32 %v1433_v59, 0.0  ;;  %v2385_v62 = vmax.f32 %v1658_v60, 0.0  ;;  %2990 = vmatmul.msk.f32.gmra.mxu0 %vm477_vm1, %v198_v57  ;;  %3065 = vmatmul.msk.f32.gmra.mxu1 %vm477_vm1, %v273_v58  ;;  %v202_v58 = vld [vmem:[%s3334_s21 + $0xf8] sm:$0xff]  ;;  %v277_v59 = vld [vmem:[%s3334_s21 + $0x350] sm:$0xff] }
  0xeb   : > { %2611 = vst.msk [vmem:[%s3480_s26 + $0x58] sm:$0xff] %vm2599_vm2, %v2310_v61  ;;  %v1882_v63 = vpop.f32.mrf.mxu2  ;;  %v2107_v0 = vpop.f32.mrf.mxu3 }
  0xec   : > { %2686 = vst.msk [vmem:[%s3480_s26 + $0x2b0] sm:$0xff] %vm2599_vm2, %v2385_v62  ;;  %v1883_v1 = vadd.f32 %v3467_v2, %v1882_v63  ;;  %v2108_v3 = vadd.f32 %v3467_v2, %v2107_v0 }
  0xee   : > { %v2460_v6 = vmax.f32 %v1883_v1, 0.0  ;;  %v2535_v7 = vmax.f32 %v2108_v3, 0.0  ;;  %v1435_v8 = vpop.f32.mrf.mxu0  ;;  %v1660_v9 = vpop.f32.mrf.mxu1 }
  0xef   : > { %v1436_v12 = vadd.f32 %v3467_v2, %v1435_v8  ;;  %v1661_v13 = vadd.f32 %v3467_v2, %v1660_v9 }
  0xf0   : > { %2761 = vst.msk [vmem:[%s3480_s26 + $0x508] sm:$0xff] %vm2599_vm2, %v2460_v6  ;;  %3141 = vmatmul.msk.f32.gmra.mxu2 %vm477_vm1, %v349_v4  ;;  %3216 = vmatmul.msk.f32.gmra.mxu3 %vm477_vm1, %v424_v5  ;;  %v353_v5 = vld [vmem:[%s3334_s21 + $0x5b0] sm:$0xff]  ;;  %v428_v6 = vld [vmem:[%s3334_s21 + $0x808] sm:$0xff] }
  0xf1   : > { %2836 = vst.msk [vmem:[%s3480_s26 + $0x760] sm:$0xff] %vm2599_vm2, %v2535_v7  ;;  %v2311_v14 = vmax.f32 %v1436_v12, 0.0  ;;  %v2386_v15 = vmax.f32 %v1661_v13, 0.0  ;;  %2991 = vmatmul.msk.f32.gmra.mxu0 %vm477_vm1, %v199_v10  ;;  %3066 = vmatmul.msk.f32.gmra.mxu1 %vm477_vm1, %v274_v11  ;;  %v203_v11 = vld [vmem:[%s3334_s21 + $0x100] sm:$0xff]  ;;  %v278_v12 = vld [vmem:[%s3334_s21 + $0x358] sm:$0xff] }
  0xf3   : > { %2612 = vst.msk [vmem:[%s3480_s26 + $0x60] sm:$0xff] %vm2599_vm2, %v2311_v14  ;;  %v1885_v16 = vpop.f32.mrf.mxu2  ;;  %v2110_v17 = vpop.f32.mrf.mxu3 }
  0xf4   : > { %2687 = vst.msk [vmem:[%s3480_s26 + $0x2b8] sm:$0xff] %vm2599_vm2, %v2386_v15  ;;  %v1886_v18 = vadd.f32 %v3467_v2, %v1885_v16  ;;  %v2111_v19 = vadd.f32 %v3467_v2, %v2110_v17 }
  0xf6   : > { %v2461_v22 = vmax.f32 %v1886_v18, 0.0  ;;  %v2536_v23 = vmax.f32 %v2111_v19, 0.0  ;;  %v1438_v24 = vpop.f32.mrf.mxu0  ;;  %v1663_v25 = vpop.f32.mrf.mxu1 }
  0xf7   : > { %v1439_v28 = vadd.f32 %v3467_v2, %v1438_v24  ;;  %v1664_v29 = vadd.f32 %v3467_v2, %v1663_v25 }
  0xf8   : > { %2762 = vst.msk [vmem:[%s3480_s26 + $0x510] sm:$0xff] %vm2599_vm2, %v2461_v22  ;;  %3142 = vmatmul.msk.f32.gmra.mxu2 %vm477_vm1, %v350_v20  ;;  %3217 = vmatmul.msk.f32.gmra.mxu3 %vm477_vm1, %v425_v21  ;;  %v354_v21 = vld [vmem:[%s3334_s21 + $0x5b8] sm:$0xff]  ;;  %v429_v22 = vld [vmem:[%s3334_s21 + $0x810] sm:$0xff] }
  0xf9   : > { %2837 = vst.msk [vmem:[%s3480_s26 + $0x768] sm:$0xff] %vm2599_vm2, %v2536_v23  ;;  %v2312_v30 = vmax.f32 %v1439_v28, 0.0  ;;  %v2387_v31 = vmax.f32 %v1664_v29, 0.0  ;;  %2992 = vmatmul.msk.f32.gmra.mxu0 %vm477_vm1, %v200_v26  ;;  %3067 = vmatmul.msk.f32.gmra.mxu1 %vm477_vm1, %v275_v27  ;;  %v204_v27 = vld [vmem:[%s3334_s21 + $0x108] sm:$0xff]  ;;  %v279_v28 = vld [vmem:[%s3334_s21 + $0x360] sm:$0xff] }
  0xfb   : > { %2613 = vst.msk [vmem:[%s3480_s26 + $0x68] sm:$0xff] %vm2599_vm2, %v2312_v30  ;;  %v1888_v32 = vpop.f32.mrf.mxu2  ;;  %v2113_v33 = vpop.f32.mrf.mxu3 }
  0xfc   : > { %2688 = vst.msk [vmem:[%s3480_s26 + $0x2c0] sm:$0xff] %vm2599_vm2, %v2387_v31  ;;  %v1889_v34 = vadd.f32 %v3467_v2, %v1888_v32  ;;  %v2114_v35 = vadd.f32 %v3467_v2, %v2113_v33 }
  0xfe   : > { %v2462_v38 = vmax.f32 %v1889_v34, 0.0  ;;  %v2537_v39 = vmax.f32 %v2114_v35, 0.0  ;;  %v1441_v40 = vpop.f32.mrf.mxu0  ;;  %v1666_v41 = vpop.f32.mrf.mxu1 }
  0xff   : > { %v1442_v44 = vadd.f32 %v3467_v2, %v1441_v40  ;;  %v1667_v45 = vadd.f32 %v3467_v2, %v1666_v41 }
 0x100   : > { %2763 = vst.msk [vmem:[%s3480_s26 + $0x518] sm:$0xff] %vm2599_vm2, %v2462_v38  ;;  %3143 = vmatmul.msk.f32.gmra.mxu2 %vm477_vm1, %v351_v36  ;;  %3218 = vmatmul.msk.f32.gmra.mxu3 %vm477_vm1, %v426_v37  ;;  %v355_v37 = vld [vmem:[%s3334_s21 + $0x5c0] sm:$0xff]  ;;  %v430_v38 = vld [vmem:[%s3334_s21 + $0x818] sm:$0xff] }
 0x101   : > { %2838 = vst.msk [vmem:[%s3480_s26 + $0x770] sm:$0xff] %vm2599_vm2, %v2537_v39  ;;  %v2313_v46 = vmax.f32 %v1442_v44, 0.0  ;;  %v2388_v47 = vmax.f32 %v1667_v45, 0.0  ;;  %2993 = vmatmul.msk.f32.gmra.mxu0 %vm477_vm1, %v201_v42  ;;  %3068 = vmatmul.msk.f32.gmra.mxu1 %vm477_vm1, %v276_v43  ;;  %v205_v43 = vld [vmem:[%s3334_s21 + $0x110] sm:$0xff]  ;;  %v280_v44 = vld [vmem:[%s3334_s21 + $0x368] sm:$0xff] }
 0x103   : > { %2614 = vst.msk [vmem:[%s3480_s26 + $0x70] sm:$0xff] %vm2599_vm2, %v2313_v46  ;;  %v1891_v48 = vpop.f32.mrf.mxu2  ;;  %v2116_v49 = vpop.f32.mrf.mxu3 }
 0x104   : > { %2689 = vst.msk [vmem:[%s3480_s26 + $0x2c8] sm:$0xff] %vm2599_vm2, %v2388_v47  ;;  %v1892_v50 = vadd.f32 %v3467_v2, %v1891_v48  ;;  %v2117_v51 = vadd.f32 %v3467_v2, %v2116_v49 }
 0x106   : > { %v2463_v54 = vmax.f32 %v1892_v50, 0.0  ;;  %v2538_v55 = vmax.f32 %v2117_v51, 0.0  ;;  %v1444_v56 = vpop.f32.mrf.mxu0  ;;  %v1669_v57 = vpop.f32.mrf.mxu1 }
 0x107   : > { %v1445_v60 = vadd.f32 %v3467_v2, %v1444_v56  ;;  %v1670_v61 = vadd.f32 %v3467_v2, %v1669_v57 }
 0x108   : > { %2764 = vst.msk [vmem:[%s3480_s26 + $0x520] sm:$0xff] %vm2599_vm2, %v2463_v54  ;;  %3144 = vmatmul.msk.f32.gmra.mxu2 %vm477_vm1, %v352_v52  ;;  %3219 = vmatmul.msk.f32.gmra.mxu3 %vm477_vm1, %v427_v53  ;;  %v356_v53 = vld [vmem:[%s3334_s21 + $0x5c8] sm:$0xff]  ;;  %v431_v54 = vld [vmem:[%s3334_s21 + $0x820] sm:$0xff] }
 0x109   : > { %2839 = vst.msk [vmem:[%s3480_s26 + $0x778] sm:$0xff] %vm2599_vm2, %v2538_v55  ;;  %v2314_v62 = vmax.f32 %v1445_v60, 0.0  ;;  %v2389_v63 = vmax.f32 %v1670_v61, 0.0  ;;  %2994 = vmatmul.msk.f32.gmra.mxu0 %vm477_vm1, %v202_v58  ;;  %3069 = vmatmul.msk.f32.gmra.mxu1 %vm477_vm1, %v277_v59  ;;  %v206_v59 = vld [vmem:[%s3334_s21 + $0x118] sm:$0xff]  ;;  %v281_v60 = vld [vmem:[%s3334_s21 + $0x370] sm:$0xff] }
 0x10b   : > { %2615 = vst.msk [vmem:[%s3480_s26 + $0x78] sm:$0xff] %vm2599_vm2, %v2314_v62  ;;  %v1894_v0 = vpop.f32.mrf.mxu2  ;;  %v2119_v1 = vpop.f32.mrf.mxu3 }
 0x10c   : > { %2690 = vst.msk [vmem:[%s3480_s26 + $0x2d0] sm:$0xff] %vm2599_vm2, %v2389_v63  ;;  %v1895_v3 = vadd.f32 %v3467_v2, %v1894_v0  ;;  %v2120_v4 = vadd.f32 %v3467_v2, %v2119_v1 }
 0x10e   : > { %v2464_v7 = vmax.f32 %v1895_v3, 0.0  ;;  %v2539_v8 = vmax.f32 %v2120_v4, 0.0  ;;  %v1447_v9 = vpop.f32.mrf.mxu0  ;;  %v1672_v10 = vpop.f32.mrf.mxu1 }
 0x10f   : > { %v1448_v13 = vadd.f32 %v3467_v2, %v1447_v9  ;;  %v1673_v14 = vadd.f32 %v3467_v2, %v1672_v10 }
 0x110   : > { %2765 = vst.msk [vmem:[%s3480_s26 + $0x528] sm:$0xff] %vm2599_vm2, %v2464_v7  ;;  %3145 = vmatmul.msk.f32.gmra.mxu2 %vm477_vm1, %v353_v5  ;;  %3220 = vmatmul.msk.f32.gmra.mxu3 %vm477_vm1, %v428_v6  ;;  %v357_v6 = vld [vmem:[%s3334_s21 + $0x5d0] sm:$0xff]  ;;  %v432_v7 = vld [vmem:[%s3334_s21 + $0x828] sm:$0xff] }
 0x111   : > { %2840 = vst.msk [vmem:[%s3480_s26 + $0x780] sm:$0xff] %vm2599_vm2, %v2539_v8  ;;  %v2315_v15 = vmax.f32 %v1448_v13, 0.0  ;;  %v2390_v16 = vmax.f32 %v1673_v14, 0.0  ;;  %2995 = vmatmul.msk.f32.gmra.mxu0 %vm477_vm1, %v203_v11  ;;  %3070 = vmatmul.msk.f32.gmra.mxu1 %vm477_vm1, %v278_v12  ;;  %v207_v12 = vld [vmem:[%s3334_s21 + $0x120] sm:$0xff]  ;;  %v282_v13 = vld [vmem:[%s3334_s21 + $0x378] sm:$0xff] }
 0x113   : > { %2616 = vst.msk [vmem:[%s3480_s26 + $0x80] sm:$0xff] %vm2599_vm2, %v2315_v15  ;;  %v1897_v17 = vpop.f32.mrf.mxu2  ;;  %v2122_v18 = vpop.f32.mrf.mxu3 }
 0x114   : > { %2691 = vst.msk [vmem:[%s3480_s26 + $0x2d8] sm:$0xff] %vm2599_vm2, %v2390_v16  ;;  %v1898_v19 = vadd.f32 %v3467_v2, %v1897_v17  ;;  %v2123_v20 = vadd.f32 %v3467_v2, %v2122_v18 }
 0x116   : > { %v2465_v23 = vmax.f32 %v1898_v19, 0.0  ;;  %v2540_v24 = vmax.f32 %v2123_v20, 0.0  ;;  %v1450_v25 = vpop.f32.mrf.mxu0  ;;  %v1675_v26 = vpop.f32.mrf.mxu1 }
 0x117   : > { %v1451_v29 = vadd.f32 %v3467_v2, %v1450_v25  ;;  %v1676_v30 = vadd.f32 %v3467_v2, %v1675_v26 }
 0x118   : > { %2766 = vst.msk [vmem:[%s3480_s26 + $0x530] sm:$0xff] %vm2599_vm2, %v2465_v23  ;;  %3146 = vmatmul.msk.f32.gmra.mxu2 %vm477_vm1, %v354_v21  ;;  %3221 = vmatmul.msk.f32.gmra.mxu3 %vm477_vm1, %v429_v22  ;;  %v358_v22 = vld [vmem:[%s3334_s21 + $0x5d8] sm:$0xff]  ;;  %v433_v23 = vld [vmem:[%s3334_s21 + $0x830] sm:$0xff] }
 0x119   : > { %2841 = vst.msk [vmem:[%s3480_s26 + $0x788] sm:$0xff] %vm2599_vm2, %v2540_v24  ;;  %v2316_v31 = vmax.f32 %v1451_v29, 0.0  ;;  %v2391_v32 = vmax.f32 %v1676_v30, 0.0  ;;  %2996 = vmatmul.msk.f32.gmra.mxu0 %vm477_vm1, %v204_v27  ;;  %3071 = vmatmul.msk.f32.gmra.mxu1 %vm477_vm1, %v279_v28  ;;  %v208_v28 = vld [vmem:[%s3334_s21 + $0x128] sm:$0xff]  ;;  %v283_v29 = vld [vmem:[%s3334_s21 + $0x380] sm:$0xff] }
 0x11b   : > { %2617 = vst.msk [vmem:[%s3480_s26 + $0x88] sm:$0xff] %vm2599_vm2, %v2316_v31  ;;  %v1900_v33 = vpop.f32.mrf.mxu2  ;;  %v2125_v34 = vpop.f32.mrf.mxu3  ;;  %v3900_v31 = vld [vmem:[%s4868_s2] ss:$0 sm:$0xff] }
 0x11c   : > { %2692 = vst.msk [vmem:[%s3480_s26 + $0x2e0] sm:$0xff] %vm2599_vm2, %v2391_v32  ;;  %v1901_v35 = vadd.f32 %v3467_v2, %v1900_v33  ;;  %v2126_v36 = vadd.f32 %v3467_v2, %v2125_v34 }
 0x11e   : > { %v2466_v39 = vmax.f32 %v1901_v35, 0.0  ;;  %v2541_v40 = vmax.f32 %v2126_v36, 0.0  ;;  %v1453_v41 = vpop.f32.mrf.mxu0  ;;  %v1678_v42 = vpop.f32.mrf.mxu1 }
 0x11f   : > { %v1454_v45 = vadd.f32 %v3467_v2, %v1453_v41  ;;  %v1679_v46 = vadd.f32 %v3467_v2, %v1678_v42 }
 0x120   : > { %2767 = vst.msk [vmem:[%s3480_s26 + $0x538] sm:$0xff] %vm2599_vm2, %v2466_v39  ;;  %3147 = vmatmul.msk.f32.gmra.mxu2 %vm477_vm1, %v355_v37  ;;  %3222 = vmatmul.msk.f32.gmra.mxu3 %vm477_vm1, %v430_v38  ;;  %v359_v38 = vld [vmem:[%s3334_s21 + $0x5e0] sm:$0xff]  ;;  %v434_v39 = vld [vmem:[%s3334_s21 + $0x838] sm:$0xff] }
 0x121   : > { %2842 = vst.msk [vmem:[%s3480_s26 + $0x790] sm:$0xff] %vm2599_vm2, %v2541_v40  ;;  %v2317_v47 = vmax.f32 %v1454_v45, 0.0  ;;  %v2392_v48 = vmax.f32 %v1679_v46, 0.0  ;;  %2997 = vmatmul.msk.f32.gmra.mxu0 %vm477_vm1, %v205_v43  ;;  %3072 = vmatmul.msk.f32.gmra.mxu1 %vm477_vm1, %v280_v44  ;;  %v209_v44 = vld [vmem:[%s3334_s21 + $0x130] sm:$0xff]  ;;  %v284_v45 = vld [vmem:[%s3334_s21 + $0x388] sm:$0xff] }
 0x123   : > { %2618 = vst.msk [vmem:[%s3480_s26 + $0x90] sm:$0xff] %vm2599_vm2, %v2317_v47  ;;  %v1903_v49 = vpop.f32.mrf.mxu2  ;;  %v2128_v50 = vpop.f32.mrf.mxu3 }
 0x124   : > { %2693 = vst.msk [vmem:[%s3480_s26 + $0x2e8] sm:$0xff] %vm2599_vm2, %v2392_v48  ;;  %v1904_v51 = vadd.f32 %v3467_v2, %v1903_v49  ;;  %v2129_v52 = vadd.f32 %v3467_v2, %v2128_v50 }
 0x126   : > { %v2467_v55 = vmax.f32 %v1904_v51, 0.0  ;;  %v2542_v56 = vmax.f32 %v2129_v52, 0.0  ;;  %v1456_v57 = vpop.f32.mrf.mxu0  ;;  %v1681_v58 = vpop.f32.mrf.mxu1 }
 0x127   : > { %v1457_v61 = vadd.f32 %v3467_v2, %v1456_v57  ;;  %v1682_v62 = vadd.f32 %v3467_v2, %v1681_v58 }
 0x128   : > { %2768 = vst.msk [vmem:[%s3480_s26 + $0x540] sm:$0xff] %vm2599_vm2, %v2467_v55  ;;  %3148 = vmatmul.msk.f32.gmra.mxu2 %vm477_vm1, %v356_v53  ;;  %3223 = vmatmul.msk.f32.gmra.mxu3 %vm477_vm1, %v431_v54  ;;  %v360_v54 = vld [vmem:[%s3334_s21 + $0x5e8] sm:$0xff]  ;;  %v435_v55 = vld [vmem:[%s3334_s21 + $0x840] sm:$0xff] }
 0x129   : > { %2843 = vst.msk [vmem:[%s3480_s26 + $0x798] sm:$0xff] %vm2599_vm2, %v2542_v56  ;;  %v2318_v63 = vmax.f32 %v1457_v61, 0.0  ;;  %v2393_v0 = vmax.f32 %v1682_v62, 0.0  ;;  %2998 = vmatmul.msk.f32.gmra.mxu0 %vm477_vm1, %v206_v59  ;;  %3073 = vmatmul.msk.f32.gmra.mxu1 %vm477_vm1, %v281_v60  ;;  %v210_v60 = vld [vmem:[%s3334_s21 + $0x138] sm:$0xff]  ;;  %v285_v61 = vld [vmem:[%s3334_s21 + $0x390] sm:$0xff] }
 0x12b   : > { %2619 = vst.msk [vmem:[%s3480_s26 + $0x98] sm:$0xff] %vm2599_vm2, %v2318_v63  ;;  %v1906_v1 = vpop.f32.mrf.mxu2  ;;  %v2131_v3 = vpop.f32.mrf.mxu3 }
 0x12c   : > { %2694 = vst.msk [vmem:[%s3480_s26 + $0x2f0] sm:$0xff] %vm2599_vm2, %v2393_v0  ;;  %v1907_v4 = vadd.f32 %v3467_v2, %v1906_v1  ;;  %v2132_v5 = vadd.f32 %v3467_v2, %v2131_v3 }
 0x12e   : > { %v2468_v8 = vmax.f32 %v1907_v4, 0.0  ;;  %v2543_v9 = vmax.f32 %v2132_v5, 0.0  ;;  %v1459_v10 = vpop.f32.mrf.mxu0  ;;  %v1684_v11 = vpop.f32.mrf.mxu1 }
 0x12f   : > { %v1460_v14 = vadd.f32 %v3467_v2, %v1459_v10  ;;  %v1685_v15 = vadd.f32 %v3467_v2, %v1684_v11 }
 0x130   : > { %2769 = vst.msk [vmem:[%s3480_s26 + $0x548] sm:$0xff] %vm2599_vm2, %v2468_v8  ;;  %3149 = vmatmul.msk.f32.gmra.mxu2 %vm477_vm1, %v357_v6  ;;  %3224 = vmatmul.msk.f32.gmra.mxu3 %vm477_vm1, %v432_v7  ;;  %v361_v7 = vld [vmem:[%s3334_s21 + $0x5f0] sm:$0xff]  ;;  %v436_v8 = vld [vmem:[%s3334_s21 + $0x848] sm:$0xff] }
 0x131   : > { %2844 = vst.msk [vmem:[%s3480_s26 + $0x7a0] sm:$0xff] %vm2599_vm2, %v2543_v9  ;;  %v2319_v16 = vmax.f32 %v1460_v14, 0.0  ;;  %v2394_v17 = vmax.f32 %v1685_v15, 0.0  ;;  %2999 = vmatmul.msk.f32.gmra.mxu0 %vm477_vm1, %v207_v12  ;;  %3074 = vmatmul.msk.f32.gmra.mxu1 %vm477_vm1, %v282_v13  ;;  %v211_v13 = vld [vmem:[%s3334_s21 + $0x140] sm:$0xff]  ;;  %v286_v14 = vld [vmem:[%s3334_s21 + $0x398] sm:$0xff] }
 0x133   : > { %2620 = vst.msk [vmem:[%s3480_s26 + $0xa0] sm:$0xff] %vm2599_vm2, %v2319_v16  ;;  %v1909_v18 = vpop.f32.mrf.mxu2  ;;  %v2134_v19 = vpop.f32.mrf.mxu3 }
 0x134   : > { %2695 = vst.msk [vmem:[%s3480_s26 + $0x2f8] sm:$0xff] %vm2599_vm2, %v2394_v17  ;;  %v1910_v20 = vadd.f32 %v3467_v2, %v1909_v18  ;;  %v2135_v21 = vadd.f32 %v3467_v2, %v2134_v19 }
 0x136   : > { %v2469_v24 = vmax.f32 %v1910_v20, 0.0  ;;  %v2544_v25 = vmax.f32 %v2135_v21, 0.0  ;;  %v1462_v26 = vpop.f32.mrf.mxu0  ;;  %v1687_v27 = vpop.f32.mrf.mxu1 }
 0x137   : > { %v1463_v30 = vadd.f32 %v3467_v2, %v1462_v26  ;;  %v1688_v32 = vadd.f32 %v3900_v31, %v1687_v27 }
 0x138   : > { %2770 = vst.msk [vmem:[%s3480_s26 + $0x550] sm:$0xff] %vm2599_vm2, %v2469_v24  ;;  %3150 = vmatmul.msk.f32.gmra.mxu2 %vm477_vm1, %v358_v22  ;;  %3225 = vmatmul.msk.f32.gmra.mxu3 %vm477_vm1, %v433_v23  ;;  %v362_v23 = vld [vmem:[%s3334_s21 + $0x5f8] sm:$0xff]  ;;  %v437_v24 = vld [vmem:[%s3334_s21 + $0x850] sm:$0xff] }
 0x139   : > { %2845 = vst.msk [vmem:[%s3480_s26 + $0x7a8] sm:$0xff] %vm2599_vm2, %v2544_v25  ;;  %v2320_v33 = vmax.f32 %v1463_v30, 0.0  ;;  %v2395_v2 = vmax.f32 %v1688_v32, 0.0  ;;  %3000 = vmatmul.msk.f32.gmra.mxu0 %vm477_vm1, %v208_v28  ;;  %3075 = vmatmul.msk.f32.gmra.mxu1 %vm477_vm1, %v283_v29  ;;  %v212_v29 = vld [vmem:[%s3334_s21 + $0x148] sm:$0xff]  ;;  %v287_v30 = vld [vmem:[%s3334_s21 + $0x3a0] sm:$0xff] }
 0x13b   : > { %2621 = vst.msk [vmem:[%s3480_s26 + $0xa8] sm:$0xff] %vm2599_vm2, %v2320_v33  ;;  %v1912_v34 = vpop.f32.mrf.mxu2  ;;  %v2137_v35 = vpop.f32.mrf.mxu3 }
 0x13c   : > { %2696 = vst.msk [vmem:[%s3480_s26 + $0x300] sm:$0xff] %vm2599_vm2, %v2395_v2  ;;  %v1913_v36 = vadd.f32 %v3900_v31, %v1912_v34  ;;  %v2138_v37 = vadd.f32 %v3900_v31, %v2137_v35 }
 0x13e   : > { %v2470_v40 = vmax.f32 %v1913_v36, 0.0  ;;  %v2545_v41 = vmax.f32 %v2138_v37, 0.0  ;;  %v1465_v42 = vpop.f32.mrf.mxu0  ;;  %v1690_v43 = vpop.f32.mrf.mxu1 }
 0x13f   : > { %v1466_v46 = vadd.f32 %v3900_v31, %v1465_v42  ;;  %v1691_v47 = vadd.f32 %v3900_v31, %v1690_v43 }
 0x140   : > { %2771 = vst.msk [vmem:[%s3480_s26 + $0x558] sm:$0xff] %vm2599_vm2, %v2470_v40  ;;  %3151 = vmatmul.msk.f32.gmra.mxu2 %vm477_vm1, %v359_v38  ;;  %3226 = vmatmul.msk.f32.gmra.mxu3 %vm477_vm1, %v434_v39  ;;  %v363_v39 = vld [vmem:[%s3334_s21 + $0x600] sm:$0xff]  ;;  %v438_v40 = vld [vmem:[%s3334_s21 + $0x858] sm:$0xff] }
 0x141   : > { %2846 = vst.msk [vmem:[%s3480_s26 + $0x7b0] sm:$0xff] %vm2599_vm2, %v2545_v41  ;;  %v2321_v48 = vmax.f32 %v1466_v46, 0.0  ;;  %v2396_v49 = vmax.f32 %v1691_v47, 0.0  ;;  %3001 = vmatmul.msk.f32.gmra.mxu0 %vm477_vm1, %v209_v44  ;;  %3076 = vmatmul.msk.f32.gmra.mxu1 %vm477_vm1, %v284_v45  ;;  %v213_v45 = vld [vmem:[%s3334_s21 + $0x150] sm:$0xff]  ;;  %v288_v46 = vld [vmem:[%s3334_s21 + $0x3a8] sm:$0xff] }
 0x143   : > { %2622 = vst.msk [vmem:[%s3480_s26 + $0xb0] sm:$0xff] %vm2599_vm2, %v2321_v48  ;;  %v1915_v50 = vpop.f32.mrf.mxu2  ;;  %v2140_v51 = vpop.f32.mrf.mxu3 }
 0x144   : > { %2697 = vst.msk [vmem:[%s3480_s26 + $0x308] sm:$0xff] %vm2599_vm2, %v2396_v49  ;;  %v1916_v52 = vadd.f32 %v3900_v31, %v1915_v50  ;;  %v2141_v53 = vadd.f32 %v3900_v31, %v2140_v51 }
 0x146   : > { %v2471_v56 = vmax.f32 %v1916_v52, 0.0  ;;  %v2546_v57 = vmax.f32 %v2141_v53, 0.0  ;;  %v1468_v58 = vpop.f32.mrf.mxu0  ;;  %v1693_v59 = vpop.f32.mrf.mxu1 }
 0x147   : > { %v1469_v62 = vadd.f32 %v3900_v31, %v1468_v58  ;;  %v1694_v63 = vadd.f32 %v3900_v31, %v1693_v59 }
 0x148   : > { %2772 = vst.msk [vmem:[%s3480_s26 + $0x560] sm:$0xff] %vm2599_vm2, %v2471_v56  ;;  %3152 = vmatmul.msk.f32.gmra.mxu2 %vm477_vm1, %v360_v54  ;;  %3227 = vmatmul.msk.f32.gmra.mxu3 %vm477_vm1, %v435_v55  ;;  %v364_v55 = vld [vmem:[%s3334_s21 + $0x608] sm:$0xff]  ;;  %v439_v56 = vld [vmem:[%s3334_s21 + $0x860] sm:$0xff] }
 0x149   : > { %2847 = vst.msk [vmem:[%s3480_s26 + $0x7b8] sm:$0xff] %vm2599_vm2, %v2546_v57  ;;  %v2322_v0 = vmax.f32 %v1469_v62, 0.0  ;;  %v2397_v1 = vmax.f32 %v1694_v63, 0.0  ;;  %3002 = vmatmul.msk.f32.gmra.mxu0 %vm477_vm1, %v210_v60  ;;  %3077 = vmatmul.msk.f32.gmra.mxu1 %vm477_vm1, %v285_v61  ;;  %v214_v61 = vld [vmem:[%s3334_s21 + $0x158] sm:$0xff]  ;;  %v289_v62 = vld [vmem:[%s3334_s21 + $0x3b0] sm:$0xff] }
 0x14b   : > { %2623 = vst.msk [vmem:[%s3480_s26 + $0xb8] sm:$0xff] %vm2599_vm2, %v2322_v0  ;;  %v1918_v3 = vpop.f32.mrf.mxu2  ;;  %v2143_v4 = vpop.f32.mrf.mxu3 }
 0x14c   : > { %2698 = vst.msk [vmem:[%s3480_s26 + $0x310] sm:$0xff] %vm2599_vm2, %v2397_v1  ;;  %v1919_v5 = vadd.f32 %v3900_v31, %v1918_v3  ;;  %v2144_v6 = vadd.f32 %v3900_v31, %v2143_v4 }
 0x14e   : > { %v2472_v9 = vmax.f32 %v1919_v5, 0.0  ;;  %v2547_v10 = vmax.f32 %v2144_v6, 0.0  ;;  %v1471_v11 = vpop.f32.mrf.mxu0  ;;  %v1696_v12 = vpop.f32.mrf.mxu1 }
 0x14f   : > { %v1472_v15 = vadd.f32 %v3900_v31, %v1471_v11  ;;  %v1697_v16 = vadd.f32 %v3900_v31, %v1696_v12 }
 0x150   : > { %2773 = vst.msk [vmem:[%s3480_s26 + $0x568] sm:$0xff] %vm2599_vm2, %v2472_v9  ;;  %3153 = vmatmul.msk.f32.gmra.mxu2 %vm477_vm1, %v361_v7  ;;  %3228 = vmatmul.msk.f32.gmra.mxu3 %vm477_vm1, %v436_v8  ;;  %v365_v8 = vld [vmem:[%s3334_s21 + $0x610] sm:$0xff]  ;;  %v440_v9 = vld [vmem:[%s3334_s21 + $0x868] sm:$0xff] }
 0x151   : > { %2848 = vst.msk [vmem:[%s3480_s26 + $0x7c0] sm:$0xff] %vm2599_vm2, %v2547_v10  ;;  %v2323_v17 = vmax.f32 %v1472_v15, 0.0  ;;  %v2398_v18 = vmax.f32 %v1697_v16, 0.0  ;;  %3003 = vmatmul.msk.f32.gmra.mxu0 %vm477_vm1, %v211_v13  ;;  %3078 = vmatmul.msk.f32.gmra.mxu1 %vm477_vm1, %v286_v14  ;;  %v215_v14 = vld [vmem:[%s3334_s21 + $0x160] sm:$0xff]  ;;  %v290_v15 = vld [vmem:[%s3334_s21 + $0x3b8] sm:$0xff] }
 0x153   : > { %2624 = vst.msk [vmem:[%s3480_s26 + $0xc0] sm:$0xff] %vm2599_vm2, %v2323_v17  ;;  %v1921_v19 = vpop.f32.mrf.mxu2  ;;  %v2146_v20 = vpop.f32.mrf.mxu3 }
 0x154   : > { %2699 = vst.msk [vmem:[%s3480_s26 + $0x318] sm:$0xff] %vm2599_vm2, %v2398_v18  ;;  %v1922_v21 = vadd.f32 %v3900_v31, %v1921_v19  ;;  %v2147_v22 = vadd.f32 %v3900_v31, %v2146_v20 }
 0x156   : > { %v2473_v25 = vmax.f32 %v1922_v21, 0.0  ;;  %v2548_v26 = vmax.f32 %v2147_v22, 0.0  ;;  %v1474_v27 = vpop.f32.mrf.mxu0  ;;  %v1699_v28 = vpop.f32.mrf.mxu1 }
 0x157   : > { %v1475_v32 = vadd.f32 %v3900_v31, %v1474_v27  ;;  %v1700_v33 = vadd.f32 %v3900_v31, %v1699_v28 }
 0x158   : > { %2774 = vst.msk [vmem:[%s3480_s26 + $0x570] sm:$0xff] %vm2599_vm2, %v2473_v25  ;;  %3154 = vmatmul.msk.f32.gmra.mxu2 %vm477_vm1, %v362_v23  ;;  %3229 = vmatmul.msk.f32.gmra.mxu3 %vm477_vm1, %v437_v24  ;;  %v366_v24 = vld [vmem:[%s3334_s21 + $0x618] sm:$0xff]  ;;  %v441_v25 = vld [vmem:[%s3334_s21 + $0x870] sm:$0xff] }
 0x159   : > { %2849 = vst.msk [vmem:[%s3480_s26 + $0x7c8] sm:$0xff] %vm2599_vm2, %v2548_v26  ;;  %v2324_v2 = vmax.f32 %v1475_v32, 0.0  ;;  %v2399_v34 = vmax.f32 %v1700_v33, 0.0  ;;  %3004 = vmatmul.msk.f32.gmra.mxu0 %vm477_vm1, %v212_v29  ;;  %3079 = vmatmul.msk.f32.gmra.mxu1 %vm477_vm1, %v287_v30  ;;  %v216_v30 = vld [vmem:[%s3334_s21 + $0x168] sm:$0xff]  ;;  %v291_v32 = vld [vmem:[%s3334_s21 + $0x3c0] sm:$0xff] }
 0x15b   : > { %2625 = vst.msk [vmem:[%s3480_s26 + $0xc8] sm:$0xff] %vm2599_vm2, %v2324_v2  ;;  %v1924_v35 = vpop.f32.mrf.mxu2  ;;  %v2149_v36 = vpop.f32.mrf.mxu3 }
 0x15c   : > { %2700 = vst.msk [vmem:[%s3480_s26 + $0x320] sm:$0xff] %vm2599_vm2, %v2399_v34  ;;  %v1925_v37 = vadd.f32 %v3900_v31, %v1924_v35  ;;  %v2150_v38 = vadd.f32 %v3900_v31, %v2149_v36 }
 0x15e   : > { %v2474_v41 = vmax.f32 %v1925_v37, 0.0  ;;  %v2549_v42 = vmax.f32 %v2150_v38, 0.0  ;;  %v1477_v43 = vpop.f32.mrf.mxu0  ;;  %v1702_v44 = vpop.f32.mrf.mxu1 }
 0x15f   : > { %v1478_v47 = vadd.f32 %v3900_v31, %v1477_v43  ;;  %v1703_v48 = vadd.f32 %v3900_v31, %v1702_v44 }
 0x160   : > { %2775 = vst.msk [vmem:[%s3480_s26 + $0x578] sm:$0xff] %vm2599_vm2, %v2474_v41  ;;  %3155 = vmatmul.msk.f32.gmra.mxu2 %vm477_vm1, %v363_v39  ;;  %3230 = vmatmul.msk.f32.gmra.mxu3 %vm477_vm1, %v438_v40  ;;  %v367_v40 = vld [vmem:[%s3334_s21 + $0x620] sm:$0xff]  ;;  %v442_v41 = vld [vmem:[%s3334_s21 + $0x878] sm:$0xff] }
 0x161   : > { %2850 = vst.msk [vmem:[%s3480_s26 + $0x7d0] sm:$0xff] %vm2599_vm2, %v2549_v42  ;;  %v2325_v49 = vmax.f32 %v1478_v47, 0.0  ;;  %v2400_v50 = vmax.f32 %v1703_v48, 0.0  ;;  %3005 = vmatmul.msk.f32.gmra.mxu0 %vm477_vm1, %v213_v45  ;;  %3080 = vmatmul.msk.f32.gmra.mxu1 %vm477_vm1, %v288_v46  ;;  %v217_v46 = vld [vmem:[%s3334_s21 + $0x170] sm:$0xff]  ;;  %v292_v47 = vld [vmem:[%s3334_s21 + $0x3c8] sm:$0xff] }
 0x163   : > { %2626 = vst.msk [vmem:[%s3480_s26 + $0xd0] sm:$0xff] %vm2599_vm2, %v2325_v49  ;;  %v1927_v51 = vpop.f32.mrf.mxu2  ;;  %v2152_v52 = vpop.f32.mrf.mxu3 }
 0x164   : > { %2701 = vst.msk [vmem:[%s3480_s26 + $0x328] sm:$0xff] %vm2599_vm2, %v2400_v50  ;;  %v1928_v53 = vadd.f32 %v3900_v31, %v1927_v51  ;;  %v2153_v54 = vadd.f32 %v3900_v31, %v2152_v52 }
 0x166   : > { %v2475_v57 = vmax.f32 %v1928_v53, 0.0  ;;  %v2550_v58 = vmax.f32 %v2153_v54, 0.0  ;;  %v1480_v59 = vpop.f32.mrf.mxu0  ;;  %v1705_v60 = vpop.f32.mrf.mxu1 }
 0x167   : > { %v1481_v63 = vadd.f32 %v3900_v31, %v1480_v59  ;;  %v1706_v0 = vadd.f32 %v3900_v31, %v1705_v60 }
 0x168   : > { %2776 = vst.msk [vmem:[%s3480_s26 + $0x580] sm:$0xff] %vm2599_vm2, %v2475_v57  ;;  %3156 = vmatmul.msk.f32.gmra.mxu2 %vm477_vm1, %v364_v55  ;;  %3231 = vmatmul.msk.f32.gmra.mxu3 %vm477_vm1, %v439_v56  ;;  %v368_v56 = vld [vmem:[%s3334_s21 + $0x628] sm:$0xff]  ;;  %v443_v57 = vld [vmem:[%s3334_s21 + $0x880] sm:$0xff] }
 0x169   : > { %2851 = vst.msk [vmem:[%s3480_s26 + $0x7d8] sm:$0xff] %vm2599_vm2, %v2550_v58  ;;  %v2326_v1 = vmax.f32 %v1481_v63, 0.0  ;;  %v2401_v3 = vmax.f32 %v1706_v0, 0.0  ;;  %3006 = vmatmul.msk.f32.gmra.mxu0 %vm477_vm1, %v214_v61  ;;  %3081 = vmatmul.msk.f32.gmra.mxu1 %vm477_vm1, %v289_v62  ;;  %v218_v62 = vld [vmem:[%s3334_s21 + $0x178] sm:$0xff]  ;;  %v293_v63 = vld [vmem:[%s3334_s21 + $0x3d0] sm:$0xff] }
 0x16b   : > { %2627 = vst.msk [vmem:[%s3480_s26 + $0xd8] sm:$0xff] %vm2599_vm2, %v2326_v1  ;;  %v1930_v4 = vpop.f32.mrf.mxu2  ;;  %v2155_v5 = vpop.f32.mrf.mxu3 }
 0x16c   : > { %2702 = vst.msk [vmem:[%s3480_s26 + $0x330] sm:$0xff] %vm2599_vm2, %v2401_v3  ;;  %v1931_v6 = vadd.f32 %v3900_v31, %v1930_v4  ;;  %v2156_v7 = vadd.f32 %v3900_v31, %v2155_v5 }
 0x16e   : > { %v2476_v10 = vmax.f32 %v1931_v6, 0.0  ;;  %v2551_v11 = vmax.f32 %v2156_v7, 0.0  ;;  %v1483_v12 = vpop.f32.mrf.mxu0  ;;  %v1708_v13 = vpop.f32.mrf.mxu1 }
 0x16f   : > { %v1484_v16 = vadd.f32 %v3900_v31, %v1483_v12  ;;  %v1709_v17 = vadd.f32 %v3900_v31, %v1708_v13 }
 0x170   : > { %2777 = vst.msk [vmem:[%s3480_s26 + $0x588] sm:$0xff] %vm2599_vm2, %v2476_v10  ;;  %3157 = vmatmul.msk.f32.gmra.mxu2 %vm477_vm1, %v365_v8  ;;  %3232 = vmatmul.msk.f32.gmra.mxu3 %vm477_vm1, %v440_v9  ;;  %v369_v9 = vld [vmem:[%s3334_s21 + $0x630] sm:$0xff]  ;;  %v444_v10 = vld [vmem:[%s3334_s21 + $0x888] sm:$0xff] }
 0x171   : > { %2852 = vst.msk [vmem:[%s3480_s26 + $0x7e0] sm:$0xff] %vm2599_vm2, %v2551_v11  ;;  %v2327_v18 = vmax.f32 %v1484_v16, 0.0  ;;  %v2402_v19 = vmax.f32 %v1709_v17, 0.0  ;;  %3007 = vmatmul.msk.f32.gmra.mxu0 %vm477_vm1, %v215_v14  ;;  %3082 = vmatmul.msk.f32.gmra.mxu1 %vm477_vm1, %v290_v15  ;;  %v219_v15 = vld [vmem:[%s3334_s21 + $0x180] sm:$0xff]  ;;  %v294_v16 = vld [vmem:[%s3334_s21 + $0x3d8] sm:$0xff] }
 0x173   : > { %2628 = vst.msk [vmem:[%s3480_s26 + $0xe0] sm:$0xff] %vm2599_vm2, %v2327_v18  ;;  %v1933_v20 = vpop.f32.mrf.mxu2  ;;  %v2158_v21 = vpop.f32.mrf.mxu3 }
 0x174   : > { %2703 = vst.msk [vmem:[%s3480_s26 + $0x338] sm:$0xff] %vm2599_vm2, %v2402_v19  ;;  %v1934_v22 = vadd.f32 %v3900_v31, %v1933_v20  ;;  %v2159_v23 = vadd.f32 %v3900_v31, %v2158_v21 }
 0x176   : > { %v2477_v26 = vmax.f32 %v1934_v22, 0.0  ;;  %v2552_v27 = vmax.f32 %v2159_v23, 0.0  ;;  %v1486_v28 = vpop.f32.mrf.mxu0  ;;  %v1711_v29 = vpop.f32.mrf.mxu1 }
 0x177   : > { %v1487_v33 = vadd.f32 %v3900_v31, %v1486_v28  ;;  %v1712_v2 = vadd.f32 %v3900_v31, %v1711_v29 }
 0x178   : > { %2778 = vst.msk [vmem:[%s3480_s26 + $0x590] sm:$0xff] %vm2599_vm2, %v2477_v26  ;;  %3158 = vmatmul.msk.f32.gmra.mxu2 %vm477_vm1, %v366_v24  ;;  %3233 = vmatmul.msk.f32.gmra.mxu3 %vm477_vm1, %v441_v25  ;;  %v370_v25 = vld [vmem:[%s3334_s21 + $0x638] sm:$0xff]  ;;  %v445_v26 = vld [vmem:[%s3334_s21 + $0x890] sm:$0xff] }
 0x179   : > { %2853 = vst.msk [vmem:[%s3480_s26 + $0x7e8] sm:$0xff] %vm2599_vm2, %v2552_v27  ;;  %v2328_v34 = vmax.f32 %v1487_v33, 0.0  ;;  %v2403_v35 = vmax.f32 %v1712_v2, 0.0  ;;  %3008 = vmatmul.msk.f32.gmra.mxu0 %vm477_vm1, %v216_v30  ;;  %3083 = vmatmul.msk.f32.gmra.mxu1 %vm477_vm1, %v291_v32  ;;  %v220_v32 = vld [vmem:[%s3334_s21 + $0x188] sm:$0xff]  ;;  %v295_v33 = vld [vmem:[%s3334_s21 + $0x3e0] sm:$0xff] }
 0x17b   : > { %2629 = vst.msk [vmem:[%s3480_s26 + $0xe8] sm:$0xff] %vm2599_vm2, %v2328_v34  ;;  %v1936_v36 = vpop.f32.mrf.mxu2  ;;  %v2161_v37 = vpop.f32.mrf.mxu3 }
 0x17c   : > { %2704 = vst.msk [vmem:[%s3480_s26 + $0x340] sm:$0xff] %vm2599_vm2, %v2403_v35  ;;  %v1937_v38 = vadd.f32 %v3900_v31, %v1936_v36  ;;  %v2162_v39 = vadd.f32 %v3900_v31, %v2161_v37 }
 0x17e   : > { %v2478_v42 = vmax.f32 %v1937_v38, 0.0  ;;  %v2553_v43 = vmax.f32 %v2162_v39, 0.0  ;;  %v1489_v44 = vpop.f32.mrf.mxu0  ;;  %v1714_v45 = vpop.f32.mrf.mxu1 }
 0x17f   : > { %v1490_v48 = vadd.f32 %v3900_v31, %v1489_v44  ;;  %v1715_v49 = vadd.f32 %v3900_v31, %v1714_v45 }
 0x180   : > { %2779 = vst.msk [vmem:[%s3480_s26 + $0x598] sm:$0xff] %vm2599_vm2, %v2478_v42  ;;  %3159 = vmatmul.msk.f32.gmra.mxu2 %vm477_vm1, %v367_v40  ;;  %3234 = vmatmul.msk.f32.gmra.mxu3 %vm477_vm1, %v442_v41  ;;  %v371_v41 = vld [vmem:[%s3334_s21 + $0x640] sm:$0xff]  ;;  %v446_v42 = vld [vmem:[%s3334_s21 + $0x898] sm:$0xff] }
 0x181   : > { %2854 = vst.msk [vmem:[%s3480_s26 + $0x7f0] sm:$0xff] %vm2599_vm2, %v2553_v43  ;;  %v2329_v50 = vmax.f32 %v1490_v48, 0.0  ;;  %v2404_v51 = vmax.f32 %v1715_v49, 0.0  ;;  %3009 = vmatmul.msk.f32.gmra.mxu0 %vm477_vm1, %v217_v46  ;;  %3084 = vmatmul.msk.f32.gmra.mxu1 %vm477_vm1, %v292_v47  ;;  %v221_v47 = vld [vmem:[%s3334_s21 + $0x190] sm:$0xff]  ;;  %v296_v48 = vld [vmem:[%s3334_s21 + $0x3e8] sm:$0xff] }
 0x183   : > { %2630 = vst.msk [vmem:[%s3480_s26 + $0xf0] sm:$0xff] %vm2599_vm2, %v2329_v50  ;;  %v1939_v52 = vpop.f32.mrf.mxu2  ;;  %v2164_v53 = vpop.f32.mrf.mxu3 }
 0x184   : > { %2705 = vst.msk [vmem:[%s3480_s26 + $0x348] sm:$0xff] %vm2599_vm2, %v2404_v51  ;;  %v1940_v54 = vadd.f32 %v3900_v31, %v1939_v52  ;;  %v2165_v55 = vadd.f32 %v3900_v31, %v2164_v53 }
 0x186   : > { %v2479_v58 = vmax.f32 %v1940_v54, 0.0  ;;  %v2554_v59 = vmax.f32 %v2165_v55, 0.0  ;;  %v1492_v60 = vpop.f32.mrf.mxu0  ;;  %v1717_v61 = vpop.f32.mrf.mxu1 }
 0x187   : > { %v1493_v0 = vadd.f32 %v3900_v31, %v1492_v60  ;;  %v1718_v1 = vadd.f32 %v3900_v31, %v1717_v61 }
 0x188   : > { %2780 = vst.msk [vmem:[%s3480_s26 + $0x5a0] sm:$0xff] %vm2599_vm2, %v2479_v58  ;;  %3160 = vmatmul.msk.f32.gmra.mxu2 %vm477_vm1, %v368_v56  ;;  %3235 = vmatmul.msk.f32.gmra.mxu3 %vm477_vm1, %v443_v57  ;;  %v372_v57 = vld [vmem:[%s3334_s21 + $0x648] sm:$0xff]  ;;  %v447_v58 = vld [vmem:[%s3334_s21 + $0x8a0] sm:$0xff] }
 0x189   : > { %2855 = vst.msk [vmem:[%s3480_s26 + $0x7f8] sm:$0xff] %vm2599_vm2, %v2554_v59  ;;  %v2330_v3 = vmax.f32 %v1493_v0, 0.0  ;;  %v2405_v4 = vmax.f32 %v1718_v1, 0.0  ;;  %3010 = vmatmul.msk.f32.gmra.mxu0 %vm477_vm1, %v218_v62  ;;  %3085 = vmatmul.msk.f32.gmra.mxu1 %vm477_vm1, %v293_v63  ;;  %v222_v63 = vld [vmem:[%s3334_s21 + $0x198] sm:$0xff]  ;;  %v297_v0 = vld [vmem:[%s3334_s21 + $0x3f0] sm:$0xff] }
 0x18b   : > { %2631 = vst.msk [vmem:[%s3480_s26 + $0xf8] sm:$0xff] %vm2599_vm2, %v2330_v3  ;;  %v1942_v5 = vpop.f32.mrf.mxu2  ;;  %v2167_v6 = vpop.f32.mrf.mxu3 }
 0x18c   : > { %2706 = vst.msk [vmem:[%s3480_s26 + $0x350] sm:$0xff] %vm2599_vm2, %v2405_v4  ;;  %v1943_v7 = vadd.f32 %v3900_v31, %v1942_v5  ;;  %v2168_v8 = vadd.f32 %v3900_v31, %v2167_v6 }
 0x18e   : > { %v2480_v11 = vmax.f32 %v1943_v7, 0.0  ;;  %v2555_v12 = vmax.f32 %v2168_v8, 0.0  ;;  %v1495_v13 = vpop.f32.mrf.mxu0  ;;  %v1720_v14 = vpop.f32.mrf.mxu1 }
 0x18f   : > { %v1496_v17 = vadd.f32 %v3900_v31, %v1495_v13  ;;  %v1721_v18 = vadd.f32 %v3900_v31, %v1720_v14 }
 0x190   : > { %2781 = vst.msk [vmem:[%s3480_s26 + $0x5a8] sm:$0xff] %vm2599_vm2, %v2480_v11  ;;  %3161 = vmatmul.msk.f32.gmra.mxu2 %vm477_vm1, %v369_v9  ;;  %3236 = vmatmul.msk.f32.gmra.mxu3 %vm477_vm1, %v444_v10  ;;  %v373_v10 = vld [vmem:[%s3334_s21 + $0x650] sm:$0xff]  ;;  %v448_v11 = vld [vmem:[%s3334_s21 + $0x8a8] sm:$0xff] }
 0x191   : > { %2856 = vst.msk [vmem:[%s3480_s26 + $0x800] sm:$0xff] %vm2599_vm2, %v2555_v12  ;;  %v2331_v19 = vmax.f32 %v1496_v17, 0.0  ;;  %v2406_v20 = vmax.f32 %v1721_v18, 0.0  ;;  %3011 = vmatmul.msk.f32.gmra.mxu0 %vm477_vm1, %v219_v15  ;;  %3086 = vmatmul.msk.f32.gmra.mxu1 %vm477_vm1, %v294_v16  ;;  %v223_v16 = vld [vmem:[%s3334_s21 + $0x1a0] sm:$0xff]  ;;  %v298_v17 = vld [vmem:[%s3334_s21 + $0x3f8] sm:$0xff] }
 0x193   : > { %2632 = vst.msk [vmem:[%s3480_s26 + $0x100] sm:$0xff] %vm2599_vm2, %v2331_v19  ;;  %v1945_v21 = vpop.f32.mrf.mxu2  ;;  %v2170_v22 = vpop.f32.mrf.mxu3 }
 0x194   : > { %2707 = vst.msk [vmem:[%s3480_s26 + $0x358] sm:$0xff] %vm2599_vm2, %v2406_v20  ;;  %v1946_v23 = vadd.f32 %v3900_v31, %v1945_v21  ;;  %v2171_v24 = vadd.f32 %v3900_v31, %v2170_v22 }
 0x196   : > { %v2481_v27 = vmax.f32 %v1946_v23, 0.0  ;;  %v2556_v28 = vmax.f32 %v2171_v24, 0.0  ;;  %v1498_v29 = vpop.f32.mrf.mxu0  ;;  %v1723_v30 = vpop.f32.mrf.mxu1 }
 0x197   : > { %v1499_v2 = vadd.f32 %v3900_v31, %v1498_v29  ;;  %v1724_v34 = vadd.f32 %v3900_v31, %v1723_v30 }
 0x198   : > { %2782 = vst.msk [vmem:[%s3480_s26 + $0x5b0] sm:$0xff] %vm2599_vm2, %v2481_v27  ;;  %3162 = vmatmul.msk.f32.gmra.mxu2 %vm477_vm1, %v370_v25  ;;  %3237 = vmatmul.msk.f32.gmra.mxu3 %vm477_vm1, %v445_v26  ;;  %v374_v26 = vld [vmem:[%s3334_s21 + $0x658] sm:$0xff]  ;;  %v449_v27 = vld [vmem:[%s3334_s21 + $0x8b0] sm:$0xff] }
 0x199   : > { %2857 = vst.msk [vmem:[%s3480_s26 + $0x808] sm:$0xff] %vm2599_vm2, %v2556_v28  ;;  %v2332_v35 = vmax.f32 %v1499_v2, 0.0  ;;  %v2407_v36 = vmax.f32 %v1724_v34, 0.0  ;;  %3012 = vmatmul.msk.f32.gmra.mxu0 %vm477_vm1, %v220_v32  ;;  %3087 = vmatmul.msk.f32.gmra.mxu1 %vm477_vm1, %v295_v33  ;;  %v224_v33 = vld [vmem:[%s3334_s21 + $0x1a8] sm:$0xff]  ;;  %v299_v2 = vld [vmem:[%s3334_s21 + $0x400] sm:$0xff] }
 0x19b   : > { %2633 = vst.msk [vmem:[%s3480_s26 + $0x108] sm:$0xff] %vm2599_vm2, %v2332_v35  ;;  %v1948_v37 = vpop.f32.mrf.mxu2  ;;  %v2173_v38 = vpop.f32.mrf.mxu3 }
 0x19c   : > { %2708 = vst.msk [vmem:[%s3480_s26 + $0x360] sm:$0xff] %vm2599_vm2, %v2407_v36  ;;  %v1949_v39 = vadd.f32 %v3900_v31, %v1948_v37  ;;  %v2174_v40 = vadd.f32 %v3900_v31, %v2173_v38 }
 0x19e   : > { %v2482_v43 = vmax.f32 %v1949_v39, 0.0  ;;  %v2557_v44 = vmax.f32 %v2174_v40, 0.0  ;;  %v1501_v45 = vpop.f32.mrf.mxu0  ;;  %v1726_v46 = vpop.f32.mrf.mxu1 }
 0x19f   : > { %v1502_v49 = vadd.f32 %v3900_v31, %v1501_v45  ;;  %v1727_v50 = vadd.f32 %v3900_v31, %v1726_v46 }
 0x1a0   : > { %2783 = vst.msk [vmem:[%s3480_s26 + $0x5b8] sm:$0xff] %vm2599_vm2, %v2482_v43  ;;  %3163 = vmatmul.msk.f32.gmra.mxu2 %vm477_vm1, %v371_v41  ;;  %3238 = vmatmul.msk.f32.gmra.mxu3 %vm477_vm1, %v446_v42  ;;  %v375_v42 = vld [vmem:[%s3334_s21 + $0x660] sm:$0xff]  ;;  %v450_v43 = vld [vmem:[%s3334_s21 + $0x8b8] sm:$0xff] }
 0x1a1   : > { %2858 = vst.msk [vmem:[%s3480_s26 + $0x810] sm:$0xff] %vm2599_vm2, %v2557_v44  ;;  %v2333_v51 = vmax.f32 %v1502_v49, 0.0  ;;  %v2408_v52 = vmax.f32 %v1727_v50, 0.0  ;;  %3013 = vmatmul.msk.f32.gmra.mxu0 %vm477_vm1, %v221_v47  ;;  %3088 = vmatmul.msk.f32.gmra.mxu1 %vm477_vm1, %v296_v48  ;;  %v225_v48 = vld [vmem:[%s3334_s21 + $0x1b0] sm:$0xff]  ;;  %v300_v49 = vld [vmem:[%s3334_s21 + $0x408] sm:$0xff] }
 0x1a3   : > { %2634 = vst.msk [vmem:[%s3480_s26 + $0x110] sm:$0xff] %vm2599_vm2, %v2333_v51  ;;  %v1951_v53 = vpop.f32.mrf.mxu2  ;;  %v2176_v54 = vpop.f32.mrf.mxu3 }
 0x1a4   : > { %2709 = vst.msk [vmem:[%s3480_s26 + $0x368] sm:$0xff] %vm2599_vm2, %v2408_v52  ;;  %v1952_v55 = vadd.f32 %v3900_v31, %v1951_v53  ;;  %v2177_v56 = vadd.f32 %v3900_v31, %v2176_v54 }
 0x1a6   : > { %v2483_v59 = vmax.f32 %v1952_v55, 0.0  ;;  %v2558_v60 = vmax.f32 %v2177_v56, 0.0  ;;  %v1504_v61 = vpop.f32.mrf.mxu0  ;;  %v1729_v62 = vpop.f32.mrf.mxu1 }
 0x1a7   : > { %v1505_v1 = vadd.f32 %v3900_v31, %v1504_v61  ;;  %v1730_v3 = vadd.f32 %v3900_v31, %v1729_v62 }
 0x1a8   : > { %2784 = vst.msk [vmem:[%s3480_s26 + $0x5c0] sm:$0xff] %vm2599_vm2, %v2483_v59  ;;  %3164 = vmatmul.msk.f32.gmra.mxu2 %vm477_vm1, %v372_v57  ;;  %3239 = vmatmul.msk.f32.gmra.mxu3 %vm477_vm1, %v447_v58  ;;  %v376_v58 = vld [vmem:[%s3334_s21 + $0x668] sm:$0xff]  ;;  %v451_v59 = vld [vmem:[%s3334_s21 + $0x8c0] sm:$0xff] }
 0x1a9   : > { %2859 = vst.msk [vmem:[%s3480_s26 + $0x818] sm:$0xff] %vm2599_vm2, %v2558_v60  ;;  %v2334_v4 = vmax.f32 %v1505_v1, 0.0  ;;  %v2409_v5 = vmax.f32 %v1730_v3, 0.0  ;;  %3014 = vmatmul.msk.f32.gmra.mxu0 %vm477_vm1, %v222_v63  ;;  %3089 = vmatmul.msk.f32.gmra.mxu1 %vm477_vm1, %v297_v0  ;;  %v226_v0 = vld [vmem:[%s3334_s21 + $0x1b8] sm:$0xff]  ;;  %v301_v1 = vld [vmem:[%s3334_s21 + $0x410] sm:$0xff] }
 0x1ab   : > { %2635 = vst.msk [vmem:[%s3480_s26 + $0x118] sm:$0xff] %vm2599_vm2, %v2334_v4  ;;  %v1954_v6 = vpop.f32.mrf.mxu2  ;;  %v2179_v7 = vpop.f32.mrf.mxu3 }
 0x1ac   : > { %2710 = vst.msk [vmem:[%s3480_s26 + $0x370] sm:$0xff] %vm2599_vm2, %v2409_v5  ;;  %v1955_v8 = vadd.f32 %v3900_v31, %v1954_v6  ;;  %v2180_v9 = vadd.f32 %v3900_v31, %v2179_v7 }
 0x1ae   : > { %v2484_v12 = vmax.f32 %v1955_v8, 0.0  ;;  %v2559_v13 = vmax.f32 %v2180_v9, 0.0  ;;  %v1507_v14 = vpop.f32.mrf.mxu0  ;;  %v1732_v15 = vpop.f32.mrf.mxu1 }
 0x1af   : > { %v1508_v18 = vadd.f32 %v3900_v31, %v1507_v14  ;;  %v1733_v19 = vadd.f32 %v3900_v31, %v1732_v15 }
 0x1b0   : > { %2785 = vst.msk [vmem:[%s3480_s26 + $0x5c8] sm:$0xff] %vm2599_vm2, %v2484_v12  ;;  %3165 = vmatmul.msk.f32.gmra.mxu2 %vm477_vm1, %v373_v10  ;;  %3240 = vmatmul.msk.f32.gmra.mxu3 %vm477_vm1, %v448_v11  ;;  %v377_v11 = vld [vmem:[%s3334_s21 + $0x670] sm:$0xff]  ;;  %v452_v12 = vld [vmem:[%s3334_s21 + $0x8c8] sm:$0xff] }
 0x1b1   : > { %2860 = vst.msk [vmem:[%s3480_s26 + $0x820] sm:$0xff] %vm2599_vm2, %v2559_v13  ;;  %v2335_v20 = vmax.f32 %v1508_v18, 0.0  ;;  %v2410_v21 = vmax.f32 %v1733_v19, 0.0  ;;  %3015 = vmatmul.msk.f32.gmra.mxu0 %vm477_vm1, %v223_v16  ;;  %3090 = vmatmul.msk.f32.gmra.mxu1 %vm477_vm1, %v298_v17  ;;  %v227_v17 = vld [vmem:[%s3334_s21 + $0x1c0] sm:$0xff]  ;;  %v302_v18 = vld [vmem:[%s3334_s21 + $0x418] sm:$0xff] }
 0x1b3   : > { %2636 = vst.msk [vmem:[%s3480_s26 + $0x120] sm:$0xff] %vm2599_vm2, %v2335_v20  ;;  %v1957_v22 = vpop.f32.mrf.mxu2  ;;  %v2182_v23 = vpop.f32.mrf.mxu3 }
 0x1b4   : > { %2711 = vst.msk [vmem:[%s3480_s26 + $0x378] sm:$0xff] %vm2599_vm2, %v2410_v21  ;;  %v1958_v24 = vadd.f32 %v3900_v31, %v1957_v22  ;;  %v2183_v25 = vadd.f32 %v3900_v31, %v2182_v23 }
 0x1b6   : > { %v2485_v28 = vmax.f32 %v1958_v24, 0.0  ;;  %v2560_v29 = vmax.f32 %v2183_v25, 0.0  ;;  %v1510_v30 = vpop.f32.mrf.mxu0  ;;  %v1735_v32 = vpop.f32.mrf.mxu1 }
 0x1b7   : > { %v1511_v34 = vadd.f32 %v3900_v31, %v1510_v30  ;;  %v1736_v35 = vadd.f32 %v3900_v31, %v1735_v32 }
 0x1b8   : > { %2786 = vst.msk [vmem:[%s3480_s26 + $0x5d0] sm:$0xff] %vm2599_vm2, %v2485_v28  ;;  %3166 = vmatmul.msk.f32.gmra.mxu2 %vm477_vm1, %v374_v26  ;;  %3241 = vmatmul.msk.f32.gmra.mxu3 %vm477_vm1, %v449_v27  ;;  %v378_v27 = vld [vmem:[%s3334_s21 + $0x678] sm:$0xff]  ;;  %v453_v28 = vld [vmem:[%s3334_s21 + $0x8d0] sm:$0xff] }
 0x1b9   : > { %2861 = vst.msk [vmem:[%s3480_s26 + $0x828] sm:$0xff] %vm2599_vm2, %v2560_v29  ;;  %v2336_v36 = vmax.f32 %v1511_v34, 0.0  ;;  %v2411_v37 = vmax.f32 %v1736_v35, 0.0  ;;  %3016 = vmatmul.msk.f32.gmra.mxu0 %vm477_vm1, %v224_v33  ;;  %3091 = vmatmul.msk.f32.gmra.mxu1 %vm477_vm1, %v299_v2  ;;  %v228_v2 = vld [vmem:[%s3334_s21 + $0x1c8] sm:$0xff]  ;;  %v303_v34 = vld [vmem:[%s3334_s21 + $0x420] sm:$0xff] }
 0x1bb   : > { %2637 = vst.msk [vmem:[%s3480_s26 + $0x128] sm:$0xff] %vm2599_vm2, %v2336_v36  ;;  %v1960_v38 = vpop.f32.mrf.mxu2  ;;  %v2185_v39 = vpop.f32.mrf.mxu3 }
 0x1bc   : > { %2712 = vst.msk [vmem:[%s3480_s26 + $0x380] sm:$0xff] %vm2599_vm2, %v2411_v37  ;;  %v1961_v40 = vadd.f32 %v3900_v31, %v1960_v38  ;;  %v2186_v41 = vadd.f32 %v3900_v31, %v2185_v39 }
 0x1be   : > { %v2486_v44 = vmax.f32 %v1961_v40, 0.0  ;;  %v2561_v45 = vmax.f32 %v2186_v41, 0.0  ;;  %v1513_v46 = vpop.f32.mrf.mxu0  ;;  %v1738_v47 = vpop.f32.mrf.mxu1 }
 0x1bf   : > { %v1514_v50 = vadd.f32 %v3900_v31, %v1513_v46  ;;  %v1739_v51 = vadd.f32 %v3900_v31, %v1738_v47 }
 0x1c0   : > { %2787 = vst.msk [vmem:[%s3480_s26 + $0x5d8] sm:$0xff] %vm2599_vm2, %v2486_v44  ;;  %3167 = vmatmul.msk.f32.gmra.mxu2 %vm477_vm1, %v375_v42  ;;  %3242 = vmatmul.msk.f32.gmra.mxu3 %vm477_vm1, %v450_v43  ;;  %v379_v43 = vld [vmem:[%s3334_s21 + $0x680] sm:$0xff]  ;;  %v454_v44 = vld [vmem:[%s3334_s21 + $0x8d8] sm:$0xff] }
 0x1c1   : > { %2862 = vst.msk [vmem:[%s3480_s26 + $0x830] sm:$0xff] %vm2599_vm2, %v2561_v45  ;;  %v2337_v52 = vmax.f32 %v1514_v50, 0.0  ;;  %v2412_v53 = vmax.f32 %v1739_v51, 0.0  ;;  %3017 = vmatmul.msk.f32.gmra.mxu0 %vm477_vm1, %v225_v48  ;;  %3092 = vmatmul.msk.f32.gmra.mxu1 %vm477_vm1, %v300_v49  ;;  %v229_v49 = vld [vmem:[%s3334_s21 + $0x1d0] sm:$0xff]  ;;  %v304_v50 = vld [vmem:[%s3334_s21 + $0x428] sm:$0xff] }
 0x1c3   : > { %2638 = vst.msk [vmem:[%s3480_s26 + $0x130] sm:$0xff] %vm2599_vm2, %v2337_v52  ;;  %v1963_v54 = vpop.f32.mrf.mxu2  ;;  %v2188_v55 = vpop.f32.mrf.mxu3 }
 0x1c4   : > { %2713 = vst.msk [vmem:[%s3480_s26 + $0x388] sm:$0xff] %vm2599_vm2, %v2412_v53  ;;  %v1964_v56 = vadd.f32 %v3900_v31, %v1963_v54  ;;  %v2189_v57 = vadd.f32 %v3900_v31, %v2188_v55 }
 0x1c6   : > { %v2487_v60 = vmax.f32 %v1964_v56, 0.0  ;;  %v2562_v61 = vmax.f32 %v2189_v57, 0.0  ;;  %v1516_v62 = vpop.f32.mrf.mxu0  ;;  %v1741_v63 = vpop.f32.mrf.mxu1  ;;  %v4338_v56 = vld [vmem:[%s4868_s2] ss:$0 sm:$0xff] }
 0x1c7   : > { %v1517_v3 = vadd.f32 %v3900_v31, %v1516_v62  ;;  %v1742_v4 = vadd.f32 %v3900_v31, %v1741_v63 }
 0x1c8   : > { %2788 = vst.msk [vmem:[%s3480_s26 + $0x5e0] sm:$0xff] %vm2599_vm2, %v2487_v60  ;;  %3168 = vmatmul.msk.f32.gmra.mxu2 %vm477_vm1, %v376_v58  ;;  %3243 = vmatmul.msk.f32.gmra.mxu3 %vm477_vm1, %v451_v59  ;;  %v380_v59 = vld [vmem:[%s3334_s21 + $0x688] sm:$0xff]  ;;  %v455_v60 = vld [vmem:[%s3334_s21 + $0x8e0] sm:$0xff] }
 0x1c9   : > { %2863 = vst.msk [vmem:[%s3480_s26 + $0x838] sm:$0xff] %vm2599_vm2, %v2562_v61  ;;  %v2338_v5 = vmax.f32 %v1517_v3, 0.0  ;;  %v2413_v6 = vmax.f32 %v1742_v4, 0.0  ;;  %3018 = vmatmul.msk.f32.gmra.mxu0 %vm477_vm1, %v226_v0  ;;  %3093 = vmatmul.msk.f32.gmra.mxu1 %vm477_vm1, %v301_v1  ;;  %v230_v1 = vld [vmem:[%s3334_s21 + $0x1d8] sm:$0xff]  ;;  %v305_v3 = vld [vmem:[%s3334_s21 + $0x430] sm:$0xff] }
 0x1cb   : > { %2639 = vst.msk [vmem:[%s3480_s26 + $0x138] sm:$0xff] %vm2599_vm2, %v2338_v5  ;;  %v1966_v7 = vpop.f32.mrf.mxu2  ;;  %v2191_v8 = vpop.f32.mrf.mxu3 }
 0x1cc   : > { %2714 = vst.msk [vmem:[%s3480_s26 + $0x390] sm:$0xff] %vm2599_vm2, %v2413_v6  ;;  %v1967_v9 = vadd.f32 %v3900_v31, %v1966_v7  ;;  %v2192_v10 = vadd.f32 %v3900_v31, %v2191_v8 }
 0x1ce   : > { %v2488_v13 = vmax.f32 %v1967_v9, 0.0  ;;  %v2563_v14 = vmax.f32 %v2192_v10, 0.0  ;;  %v1519_v15 = vpop.f32.mrf.mxu0  ;;  %v1744_v16 = vpop.f32.mrf.mxu1 }
 0x1cf   : > { %v1520_v19 = vadd.f32 %v3900_v31, %v1519_v15  ;;  %v1745_v20 = vadd.f32 %v3900_v31, %v1744_v16 }
 0x1d0   : > { %2789 = vst.msk [vmem:[%s3480_s26 + $0x5e8] sm:$0xff] %vm2599_vm2, %v2488_v13  ;;  %3169 = vmatmul.msk.f32.gmra.mxu2 %vm477_vm1, %v377_v11  ;;  %3244 = vmatmul.msk.f32.gmra.mxu3 %vm477_vm1, %v452_v12  ;;  %v381_v12 = vld [vmem:[%s3334_s21 + $0x690] sm:$0xff]  ;;  %v456_v13 = vld [vmem:[%s3334_s21 + $0x8e8] sm:$0xff] }
 0x1d1   : > { %2864 = vst.msk [vmem:[%s3480_s26 + $0x840] sm:$0xff] %vm2599_vm2, %v2563_v14  ;;  %v2339_v21 = vmax.f32 %v1520_v19, 0.0  ;;  %v2414_v22 = vmax.f32 %v1745_v20, 0.0  ;;  %3019 = vmatmul.msk.f32.gmra.mxu0 %vm477_vm1, %v227_v17  ;;  %3094 = vmatmul.msk.f32.gmra.mxu1 %vm477_vm1, %v302_v18  ;;  %v231_v18 = vld [vmem:[%s3334_s21 + $0x1e0] sm:$0xff]  ;;  %v306_v19 = vld [vmem:[%s3334_s21 + $0x438] sm:$0xff] }
 0x1d3   : > { %2640 = vst.msk [vmem:[%s3480_s26 + $0x140] sm:$0xff] %vm2599_vm2, %v2339_v21  ;;  %v1969_v23 = vpop.f32.mrf.mxu2  ;;  %v2194_v24 = vpop.f32.mrf.mxu3 }
 0x1d4   : > { %2715 = vst.msk [vmem:[%s3480_s26 + $0x398] sm:$0xff] %vm2599_vm2, %v2414_v22  ;;  %v1970_v25 = vadd.f32 %v3900_v31, %v1969_v23  ;;  %v2195_v26 = vadd.f32 %v3900_v31, %v2194_v24 }
 0x1d6   : > { %v2489_v29 = vmax.f32 %v1970_v25, 0.0  ;;  %v2564_v30 = vmax.f32 %v2195_v26, 0.0  ;;  %v1522_v32 = vpop.f32.mrf.mxu0  ;;  %v1747_v33 = vpop.f32.mrf.mxu1 }
 0x1d7   : > { %v1523_v35 = vadd.f32 %v3900_v31, %v1522_v32  ;;  %v1748_v36 = vadd.f32 %v3900_v31, %v1747_v33 }
 0x1d8   : > { %2790 = vst.msk [vmem:[%s3480_s26 + $0x5f0] sm:$0xff] %vm2599_vm2, %v2489_v29  ;;  %3170 = vmatmul.msk.f32.gmra.mxu2 %vm477_vm1, %v378_v27  ;;  %3245 = vmatmul.msk.f32.gmra.mxu3 %vm477_vm1, %v453_v28  ;;  %v382_v28 = vld [vmem:[%s3334_s21 + $0x698] sm:$0xff]  ;;  %v457_v29 = vld [vmem:[%s3334_s21 + $0x8f0] sm:$0xff] }
 0x1d9   : > { %2865 = vst.msk [vmem:[%s3480_s26 + $0x848] sm:$0xff] %vm2599_vm2, %v2564_v30  ;;  %v2340_v37 = vmax.f32 %v1523_v35, 0.0  ;;  %v2415_v38 = vmax.f32 %v1748_v36, 0.0  ;;  %3020 = vmatmul.msk.f32.gmra.mxu0 %vm477_vm1, %v228_v2  ;;  %3095 = vmatmul.msk.f32.gmra.mxu1 %vm477_vm1, %v303_v34  ;;  %v232_v34 = vld [vmem:[%s3334_s21 + $0x1e8] sm:$0xff]  ;;  %v307_v35 = vld [vmem:[%s3334_s21 + $0x440] sm:$0xff] }
 0x1db   : > { %2641 = vst.msk [vmem:[%s3480_s26 + $0x148] sm:$0xff] %vm2599_vm2, %v2340_v37  ;;  %v1972_v39 = vpop.f32.mrf.mxu2  ;;  %v2197_v40 = vpop.f32.mrf.mxu3 }
 0x1dc   : > { %2716 = vst.msk [vmem:[%s3480_s26 + $0x3a0] sm:$0xff] %vm2599_vm2, %v2415_v38  ;;  %v1973_v41 = vadd.f32 %v3900_v31, %v1972_v39  ;;  %v2198_v42 = vadd.f32 %v3900_v31, %v2197_v40 }
 0x1de   : > { %v2490_v45 = vmax.f32 %v1973_v41, 0.0  ;;  %v2565_v46 = vmax.f32 %v2198_v42, 0.0  ;;  %v1525_v47 = vpop.f32.mrf.mxu0  ;;  %v1750_v48 = vpop.f32.mrf.mxu1 }
 0x1df   : > { %v1526_v51 = vadd.f32 %v3900_v31, %v1525_v47  ;;  %v1751_v52 = vadd.f32 %v3900_v31, %v1750_v48 }
 0x1e0   : > { %2791 = vst.msk [vmem:[%s3480_s26 + $0x5f8] sm:$0xff] %vm2599_vm2, %v2490_v45  ;;  %3171 = vmatmul.msk.f32.gmra.mxu2 %vm477_vm1, %v379_v43  ;;  %3246 = vmatmul.msk.f32.gmra.mxu3 %vm477_vm1, %v454_v44  ;;  %v383_v44 = vld [vmem:[%s3334_s21 + $0x6a0] sm:$0xff]  ;;  %v458_v45 = vld [vmem:[%s3334_s21 + $0x8f8] sm:$0xff] }
 0x1e1   : > { %2866 = vst.msk [vmem:[%s3480_s26 + $0x850] sm:$0xff] %vm2599_vm2, %v2565_v46  ;;  %v2341_v53 = vmax.f32 %v1526_v51, 0.0  ;;  %v2416_v54 = vmax.f32 %v1751_v52, 0.0  ;;  %3021 = vmatmul.msk.f32.gmra.mxu0 %vm477_vm1, %v229_v49  ;;  %3096 = vmatmul.msk.f32.gmra.mxu1 %vm477_vm1, %v304_v50  ;;  %v233_v50 = vld [vmem:[%s3334_s21 + $0x1f0] sm:$0xff]  ;;  %v308_v51 = vld [vmem:[%s3334_s21 + $0x448] sm:$0xff] }
 0x1e3   : > { %2642 = vst.msk [vmem:[%s3480_s26 + $0x150] sm:$0xff] %vm2599_vm2, %v2341_v53  ;;  %v1975_v31 = vpop.f32.mrf.mxu2  ;;  %v2200_v55 = vpop.f32.mrf.mxu3 }
 0x1e4   : > { %2717 = vst.msk [vmem:[%s3480_s26 + $0x3a8] sm:$0xff] %vm2599_vm2, %v2416_v54  ;;  %v1976_v57 = vadd.f32 %v4338_v56, %v1975_v31  ;;  %v2201_v58 = vadd.f32 %v4338_v56, %v2200_v55 }
 0x1e6   : > { %v2491_v61 = vmax.f32 %v1976_v57, 0.0  ;;  %v2566_v62 = vmax.f32 %v2201_v58, 0.0  ;;  %v1528_v63 = vpop.f32.mrf.mxu0  ;;  %v1753_v0 = vpop.f32.mrf.mxu1 }
 0x1e7   : > { %v1529_v4 = vadd.f32 %v4338_v56, %v1528_v63  ;;  %v1754_v5 = vadd.f32 %v4338_v56, %v1753_v0 }
 0x1e8   : > { %2792 = vst.msk [vmem:[%s3480_s26 + $0x600] sm:$0xff] %vm2599_vm2, %v2491_v61  ;;  %3172 = vmatmul.msk.f32.gmra.mxu2 %vm477_vm1, %v380_v59  ;;  %3247 = vmatmul.msk.f32.gmra.mxu3 %vm477_vm1, %v455_v60  ;;  %v384_v60 = vld [vmem:[%s3334_s21 + $0x6a8] sm:$0xff]  ;;  %v459_v61 = vld [vmem:[%s3334_s21 + $0x900] sm:$0xff] }
 0x1e9   : > { %2867 = vst.msk [vmem:[%s3480_s26 + $0x858] sm:$0xff] %vm2599_vm2, %v2566_v62  ;;  %v2342_v6 = vmax.f32 %v1529_v4, 0.0  ;;  %v2417_v7 = vmax.f32 %v1754_v5, 0.0  ;;  %3022 = vmatmul.msk.f32.gmra.mxu0 %vm477_vm1, %v230_v1  ;;  %3097 = vmatmul.msk.f32.gmra.mxu1 %vm477_vm1, %v305_v3  ;;  %v234_v3 = vld [vmem:[%s3334_s21 + $0x1f8] sm:$0xff]  ;;  %v309_v4 = vld [vmem:[%s3334_s21 + $0x450] sm:$0xff] }
 0x1eb   : > { %2643 = vst.msk [vmem:[%s3480_s26 + $0x158] sm:$0xff] %vm2599_vm2, %v2342_v6  ;;  %v1978_v8 = vpop.f32.mrf.mxu2  ;;  %v2203_v9 = vpop.f32.mrf.mxu3 }
 0x1ec   : > { %2718 = vst.msk [vmem:[%s3480_s26 + $0x3b0] sm:$0xff] %vm2599_vm2, %v2417_v7  ;;  %v1979_v10 = vadd.f32 %v4338_v56, %v1978_v8  ;;  %v2204_v11 = vadd.f32 %v4338_v56, %v2203_v9 }
 0x1ee   : > { %v2492_v14 = vmax.f32 %v1979_v10, 0.0  ;;  %v2567_v15 = vmax.f32 %v2204_v11, 0.0  ;;  %v1531_v16 = vpop.f32.mrf.mxu0  ;;  %v1756_v17 = vpop.f32.mrf.mxu1 }
 0x1ef   : > { %v1532_v20 = vadd.f32 %v4338_v56, %v1531_v16  ;;  %v1757_v21 = vadd.f32 %v4338_v56, %v1756_v17 }
 0x1f0   : > { %2793 = vst.msk [vmem:[%s3480_s26 + $0x608] sm:$0xff] %vm2599_vm2, %v2492_v14  ;;  %3173 = vmatmul.msk.f32.gmra.mxu2 %vm477_vm1, %v381_v12  ;;  %3248 = vmatmul.msk.f32.gmra.mxu3 %vm477_vm1, %v456_v13  ;;  %v385_v13 = vld [vmem:[%s3334_s21 + $0x6b0] sm:$0xff]  ;;  %v460_v14 = vld [vmem:[%s3334_s21 + $0x908] sm:$0xff] }
 0x1f1   : > { %2868 = vst.msk [vmem:[%s3480_s26 + $0x860] sm:$0xff] %vm2599_vm2, %v2567_v15  ;;  %v2343_v22 = vmax.f32 %v1532_v20, 0.0  ;;  %v2418_v23 = vmax.f32 %v1757_v21, 0.0  ;;  %3023 = vmatmul.msk.f32.gmra.mxu0 %vm477_vm1, %v231_v18  ;;  %3098 = vmatmul.msk.f32.gmra.mxu1 %vm477_vm1, %v306_v19  ;;  %v235_v19 = vld [vmem:[%s3334_s21 + $0x200] sm:$0xff]  ;;  %v310_v20 = vld [vmem:[%s3334_s21 + $0x458] sm:$0xff] }
 0x1f3   : > { %2644 = vst.msk [vmem:[%s3480_s26 + $0x160] sm:$0xff] %vm2599_vm2, %v2343_v22  ;;  %v1981_v24 = vpop.f32.mrf.mxu2  ;;  %v2206_v25 = vpop.f32.mrf.mxu3 }
 0x1f4   : > { %2719 = vst.msk [vmem:[%s3480_s26 + $0x3b8] sm:$0xff] %vm2599_vm2, %v2418_v23  ;;  %v1982_v26 = vadd.f32 %v4338_v56, %v1981_v24  ;;  %v2207_v27 = vadd.f32 %v4338_v56, %v2206_v25 }
 0x1f6   : > { %v2493_v30 = vmax.f32 %v1982_v26, 0.0  ;;  %v2568_v32 = vmax.f32 %v2207_v27, 0.0  ;;  %v1534_v33 = vpop.f32.mrf.mxu0  ;;  %v1759_v2 = vpop.f32.mrf.mxu1 }
 0x1f7   : > { %v1535_v36 = vadd.f32 %v4338_v56, %v1534_v33  ;;  %v1760_v37 = vadd.f32 %v4338_v56, %v1759_v2 }
 0x1f8   : > { %2794 = vst.msk [vmem:[%s3480_s26 + $0x610] sm:$0xff] %vm2599_vm2, %v2493_v30  ;;  %3174 = vmatmul.msk.f32.gmra.mxu2 %vm477_vm1, %v382_v28  ;;  %3249 = vmatmul.msk.f32.gmra.mxu3 %vm477_vm1, %v457_v29  ;;  %v386_v29 = vld [vmem:[%s3334_s21 + $0x6b8] sm:$0xff]  ;;  %v461_v30 = vld [vmem:[%s3334_s21 + $0x910] sm:$0xff] }
 0x1f9   : > { %2869 = vst.msk [vmem:[%s3480_s26 + $0x868] sm:$0xff] %vm2599_vm2, %v2568_v32  ;;  %v2344_v38 = vmax.f32 %v1535_v36, 0.0  ;;  %v2419_v39 = vmax.f32 %v1760_v37, 0.0  ;;  %3024 = vmatmul.msk.f32.gmra.mxu0 %vm477_vm1, %v232_v34  ;;  %3099 = vmatmul.msk.f32.gmra.mxu1 %vm477_vm1, %v307_v35  ;;  %v236_v35 = vld [vmem:[%s3334_s21 + $0x208] sm:$0xff]  ;;  %v311_v36 = vld [vmem:[%s3334_s21 + $0x460] sm:$0xff] }
 0x1fb   : > { %2645 = vst.msk [vmem:[%s3480_s26 + $0x168] sm:$0xff] %vm2599_vm2, %v2344_v38  ;;  %v1984_v40 = vpop.f32.mrf.mxu2  ;;  %v2209_v41 = vpop.f32.mrf.mxu3 }
 0x1fc   : > { %2720 = vst.msk [vmem:[%s3480_s26 + $0x3c0] sm:$0xff] %vm2599_vm2, %v2419_v39  ;;  %v1985_v42 = vadd.f32 %v4338_v56, %v1984_v40  ;;  %v2210_v43 = vadd.f32 %v4338_v56, %v2209_v41 }
 0x1fe   : > { %v2494_v46 = vmax.f32 %v1985_v42, 0.0  ;;  %v2569_v47 = vmax.f32 %v2210_v43, 0.0  ;;  %v1537_v48 = vpop.f32.mrf.mxu0  ;;  %v1762_v49 = vpop.f32.mrf.mxu1 }
 0x1ff   : > { %v1538_v52 = vadd.f32 %v4338_v56, %v1537_v48  ;;  %v1763_v53 = vadd.f32 %v4338_v56, %v1762_v49 }
 0x200   : > { %2795 = vst.msk [vmem:[%s3480_s26 + $0x618] sm:$0xff] %vm2599_vm2, %v2494_v46  ;;  %3175 = vmatmul.msk.f32.gmra.mxu2 %vm477_vm1, %v383_v44  ;;  %3250 = vmatmul.msk.f32.gmra.mxu3 %vm477_vm1, %v458_v45  ;;  %v387_v45 = vld [vmem:[%s3334_s21 + $0x6c0] sm:$0xff]  ;;  %v462_v46 = vld [vmem:[%s3334_s21 + $0x918] sm:$0xff] }
 0x201   : > { %2870 = vst.msk [vmem:[%s3480_s26 + $0x870] sm:$0xff] %vm2599_vm2, %v2569_v47  ;;  %v2345_v54 = vmax.f32 %v1538_v52, 0.0  ;;  %v2420_v31 = vmax.f32 %v1763_v53, 0.0  ;;  %3025 = vmatmul.msk.f32.gmra.mxu0 %vm477_vm1, %v233_v50  ;;  %3100 = vmatmul.msk.f32.gmra.mxu1 %vm477_vm1, %v308_v51  ;;  %v237_v51 = vld [vmem:[%s3334_s21 + $0x210] sm:$0xff]  ;;  %v312_v52 = vld [vmem:[%s3334_s21 + $0x468] sm:$0xff] }
 0x203   : > { %2646 = vst.msk [vmem:[%s3480_s26 + $0x170] sm:$0xff] %vm2599_vm2, %v2345_v54  ;;  %v1987_v55 = vpop.f32.mrf.mxu2  ;;  %v2212_v57 = vpop.f32.mrf.mxu3 }
 0x204   : > { %2721 = vst.msk [vmem:[%s3480_s26 + $0x3c8] sm:$0xff] %vm2599_vm2, %v2420_v31  ;;  %v1988_v58 = vadd.f32 %v4338_v56, %v1987_v55  ;;  %v2213_v59 = vadd.f32 %v4338_v56, %v2212_v57 }
 0x206   : > { %v2495_v62 = vmax.f32 %v1988_v58, 0.0  ;;  %v2570_v63 = vmax.f32 %v2213_v59, 0.0  ;;  %v1540_v0 = vpop.f32.mrf.mxu0  ;;  %v1765_v1 = vpop.f32.mrf.mxu1 }
 0x207   : > { %v1541_v5 = vadd.f32 %v4338_v56, %v1540_v0  ;;  %v1766_v6 = vadd.f32 %v4338_v56, %v1765_v1 }
 0x208   : > { %2796 = vst.msk [vmem:[%s3480_s26 + $0x620] sm:$0xff] %vm2599_vm2, %v2495_v62  ;;  %3176 = vmatmul.msk.f32.gmra.mxu2 %vm477_vm1, %v384_v60  ;;  %3251 = vmatmul.msk.f32.gmra.mxu3 %vm477_vm1, %v459_v61  ;;  %v388_v61 = vld [vmem:[%s3334_s21 + $0x6c8] sm:$0xff]  ;;  %v463_v62 = vld [vmem:[%s3334_s21 + $0x920] sm:$0xff] }
 0x209   : > { %2871 = vst.msk [vmem:[%s3480_s26 + $0x878] sm:$0xff] %vm2599_vm2, %v2570_v63  ;;  %v2346_v7 = vmax.f32 %v1541_v5, 0.0  ;;  %v2421_v8 = vmax.f32 %v1766_v6, 0.0  ;;  %3026 = vmatmul.msk.f32.gmra.mxu0 %vm477_vm1, %v234_v3  ;;  %3101 = vmatmul.msk.f32.gmra.mxu1 %vm477_vm1, %v309_v4  ;;  %v238_v4 = vld [vmem:[%s3334_s21 + $0x218] sm:$0xff]  ;;  %v313_v5 = vld [vmem:[%s3334_s21 + $0x470] sm:$0xff] }
 0x20b   : > { %2647 = vst.msk [vmem:[%s3480_s26 + $0x178] sm:$0xff] %vm2599_vm2, %v2346_v7  ;;  %v1990_v9 = vpop.f32.mrf.mxu2  ;;  %v2215_v10 = vpop.f32.mrf.mxu3 }
 0x20c   : > { %2722 = vst.msk [vmem:[%s3480_s26 + $0x3d0] sm:$0xff] %vm2599_vm2, %v2421_v8  ;;  %v1991_v11 = vadd.f32 %v4338_v56, %v1990_v9  ;;  %v2216_v12 = vadd.f32 %v4338_v56, %v2215_v10 }
 0x20e   : > { %v2496_v15 = vmax.f32 %v1991_v11, 0.0  ;;  %v2571_v16 = vmax.f32 %v2216_v12, 0.0  ;;  %v1543_v17 = vpop.f32.mrf.mxu0  ;;  %v1768_v18 = vpop.f32.mrf.mxu1 }
 0x20f   : > { %v1544_v21 = vadd.f32 %v4338_v56, %v1543_v17  ;;  %v1769_v22 = vadd.f32 %v4338_v56, %v1768_v18 }
 0x210   : > { %2797 = vst.msk [vmem:[%s3480_s26 + $0x628] sm:$0xff] %vm2599_vm2, %v2496_v15  ;;  %3177 = vmatmul.msk.f32.gmra.mxu2 %vm477_vm1, %v385_v13  ;;  %3252 = vmatmul.msk.f32.gmra.mxu3 %vm477_vm1, %v460_v14  ;;  %v389_v14 = vld [vmem:[%s3334_s21 + $0x6d0] sm:$0xff]  ;;  %v464_v15 = vld [vmem:[%s3334_s21 + $0x928] sm:$0xff] }
 0x211   : > { %2872 = vst.msk [vmem:[%s3480_s26 + $0x880] sm:$0xff] %vm2599_vm2, %v2571_v16  ;;  %v2347_v23 = vmax.f32 %v1544_v21, 0.0  ;;  %v2422_v24 = vmax.f32 %v1769_v22, 0.0  ;;  %3027 = vmatmul.msk.f32.gmra.mxu0 %vm477_vm1, %v235_v19  ;;  %3102 = vmatmul.msk.f32.gmra.mxu1 %vm477_vm1, %v310_v20  ;;  %v239_v20 = vld [vmem:[%s3334_s21 + $0x220] sm:$0xff]  ;;  %v314_v21 = vld [vmem:[%s3334_s21 + $0x478] sm:$0xff] }
 0x213   : > { %2648 = vst.msk [vmem:[%s3480_s26 + $0x180] sm:$0xff] %vm2599_vm2, %v2347_v23  ;;  %v1993_v25 = vpop.f32.mrf.mxu2  ;;  %v2218_v26 = vpop.f32.mrf.mxu3 }
 0x214   : > { %2723 = vst.msk [vmem:[%s3480_s26 + $0x3d8] sm:$0xff] %vm2599_vm2, %v2422_v24  ;;  %v1994_v27 = vadd.f32 %v4338_v56, %v1993_v25  ;;  %v2219_v28 = vadd.f32 %v4338_v56, %v2218_v26 }
 0x216   : > { %v2497_v32 = vmax.f32 %v1994_v27, 0.0  ;;  %v2572_v33 = vmax.f32 %v2219_v28, 0.0  ;;  %v1546_v2 = vpop.f32.mrf.mxu0  ;;  %v1771_v34 = vpop.f32.mrf.mxu1 }
 0x217   : > { %v1547_v37 = vadd.f32 %v4338_v56, %v1546_v2  ;;  %v1772_v38 = vadd.f32 %v4338_v56, %v1771_v34 }
 0x218   : > { %2798 = vst.msk [vmem:[%s3480_s26 + $0x630] sm:$0xff] %vm2599_vm2, %v2497_v32  ;;  %3178 = vmatmul.msk.f32.gmra.mxu2 %vm477_vm1, %v386_v29  ;;  %3253 = vmatmul.msk.f32.gmra.mxu3 %vm477_vm1, %v461_v30  ;;  %v390_v30 = vld [vmem:[%s3334_s21 + $0x6d8] sm:$0xff]  ;;  %v465_v32 = vld [vmem:[%s3334_s21 + $0x930] sm:$0xff] }
 0x219   : > { %2873 = vst.msk [vmem:[%s3480_s26 + $0x888] sm:$0xff] %vm2599_vm2, %v2572_v33  ;;  %v2348_v39 = vmax.f32 %v1547_v37, 0.0  ;;  %v2423_v40 = vmax.f32 %v1772_v38, 0.0  ;;  %3028 = vmatmul.msk.f32.gmra.mxu0 %vm477_vm1, %v236_v35  ;;  %3103 = vmatmul.msk.f32.gmra.mxu1 %vm477_vm1, %v311_v36  ;;  %v240_v36 = vld [vmem:[%s3334_s21 + $0x228] sm:$0xff]  ;;  %v315_v37 = vld [vmem:[%s3334_s21 + $0x480] sm:$0xff] }
 0x21b   : > { %2649 = vst.msk [vmem:[%s3480_s26 + $0x188] sm:$0xff] %vm2599_vm2, %v2348_v39  ;;  %v1996_v41 = vpop.f32.mrf.mxu2  ;;  %v2221_v42 = vpop.f32.mrf.mxu3 }
 0x21c   : > { %2724 = vst.msk [vmem:[%s3480_s26 + $0x3e0] sm:$0xff] %vm2599_vm2, %v2423_v40  ;;  %v1997_v43 = vadd.f32 %v4338_v56, %v1996_v41  ;;  %v2222_v44 = vadd.f32 %v4338_v56, %v2221_v42 }
 0x21e   : > { %v2498_v47 = vmax.f32 %v1997_v43, 0.0  ;;  %v2573_v48 = vmax.f32 %v2222_v44, 0.0  ;;  %v1549_v49 = vpop.f32.mrf.mxu0  ;;  %v1774_v50 = vpop.f32.mrf.mxu1 }
 0x21f   : > { %v1550_v53 = vadd.f32 %v4338_v56, %v1549_v49  ;;  %v1775_v54 = vadd.f32 %v4338_v56, %v1774_v50 }
 0x220   : > { %2799 = vst.msk [vmem:[%s3480_s26 + $0x638] sm:$0xff] %vm2599_vm2, %v2498_v47  ;;  %3179 = vmatmul.msk.f32.gmra.mxu2 %vm477_vm1, %v387_v45  ;;  %3254 = vmatmul.msk.f32.gmra.mxu3 %vm477_vm1, %v462_v46  ;;  %v391_v46 = vld [vmem:[%s3334_s21 + $0x6e0] sm:$0xff]  ;;  %v466_v47 = vld [vmem:[%s3334_s21 + $0x938] sm:$0xff] }
 0x221   : > { %2874 = vst.msk [vmem:[%s3480_s26 + $0x890] sm:$0xff] %vm2599_vm2, %v2573_v48  ;;  %v2349_v31 = vmax.f32 %v1550_v53, 0.0  ;;  %v2424_v55 = vmax.f32 %v1775_v54, 0.0  ;;  %3029 = vmatmul.msk.f32.gmra.mxu0 %vm477_vm1, %v237_v51  ;;  %3104 = vmatmul.msk.f32.gmra.mxu1 %vm477_vm1, %v312_v52  ;;  %v241_v52 = vld [vmem:[%s3334_s21 + $0x230] sm:$0xff]  ;;  %v316_v53 = vld [vmem:[%s3334_s21 + $0x488] sm:$0xff] }
 0x223   : > { %2650 = vst.msk [vmem:[%s3480_s26 + $0x190] sm:$0xff] %vm2599_vm2, %v2349_v31  ;;  %v1999_v57 = vpop.f32.mrf.mxu2  ;;  %v2224_v58 = vpop.f32.mrf.mxu3 }
 0x224   : > { %2725 = vst.msk [vmem:[%s3480_s26 + $0x3e8] sm:$0xff] %vm2599_vm2, %v2424_v55  ;;  %v2000_v59 = vadd.f32 %v4338_v56, %v1999_v57  ;;  %v2225_v60 = vadd.f32 %v4338_v56, %v2224_v58 }
 0x226   : > { %v2499_v63 = vmax.f32 %v2000_v59, 0.0  ;;  %v2574_v0 = vmax.f32 %v2225_v60, 0.0  ;;  %v1552_v1 = vpop.f32.mrf.mxu0  ;;  %v1777_v3 = vpop.f32.mrf.mxu1 }
 0x227   : > { %v1553_v6 = vadd.f32 %v4338_v56, %v1552_v1  ;;  %v1778_v7 = vadd.f32 %v4338_v56, %v1777_v3 }
 0x228   : > { %2800 = vst.msk [vmem:[%s3480_s26 + $0x640] sm:$0xff] %vm2599_vm2, %v2499_v63  ;;  %3180 = vmatmul.msk.f32.gmra.mxu2 %vm477_vm1, %v388_v61  ;;  %3255 = vmatmul.msk.f32.gmra.mxu3 %vm477_vm1, %v463_v62  ;;  %v392_v62 = vld [vmem:[%s3334_s21 + $0x6e8] sm:$0xff]  ;;  %v467_v63 = vld [vmem:[%s3334_s21 + $0x940] sm:$0xff] }
 0x229   : > { %2875 = vst.msk [vmem:[%s3480_s26 + $0x898] sm:$0xff] %vm2599_vm2, %v2574_v0  ;;  %v2350_v8 = vmax.f32 %v1553_v6, 0.0  ;;  %v2425_v9 = vmax.f32 %v1778_v7, 0.0  ;;  %3030 = vmatmul.msk.f32.gmra.mxu0 %vm477_vm1, %v238_v4  ;;  %3105 = vmatmul.msk.f32.gmra.mxu1 %vm477_vm1, %v313_v5  ;;  %v242_v5 = vld [vmem:[%s3334_s21 + $0x238] sm:$0xff]  ;;  %v317_v6 = vld [vmem:[%s3334_s21 + $0x490] sm:$0xff] }
 0x22b   : > { %2651 = vst.msk [vmem:[%s3480_s26 + $0x198] sm:$0xff] %vm2599_vm2, %v2350_v8  ;;  %v2002_v10 = vpop.f32.mrf.mxu2  ;;  %v2227_v11 = vpop.f32.mrf.mxu3 }
 0x22c   : > { %2726 = vst.msk [vmem:[%s3480_s26 + $0x3f0] sm:$0xff] %vm2599_vm2, %v2425_v9  ;;  %v2003_v12 = vadd.f32 %v4338_v56, %v2002_v10  ;;  %v2228_v13 = vadd.f32 %v4338_v56, %v2227_v11 }
 0x22e   : > { %v2500_v16 = vmax.f32 %v2003_v12, 0.0  ;;  %v2575_v17 = vmax.f32 %v2228_v13, 0.0  ;;  %v1555_v18 = vpop.f32.mrf.mxu0  ;;  %v1780_v19 = vpop.f32.mrf.mxu1 }
 0x22f   : > { %v1556_v22 = vadd.f32 %v4338_v56, %v1555_v18  ;;  %v1781_v23 = vadd.f32 %v4338_v56, %v1780_v19 }
 0x230   : > { %2801 = vst.msk [vmem:[%s3480_s26 + $0x648] sm:$0xff] %vm2599_vm2, %v2500_v16  ;;  %3181 = vmatmul.msk.f32.gmra.mxu2 %vm477_vm1, %v389_v14  ;;  %3256 = vmatmul.msk.f32.gmra.mxu3 %vm477_vm1, %v464_v15  ;;  %v393_v15 = vld [vmem:[%s3334_s21 + $0x6f0] sm:$0xff]  ;;  %v468_v16 = vld [vmem:[%s3334_s21 + $0x948] sm:$0xff] }
 0x231   : > { %2876 = vst.msk [vmem:[%s3480_s26 + $0x8a0] sm:$0xff] %vm2599_vm2, %v2575_v17  ;;  %v2351_v24 = vmax.f32 %v1556_v22, 0.0  ;;  %v2426_v25 = vmax.f32 %v1781_v23, 0.0  ;;  %3031 = vmatmul.msk.f32.gmra.mxu0 %vm477_vm1, %v239_v20  ;;  %3106 = vmatmul.msk.f32.gmra.mxu1 %vm477_vm1, %v314_v21  ;;  %v243_v21 = vld [vmem:[%s3334_s21 + $0x240] sm:$0xff]  ;;  %v318_v22 = vld [vmem:[%s3334_s21 + $0x498] sm:$0xff] }
 0x233   : > { %2652 = vst.msk [vmem:[%s3480_s26 + $0x1a0] sm:$0xff] %vm2599_vm2, %v2351_v24  ;;  %v2005_v26 = vpop.f32.mrf.mxu2  ;;  %v2230_v27 = vpop.f32.mrf.mxu3 }
 0x234   : > { %2727 = vst.msk [vmem:[%s3480_s26 + $0x3f8] sm:$0xff] %vm2599_vm2, %v2426_v25  ;;  %v2006_v28 = vadd.f32 %v4338_v56, %v2005_v26  ;;  %v2231_v29 = vadd.f32 %v4338_v56, %v2230_v27 }
 0x236   : > { %v2501_v33 = vmax.f32 %v2006_v28, 0.0  ;;  %v2576_v2 = vmax.f32 %v2231_v29, 0.0  ;;  %v1558_v34 = vpop.f32.mrf.mxu0  ;;  %v1783_v35 = vpop.f32.mrf.mxu1 }
 0x237   : > { %v1559_v38 = vadd.f32 %v4338_v56, %v1558_v34  ;;  %v1784_v39 = vadd.f32 %v4338_v56, %v1783_v35 }
 0x238   : > { %2802 = vst.msk [vmem:[%s3480_s26 + $0x650] sm:$0xff] %vm2599_vm2, %v2501_v33  ;;  %3182 = vmatmul.msk.f32.gmra.mxu2 %vm477_vm1, %v390_v30  ;;  %3257 = vmatmul.msk.f32.gmra.mxu3 %vm477_vm1, %v465_v32  ;;  %v394_v32 = vld [vmem:[%s3334_s21 + $0x6f8] sm:$0xff]  ;;  %v469_v33 = vld [vmem:[%s3334_s21 + $0x950] sm:$0xff] }
 0x239   : > { %2877 = vst.msk [vmem:[%s3480_s26 + $0x8a8] sm:$0xff] %vm2599_vm2, %v2576_v2  ;;  %v2352_v40 = vmax.f32 %v1559_v38, 0.0  ;;  %v2427_v41 = vmax.f32 %v1784_v39, 0.0  ;;  %3032 = vmatmul.msk.f32.gmra.mxu0 %vm477_vm1, %v240_v36  ;;  %3107 = vmatmul.msk.f32.gmra.mxu1 %vm477_vm1, %v315_v37  ;;  %v244_v37 = vld [vmem:[%s3334_s21 + $0x248] sm:$0xff]  ;;  %v319_v38 = vld [vmem:[%s3334_s21 + $0x4a0] sm:$0xff] }
 0x23b   : > { %2653 = vst.msk [vmem:[%s3480_s26 + $0x1a8] sm:$0xff] %vm2599_vm2, %v2352_v40  ;;  %v2008_v42 = vpop.f32.mrf.mxu2  ;;  %v2233_v43 = vpop.f32.mrf.mxu3 }
 0x23c   : > { %2728 = vst.msk [vmem:[%s3480_s26 + $0x400] sm:$0xff] %vm2599_vm2, %v2427_v41  ;;  %v2009_v44 = vadd.f32 %v4338_v56, %v2008_v42  ;;  %v2234_v45 = vadd.f32 %v4338_v56, %v2233_v43 }
 0x23e   : > { %v2502_v48 = vmax.f32 %v2009_v44, 0.0  ;;  %v2577_v49 = vmax.f32 %v2234_v45, 0.0  ;;  %v1561_v50 = vpop.f32.mrf.mxu0  ;;  %v1786_v51 = vpop.f32.mrf.mxu1 }
 0x23f   : > { %v1562_v54 = vadd.f32 %v4338_v56, %v1561_v50  ;;  %v1787_v31 = vadd.f32 %v4338_v56, %v1786_v51 }
 0x240   : > { %2803 = vst.msk [vmem:[%s3480_s26 + $0x658] sm:$0xff] %vm2599_vm2, %v2502_v48  ;;  %3183 = vmatmul.msk.f32.gmra.mxu2 %vm477_vm1, %v391_v46  ;;  %3258 = vmatmul.msk.f32.gmra.mxu3 %vm477_vm1, %v466_v47  ;;  %v395_v47 = vld [vmem:[%s3334_s21 + $0x700] sm:$0xff]  ;;  %v470_v48 = vld [vmem:[%s3334_s21 + $0x958] sm:$0xff] }
 0x241   : > { %2878 = vst.msk [vmem:[%s3480_s26 + $0x8b0] sm:$0xff] %vm2599_vm2, %v2577_v49  ;;  %v2353_v55 = vmax.f32 %v1562_v54, 0.0  ;;  %v2428_v57 = vmax.f32 %v1787_v31, 0.0  ;;  %3033 = vmatmul.msk.f32.gmra.mxu0 %vm477_vm1, %v241_v52  ;;  %3108 = vmatmul.msk.f32.gmra.mxu1 %vm477_vm1, %v316_v53  ;;  %v245_v53 = vld [vmem:[%s3334_s21 + $0x250] sm:$0xff]  ;;  %v320_v54 = vld [vmem:[%s3334_s21 + $0x4a8] sm:$0xff] }
 0x243   : > { %2654 = vst.msk [vmem:[%s3480_s26 + $0x1b0] sm:$0xff] %vm2599_vm2, %v2353_v55  ;;  %v2011_v58 = vpop.f32.mrf.mxu2  ;;  %v2236_v59 = vpop.f32.mrf.mxu3 }
 0x244   : > { %2729 = vst.msk [vmem:[%s3480_s26 + $0x408] sm:$0xff] %vm2599_vm2, %v2428_v57  ;;  %v2012_v60 = vadd.f32 %v4338_v56, %v2011_v58  ;;  %v2237_v61 = vadd.f32 %v4338_v56, %v2236_v59 }
 0x246   : > { %v2503_v0 = vmax.f32 %v2012_v60, 0.0  ;;  %v2578_v1 = vmax.f32 %v2237_v61, 0.0  ;;  %v1564_v3 = vpop.f32.mrf.mxu0  ;;  %v1789_v4 = vpop.f32.mrf.mxu1 }
 0x247   : > { %v1565_v7 = vadd.f32 %v4338_v56, %v1564_v3  ;;  %v1790_v8 = vadd.f32 %v4338_v56, %v1789_v4 }
 0x248   : > { %2804 = vst.msk [vmem:[%s3480_s26 + $0x660] sm:$0xff] %vm2599_vm2, %v2503_v0  ;;  %3184 = vmatmul.msk.f32.gmra.mxu2 %vm477_vm1, %v392_v62  ;;  %3259 = vmatmul.msk.f32.gmra.mxu3 %vm477_vm1, %v467_v63 }
 0x249   : > { %2879 = vst.msk [vmem:[%s3480_s26 + $0x8b8] sm:$0xff] %vm2599_vm2, %v2578_v1  ;;  %v2354_v9 = vmax.f32 %v1565_v7, 0.0  ;;  %v2429_v10 = vmax.f32 %v1790_v8, 0.0  ;;  %3034 = vmatmul.msk.f32.gmra.mxu0 %vm477_vm1, %v242_v5  ;;  %3109 = vmatmul.msk.f32.gmra.mxu1 %vm477_vm1, %v317_v6 }
 0x24b   : > { %2655 = vst.msk [vmem:[%s3480_s26 + $0x1b8] sm:$0xff] %vm2599_vm2, %v2354_v9  ;;  %v2014_v11 = vpop.f32.mrf.mxu2  ;;  %v2239_v12 = vpop.f32.mrf.mxu3 }
 0x24c   : > { %2730 = vst.msk [vmem:[%s3480_s26 + $0x410] sm:$0xff] %vm2599_vm2, %v2429_v10  ;;  %v2015_v13 = vadd.f32 %v4338_v56, %v2014_v11  ;;  %v2240_v14 = vadd.f32 %v4338_v56, %v2239_v12 }
 0x24e   : > { %v2504_v17 = vmax.f32 %v2015_v13, 0.0  ;;  %v2579_v18 = vmax.f32 %v2240_v14, 0.0  ;;  %v1567_v19 = vpop.f32.mrf.mxu0  ;;  %v1792_v20 = vpop.f32.mrf.mxu1 }
 0x24f   : > { %v1568_v23 = vadd.f32 %v4338_v56, %v1567_v19  ;;  %v1793_v24 = vadd.f32 %v4338_v56, %v1792_v20 }
 0x250   : > { %2805 = vst.msk [vmem:[%s3480_s26 + $0x668] sm:$0xff] %vm2599_vm2, %v2504_v17  ;;  %3185 = vmatmul.msk.f32.gmra.mxu2 %vm477_vm1, %v393_v15  ;;  %3260 = vmatmul.msk.f32.gmra.mxu3 %vm477_vm1, %v468_v16 }
 0x251   : > { %2880 = vst.msk [vmem:[%s3480_s26 + $0x8c0] sm:$0xff] %vm2599_vm2, %v2579_v18  ;;  %v2355_v25 = vmax.f32 %v1568_v23, 0.0  ;;  %v2430_v26 = vmax.f32 %v1793_v24, 0.0  ;;  %3035 = vmatmul.msk.f32.gmra.mxu0 %vm477_vm1, %v243_v21  ;;  %3110 = vmatmul.msk.f32.gmra.mxu1 %vm477_vm1, %v318_v22 }
 0x253   : > { %2656 = vst.msk [vmem:[%s3480_s26 + $0x1c0] sm:$0xff] %vm2599_vm2, %v2355_v25  ;;  %v2017_v27 = vpop.f32.mrf.mxu2  ;;  %v2242_v28 = vpop.f32.mrf.mxu3 }
 0x254   : > { %2731 = vst.msk [vmem:[%s3480_s26 + $0x418] sm:$0xff] %vm2599_vm2, %v2430_v26  ;;  %v2018_v29 = vadd.f32 %v4338_v56, %v2017_v27  ;;  %v2243_v30 = vadd.f32 %v4338_v56, %v2242_v28 }
 0x256   : > { %v2505_v2 = vmax.f32 %v2018_v29, 0.0  ;;  %v2580_v34 = vmax.f32 %v2243_v30, 0.0  ;;  %v1570_v35 = vpop.f32.mrf.mxu0  ;;  %v1795_v36 = vpop.f32.mrf.mxu1 }
 0x257   : > { %v1571_v39 = vadd.f32 %v4338_v56, %v1570_v35  ;;  %v1796_v40 = vadd.f32 %v4338_v56, %v1795_v36 }
 0x258   : > { %2806 = vst.msk [vmem:[%s3480_s26 + $0x670] sm:$0xff] %vm2599_vm2, %v2505_v2  ;;  %3186 = vmatmul.msk.f32.gmra.mxu2 %vm477_vm1, %v394_v32  ;;  %3261 = vmatmul.msk.f32.gmra.mxu3 %vm477_vm1, %v469_v33 }
 0x259   : > { %2881 = vst.msk [vmem:[%s3480_s26 + $0x8c8] sm:$0xff] %vm2599_vm2, %v2580_v34  ;;  %v2356_v41 = vmax.f32 %v1571_v39, 0.0  ;;  %v2431_v42 = vmax.f32 %v1796_v40, 0.0  ;;  %3036 = vmatmul.msk.f32.gmra.mxu0 %vm477_vm1, %v244_v37  ;;  %3111 = vmatmul.msk.f32.gmra.mxu1 %vm477_vm1, %v319_v38 }
 0x25b   : > { %2657 = vst.msk [vmem:[%s3480_s26 + $0x1c8] sm:$0xff] %vm2599_vm2, %v2356_v41  ;;  %v2020_v43 = vpop.f32.mrf.mxu2  ;;  %v2245_v44 = vpop.f32.mrf.mxu3 }
 0x25c   : > { %2732 = vst.msk [vmem:[%s3480_s26 + $0x420] sm:$0xff] %vm2599_vm2, %v2431_v42  ;;  %v2021_v45 = vadd.f32 %v4338_v56, %v2020_v43  ;;  %v2246_v46 = vadd.f32 %v4338_v56, %v2245_v44 }
 0x25e   : > { %v2506_v49 = vmax.f32 %v2021_v45, 0.0  ;;  %v2581_v50 = vmax.f32 %v2246_v46, 0.0  ;;  %v1573_v51 = vpop.f32.mrf.mxu0  ;;  %v1798_v52 = vpop.f32.mrf.mxu1 }
 0x25f   : > { %v1574_v31 = vadd.f32 %v4338_v56, %v1573_v51  ;;  %v1799_v55 = vadd.f32 %v4338_v56, %v1798_v52 }
 0x260   : > { %2807 = vst.msk [vmem:[%s3480_s26 + $0x678] sm:$0xff] %vm2599_vm2, %v2506_v49  ;;  %3187 = vmatmul.msk.f32.gmra.mxu2 %vm477_vm1, %v395_v47  ;;  %3262 = vmatmul.msk.f32.gmra.mxu3 %vm477_vm1, %v470_v48 }
 0x261   : > { %2882 = vst.msk [vmem:[%s3480_s26 + $0x8d0] sm:$0xff] %vm2599_vm2, %v2581_v50  ;;  %v2357_v57 = vmax.f32 %v1574_v31, 0.0  ;;  %v2432_v58 = vmax.f32 %v1799_v55, 0.0  ;;  %3037 = vmatmul.msk.f32.gmra.mxu0 %vm477_vm1, %v245_v53  ;;  %3112 = vmatmul.msk.f32.gmra.mxu1 %vm477_vm1, %v320_v54 }
 0x263   : > { %2658 = vst.msk [vmem:[%s3480_s26 + $0x1d0] sm:$0xff] %vm2599_vm2, %v2357_v57  ;;  %v2023_v59 = vpop.f32.mrf.mxu2  ;;  %v2248_v60 = vpop.f32.mrf.mxu3 }
 0x264   : > { %2733 = vst.msk [vmem:[%s3480_s26 + $0x428] sm:$0xff] %vm2599_vm2, %v2432_v58  ;;  %v2024_v61 = vadd.f32 %v4338_v56, %v2023_v59  ;;  %v2249_v62 = vadd.f32 %v4338_v56, %v2248_v60 }
 0x266   : > { %v2507_v63 = vmax.f32 %v2024_v61, 0.0  ;;  %v2582_v0 = vmax.f32 %v2249_v62, 0.0  ;;  %v1576_v1 = vpop.f32.mrf.mxu0  ;;  %v1801_v3 = vpop.f32.mrf.mxu1 }
 0x267   : > { %v1577_v4 = vadd.f32 %v4338_v56, %v1576_v1  ;;  %v1802_v5 = vadd.f32 %v4338_v56, %v1801_v3 }
 0x268   : > { %2808 = vst.msk [vmem:[%s3480_s26 + $0x680] sm:$0xff] %vm2599_vm2, %v2507_v63 }
 0x269   : > { %2883 = vst.msk [vmem:[%s3480_s26 + $0x8d8] sm:$0xff] %vm2599_vm2, %v2582_v0  ;;  %v2358_v6 = vmax.f32 %v1577_v4, 0.0  ;;  %v2433_v7 = vmax.f32 %v1802_v5, 0.0 }
 0x26b   : > { %2659 = vst.msk [vmem:[%s3480_s26 + $0x1d8] sm:$0xff] %vm2599_vm2, %v2358_v6  ;;  %v2026_v8 = vpop.f32.mrf.mxu2  ;;  %v2251_v9 = vpop.f32.mrf.mxu3 }
 0x26c   : > { %2734 = vst.msk [vmem:[%s3480_s26 + $0x430] sm:$0xff] %vm2599_vm2, %v2433_v7  ;;  %v2027_v10 = vadd.f32 %v4338_v56, %v2026_v8  ;;  %v2252_v11 = vadd.f32 %v4338_v56, %v2251_v9 }
 0x26e   : > { %v2508_v12 = vmax.f32 %v2027_v10, 0.0  ;;  %v2583_v13 = vmax.f32 %v2252_v11, 0.0  ;;  %v1579_v14 = vpop.f32.mrf.mxu0  ;;  %v1804_v15 = vpop.f32.mrf.mxu1 }
 0x26f   : > { %v1580_v16 = vadd.f32 %v4338_v56, %v1579_v14  ;;  %v1805_v17 = vadd.f32 %v4338_v56, %v1804_v15 }
 0x270   : > { %2809 = vst.msk [vmem:[%s3480_s26 + $0x688] sm:$0xff] %vm2599_vm2, %v2508_v12 }
 0x271   : > { %2884 = vst.msk [vmem:[%s3480_s26 + $0x8e0] sm:$0xff] %vm2599_vm2, %v2583_v13  ;;  %v2359_v18 = vmax.f32 %v1580_v16, 0.0  ;;  %v2434_v19 = vmax.f32 %v1805_v17, 0.0 }
 0x273   : > { %2660 = vst.msk [vmem:[%s3480_s26 + $0x1e0] sm:$0xff] %vm2599_vm2, %v2359_v18  ;;  %v2029_v20 = vpop.f32.mrf.mxu2  ;;  %v2254_v21 = vpop.f32.mrf.mxu3 }
 0x274   : > { %2735 = vst.msk [vmem:[%s3480_s26 + $0x438] sm:$0xff] %vm2599_vm2, %v2434_v19  ;;  %v2030_v22 = vadd.f32 %v4338_v56, %v2029_v20  ;;  %v2255_v23 = vadd.f32 %v4338_v56, %v2254_v21 }
 0x276   : > { %v2509_v24 = vmax.f32 %v2030_v22, 0.0  ;;  %v2584_v25 = vmax.f32 %v2255_v23, 0.0  ;;  %v1582_v26 = vpop.f32.mrf.mxu0  ;;  %v1807_v27 = vpop.f32.mrf.mxu1 }
 0x277   : > { %v1583_v28 = vadd.f32 %v4338_v56, %v1582_v26  ;;  %v1808_v29 = vadd.f32 %v4338_v56, %v1807_v27 }
 0x278   : > { %2810 = vst.msk [vmem:[%s3480_s26 + $0x690] sm:$0xff] %vm2599_vm2, %v2509_v24 }
 0x279   : > { %2885 = vst.msk [vmem:[%s3480_s26 + $0x8e8] sm:$0xff] %vm2599_vm2, %v2584_v25  ;;  %v2360_v30 = vmax.f32 %v1583_v28, 0.0  ;;  %v2435_v32 = vmax.f32 %v1808_v29, 0.0 }
 0x27b   : > { %2661 = vst.msk [vmem:[%s3480_s26 + $0x1e8] sm:$0xff] %vm2599_vm2, %v2360_v30  ;;  %v2032_v33 = vpop.f32.mrf.mxu2  ;;  %v2257_v2 = vpop.f32.mrf.mxu3 }
 0x27c   : > { %2736 = vst.msk [vmem:[%s3480_s26 + $0x440] sm:$0xff] %vm2599_vm2, %v2435_v32  ;;  %v2033_v34 = vadd.f32 %v4338_v56, %v2032_v33  ;;  %v2258_v35 = vadd.f32 %v4338_v56, %v2257_v2  ;;  %v4759_v32 = vld [vmem:[%s4868_s2] ss:$0 sm:$0xff] }
 0x27e   : > { %v2510_v36 = vmax.f32 %v2033_v34, 0.0  ;;  %v2585_v37 = vmax.f32 %v2258_v35, 0.0  ;;  %v1585_v38 = vpop.f32.mrf.mxu0  ;;  %v1810_v39 = vpop.f32.mrf.mxu1 }
 0x27f   : > { %v1586_v40 = vadd.f32 %v4338_v56, %v1585_v38  ;;  %v1811_v41 = vadd.f32 %v4338_v56, %v1810_v39 }
 0x280   : > { %2811 = vst.msk [vmem:[%s3480_s26 + $0x698] sm:$0xff] %vm2599_vm2, %v2510_v36 }
 0x281   : > { %2886 = vst.msk [vmem:[%s3480_s26 + $0x8f0] sm:$0xff] %vm2599_vm2, %v2585_v37  ;;  %v2361_v42 = vmax.f32 %v1586_v40, 0.0  ;;  %v2436_v43 = vmax.f32 %v1811_v41, 0.0 }
 0x283   : > { %2662 = vst.msk [vmem:[%s3480_s26 + $0x1f0] sm:$0xff] %vm2599_vm2, %v2361_v42  ;;  %v2035_v44 = vpop.f32.mrf.mxu2  ;;  %v2260_v45 = vpop.f32.mrf.mxu3 }
 0x284   : > { %2737 = vst.msk [vmem:[%s3480_s26 + $0x448] sm:$0xff] %vm2599_vm2, %v2436_v43  ;;  %v2036_v46 = vadd.f32 %v4338_v56, %v2035_v44  ;;  %v2261_v47 = vadd.f32 %v4338_v56, %v2260_v45 }
 0x286   : > { %v2511_v48 = vmax.f32 %v2036_v46, 0.0  ;;  %v2586_v49 = vmax.f32 %v2261_v47, 0.0  ;;  %v1588_v50 = vpop.f32.mrf.mxu0  ;;  %v1813_v51 = vpop.f32.mrf.mxu1 }
 0x287   : > { %v1589_v52 = vadd.f32 %v4338_v56, %v1588_v50  ;;  %v1814_v53 = vadd.f32 %v4338_v56, %v1813_v51 }
 0x288   : > { %2812 = vst.msk [vmem:[%s3480_s26 + $0x6a0] sm:$0xff] %vm2599_vm2, %v2511_v48 }
 0x289   : > { %2887 = vst.msk [vmem:[%s3480_s26 + $0x8f8] sm:$0xff] %vm2599_vm2, %v2586_v49  ;;  %v2362_v54 = vmax.f32 %v1589_v52, 0.0  ;;  %v2437_v31 = vmax.f32 %v1814_v53, 0.0 }
 0x28b   : > { %2663 = vst.msk [vmem:[%s3480_s26 + $0x1f8] sm:$0xff] %vm2599_vm2, %v2362_v54  ;;  %v2038_v55 = vpop.f32.mrf.mxu2  ;;  %v2263_v57 = vpop.f32.mrf.mxu3 }
 0x28c   : > { %2738 = vst.msk [vmem:[%s3480_s26 + $0x450] sm:$0xff] %vm2599_vm2, %v2437_v31  ;;  %v2039_v58 = vadd.f32 %v4338_v56, %v2038_v55  ;;  %v2264_v59 = vadd.f32 %v4338_v56, %v2263_v57 }
 0x28e   : > { %v2512_v60 = vmax.f32 %v2039_v58, 0.0  ;;  %v2587_v61 = vmax.f32 %v2264_v59, 0.0  ;;  %v1591_v62 = vpop.f32.mrf.mxu0  ;;  %v1816_v63 = vpop.f32.mrf.mxu1 }
 0x28f   : > { %v1592_v0 = vadd.f32 %v4338_v56, %v1591_v62  ;;  %v1817_v1 = vadd.f32 %v4338_v56, %v1816_v63 }
 0x290   : > { %2813 = vst.msk [vmem:[%s3480_s26 + $0x6a8] sm:$0xff] %vm2599_vm2, %v2512_v60 }
 0x291   : > { %2888 = vst.msk [vmem:[%s3480_s26 + $0x900] sm:$0xff] %vm2599_vm2, %v2587_v61  ;;  %v2363_v3 = vmax.f32 %v1592_v0, 0.0  ;;  %v2438_v4 = vmax.f32 %v1817_v1, 0.0 }
 0x293   : > { %2664 = vst.msk [vmem:[%s3480_s26 + $0x200] sm:$0xff] %vm2599_vm2, %v2363_v3  ;;  %v2041_v5 = vpop.f32.mrf.mxu2  ;;  %v2266_v6 = vpop.f32.mrf.mxu3 }
 0x294   : > { %2739 = vst.msk [vmem:[%s3480_s26 + $0x458] sm:$0xff] %vm2599_vm2, %v2438_v4  ;;  %v2042_v7 = vadd.f32 %v4338_v56, %v2041_v5  ;;  %v2267_v8 = vadd.f32 %v4338_v56, %v2266_v6 }
 0x296   : > { %v2513_v9 = vmax.f32 %v2042_v7, 0.0  ;;  %v2588_v10 = vmax.f32 %v2267_v8, 0.0  ;;  %v1594_v11 = vpop.f32.mrf.mxu0  ;;  %v1819_v12 = vpop.f32.mrf.mxu1 }
 0x297   : > { %v1595_v13 = vadd.f32 %v4338_v56, %v1594_v11  ;;  %v1820_v14 = vadd.f32 %v4338_v56, %v1819_v12 }
 0x298   : > { %2814 = vst.msk [vmem:[%s3480_s26 + $0x6b0] sm:$0xff] %vm2599_vm2, %v2513_v9 }
 0x299   : > { %2889 = vst.msk [vmem:[%s3480_s26 + $0x908] sm:$0xff] %vm2599_vm2, %v2588_v10  ;;  %v2364_v15 = vmax.f32 %v1595_v13, 0.0  ;;  %v2439_v16 = vmax.f32 %v1820_v14, 0.0 }
 0x29b   : > { %2665 = vst.msk [vmem:[%s3480_s26 + $0x208] sm:$0xff] %vm2599_vm2, %v2364_v15  ;;  %v2044_v17 = vpop.f32.mrf.mxu2  ;;  %v2269_v18 = vpop.f32.mrf.mxu3 }
 0x29c   : > { %2740 = vst.msk [vmem:[%s3480_s26 + $0x460] sm:$0xff] %vm2599_vm2, %v2439_v16  ;;  %v2045_v19 = vadd.f32 %v4338_v56, %v2044_v17  ;;  %v2270_v20 = vadd.f32 %v4338_v56, %v2269_v18 }
 0x29e   : > { %v2514_v21 = vmax.f32 %v2045_v19, 0.0  ;;  %v2589_v22 = vmax.f32 %v2270_v20, 0.0  ;;  %v1597_v23 = vpop.f32.mrf.mxu0  ;;  %v1822_v24 = vpop.f32.mrf.mxu1 }
 0x29f   : > { %v1598_v25 = vadd.f32 %v4338_v56, %v1597_v23  ;;  %v1823_v26 = vadd.f32 %v4338_v56, %v1822_v24 }
 0x2a0   : > { %2815 = vst.msk [vmem:[%s3480_s26 + $0x6b8] sm:$0xff] %vm2599_vm2, %v2514_v21 }
 0x2a1   : > { %2890 = vst.msk [vmem:[%s3480_s26 + $0x910] sm:$0xff] %vm2599_vm2, %v2589_v22  ;;  %v2365_v27 = vmax.f32 %v1598_v25, 0.0  ;;  %v2440_v28 = vmax.f32 %v1823_v26, 0.0 }
 0x2a3   : > { %2666 = vst.msk [vmem:[%s3480_s26 + $0x210] sm:$0xff] %vm2599_vm2, %v2365_v27  ;;  %v2047_v29 = vpop.f32.mrf.mxu2  ;;  %v2272_v30 = vpop.f32.mrf.mxu3 }
 0x2a4   : > { %2741 = vst.msk [vmem:[%s3480_s26 + $0x468] sm:$0xff] %vm2599_vm2, %v2440_v28  ;;  %v2048_v56 = vadd.f32 %v4759_v32, %v2047_v29  ;;  %v2273_v33 = vadd.f32 %v4759_v32, %v2272_v30 }
 0x2a6   : > { %v2515_v2 = vmax.f32 %v2048_v56, 0.0  ;;  %v2590_v34 = vmax.f32 %v2273_v33, 0.0  ;;  %v1600_v35 = vpop.f32.mrf.mxu0  ;;  %v1825_v36 = vpop.f32.mrf.mxu1 }
 0x2a7   : > { %v1601_v37 = vadd.f32 %v4759_v32, %v1600_v35  ;;  %v1826_v38 = vadd.f32 %v4759_v32, %v1825_v36 }
 0x2a8   : > { %2816 = vst.msk [vmem:[%s3480_s26 + $0x6c0] sm:$0xff] %vm2599_vm2, %v2515_v2 }
 0x2a9   : > { %2891 = vst.msk [vmem:[%s3480_s26 + $0x918] sm:$0xff] %vm2599_vm2, %v2590_v34  ;;  %v2366_v39 = vmax.f32 %v1601_v37, 0.0  ;;  %v2441_v40 = vmax.f32 %v1826_v38, 0.0 }
 0x2ab   : > { %2667 = vst.msk [vmem:[%s3480_s26 + $0x218] sm:$0xff] %vm2599_vm2, %v2366_v39  ;;  %v2050_v41 = vpop.f32.mrf.mxu2  ;;  %v2275_v42 = vpop.f32.mrf.mxu3 }
 0x2ac   : > { %2742 = vst.msk [vmem:[%s3480_s26 + $0x470] sm:$0xff] %vm2599_vm2, %v2441_v40  ;;  %v2051_v43 = vadd.f32 %v4759_v32, %v2050_v41  ;;  %v2276_v44 = vadd.f32 %v4759_v32, %v2275_v42 }
 0x2ae   : > { %v2516_v45 = vmax.f32 %v2051_v43, 0.0  ;;  %v2591_v46 = vmax.f32 %v2276_v44, 0.0  ;;  %v1603_v47 = vpop.f32.mrf.mxu0  ;;  %v1828_v48 = vpop.f32.mrf.mxu1 }
 0x2af   : > { %v1604_v49 = vadd.f32 %v4759_v32, %v1603_v47  ;;  %v1829_v50 = vadd.f32 %v4759_v32, %v1828_v48 }
 0x2b0   : > { %2817 = vst.msk [vmem:[%s3480_s26 + $0x6c8] sm:$0xff] %vm2599_vm2, %v2516_v45 }
 0x2b1   : > { %2892 = vst.msk [vmem:[%s3480_s26 + $0x920] sm:$0xff] %vm2599_vm2, %v2591_v46  ;;  %v2367_v51 = vmax.f32 %v1604_v49, 0.0  ;;  %v2442_v52 = vmax.f32 %v1829_v50, 0.0 }
 0x2b3   : > { %2668 = vst.msk [vmem:[%s3480_s26 + $0x220] sm:$0xff] %vm2599_vm2, %v2367_v51  ;;  %v2053_v53 = vpop.f32.mrf.mxu2  ;;  %v2278_v54 = vpop.f32.mrf.mxu3 }
 0x2b4   : > { %2743 = vst.msk [vmem:[%s3480_s26 + $0x478] sm:$0xff] %vm2599_vm2, %v2442_v52  ;;  %v2054_v31 = vadd.f32 %v4759_v32, %v2053_v53  ;;  %v2279_v55 = vadd.f32 %v4759_v32, %v2278_v54 }
 0x2b6   : > { %v2517_v57 = vmax.f32 %v2054_v31, 0.0  ;;  %v2592_v58 = vmax.f32 %v2279_v55, 0.0  ;;  %v1606_v59 = vpop.f32.mrf.mxu0  ;;  %v1831_v60 = vpop.f32.mrf.mxu1 }
 0x2b7   : > { %v1607_v61 = vadd.f32 %v4759_v32, %v1606_v59  ;;  %v1832_v62 = vadd.f32 %v4759_v32, %v1831_v60 }
 0x2b8   : > { %2818 = vst.msk [vmem:[%s3480_s26 + $0x6d0] sm:$0xff] %vm2599_vm2, %v2517_v57 }
 0x2b9   : > { %2893 = vst.msk [vmem:[%s3480_s26 + $0x928] sm:$0xff] %vm2599_vm2, %v2592_v58  ;;  %v2368_v63 = vmax.f32 %v1607_v61, 0.0  ;;  %v2443_v0 = vmax.f32 %v1832_v62, 0.0 }
 0x2bb   : > { %2669 = vst.msk [vmem:[%s3480_s26 + $0x228] sm:$0xff] %vm2599_vm2, %v2368_v63  ;;  %v2056_v1 = vpop.f32.mrf.mxu2  ;;  %v2281_v3 = vpop.f32.mrf.mxu3 }
 0x2bc   : > { %2744 = vst.msk [vmem:[%s3480_s26 + $0x480] sm:$0xff] %vm2599_vm2, %v2443_v0  ;;  %v2057_v4 = vadd.f32 %v4759_v32, %v2056_v1  ;;  %v2282_v5 = vadd.f32 %v4759_v32, %v2281_v3 }
 0x2be   : > { %v2518_v6 = vmax.f32 %v2057_v4, 0.0  ;;  %v2593_v7 = vmax.f32 %v2282_v5, 0.0  ;;  %v1609_v8 = vpop.f32.mrf.mxu0  ;;  %v1834_v9 = vpop.f32.mrf.mxu1 }
 0x2bf   : > { %v1610_v10 = vadd.f32 %v4759_v32, %v1609_v8  ;;  %v1835_v11 = vadd.f32 %v4759_v32, %v1834_v9 }
 0x2c0   : > { %2819 = vst.msk [vmem:[%s3480_s26 + $0x6d8] sm:$0xff] %vm2599_vm2, %v2518_v6 }
 0x2c1   : > { %2894 = vst.msk [vmem:[%s3480_s26 + $0x930] sm:$0xff] %vm2599_vm2, %v2593_v7  ;;  %v2369_v12 = vmax.f32 %v1610_v10, 0.0  ;;  %v2444_v13 = vmax.f32 %v1835_v11, 0.0 }
 0x2c3   : > { %2670 = vst.msk [vmem:[%s3480_s26 + $0x230] sm:$0xff] %vm2599_vm2, %v2369_v12  ;;  %v2059_v14 = vpop.f32.mrf.mxu2  ;;  %v2284_v15 = vpop.f32.mrf.mxu3 }
 0x2c4   : > { %2745 = vst.msk [vmem:[%s3480_s26 + $0x488] sm:$0xff] %vm2599_vm2, %v2444_v13  ;;  %v2060_v16 = vadd.f32 %v4759_v32, %v2059_v14  ;;  %v2285_v17 = vadd.f32 %v4759_v32, %v2284_v15 }
 0x2c6   : > { %v2519_v18 = vmax.f32 %v2060_v16, 0.0  ;;  %v2594_v19 = vmax.f32 %v2285_v17, 0.0  ;;  %v1612_v20 = vpop.f32.mrf.mxu0  ;;  %v1837_v21 = vpop.f32.mrf.mxu1 }
 0x2c7   : > { %v1613_v22 = vadd.f32 %v4759_v32, %v1612_v20  ;;  %v1838_v23 = vadd.f32 %v4759_v32, %v1837_v21 }
 0x2c8   : > { %2820 = vst.msk [vmem:[%s3480_s26 + $0x6e0] sm:$0xff] %vm2599_vm2, %v2519_v18 }
 0x2c9   : > { %2895 = vst.msk [vmem:[%s3480_s26 + $0x938] sm:$0xff] %vm2599_vm2, %v2594_v19  ;;  %v2370_v24 = vmax.f32 %v1613_v22, 0.0  ;;  %v2445_v25 = vmax.f32 %v1838_v23, 0.0 }
 0x2cb   : > { %2671 = vst.msk [vmem:[%s3480_s26 + $0x238] sm:$0xff] %vm2599_vm2, %v2370_v24  ;;  %v2062_v26 = vpop.f32.mrf.mxu2  ;;  %v2287_v27 = vpop.f32.mrf.mxu3 }
 0x2cc   : > { %2746 = vst.msk [vmem:[%s3480_s26 + $0x490] sm:$0xff] %vm2599_vm2, %v2445_v25  ;;  %v2063_v28 = vadd.f32 %v4759_v32, %v2062_v26  ;;  %v2288_v29 = vadd.f32 %v4759_v32, %v2287_v27 }
 0x2ce   : > { %v2520_v30 = vmax.f32 %v2063_v28, 0.0  ;;  %v2595_v56 = vmax.f32 %v2288_v29, 0.0  ;;  %v1615_v33 = vpop.f32.mrf.mxu0  ;;  %v1840_v2 = vpop.f32.mrf.mxu1 }
 0x2cf   : > { %v1616_v34 = vadd.f32 %v4759_v32, %v1615_v33  ;;  %v1841_v35 = vadd.f32 %v4759_v32, %v1840_v2 }
 0x2d0   : > { %2821 = vst.msk [vmem:[%s3480_s26 + $0x6e8] sm:$0xff] %vm2599_vm2, %v2520_v30 }
 0x2d1   : > { %2896 = vst.msk [vmem:[%s3480_s26 + $0x940] sm:$0xff] %vm2599_vm2, %v2595_v56  ;;  %v2371_v36 = vmax.f32 %v1616_v34, 0.0  ;;  %v2446_v37 = vmax.f32 %v1841_v35, 0.0 }
 0x2d3   : > { %2672 = vst.msk [vmem:[%s3480_s26 + $0x240] sm:$0xff] %vm2599_vm2, %v2371_v36  ;;  %v2065_v38 = vpop.f32.mrf.mxu2  ;;  %v2290_v39 = vpop.f32.mrf.mxu3 }
 0x2d4   : > { %2747 = vst.msk [vmem:[%s3480_s26 + $0x498] sm:$0xff] %vm2599_vm2, %v2446_v37  ;;  %v2066_v40 = vadd.f32 %v4759_v32, %v2065_v38  ;;  %v2291_v41 = vadd.f32 %v4759_v32, %v2290_v39 }
 0x2d6   : > { %v2521_v42 = vmax.f32 %v2066_v40, 0.0  ;;  %v2596_v43 = vmax.f32 %v2291_v41, 0.0  ;;  %v1618_v44 = vpop.f32.mrf.mxu0  ;;  %v1843_v45 = vpop.f32.mrf.mxu1 }
 0x2d7   : > { %v1619_v46 = vadd.f32 %v4759_v32, %v1618_v44  ;;  %v1844_v47 = vadd.f32 %v4759_v32, %v1843_v45 }
 0x2d8   : > { %2822 = vst.msk [vmem:[%s3480_s26 + $0x6f0] sm:$0xff] %vm2599_vm2, %v2521_v42 }
 0x2d9   : > { %2897 = vst.msk [vmem:[%s3480_s26 + $0x948] sm:$0xff] %vm2599_vm2, %v2596_v43  ;;  %v2372_v48 = vmax.f32 %v1619_v46, 0.0  ;;  %v2447_v49 = vmax.f32 %v1844_v47, 0.0 }
 0x2db   : > { %2673 = vst.msk [vmem:[%s3480_s26 + $0x248] sm:$0xff] %vm2599_vm2, %v2372_v48  ;;  %v2068_v50 = vpop.f32.mrf.mxu2  ;;  %v2293_v51 = vpop.f32.mrf.mxu3 }
 0x2dc   : > { %2748 = vst.msk [vmem:[%s3480_s26 + $0x4a0] sm:$0xff] %vm2599_vm2, %v2447_v49  ;;  %v2069_v52 = vadd.f32 %v4759_v32, %v2068_v50  ;;  %v2294_v53 = vadd.f32 %v4759_v32, %v2293_v51 }
 0x2de   : > { %v2522_v54 = vmax.f32 %v2069_v52, 0.0  ;;  %v2597_v31 = vmax.f32 %v2294_v53, 0.0  ;;  %v1621_v55 = vpop.f32.mrf.mxu0  ;;  %v1846_v57 = vpop.f32.mrf.mxu1 }
 0x2df   : > { %v1622_v58 = vadd.f32 %v4759_v32, %v1621_v55  ;;  %v1847_v59 = vadd.f32 %v4759_v32, %v1846_v57 }
 0x2e0   : > { %2823 = vst.msk [vmem:[%s3480_s26 + $0x6f8] sm:$0xff] %vm2599_vm2, %v2522_v54 }
 0x2e1   : > { %2898 = vst.msk [vmem:[%s3480_s26 + $0x950] sm:$0xff] %vm2599_vm2, %v2597_v31  ;;  %v2373_v60 = vmax.f32 %v1622_v58, 0.0  ;;  %v2448_v61 = vmax.f32 %v1847_v59, 0.0 }
 0x2e3   : > { %2674 = vst.msk [vmem:[%s3480_s26 + $0x250] sm:$0xff] %vm2599_vm2, %v2373_v60  ;;  %v2071_v62 = vpop.f32.mrf.mxu2  ;;  %v2296_v63 = vpop.f32.mrf.mxu3 }
 0x2e4   : > { %2749 = vst.msk [vmem:[%s3480_s26 + $0x4a8] sm:$0xff] %vm2599_vm2, %v2448_v61  ;;  %v2072_v0 = vadd.f32 %v4759_v32, %v2071_v62  ;;  %v2297_v1 = vadd.f32 %v4759_v32, %v2296_v63 }
 0x2e6   : > { %v2523_v3 = vmax.f32 %v2072_v0, 0.0  ;;  %v2598_v4 = vmax.f32 %v2297_v1, 0.0 }
 0x2e8   : > { %2824 = vst.msk [vmem:[%s3480_s26 + $0x700] sm:$0xff] %vm2599_vm2, %v2523_v3 }
 0x2e9   : > { %2899 = vst.msk [vmem:[%s3480_s26 + $0x958] sm:$0xff] %vm2599_vm2, %v2598_v4 }
 0x2ea PF: > { %s13_s12 = sadd.s32 1, %s3290_s12  }
 0x2eb   : > { %p10_p4 = scmp.ge.s32.totalorder %s13_s12, 4  }
 0x2ed   :  { %12 = sbr.rel (!%p10_p4) target bundleno = 1 (0x1), region = 62 }

// kernel: cnn1_forward.4
= control target key start
LH: loop header
LB: loop body
LE: loop exit
PB: predicated region body
PF: predicated region fallthrough
CT: control target
= control target key end

     0   :  { %s5935_s12 = smov 0   ;;  %s8011_s0 = inlined_call_operand.vmem [shape: f32[2,578,32], index: 0, kind: input, shape index: {}]   ;;  %s8012_s1 = inlined_call_operand.vmem [shape: f32[9,32,64], index: 1, kind: input, shape index: {}]   ;;  %s8013_s2 = inlined_call_operand.vmem [shape: f32[1,64], index: 2, kind: input, shape index: {}]   ;;  %s8014_s3 = inlined_call_operand.vmem [shape: f32[2,528,64], index: 3, kind: output, shape index: {}]  }
   0x1 LB: > { %s5247_s13 = sadd.s32 4294967295, %s5913_s12   ;;  %p5251_p0 = scmp.ge.s32.totalorder %s5913_s12, 1  ;;  %s5913_s12 = sphi %s5935_s12, %s13_s12  }
   0x2   : > { %p137_p1 = scmp.lt.s32.totalorder %s5913_s12, 3 }
   0x4   : > { %p138_p2 = pnand %p5251_p0, %p137_p1 }
   0x6   : > { %141 = sbr.rel (%p138_p2) target bundleno = 1346 (0x542), region = 32 }
   0xb   : > { %v5257_v0 = vld [vmem:[%s8012_s1 + $0x38] sm:$0xff]  ;;  %v5256_v1 = vld [vmem:[%s8012_s1 + $0x30] sm:$0xff]  ;;  %p161_p3 = scmp.lt.s32.totalorder %s5247_s13, 1  ;;  %v5255_v2 = vld [vmem:[%s8012_s1 + $0x28] sm:$0xff]  ;;  %vm312_vm0 = vcmask 261120   ;;  %vm5125_vm1 = vcmask 523264  }
   0xc   : > { %5882 = vmatpush.msra.mxu1 %v5257_v0  ;;  %5883 = vmatpush.msra.mxu2 %v5257_v0  ;;  %v5254_v3 = vld [vmem:[%s8012_s1 + $0x20] sm:$0xff]  ;;  %v5393_v4 = vld [vmem:[%s8012_s1 + $0x58] sm:$0xff]  ;;  %v5392_v12 = vld [vmem:[%s8012_s1 + $0x50] sm:$0xff] }
   0xd   : > { %s8128_s13 = smov (!%p161_p3, %s5247_s13), 1  ;;  %523 = vmatpush.msra.mxu0 %v5257_v0  ;;  %5884 = vmatpush.msra.mxu3 %v5257_v0  ;;  %v240_v5 = vld [vmem:[%s8012_s1 + $0x18] sm:$0xff]  ;;  %v239_v15 = vld [vmem:[%s8012_s1 + $0x10] sm:$0xff]  ;;  %v5391_v32 = vld [vmem:[%s8012_s1 + $0x48] sm:$0xff] }
   0xe   : > { %5885 = vmatpush.msra.mxu1 %v5256_v1  ;;  %5886 = vmatpush.msra.mxu2 %v5256_v1  ;;  %s5894_s22 = smul.u32 584, %s8128_s13  ;;  %v5533_v9 = vld [vmem:[%s8012_s1 + $0x98] sm:$0xff]  ;;  %v5532_v18 = vld [vmem:[%s8012_s1 + $0x90] sm:$0xff]  ;;  %v238_v37 = vld [vmem:[%s8012_s1 + $0x8] sm:$0xff] }
   0xf   : > { %524 = vmatpush.msra.mxu0 %v5256_v1  ;;  %5887 = vmatpush.msra.mxu3 %v5256_v1  ;;  %v5463_v11 = vld [vmem:[%s8012_s1 + $0x78] sm:$0xff]  ;;  %v5462_v23 = vld [vmem:[%s8012_s1 + $0x70] sm:$0xff]  ;;  %v5461_v38 = vld [vmem:[%s8012_s1 + $0x68] sm:$0xff]  ;;  %s5895_s19 = smul.u32 528, %s8128_s13 }
  0x10   : > { %5888 = vmatpush.msra.mxu1 %v5255_v2  ;;  %5889 = vmatpush.msra.mxu2 %v5255_v2  ;;  %s5961_s25 = scalar_lea.vmem %s8011_s0, %s5894_s22  ;;  %v5531_v39 = vld [vmem:[%s8012_s1 + $0x88] sm:$0xff]  ;;  %v5390_v52 = vld [vmem:[%s8012_s1 + $0x40] sm:$0xff] }
  0x11   : > { %525 = vmatpush.msra.mxu0 %v5255_v2  ;;  %5890 = vmatpush.msra.mxu3 %v5255_v2  ;;  %v5970_v6 = vld [vmem:[%s5961_s25 + $0x89] sm:$0xff]  ;;  %v275_v7 = vld [vmem:[%s5961_s25 + $0x111] sm:$0xff]  ;;  %v241_v8 = vld [vmem:[%s5961_s25 + $0x1] sm:$0xff]  ;;  %s7406_s22 = scalar_lea.vmem %s8014_s3, %s5895_s19 }
  0x12   : > { %5891 = vmatpush.msra.mxu1 %v5254_v3  ;;  %5892 = vmatpush.msra.mxu2 %v5254_v3  ;;  %v292_v10 = vld [vmem:[%s5961_s25 + $0x199] sm:$0xff]  ;;  %v5990_v13 = vld [vmem:[%s5961_s25 + $0x91] sm:$0xff]  ;;  %v242_v16 = vld [vmem:[%s5961_s25 + $0x9] sm:$0xff] }
  0x13   : > { %5275 = vmatmul.msk.f32.vlgmr.msra.gmra.mxu1 %vm312_vm0, %v5970_v6  ;;  %5292 = vmatmul.msk.f32.vlgmr.msra.gmra.mxu2 %vm312_vm0, %v275_v7  ;;  %v276_v14 = vld [vmem:[%s5961_s25 + $0x119] sm:$0xff]  ;;  %v293_v17 = vld [vmem:[%s5961_s25 + $0x1a1] sm:$0xff]  ;;  %v243_v21 = vld [vmem:[%s5961_s25 + $0x11] sm:$0xff] }
  0x14   : > { %1420 = vmatpush.msrb.mxu2 %v5393_v4  ;;  %936 = vmatpush.msrb.mxu1 %v240_v5  ;;  %v6007_v19 = vld [vmem:[%s5961_s25 + $0x99] sm:$0xff]  ;;  %v277_v20 = vld [vmem:[%s5961_s25 + $0x121] sm:$0xff]  ;;  %v294_v22 = vld [vmem:[%s5961_s25 + $0x1a9] sm:$0xff] }
  0x15   : > { %526 = vmatpush.msra.mxu0 %v5254_v3  ;;  %5893 = vmatpush.msra.mxu3 %v5254_v3  ;;  %v6021_v24 = vld [vmem:[%s5961_s25 + $0xa1] sm:$0xff]  ;;  %v278_v25 = vld [vmem:[%s5961_s25 + $0x129] sm:$0xff]  ;;  %v6028_v26 = vld [vmem:[%s5961_s25 + $0x19] sm:$0xff] }
  0x16   : > { %5258 = vmatmul.msk.f32.vlgmr.msra.gmra.mxu0 %vm312_vm0, %v241_v8  ;;  %5309 = vmatmul.msk.f32.vlgmr.msra.gmra.mxu3 %vm312_vm0, %v292_v10  ;;  %v295_v27 = vld [vmem:[%s5961_s25 + $0x1b1] sm:$0xff]  ;;  %v6035_v28 = vld [vmem:[%s5961_s25 + $0xa9] sm:$0xff]  ;;  %v6042_v30 = vld [vmem:[%s5961_s25 + $0x21] sm:$0xff] }
  0x17   : > { %2520 = vmatpush.msrb.mxu0 %v5533_v9  ;;  %1970 = vmatpush.msrb.mxu3 %v5463_v11  ;;  %v279_v29 = vld [vmem:[%s5961_s25 + $0x131] sm:$0xff]  ;;  %v296_v31 = vld [vmem:[%s5961_s25 + $0x1b9] sm:$0xff]  ;;  %v6059_v35 = vld [vmem:[%s5961_s25 + $0x29] sm:$0xff] }
  0x18   : > { %1421 = vmatpush.msrb.mxu2 %v5392_v12  ;;  %937 = vmatpush.msrb.mxu1 %v239_v15  ;;  %v6052_v33 = vld [vmem:[%s5961_s25 + $0xb1] sm:$0xff]  ;;  %v280_v34 = vld [vmem:[%s5961_s25 + $0x139] sm:$0xff]  ;;  %v297_v36 = vld [vmem:[%s5961_s25 + $0x1c1] sm:$0xff] }
  0x19   : > { %2521 = vmatpush.msrb.mxu0 %v5532_v18  ;;  %1971 = vmatpush.msrb.mxu3 %v5462_v23  ;;  %v6075_v40 = vld [vmem:[%s5961_s25 + $0xb9] sm:$0xff]  ;;  %v281_v41 = vld [vmem:[%s5961_s25 + $0x141] sm:$0xff]  ;;  %v6082_v42 = vld [vmem:[%s5961_s25 + $0x31] sm:$0xff] }
  0x1a   : > { %1422 = vmatpush.msrb.mxu2 %v5391_v32  ;;  %938 = vmatpush.msrb.mxu1 %v238_v37  ;;  %v298_v43 = vld [vmem:[%s5961_s25 + $0x1c9] sm:$0xff]  ;;  %v6089_v44 = vld [vmem:[%s5961_s25 + $0xc1] sm:$0xff]  ;;  %v6096_v46 = vld [vmem:[%s5961_s25 + $0x39] sm:$0xff] }
  0x1b   : > { %5276 = vmatmul.msk.f32.gmra.mxu1 %vm312_vm0, %v5990_v13  ;;  %5293 = vmatmul.msk.f32.gmra.mxu2 %vm312_vm0, %v276_v14  ;;  %v282_v45 = vld [vmem:[%s5961_s25 + $0x149] sm:$0xff]  ;;  %v299_v47 = vld [vmem:[%s5961_s25 + $0x1d1] sm:$0xff]  ;;  %v6110_v50 = vld [vmem:[%s5961_s25 + $0x41] sm:$0xff] }
  0x1c   : > { %1972 = vmatpush.msrb.mxu3 %v5461_v38  ;;  %2522 = vmatpush.msrb.mxu0 %v5531_v39  ;;  %v6103_v48 = vld [vmem:[%s5961_s25 + $0xc9] sm:$0xff]  ;;  %v283_v49 = vld [vmem:[%s5961_s25 + $0x151] sm:$0xff]  ;;  %v300_v51 = vld [vmem:[%s5961_s25 + $0x1d9] sm:$0xff] }
  0x1d   : > { %1423 = vmatpush.msrb.mxu2 %v5390_v52  ;;  %v6120_v53 = vld [vmem:[%s5961_s25 + $0xd1] sm:$0xff]  ;;  %v284_v54 = vld [vmem:[%s5961_s25 + $0x159] sm:$0xff]  ;;  %v6127_v55 = vld [vmem:[%s5961_s25 + $0x49] sm:$0xff] }
  0x1e   : > { %5259 = vmatmul.msk.f32.gmra.mxu0 %vm312_vm0, %v242_v16  ;;  %5310 = vmatmul.msk.f32.gmra.mxu3 %vm312_vm0, %v293_v17  ;;  %v301_v56 = vld [vmem:[%s5961_s25 + $0x1e1] sm:$0xff]  ;;  %v6140_v59 = vld [vmem:[%s5961_s25 + $0xd9] sm:$0xff]  ;;  %v6147_v61 = vld [vmem:[%s5961_s25 + $0x51] sm:$0xff] }
  0x1f   : > { %v237_v57 = vld [vmem:[%s8012_s1] sm:$0xff]  ;;  %v302_v62 = vld [vmem:[%s5961_s25 + $0x1e9] sm:$0xff]  ;;  %v303_v3 = vld [vmem:[%s5961_s25 + $0x1f1] sm:$0xff] }
  0x20   : > { %939 = vmatpush.msrb.mxu1 %v237_v57  ;;  %v5460_v58 = vld [vmem:[%s8012_s1 + $0x60] sm:$0xff]  ;;  %v286_v1 = vld [vmem:[%s5961_s25 + $0x169] sm:$0xff]  ;;  %v287_v5 = vld [vmem:[%s5961_s25 + $0x171] sm:$0xff] }
  0x21   : > { %1973 = vmatpush.msrb.mxu3 %v5460_v58  ;;  %v285_v60 = vld [vmem:[%s5961_s25 + $0x161] sm:$0xff]  ;;  %v6164_v2 = vld [vmem:[%s5961_s25 + $0x59] sm:$0xff]  ;;  %v6171_v4 = vld [vmem:[%s5961_s25 + $0xe9] sm:$0xff] }
  0x22   : > { %v5530_v63 = vld [vmem:[%s8012_s1 + $0x80] sm:$0xff]  ;;  %v6185_v9 = vld [vmem:[%s5961_s25 + $0xf1] sm:$0xff]  ;;  %v6192_v11 = vld [vmem:[%s5961_s25 + $0x69] sm:$0xff] }
  0x23   : > { %5277 = vmatmul.msk.f32.gmra.mxu1 %vm312_vm0, %v6007_v19  ;;  %5294 = vmatmul.msk.f32.gmra.mxu2 %vm312_vm0, %v277_v20  ;;  %v6157_v0 = vld [vmem:[%s5961_s25 + $0xe1] sm:$0xff]  ;;  %v304_v8 = vld [vmem:[%s5961_s25 + $0x1f9] sm:$0xff]  ;;  %v6215_v20 = vld [vmem:[%s5961_s25 + $0x71] sm:$0xff] }
  0x24   : > { %2523 = vmatpush.msrb.mxu0 %v5530_v63  ;;  %v6178_v7 = vld [vmem:[%s5961_s25 + $0x61] sm:$0xff]  ;;  %v288_v10 = vld [vmem:[%s5961_s25 + $0x179] sm:$0xff]  ;;  %v6241_v32 = vld [vmem:[%s5961_s25 + $0x109] sm:$0xff] }
  0x25   : > { %v305_v12 = vld [vmem:[%s5961_s25 + $0x201] sm:$0xff]  ;;  %v5673_v14 = vld [vmem:[%s8012_s1 + $0xd8] sm:$0xff]  ;;  %v1140_v57 = vld [vmem:[%s5961_s25 + $0xa] sm:$0xff] }
  0x26   : > { %5260 = vmatmul.msk.f32.gmra.mxu0 %vm312_vm0, %v243_v21  ;;  %5311 = vmatmul.msk.f32.gmra.mxu3 %vm312_vm0, %v294_v22  ;;  %v5743_v15 = vld [vmem:[%s8012_s1 + $0xf8] sm:$0xff]  ;;  %v289_v18 = vld [vmem:[%s5961_s25 + $0x181] sm:$0xff]  ;;  %v306_v21 = vld [vmem:[%s5961_s25 + $0x209] sm:$0xff] }
  0x27   : > { %3620 = vmatpush.msra.mxu2 %v5673_v14  ;;  %4170 = vmatpush.msra.mxu3 %v5743_v15  ;;  %v5603_v16 = vld [vmem:[%s8012_s1 + $0xb8] sm:$0xff]  ;;  %v6225_v23 = vld [vmem:[%s5961_s25 + $0x101] sm:$0xff] }
  0x28   : > { %3070 = vmatpush.msra.mxu1 %v5603_v16  ;;  %v6208_v17 = vld [vmem:[%s5961_s25 + $0xf9] sm:$0xff]  ;;  %v6250_v37 = vld [vmem:[%s5961_s25 + $0x81] sm:$0xff] }
  0x29   : > { %v5813_v22 = vld [vmem:[%s8012_s1 + $0x118] sm:$0xff]  ;;  %v1690_v38 = vld [vmem:[%s5961_s25 + $0x20] sm:$0xff] }
  0x2a   : > { %4720 = vmatpush.msra.mxu0 %v5813_v22  ;;  %v1142_v14 = vld [vmem:[%s5961_s25 + $0x1a] sm:$0xff]  ;;  %v1143_v22 = vld [vmem:[%s5961_s25 + $0x22] sm:$0xff] }
  0x2b   : > { %5278 = vmatmul.msk.f32.gmra.mxu1 %vm312_vm0, %v6021_v24  ;;  %5295 = vmatmul.msk.f32.gmra.mxu2 %vm312_vm0, %v278_v25  ;;  %v290_v25 = vld [vmem:[%s5961_s25 + $0x189] sm:$0xff] }
  0x2e   : > { %5261 = vmatmul.msk.f32.gmra.mxu0 %vm312_vm0, %v6028_v26  ;;  %5312 = vmatmul.msk.f32.gmra.mxu3 %vm312_vm0, %v295_v27  ;;  %v6232_v27 = vld [vmem:[%s5961_s25 + $0x79] sm:$0xff] }
  0x33   : > { %5279 = vmatmul.msk.f32.gmra.mxu1 %vm312_vm0, %v6035_v28  ;;  %5296 = vmatmul.msk.f32.gmra.mxu2 %vm312_vm0, %v279_v29  ;;  %v1689_v29 = vld [vmem:[%s5961_s25 + $0x18] sm:$0xff] }
  0x36   : > { %5262 = vmatmul.msk.f32.gmra.mxu0 %vm312_vm0, %v6042_v30  ;;  %5313 = vmatmul.msk.f32.gmra.mxu3 %vm312_vm0, %v296_v31 }
  0x3b   : > { %5280 = vmatmul.msk.f32.gmra.mxu1 %vm312_vm0, %v6052_v33  ;;  %5297 = vmatmul.msk.f32.gmra.mxu2 %vm312_vm0, %v280_v34  ;;  %v291_v34 = vld [vmem:[%s5961_s25 + $0x191] sm:$0xff] }
  0x3e   : > { %5263 = vmatmul.msk.f32.gmra.mxu0 %vm312_vm0, %v6059_v35  ;;  %5314 = vmatmul.msk.f32.gmra.mxu3 %vm312_vm0, %v297_v36 }
  0x43   : > { %5281 = vmatmul.msk.f32.gmra.mxu1 %vm312_vm0, %v6075_v40  ;;  %5298 = vmatmul.msk.f32.gmra.mxu2 %vm312_vm0, %v281_v41 }
  0x46   : > { %5264 = vmatmul.msk.f32.gmra.mxu0 %vm312_vm0, %v6082_v42  ;;  %5315 = vmatmul.msk.f32.gmra.mxu3 %vm312_vm0, %v298_v43  ;;  %v171_v43 = vld [vmem:[%s5961_s25] sm:$0xff] }
  0x4b   : > { %5282 = vmatmul.msk.f32.gmra.mxu1 %vm312_vm0, %v6089_v44  ;;  %5299 = vmatmul.msk.f32.gmra.mxu2 %vm312_vm0, %v282_v45  ;;  %v1139_v45 = vld [vmem:[%s5961_s25 + $0x2] sm:$0xff] }
  0x4e   : > { %5265 = vmatmul.msk.f32.gmra.mxu0 %vm312_vm0, %v6096_v46  ;;  %5316 = vmatmul.msk.f32.gmra.mxu3 %vm312_vm0, %v299_v47 }
  0x53   : > { %5283 = vmatmul.msk.f32.gmra.mxu1 %vm312_vm0, %v6103_v48  ;;  %5300 = vmatmul.msk.f32.gmra.mxu2 %vm312_vm0, %v283_v49 }
  0x56   : > { %5266 = vmatmul.msk.f32.gmra.mxu0 %vm312_vm0, %v6110_v50  ;;  %5317 = vmatmul.msk.f32.gmra.mxu3 %vm312_vm0, %v300_v51  ;;  %v1691_v51 = vld [vmem:[%s5961_s25 + $0x28] sm:$0xff] }
  0x5b   : > { %5284 = vmatmul.msk.f32.gmra.mxu1 %vm312_vm0, %v6120_v53  ;;  %5301 = vmatmul.msk.f32.gmra.mxu2 %vm312_vm0, %v284_v54 }
  0x5e   : > { %5267 = vmatmul.msk.f32.gmra.mxu0 %vm312_vm0, %v6127_v55  ;;  %5318 = vmatmul.msk.f32.gmra.mxu3 %vm312_vm0, %v301_v56  ;;  %v172_v56 = vld [vmem:[%s5961_s25 + $0x8] sm:$0xff] }
  0x63   : > { %5285 = vmatmul.msk.f32.gmra.mxu1 %vm312_vm0, %v6140_v59  ;;  %5302 = vmatmul.msk.f32.gmra.mxu2 %vm312_vm0, %v285_v60 }
  0x66   : > { %5268 = vmatmul.msk.f32.gmra.mxu0 %vm312_vm0, %v6147_v61  ;;  %5319 = vmatmul.msk.f32.gmra.mxu3 %vm312_vm0, %v302_v62  ;;  %v1692_v62 = vld [vmem:[%s5961_s25 + $0x30] sm:$0xff] }
  0x6b   : > { %5286 = vmatmul.msk.f32.gmra.mxu1 %vm312_vm0, %v6157_v0  ;;  %5303 = vmatmul.msk.f32.gmra.mxu2 %vm312_vm0, %v286_v1  ;;  %v173_v1 = vld [vmem:[%s5961_s25 + $0x10] sm:$0xff] }
  0x6e   : > { %5269 = vmatmul.msk.f32.gmra.mxu0 %vm312_vm0, %v6164_v2  ;;  %5320 = vmatmul.msk.f32.gmra.mxu3 %vm312_vm0, %v303_v3  ;;  %v1141_v3 = vld [vmem:[%s5961_s25 + $0x12] sm:$0xff] }
  0x73   : > { %5287 = vmatmul.msk.f32.gmra.mxu1 %vm312_vm0, %v6171_v4  ;;  %5304 = vmatmul.msk.f32.gmra.mxu2 %vm312_vm0, %v287_v5 }
  0x76   : > { %5270 = vmatmul.msk.f32.gmra.mxu0 %vm312_vm0, %v6178_v7  ;;  %5321 = vmatmul.msk.f32.gmra.mxu3 %vm312_vm0, %v304_v8 }
  0x7b   : > { %5288 = vmatmul.msk.f32.gmra.mxu1 %vm312_vm0, %v6185_v9  ;;  %5305 = vmatmul.msk.f32.gmra.mxu2 %vm312_vm0, %v288_v10  ;;  %v1693_v10 = vld [vmem:[%s5961_s25 + $0x38] sm:$0xff] }
  0x7e   : > { %5271 = vmatmul.msk.f32.gmra.mxu0 %vm312_vm0, %v6192_v11  ;;  %5322 = vmatmul.msk.f32.gmra.mxu3 %vm312_vm0, %v305_v12 }
  0x83   : > { %5289 = vmatmul.msk.f32.gmra.mxu1 %vm312_vm0, %v6208_v17  ;;  %5306 = vmatmul.msk.f32.gmra.mxu2 %vm312_vm0, %v289_v18  ;;  %v1694_v18 = vld [vmem:[%s5961_s25 + $0x40] sm:$0xff] }
  0x86   : > { %5272 = vmatmul.msk.f32.gmra.mxu0 %vm312_vm0, %v6215_v20  ;;  %5323 = vmatmul.msk.f32.gmra.mxu3 %vm312_vm0, %v306_v21 }
  0x8b   : > { %5290 = vmatmul.msk.f32.gmra.mxu1 %vm312_vm0, %v6225_v23  ;;  %5307 = vmatmul.msk.f32.gmra.mxu2 %vm312_vm0, %v290_v25 }
  0x8e   : > { %5273 = vmatmul.msk.f32.gmra.mxu0 %vm312_vm0, %v6232_v27  ;;  %5464 = vmatmul.msk.f32.vlgmr.msrb.gmra.mxu3 %vm312_vm0, %v1689_v29 }
  0x90   : > { %v6238_v31 = vpop.f32.mrf.mxu1 }
  0x93   : > { %5291 = vmatmul.msk.f32.gmra.mxu1 %vm312_vm0, %v6241_v32  ;;  %5308 = vmatmul.msk.f32.gmra.mxu2 %vm312_vm0, %v291_v34  ;;  %v6247_v36 = vpop.f32.mrf.mxu0  ;;  %v1695_v34 = vld [vmem:[%s5961_s25 + $0x48] sm:$0xff] }
  0x96   : > { %v6253_v39 = vpop.f32.mrf.mxu2  ;;  %5274 = vmatmul.msk.f32.gmra.mxu0 %vm312_vm0, %v6250_v37  ;;  %5465 = vmatmul.msk.f32.gmra.mxu3 %vm312_vm0, %v1690_v38 }
  0x97   : > { %8015 = vst [vmem:[#allocation2_spill] sm:$0xff] %v6253_v39 }
  0x98   : > { %v6258_v41 = vpop.f32.mrf.mxu1 }
  0x99   : > { %v6262_v47 = vpop.f32.mrf.mxu3 }
  0x9a   : > { %8016 = vst [vmem:[#allocation3_spill] sm:$0xff] %v6262_v47 }
  0x9b   : > { %5324 = vmatmul.msk.f32.vlgmr.msrb.gmra.mxu1 %vm312_vm0, %v171_v43  ;;  %5394 = vmatmul.msk.f32.vlgmr.msrb.gmra.mxu2 %vm312_vm0, %v1139_v45  ;;  %v6266_v49 = vpop.f32.mrf.mxu0  ;;  %v1144_v45 = vld [vmem:[%s5961_s25 + $0x2a] sm:$0xff] }
  0x9e   : > { %v6269_v52 = vpop.f32.mrf.mxu2  ;;  %5534 = vmatmul.msk.f32.vlgmr.msrb.gmra.mxu0 %vm312_vm0, %v6028_v26  ;;  %5466 = vmatmul.msk.f32.gmra.mxu3 %vm312_vm0, %v1691_v51 }
  0x9f   : > { %8017 = vst [vmem:[#allocation4_spill] sm:$0xff] %v6269_v52 }
  0xa0   : > { %v6274_v54 = vpop.f32.mrf.mxu1 }
  0xa1   : > { %v6278_v58 = vpop.f32.mrf.mxu3 }
  0xa2   : > { %8018 = vst [vmem:[#allocation5_spill] sm:$0xff] %v6278_v58  ;;  %v1148_v58 = vld [vmem:[%s5961_s25 + $0x4a] sm:$0xff] }
  0xa3   : > { %5325 = vmatmul.msk.f32.gmra.mxu1 %vm312_vm0, %v172_v56  ;;  %5395 = vmatmul.msk.f32.gmra.mxu2 %vm312_vm0, %v1140_v57  ;;  %v6282_v60 = vpop.f32.mrf.mxu0  ;;  %v1696_v57 = vld [vmem:[%s5961_s25 + $0x50] sm:$0xff] }
  0xa6   : > { %v6285_v63 = vpop.f32.mrf.mxu2  ;;  %5535 = vmatmul.msk.f32.gmra.mxu0 %vm312_vm0, %v6042_v30  ;;  %5467 = vmatmul.msk.f32.gmra.mxu3 %vm312_vm0, %v1692_v62 }
  0xa7   : > { %8019 = vst [vmem:[#allocation6_spill] sm:$0xff] %v6285_v63 }
  0xa8   : > { %v6290_v26 = vpop.f32.mrf.mxu1 }
  0xa9   : > { %v6294_v5 = vpop.f32.mrf.mxu3 }
  0xaa   : > { %8020 = vst [vmem:[#allocation7_spill] sm:$0xff] %v6294_v5 }
  0xab   : > { %5326 = vmatmul.msk.f32.gmra.mxu1 %vm312_vm0, %v173_v1  ;;  %5396 = vmatmul.msk.f32.gmra.mxu2 %vm312_vm0, %v1141_v3  ;;  %v6298_v8 = vpop.f32.mrf.mxu0  ;;  %v1145_v3 = vld [vmem:[%s5961_s25 + $0x32] sm:$0xff] }
  0xae   : > { %v6301_v12 = vpop.f32.mrf.mxu2  ;;  %5536 = vmatmul.msk.f32.gmra.mxu0 %vm312_vm0, %v6059_v35  ;;  %5468 = vmatmul.msk.f32.gmra.mxu3 %vm312_vm0, %v1693_v10 }
  0xaf   : > { %8021 = vst [vmem:[#allocation8_spill] sm:$0xff] %v6301_v12 }
  0xb0   : > { %v6306_v30 = vpop.f32.mrf.mxu1 }
  0xb1   : > { %v6309_v15 = vpop.f32.mrf.mxu3 }
  0xb2   : > { %8022 = vst [vmem:[#allocation9_spill] sm:$0xff] %v6309_v15  ;;  %v1147_v15 = vld [vmem:[%s5961_s25 + $0x42] sm:$0xff] }
  0xb3   : > { %5327 = vmatmul.msk.f32.gmra.mxu1 %vm312_vm0, %v1689_v29  ;;  %5397 = vmatmul.msk.f32.gmra.mxu2 %vm312_vm0, %v1142_v14  ;;  %v6313_v16 = vpop.f32.mrf.mxu0 }
  0xb6   : > { %v6316_v21 = vpop.f32.mrf.mxu2  ;;  %5537 = vmatmul.msk.f32.gmra.mxu0 %vm312_vm0, %v6082_v42  ;;  %5469 = vmatmul.msk.f32.gmra.mxu3 %vm312_vm0, %v1694_v18 }
  0xb7   : > { %8023 = vst [vmem:[#allocation10_spill] sm:$0xff] %v6316_v21  ;;  %v1154_v21 = vld [vmem:[%s5961_s25 + $0x7a] sm:$0xff] }
  0xb8   : > { %v6321_v35 = vpop.f32.mrf.mxu1 }
  0xb9   : > { %v6324_v25 = vpop.f32.mrf.mxu3 }
  0xba   : > { %8024 = vst [vmem:[#allocation11_spill] sm:$0xff] %v6324_v25 }
  0xbb   : > { %5328 = vmatmul.msk.f32.gmra.mxu1 %vm312_vm0, %v1690_v38  ;;  %5398 = vmatmul.msk.f32.gmra.mxu2 %vm312_vm0, %v1143_v22  ;;  %v6328_v29 = vpop.f32.mrf.mxu0  ;;  %v1697_v22 = vld [vmem:[%s5961_s25 + $0x58] sm:$0xff] }
  0xbe   : > { %v6331_v43 = vpop.f32.mrf.mxu2  ;;  %5538 = vmatmul.msk.f32.gmra.mxu0 %vm312_vm0, %v6096_v46  ;;  %5470 = vmatmul.msk.f32.gmra.mxu3 %vm312_vm0, %v1695_v34 }
  0xbf   : > { %8025 = vst [vmem:[#allocation12_spill] sm:$0xff] %v6331_v43  ;;  %v5602_v43 = vld [vmem:[%s8012_s1 + $0xb0] sm:$0xff] }
  0xc0   : > { %v6336_v42 = vpop.f32.mrf.mxu1  ;;  %3071 = vmatpush.msra.mxu1 %v5602_v43 }
  0xc1   : > { %v6339_v56 = vpop.f32.mrf.mxu3 }
  0xc2   : > { %8026 = vst [vmem:[#allocation13_spill] sm:$0xff] %v6339_v56  ;;  %v1146_v56 = vld [vmem:[%s5961_s25 + $0x3a] sm:$0xff] }
  0xc3   : > { %5329 = vmatmul.msk.f32.gmra.mxu1 %vm312_vm0, %v1691_v51  ;;  %5399 = vmatmul.msk.f32.gmra.mxu2 %vm312_vm0, %v1144_v45  ;;  %v6343_v38 = vpop.f32.mrf.mxu0 }
  0xc6   : > { %v6346_v1 = vpop.f32.mrf.mxu2  ;;  %5539 = vmatmul.msk.f32.gmra.mxu0 %vm312_vm0, %v6110_v50  ;;  %5471 = vmatmul.msk.f32.gmra.mxu3 %vm312_vm0, %v1696_v57 }
  0xc7   : > { %8027 = vst [vmem:[#allocation14_spill] sm:$0xff] %v6346_v1 }
  0xc8   : > { %v6351_v46 = vpop.f32.mrf.mxu1 }
  0xc9   : > { %v6354_v14 = vpop.f32.mrf.mxu3 }
  0xca   : > { %8028 = vst [vmem:[#allocation15_spill] sm:$0xff] %v6354_v14 }
  0xcb   : > { %5330 = vmatmul.msk.f32.gmra.mxu1 %vm312_vm0, %v1692_v62  ;;  %5400 = vmatmul.msk.f32.gmra.mxu2 %vm312_vm0, %v1145_v3  ;;  %v6358_v51 = vpop.f32.mrf.mxu0  ;;  %v1698_v3 = vld [vmem:[%s5961_s25 + $0x60] sm:$0xff] }
  0xce   : > { %v6361_v45 = vpop.f32.mrf.mxu2  ;;  %5540 = vmatmul.msk.f32.gmra.mxu0 %vm312_vm0, %v6127_v55  ;;  %5472 = vmatmul.msk.f32.gmra.mxu3 %vm312_vm0, %v1697_v22 }
  0xcf   : > { %8029 = vst [vmem:[#allocation16_spill] sm:$0xff] %v6361_v45  ;;  %v1151_v45 = vld [vmem:[%s5961_s25 + $0x62] sm:$0xff] }
  0xd0   : > { %v6366_v50 = vpop.f32.mrf.mxu1 }
  0xd1   : > { %v6369_v14 = vpop.f32.mrf.mxu3 }
  0xd2   : > { %8030 = vst [vmem:[#allocation17_spill] sm:$0xff] %v6369_v14 }
  0xd3   : > { %5331 = vmatmul.msk.f32.gmra.mxu1 %vm312_vm0, %v1693_v10  ;;  %5401 = vmatmul.msk.f32.gmra.mxu2 %vm312_vm0, %v1146_v56  ;;  %v6373_v62 = vpop.f32.mrf.mxu0  ;;  %v1699_v56 = vld [vmem:[%s5961_s25 + $0x68] sm:$0xff] }
  0xd6   : > { %v6376_v25 = vpop.f32.mrf.mxu2  ;;  %5541 = vmatmul.msk.f32.gmra.mxu0 %vm312_vm0, %v6147_v61  ;;  %5473 = vmatmul.msk.f32.gmra.mxu3 %vm312_vm0, %v1698_v3 }
  0xd7   : > { %8031 = vst [vmem:[#allocation18_spill] sm:$0xff] %v6376_v25  ;;  %v1150_v25 = vld [vmem:[%s5961_s25 + $0x5a] sm:$0xff] }
  0xd8   : > { %v6381_v55 = vpop.f32.mrf.mxu1 }
  0xd9   : > { %v6384_v14 = vpop.f32.mrf.mxu3 }
  0xda   : > { %8032 = vst [vmem:[#allocation19_spill] sm:$0xff] %v6384_v14 }
  0xdb   : > { %5332 = vmatmul.msk.f32.gmra.mxu1 %vm312_vm0, %v1694_v18  ;;  %5402 = vmatmul.msk.f32.gmra.mxu2 %vm312_vm0, %v1147_v15  ;;  %v6388_v10 = vpop.f32.mrf.mxu0  ;;  %v1700_v18 = vld [vmem:[%s5961_s25 + $0x70] sm:$0xff] }
  0xde   : > { %v6391_v5 = vpop.f32.mrf.mxu2  ;;  %5542 = vmatmul.msk.f32.gmra.mxu0 %vm312_vm0, %v6164_v2  ;;  %5474 = vmatmul.msk.f32.gmra.mxu3 %vm312_vm0, %v1699_v56 }
  0xdf   : > { %8033 = vst [vmem:[#allocation20_spill] sm:$0xff] %v6391_v5  ;;  %v1149_v5 = vld [vmem:[%s5961_s25 + $0x52] sm:$0xff] }
  0xe0   : > { %v6396_v61 = vpop.f32.mrf.mxu1 }
  0xe1   : > { %v6399_v14 = vpop.f32.mrf.mxu3 }
  0xe2   : > { %8034 = vst [vmem:[#allocation21_spill] sm:$0xff] %v6399_v14 }
  0xe3   : > { %5333 = vmatmul.msk.f32.gmra.mxu1 %vm312_vm0, %v1695_v34  ;;  %5403 = vmatmul.msk.f32.gmra.mxu2 %vm312_vm0, %v1148_v58  ;;  %v6403_v15 = vpop.f32.mrf.mxu0  ;;  %v1701_v34 = vld [vmem:[%s5961_s25 + $0x78] sm:$0xff] }
  0xe6   : > { %v6406_v47 = vpop.f32.mrf.mxu2  ;;  %5543 = vmatmul.msk.f32.gmra.mxu0 %vm312_vm0, %v6178_v7  ;;  %5475 = vmatmul.msk.f32.gmra.mxu3 %vm312_vm0, %v1700_v18 }
  0xe7   : > { %8035 = vst [vmem:[#allocation22_spill] sm:$0xff] %v6406_v47 }
  0xe8   : > { %v6411_v2 = vpop.f32.mrf.mxu1 }
  0xe9   : > { %v6414_v14 = vpop.f32.mrf.mxu3 }
  0xea   : > { %8036 = vst [vmem:[#allocation23_spill] sm:$0xff] %v6414_v14 }
  0xeb   : > { %5334 = vmatmul.msk.f32.gmra.mxu1 %vm312_vm0, %v1696_v57  ;;  %5404 = vmatmul.msk.f32.gmra.mxu2 %vm312_vm0, %v1149_v5  ;;  %v6418_v58 = vpop.f32.mrf.mxu0  ;;  %v1702_v57 = vld [vmem:[%s5961_s25 + $0x80] sm:$0xff] }
  0xee   : > { %v6421_v47 = vpop.f32.mrf.mxu2  ;;  %5544 = vmatmul.msk.f32.gmra.mxu0 %vm312_vm0, %v6192_v11  ;;  %5476 = vmatmul.msk.f32.gmra.mxu3 %vm312_vm0, %v1701_v34 }
  0xef   : > { %8037 = vst [vmem:[#allocation24_spill] sm:$0xff] %v6421_v47 }
  0xf0   : > { %v6426_v7 = vpop.f32.mrf.mxu1 }
  0xf1   : > { %v6429_v14 = vpop.f32.mrf.mxu3 }
  0xf2   : > { %8038 = vst [vmem:[#allocation25_spill] sm:$0xff] %v6429_v14 }
  0xf3   : > { %5335 = vmatmul.msk.f32.gmra.mxu1 %vm312_vm0, %v1697_v22  ;;  %5405 = vmatmul.msk.f32.gmra.mxu2 %vm312_vm0, %v1150_v25  ;;  %v6433_v5 = vpop.f32.mrf.mxu0  ;;  %v1703_v22 = vld [vmem:[%s5961_s25 + $0x88] sm:$0xff] }
  0xf6   : > { %v6436_v47 = vpop.f32.mrf.mxu2  ;;  %5545 = vmatmul.msk.f32.gmra.mxu0 %vm312_vm0, %v6215_v20  ;;  %5477 = vmatmul.msk.f32.gmra.mxu3 %vm312_vm0, %v1702_v57  ;;  %v5672_v20 = vld [vmem:[%s8012_s1 + $0xd0] sm:$0xff] }
  0xf7   : > { %8039 = vst [vmem:[#allocation26_spill] sm:$0xff] %v6436_v47  ;;  %3621 = vmatpush.msra.mxu2 %v5672_v20  ;;  %v1704_v47 = vld [vmem:[%s5961_s25 + $0x90] sm:$0xff] }
  0xf8   : > { %v6441_v11 = vpop.f32.mrf.mxu1 }
  0xf9   : > { %v6444_v1 = vpop.f32.mrf.mxu3 }
  0xfa   : > { %8040 = vst [vmem:[#allocation27_spill] sm:$0xff] %v6444_v1 }
  0xfb   : > { %5336 = vmatmul.msk.f32.gmra.mxu1 %vm312_vm0, %v1698_v3  ;;  %5406 = vmatmul.msk.f32.gmra.mxu2 %vm312_vm0, %v1151_v45  ;;  %v6448_v25 = vpop.f32.mrf.mxu0  ;;  %v1152_v3 = vld [vmem:[%s5961_s25 + $0x6a] sm:$0xff] }
  0xfe   : > { %v6451_v14 = vpop.f32.mrf.mxu2  ;;  %5546 = vmatmul.msk.f32.gmra.mxu0 %vm312_vm0, %v6232_v27  ;;  %5478 = vmatmul.msk.f32.gmra.mxu3 %vm312_vm0, %v1703_v22 }
  0xff   : > { %8041 = vst [vmem:[#allocation28_spill] sm:$0xff] %v6451_v14  ;;  %v5742_v14 = vld [vmem:[%s8012_s1 + $0xf0] sm:$0xff] }
 0x100   : > { %v6459_v1 = vpop.f32.mrf.mxu1  ;;  %4171 = vmatpush.msra.mxu3 %v5742_v14 }
 0x101   : > { %8042 = vst [vmem:[#allocation29_spill] sm:$0xff] %v6459_v1  ;;  %v6462_v45 = vpop.f32.mrf.mxu3 }
 0x102   : > { %8043 = vst [vmem:[#allocation30_spill] sm:$0xff] %v6462_v45  ;;  %v5812_v45 = vld [vmem:[%s8012_s1 + $0x110] sm:$0xff] }
 0x103   : > { %5337 = vmatmul.msk.f32.gmra.mxu1 %vm312_vm0, %v1699_v56  ;;  %5407 = vmatmul.msk.f32.gmra.mxu2 %vm312_vm0, %v1152_v3  ;;  %v6469_v27 = vpop.f32.mrf.mxu0  ;;  %v1153_v56 = vld [vmem:[%s5961_s25 + $0x72] sm:$0xff] }
 0x104   : > { %4721 = vmatpush.msra.mxu0 %v5812_v45 }
 0x106   : > { %v6475_v20 = vpop.f32.mrf.mxu2  ;;  %5547 = vmatmul.msk.f32.gmra.mxu0 %vm312_vm0, %v6250_v37  ;;  %5479 = vmatmul.msk.f32.gmra.mxu3 %vm312_vm0, %v1704_v47  ;;  %v1705_v37 = vld [vmem:[%s5961_s25 + $0x98] sm:$0xff] }
 0x107   : > { %8044 = vst [vmem:[#allocation31_spill] sm:$0xff] %v6475_v20 }
 0x108   : > { %v6480_v14 = vpop.f32.mrf.mxu1 }
 0x109   : > { %8045 = vst [vmem:[#allocation32_spill] sm:$0xff] %v6480_v14  ;;  %v6483_v3 = vpop.f32.mrf.mxu3 }
 0x10a   : > { %8046 = vst [vmem:[#allocation33_spill] sm:$0xff] %v6483_v3 }
 0x10b   : > { %5338 = vmatmul.msk.f32.gmra.mxu1 %vm312_vm0, %v1700_v18  ;;  %5408 = vmatmul.msk.f32.gmra.mxu2 %vm312_vm0, %v1153_v56  ;;  %v6490_v43 = vpop.f32.mrf.mxu0  ;;  %v6506_v56 = vld [vmem:[%s5961_s25 + $0xa0] sm:$0xff] }
 0x10e   : > { %v6493_v20 = vpop.f32.mrf.mxu2  ;;  %5548 = vmatmul.msk.f32.gmra.mxu0 %vm312_vm0, %v5970_v6  ;;  %5480 = vmatmul.msk.f32.gmra.mxu3 %vm312_vm0, %v1705_v37 }
 0x10f   : > { %8047 = vst [vmem:[#allocation34_spill] sm:$0xff] %v6493_v20  ;;  %v1155_v20 = vld [vmem:[%s5961_s25 + $0x82] sm:$0xff] }
 0x110   : > { %v6498_v3 = vpop.f32.mrf.mxu1 }
 0x111   : > { %8048 = vst [vmem:[#allocation35_spill] sm:$0xff] %v6498_v3  ;;  %v1975_v45 = vpop.f32.mrf.mxu3  ;;  %v1156_v3 = vld [vmem:[%s5961_s25 + $0x8a] sm:$0xff] }
 0x113   : > { %5339 = vmatmul.msk.f32.gmra.mxu1 %vm312_vm0, %v1701_v34  ;;  %5409 = vmatmul.msk.f32.gmra.mxu2 %vm312_vm0, %v1154_v21  ;;  %v6503_v18 = vpop.f32.mrf.mxu0  ;;  %v6518_v34 = vld [vmem:[%s5961_s25 + $0xa8] sm:$0xff] }
 0x116   : > { %v6508_v12 = vpop.f32.mrf.mxu2  ;;  %5549 = vmatmul.msk.f32.gmra.mxu0 %vm312_vm0, %v5990_v13  ;;  %5481 = vmatmul.msk.f32.gmra.mxu3 %vm312_vm0, %v6506_v56 }
 0x117   : > { %8049 = vst [vmem:[#allocation36_spill] sm:$0xff] %v6508_v12 }
 0x118   : > { %v941_v6 = vpop.f32.mrf.mxu1 }
 0x119   : > { %v1978_v63 = vpop.f32.mrf.mxu3  ;;  %v942_v12 = vadd.f32 %v941_v6, %v6247_v36  ;;  %v6531_v6 = vld [vmem:[%s5961_s25 + $0xb0] sm:$0xff] }
 0x11b   : > { %5340 = vmatmul.msk.f32.gmra.mxu1 %vm312_vm0, %v1702_v57  ;;  %5410 = vmatmul.msk.f32.gmra.mxu2 %vm312_vm0, %v1155_v20  ;;  %v2525_v21 = vpop.f32.mrf.mxu0 }
 0x11e   : > { %v1425_v52 = vpop.f32.mrf.mxu2  ;;  %5550 = vmatmul.msk.f32.gmra.mxu0 %vm312_vm0, %v6007_v19  ;;  %5482 = vmatmul.msk.f32.gmra.mxu3 %vm312_vm0, %v6518_v34 }
 0x11f   : > { %v1623_v13 = vadd.f32 %v1425_v52, %v942_v12 }
 0x120   : > { %v944_v39 = vpop.f32.mrf.mxu1 }
 0x121   : > { %v2173_v57 = vadd.f32 %v1975_v45, %v1623_v13  ;;  %v1981_v14 = vpop.f32.mrf.mxu3  ;;  %v945_v19 = vadd.f32 %v944_v39, %v6266_v49  ;;  %v1157_v45 = vld [vmem:[%s5961_s25 + $0x92] sm:$0xff] }
 0x122   : > { %v6544_v49 = vld [vmem:[%s5961_s25 + $0xb8] sm:$0xff] }
 0x123   : > { %v6526_v20 = vadd.f32 %v2525_v21, %v2173_v57  ;;  %5341 = vmatmul.msk.f32.gmra.mxu1 %vm312_vm0, %v1703_v22  ;;  %5411 = vmatmul.msk.f32.gmra.mxu2 %vm312_vm0, %v1156_v3  ;;  %v2528_v36 = vpop.f32.mrf.mxu0  ;;  %v1158_v57 = vld [vmem:[%s5961_s25 + $0x9a] sm:$0xff] }
 0x126   : > { %v1428_v1 = vpop.f32.mrf.mxu2  ;;  %5551 = vmatmul.msk.f32.gmra.mxu0 %vm312_vm0, %v6021_v24  ;;  %5483 = vmatmul.msk.f32.gmra.mxu3 %vm312_vm0, %v6531_v6 }
 0x127   : > { %v1624_v52 = vadd.f32 %v1428_v1, %v945_v19 }
 0x128   : > { %v947_v12 = vpop.f32.mrf.mxu1 }
 0x129   : > { %v2174_v22 = vadd.f32 %v1978_v63, %v1624_v52  ;;  %v1984_v21 = vpop.f32.mrf.mxu3  ;;  %v948_v24 = vadd.f32 %v947_v12, %v6282_v60  ;;  %v6557_v52 = vld [vmem:[%s5961_s25 + $0xc0] sm:$0xff] }
 0x12b   : > { %v6539_v3 = vadd.f32 %v2528_v36, %v2174_v22  ;;  %5342 = vmatmul.msk.f32.gmra.mxu1 %vm312_vm0, %v1704_v47  ;;  %5412 = vmatmul.msk.f32.gmra.mxu2 %vm312_vm0, %v1157_v45  ;;  %v2531_v39 = vpop.f32.mrf.mxu0  ;;  %v1159_v22 = vld [vmem:[%s5961_s25 + $0xa2] sm:$0xff] }
 0x12e   : > { %v1431_v13 = vpop.f32.mrf.mxu2  ;;  %5552 = vmatmul.msk.f32.gmra.mxu0 %vm312_vm0, %v6035_v28  ;;  %5484 = vmatmul.msk.f32.gmra.mxu3 %vm312_vm0, %v6544_v49 }
 0x12f   : > { %v1625_v63 = vadd.f32 %v1431_v13, %v948_v24  ;;  %v6571_v13 = vld [vmem:[%s5961_s25 + $0xc8] sm:$0xff] }
 0x130   : > { %v950_v1 = vpop.f32.mrf.mxu1 }
 0x131   : > { %v2175_v47 = vadd.f32 %v1981_v14, %v1625_v63  ;;  %v1987_v36 = vpop.f32.mrf.mxu3  ;;  %v951_v28 = vadd.f32 %v950_v1, %v6298_v8 }
 0x133   : > { %v6552_v19 = vadd.f32 %v2531_v39, %v2175_v47  ;;  %5343 = vmatmul.msk.f32.gmra.mxu1 %vm312_vm0, %v1705_v37  ;;  %5413 = vmatmul.msk.f32.gmra.mxu2 %vm312_vm0, %v1158_v57  ;;  %v2534_v60 = vpop.f32.mrf.mxu0  ;;  %v1160_v57 = vld [vmem:[%s5961_s25 + $0xaa] sm:$0xff] }
 0x136   : > { %v1434_v12 = vpop.f32.mrf.mxu2  ;;  %5553 = vmatmul.msk.f32.gmra.mxu0 %vm312_vm0, %v6052_v33  ;;  %5485 = vmatmul.msk.f32.gmra.mxu3 %vm312_vm0, %v6557_v52 }
 0x137   : > { %v1626_v14 = vadd.f32 %v1434_v12, %v951_v28  ;;  %v6585_v28 = vld [vmem:[%s5961_s25 + $0xd0] sm:$0xff] }
 0x138   : > { %v953_v45 = vpop.f32.mrf.mxu1 }
 0x139   : > { %v2176_v37 = vadd.f32 %v1984_v21, %v1626_v14  ;;  %v1990_v39 = vpop.f32.mrf.mxu3  ;;  %v954_v33 = vadd.f32 %v953_v45, %v6313_v16  ;;  %v1161_v45 = vld [vmem:[%s5961_s25 + $0xb2] sm:$0xff] }
 0x13b   : > { %v6565_v24 = vadd.f32 %v2534_v60, %v2176_v37  ;;  %5344 = vmatmul.msk.f32.gmra.mxu1 %vm312_vm0, %v6506_v56  ;;  %5414 = vmatmul.msk.f32.gmra.mxu2 %vm312_vm0, %v1159_v22  ;;  %v2537_v8 = vpop.f32.mrf.mxu0 }
 0x13e   : > { %v1437_v63 = vpop.f32.mrf.mxu2  ;;  %5554 = vmatmul.msk.f32.gmra.mxu0 %vm312_vm0, %v6075_v40  ;;  %5486 = vmatmul.msk.f32.gmra.mxu3 %vm312_vm0, %v6571_v13 }
 0x13f   : > { %v1627_v21 = vadd.f32 %v1437_v63, %v954_v33 }
 0x140   : > { %v956_v1 = vpop.f32.mrf.mxu1 }
 0x141   : > { %v2177_v56 = vadd.f32 %v1987_v36, %v1627_v21  ;;  %v1993_v47 = vpop.f32.mrf.mxu3  ;;  %v957_v40 = vadd.f32 %v956_v1, %v6328_v29  ;;  %v1162_v21 = vld [vmem:[%s5961_s25 + $0xba] sm:$0xff] }
 0x143   : > { %v6579_v60 = vadd.f32 %v2537_v8, %v2177_v56  ;;  %5345 = vmatmul.msk.f32.gmra.mxu1 %vm312_vm0, %v6518_v34  ;;  %5415 = vmatmul.msk.f32.gmra.mxu2 %vm312_vm0, %v1160_v57  ;;  %v2540_v16 = vpop.f32.mrf.mxu0  ;;  %v6599_v8 = vld [vmem:[%s5961_s25 + $0xd8] sm:$0xff]  ;;  %v6613_v56 = vld [vmem:[%s5961_s25 + $0xe0] sm:$0xff] }
 0x146   : > { %v1440_v12 = vpop.f32.mrf.mxu2  ;;  %5555 = vmatmul.msk.f32.gmra.mxu0 %vm312_vm0, %v6089_v44  ;;  %5487 = vmatmul.msk.f32.gmra.mxu3 %vm312_vm0, %v6585_v28 }
 0x147   : > { %v1628_v36 = vadd.f32 %v1440_v12, %v957_v40  ;;  %v1163_v12 = vld [vmem:[%s5961_s25 + $0xc2] sm:$0xff] }
 0x148   : > { %v959_v14 = vpop.f32.mrf.mxu1 }
 0x149   : > { %v2178_v34 = vadd.f32 %v1990_v39, %v1628_v36  ;;  %v1996_v22 = vpop.f32.mrf.mxu3  ;;  %v960_v44 = vadd.f32 %v959_v14, %v6343_v38 }
 0x14b   : > { %v6593_v37 = vadd.f32 %v2540_v16, %v2178_v34  ;;  %5346 = vmatmul.msk.f32.gmra.mxu1 %vm312_vm0, %v6531_v6  ;;  %5416 = vmatmul.msk.f32.gmra.mxu2 %vm312_vm0, %v1161_v45  ;;  %v2543_v29 = vpop.f32.mrf.mxu0  ;;  %v6627_v45 = vld [vmem:[%s5961_s25 + $0xe8] sm:$0xff] }
 0x14e   : > { %v1443_v33 = vpop.f32.mrf.mxu2  ;;  %5556 = vmatmul.msk.f32.gmra.mxu0 %vm312_vm0, %v6103_v48  ;;  %5488 = vmatmul.msk.f32.gmra.mxu3 %vm312_vm0, %v6599_v8 }
 0x14f   : > { %v1629_v39 = vadd.f32 %v1443_v33, %v960_v44  ;;  %v1164_v44 = vld [vmem:[%s5961_s25 + $0xca] sm:$0xff] }
 0x150   : > { %v962_v63 = vpop.f32.mrf.mxu1 }
 0x151   : > { %v2179_v6 = vadd.f32 %v1993_v47, %v1629_v39  ;;  %v1999_v1 = vpop.f32.mrf.mxu3  ;;  %v963_v48 = vadd.f32 %v962_v63, %v6358_v51  ;;  %v6641_v63 = vld [vmem:[%s5961_s25 + $0xf0] sm:$0xff] }
 0x153   : > { %v6607_v57 = vadd.f32 %v2543_v29, %v2179_v6  ;;  %5347 = vmatmul.msk.f32.gmra.mxu1 %vm312_vm0, %v6544_v49  ;;  %5417 = vmatmul.msk.f32.gmra.mxu2 %vm312_vm0, %v1162_v21  ;;  %v2546_v38 = vpop.f32.mrf.mxu0 }
 0x156   : > { %v1446_v16 = vpop.f32.mrf.mxu2  ;;  %5557 = vmatmul.msk.f32.gmra.mxu0 %vm312_vm0, %v6120_v53  ;;  %5489 = vmatmul.msk.f32.gmra.mxu3 %vm312_vm0, %v6613_v56 }
 0x157   : > { %v1630_v47 = vadd.f32 %v1446_v16, %v963_v48 }
 0x158   : > { %v965_v40 = vpop.f32.mrf.mxu1 }
 0x159   : > { %v2180_v49 = vadd.f32 %v1996_v22, %v1630_v47  ;;  %v2002_v36 = vpop.f32.mrf.mxu3  ;;  %v966_v53 = vadd.f32 %v965_v40, %v6373_v62  ;;  %v6655_v47 = vld [vmem:[%s5961_s25 + $0xf8] sm:$0xff] }
 0x15b   : > { %v6621_v14 = vadd.f32 %v2546_v38, %v2180_v49  ;;  %5348 = vmatmul.msk.f32.gmra.mxu1 %vm312_vm0, %v6557_v52  ;;  %5418 = vmatmul.msk.f32.gmra.mxu2 %vm312_vm0, %v1163_v12  ;;  %v2549_v51 = vpop.f32.mrf.mxu0  ;;  %v1165_v38 = vld [vmem:[%s5961_s25 + $0xd2] sm:$0xff] }
 0x15e   : > { %v1449_v34 = vpop.f32.mrf.mxu2  ;;  %5558 = vmatmul.msk.f32.gmra.mxu0 %vm312_vm0, %v6140_v59  ;;  %5490 = vmatmul.msk.f32.gmra.mxu3 %vm312_vm0, %v6627_v45 }
 0x15f   : > { %v1631_v22 = vadd.f32 %v1449_v34, %v966_v53  ;;  %v6669_v34 = vld [vmem:[%s5961_s25 + $0x100] sm:$0xff] }
 0x160   : > { %v968_v29 = vpop.f32.mrf.mxu1 }
 0x161   : > { %v2181_v52 = vadd.f32 %v1999_v1, %v1631_v22  ;;  %v2005_v33 = vpop.f32.mrf.mxu3  ;;  %v969_v59 = vadd.f32 %v968_v29, %v6388_v10 }
 0x163   : > { %v6635_v39 = vadd.f32 %v2549_v51, %v2181_v52  ;;  %5349 = vmatmul.msk.f32.gmra.mxu1 %vm312_vm0, %v6571_v13  ;;  %5419 = vmatmul.msk.f32.gmra.mxu2 %vm312_vm0, %v1164_v44  ;;  %v2552_v62 = vpop.f32.mrf.mxu0  ;;  %v1167_v52 = vld [vmem:[%s5961_s25 + $0xe2] sm:$0xff] }
 0x166   : > { %v1452_v21 = vpop.f32.mrf.mxu2  ;;  %5559 = vmatmul.msk.f32.gmra.mxu0 %vm312_vm0, %v6157_v0  ;;  %5491 = vmatmul.msk.f32.gmra.mxu3 %vm312_vm0, %v6641_v63 }
 0x167   : > { %v1632_v6 = vadd.f32 %v1452_v21, %v969_v59  ;;  %v6683_v59 = vld [vmem:[%s5961_s25 + $0x108] sm:$0xff] }
 0x168   : > { %v971_v1 = vpop.f32.mrf.mxu1 }
 0x169   : > { %v2182_v13 = vadd.f32 %v2002_v36, %v1632_v6  ;;  %v2008_v48 = vpop.f32.mrf.mxu3  ;;  %v972_v0 = vadd.f32 %v971_v1, %v6403_v15  ;;  %v1166_v36 = vld [vmem:[%s5961_s25 + $0xda] sm:$0xff] }
 0x16b   : > { %v6649_v16 = vadd.f32 %v2552_v62, %v2182_v13  ;;  %5350 = vmatmul.msk.f32.gmra.mxu1 %vm312_vm0, %v6585_v28  ;;  %5420 = vmatmul.msk.f32.gmra.mxu2 %vm312_vm0, %v1165_v38  ;;  %v2555_v10 = vpop.f32.mrf.mxu0  ;;  %v1168_v38 = vld [vmem:[%s5961_s25 + $0xea] sm:$0xff] }
 0x16e   : > { %v1455_v40 = vpop.f32.mrf.mxu2  ;;  %5560 = vmatmul.msk.f32.gmra.mxu0 %vm312_vm0, %v6171_v4  ;;  %5492 = vmatmul.msk.f32.gmra.mxu3 %vm312_vm0, %v6655_v47 }
 0x16f   : > { %v1633_v12 = vadd.f32 %v1455_v40, %v972_v0  ;;  %v5741_v0 = vld [vmem:[%s8012_s1 + $0xe8] sm:$0xff] }
 0x170   : > { %v974_v49 = vpop.f32.mrf.mxu1  ;;  %4172 = vmatpush.msra.mxu3 %v5741_v0  ;;  %v2271_v0 = vld [vmem:[%s5961_s25 + $0x119] sm:$0xff] }
 0x171   : > { %v2183_v28 = vadd.f32 %v2005_v33, %v1633_v12  ;;  %v2011_v51 = vpop.f32.mrf.mxu3  ;;  %v975_v4 = vadd.f32 %v974_v49, %v6418_v58  ;;  %v5601_v49 = vld [vmem:[%s8012_s1 + $0xa8] sm:$0xff] }
 0x172   : > { %3072 = vmatpush.msra.mxu1 %v5601_v49 }
 0x173   : > { %v6663_v53 = vadd.f32 %v2555_v10, %v2183_v28  ;;  %5351 = vmatmul.msk.f32.gmra.mxu1 %vm312_vm0, %v6599_v8  ;;  %5421 = vmatmul.msk.f32.gmra.mxu2 %vm312_vm0, %v1166_v36  ;;  %v2558_v15 = vpop.f32.mrf.mxu0  ;;  %v6697_v10 = vld [vmem:[%s5961_s25 + $0x110] sm:$0xff] }
 0x174   : > { %v1169_v28 = vld [vmem:[%s5961_s25 + $0xf2] sm:$0xff] }
 0x176   : > { %v1458_v22 = vpop.f32.mrf.mxu2  ;;  %5561 = vmatmul.msk.f32.gmra.mxu0 %vm312_vm0, %v6185_v9  ;;  %5493 = vmatmul.msk.f32.gmra.mxu3 %vm312_vm0, %v6669_v34 }
 0x177   : > { %v1634_v29 = vadd.f32 %v1458_v22, %v975_v4  ;;  %v6720_v4 = vld [vmem:[%s5961_s25 + $0x118] sm:$0xff]  ;;  %v5811_v22 = vld [vmem:[%s8012_s1 + $0x108] sm:$0xff] }
 0x178   : > { %v977_v44 = vpop.f32.mrf.mxu1  ;;  %4722 = vmatpush.msra.mxu0 %v5811_v22  ;;  %v6766_v22 = vld [vmem:[%s5961_s25 + $0x130] sm:$0xff] }
 0x179   : > { %v2184_v8 = vadd.f32 %v2008_v48, %v1634_v29  ;;  %v2014_v33 = vpop.f32.mrf.mxu3  ;;  %v978_v9 = vadd.f32 %v977_v44, %v6433_v5 }
 0x17b   : > { %v6677_v62 = vadd.f32 %v2558_v15, %v2184_v8  ;;  %5352 = vmatmul.msk.f32.gmra.mxu1 %vm312_vm0, %v6613_v56  ;;  %5422 = vmatmul.msk.f32.gmra.mxu2 %vm312_vm0, %v1167_v52  ;;  %v2561_v58 = vpop.f32.mrf.mxu0  ;;  %v1170_v8 = vld [vmem:[%s5961_s25 + $0xfa] sm:$0xff] }
 0x17e   : > { %v1461_v21 = vpop.f32.mrf.mxu2  ;;  %5562 = vmatmul.msk.f32.gmra.mxu0 %vm312_vm0, %v6208_v17  ;;  %5494 = vmatmul.msk.f32.gmra.mxu3 %vm312_vm0, %v6683_v59  ;;  %v5671_v17 = vld [vmem:[%s8012_s1 + $0xc8] sm:$0xff] }
 0x17f   : > { %v1635_v6 = vadd.f32 %v1461_v21, %v978_v9  ;;  %3622 = vmatpush.msra.mxu2 %v5671_v17  ;;  %v2270_v21 = vld [vmem:[%s5961_s25 + $0x111] sm:$0xff] }
 0x180   : > { %v980_v1 = vpop.f32.mrf.mxu1 }
 0x181   : > { %v2185_v13 = vadd.f32 %v2011_v51, %v1635_v6  ;;  %v2017_v56 = vpop.f32.mrf.mxu3  ;;  %v981_v40 = vadd.f32 %v980_v1, %v6448_v25 }
 0x183   : > { %v6691_v48 = vadd.f32 %v2561_v58, %v2185_v13  ;;  %5353 = vmatmul.msk.f32.gmra.mxu1 %vm312_vm0, %v6627_v45  ;;  %5423 = vmatmul.msk.f32.gmra.mxu2 %vm312_vm0, %v1168_v38  ;;  %v2564_v5 = vpop.f32.mrf.mxu0 }
 0x186   : > { %v1464_v12 = vpop.f32.mrf.mxu2  ;;  %5563 = vmatmul.msk.f32.gmra.mxu0 %vm312_vm0, %v6225_v23  ;;  %5495 = vmatmul.msk.f32.gmra.mxu3 %vm312_vm0, %v6697_v10 }
 0x187   : > { %v1636_v45 = vadd.f32 %v1464_v12, %v981_v40  ;;  %v6752_v40 = vld [vmem:[%s5961_s25 + $0x128] sm:$0xff] }
 0x188   : > { %v983_v36 = vpop.f32.mrf.mxu1 }
 0x189   : > { %v2186_v51 = vadd.f32 %v2014_v33, %v1636_v45  ;;  %v2020_v25 = vpop.f32.mrf.mxu3  ;;  %v984_v29 = vadd.f32 %v983_v36, %v6469_v27 }
 0x18b   : > { %v6714_v15 = vadd.f32 %v2564_v5, %v2186_v51  ;;  %5354 = vmatmul.msk.f32.gmra.mxu1 %vm312_vm0, %v6641_v63  ;;  %5424 = vmatmul.msk.f32.gmra.mxu2 %vm312_vm0, %v1169_v28  ;;  %v2567_v23 = vpop.f32.mrf.mxu0 }
 0x18e   : > { %v1467_v44 = vpop.f32.mrf.mxu2  ;;  %5564 = vmatmul.msk.f32.gmra.mxu0 %vm312_vm0, %v6241_v32  ;;  %5496 = vmatmul.msk.f32.gmra.mxu3 %vm312_vm0, %v6720_v4  ;;  %v6738_v32 = vld [vmem:[%s5961_s25 + $0x120] sm:$0xff] }
 0x18f   : > { %v1637_v63 = vadd.f32 %v1467_v44, %v984_v29 }
 0x190   : > { %v986_v52 = vpop.f32.mrf.mxu1 }
 0x191   : > { %v2187_v33 = vadd.f32 %v2017_v56, %v1637_v63  ;;  %v2023_v58 = vpop.f32.mrf.mxu3  ;;  %v987_v6 = vadd.f32 %v986_v52, %v6490_v43 }
 0x193   : > { %v6731_v9 = vadd.f32 %v2567_v23, %v2187_v33  ;;  %5355 = vmatmul.msk.f32.gmra.mxu1 %vm312_vm0, %v6655_v47  ;;  %5425 = vmatmul.msk.f32.gmra.mxu2 %vm312_vm0, %v1170_v8  ;;  %v2570_v27 = vpop.f32.mrf.mxu0  ;;  %v1171_v47 = vld [vmem:[%s5961_s25 + $0x102] sm:$0xff] }
 0x194   : > { %v2272_v23 = vld [vmem:[%s5961_s25 + $0x121] sm:$0xff] }
 0x196   : > { %v1470_v1 = vpop.f32.mrf.mxu2  ;;  %5565 = vmatmul.msk.f32.gmra.mxu0 %vm312_vm0, %v2270_v21  ;;  %5497 = vmatmul.msk.f32.gmra.mxu3 %vm312_vm0, %v6738_v32  ;;  %v6780_v21 = vld [vmem:[%s5961_s25 + $0x138] sm:$0xff] }
 0x197   : > { %v1638_v38 = vadd.f32 %v1470_v1, %v987_v6 }
 0x198   : > { %v989_v13 = vpop.f32.mrf.mxu1 }
 0x199   : > { %v2188_v56 = vadd.f32 %v2020_v25, %v1638_v38  ;;  %v2026_v5 = vpop.f32.mrf.mxu3  ;;  %v990_v12 = vadd.f32 %v989_v13, %v6503_v18 }
 0x19b   : > { %v6745_v17 = vadd.f32 %v2570_v27, %v2188_v56  ;;  %5356 = vmatmul.msk.f32.gmra.mxu1 %vm312_vm0, %v6669_v34  ;;  %5426 = vmatmul.msk.f32.gmra.mxu2 %vm312_vm0, %v1171_v47  ;;  %v2573_v43 = vpop.f32.mrf.mxu0  ;;  %v1172_v34 = vld [vmem:[%s5961_s25 + $0x10a] sm:$0xff] }
 0x19c   : > { %v2273_v27 = vld [vmem:[%s5961_s25 + $0x129] sm:$0xff] }
 0x19e   : > { %v1473_v45 = vpop.f32.mrf.mxu2  ;;  %5566 = vmatmul.msk.f32.gmra.mxu0 %vm312_vm0, %v2271_v0  ;;  %5498 = vmatmul.msk.f32.gmra.mxu3 %vm312_vm0, %v6752_v40  ;;  %v6794_v0 = vld [vmem:[%s5961_s25 + $0x140] sm:$0xff] }
 0x19f   : > { %v1639_v49 = vadd.f32 %v1473_v45, %v990_v12 }
 0x1a0   : > { %v992_v36 = vpop.f32.mrf.mxu1 }
 0x1a1   : > { %v2189_v28 = vadd.f32 %v2023_v58, %v1639_v49  ;;  %v2029_v51 = vpop.f32.mrf.mxu3  ;;  %v993_v29 = vadd.f32 %v992_v36, %v6238_v31 }
 0x1a3   : > { %v6759_v25 = vadd.f32 %v2573_v43, %v2189_v28  ;;  %5357 = vmatmul.msk.f32.gmra.mxu1 %vm312_vm0, %v6683_v59  ;;  %5427 = vmatmul.msk.f32.gmra.mxu2 %vm312_vm0, %v1172_v34  ;;  %v2576_v18 = vpop.f32.mrf.mxu0  ;;  %v1173_v59 = vld [vmem:[%s5961_s25 + $0x112] sm:$0xff] }
 0x1a4   : > { %v2274_v43 = vld [vmem:[%s5961_s25 + $0x131] sm:$0xff] }
 0x1a6   : > { %v1476_v44 = vpop.f32.mrf.mxu2  ;;  %5567 = vmatmul.msk.f32.gmra.mxu0 %vm312_vm0, %v2272_v23  ;;  %5499 = vmatmul.msk.f32.gmra.mxu3 %vm312_vm0, %v6766_v22  ;;  %v6808_v23 = vld [vmem:[%s5961_s25 + $0x148] sm:$0xff] }
 0x1a7   : > { %v1640_v63 = vadd.f32 %v1476_v44, %v993_v29 }
 0x1a8   : > { %v995_v52 = vpop.f32.mrf.mxu1 }
 0x1a9   : > { %v2190_v8 = vadd.f32 %v2026_v5, %v1640_v63  ;;  %v2032_v33 = vpop.f32.mrf.mxu3  ;;  %v996_v6 = vadd.f32 %v995_v52, %v6258_v41 }
 0x1ab   : > { %v6773_v58 = vadd.f32 %v2576_v18, %v2190_v8  ;;  %5358 = vmatmul.msk.f32.gmra.mxu1 %vm312_vm0, %v6697_v10  ;;  %5428 = vmatmul.msk.f32.gmra.mxu2 %vm312_vm0, %v1173_v59  ;;  %v2579_v31 = vpop.f32.mrf.mxu0  ;;  %v1174_v10 = vld [vmem:[%s5961_s25 + $0x11a] sm:$0xff] }
 0x1ac   : > { %v2275_v18 = vld [vmem:[%s5961_s25 + $0x139] sm:$0xff] }
 0x1ae   : > { %v1479_v1 = vpop.f32.mrf.mxu2  ;;  %5568 = vmatmul.msk.f32.gmra.mxu0 %vm312_vm0, %v2273_v27  ;;  %5500 = vmatmul.msk.f32.gmra.mxu3 %vm312_vm0, %v6780_v21  ;;  %v6822_v27 = vld [vmem:[%s5961_s25 + $0x150] sm:$0xff] }
 0x1af   : > { %v1641_v38 = vadd.f32 %v1479_v1, %v996_v6 }
 0x1b0   : > { %v998_v13 = vpop.f32.mrf.mxu1 }
 0x1b1   : > { %v2191_v47 = vadd.f32 %v2029_v51, %v1641_v38  ;;  %v2035_v56 = vpop.f32.mrf.mxu3  ;;  %v999_v12 = vadd.f32 %v998_v13, %v6274_v54 }
 0x1b3   : > { %v6787_v5 = vadd.f32 %v2579_v31, %v2191_v47  ;;  %5359 = vmatmul.msk.f32.gmra.mxu1 %vm312_vm0, %v6720_v4  ;;  %5429 = vmatmul.msk.f32.gmra.mxu2 %vm312_vm0, %v1174_v10  ;;  %v2582_v41 = vpop.f32.mrf.mxu0  ;;  %v1175_v4 = vld [vmem:[%s5961_s25 + $0x122] sm:$0xff] }
 0x1b4   : > { %v2276_v31 = vld [vmem:[%s5961_s25 + $0x141] sm:$0xff] }
 0x1b6   : > { %v1482_v45 = vpop.f32.mrf.mxu2  ;;  %5569 = vmatmul.msk.f32.gmra.mxu0 %vm312_vm0, %v2274_v43  ;;  %5501 = vmatmul.msk.f32.gmra.mxu3 %vm312_vm0, %v6794_v0  ;;  %v6836_v43 = vld [vmem:[%s5961_s25 + $0x158] sm:$0xff] }
 0x1b7   : > { %v1642_v49 = vadd.f32 %v1482_v45, %v999_v12 }
 0x1b8   : > { %v1001_v36 = vpop.f32.mrf.mxu1 }
 0x1b9   : > { %v2192_v34 = vadd.f32 %v2032_v33, %v1642_v49  ;;  %v2038_v28 = vpop.f32.mrf.mxu3  ;;  %v1002_v29 = vadd.f32 %v1001_v36, %v6290_v26 }
 0x1bb   : > { %v6801_v51 = vadd.f32 %v2582_v41, %v2192_v34  ;;  %5360 = vmatmul.msk.f32.gmra.mxu1 %vm312_vm0, %v6738_v32  ;;  %5430 = vmatmul.msk.f32.gmra.mxu2 %vm312_vm0, %v1175_v4  ;;  %v2585_v54 = vpop.f32.mrf.mxu0  ;;  %v1176_v32 = vld [vmem:[%s5961_s25 + $0x12a] sm:$0xff] }
 0x1bc   : > { %v2277_v41 = vld [vmem:[%s5961_s25 + $0x149] sm:$0xff] }
 0x1be   : > { %v1485_v44 = vpop.f32.mrf.mxu2  ;;  %5570 = vmatmul.msk.f32.gmra.mxu0 %vm312_vm0, %v2275_v18  ;;  %5502 = vmatmul.msk.f32.gmra.mxu3 %vm312_vm0, %v6808_v23  ;;  %v6850_v18 = vld [vmem:[%s5961_s25 + $0x160] sm:$0xff] }
 0x1bf   : > { %v1643_v63 = vadd.f32 %v1485_v44, %v1002_v29 }
 0x1c0   : > { %v1004_v52 = vpop.f32.mrf.mxu1 }
 0x1c1   : > { %v2193_v59 = vadd.f32 %v2035_v56, %v1643_v63  ;;  %v2041_v8 = vpop.f32.mrf.mxu3  ;;  %v1005_v6 = vadd.f32 %v1004_v52, %v6306_v30 }
 0x1c3   : > { %v6815_v33 = vadd.f32 %v2585_v54, %v2193_v59  ;;  %5361 = vmatmul.msk.f32.gmra.mxu1 %vm312_vm0, %v6752_v40  ;;  %5431 = vmatmul.msk.f32.gmra.mxu2 %vm312_vm0, %v1176_v32  ;;  %v2588_v26 = vpop.f32.mrf.mxu0  ;;  %v1177_v40 = vld [vmem:[%s5961_s25 + $0x132] sm:$0xff] }
 0x1c4   : > { %v2278_v54 = vld [vmem:[%s5961_s25 + $0x151] sm:$0xff] }
 0x1c6   : > { %v1488_v1 = vpop.f32.mrf.mxu2  ;;  %5571 = vmatmul.msk.f32.gmra.mxu0 %vm312_vm0, %v2276_v31  ;;  %5503 = vmatmul.msk.f32.gmra.mxu3 %vm312_vm0, %v6822_v27  ;;  %v6864_v31 = vld [vmem:[%s5961_s25 + $0x168] sm:$0xff] }
 0x1c7   : > { %v1644_v38 = vadd.f32 %v1488_v1, %v1005_v6 }
 0x1c8   : > { %v1007_v13 = vpop.f32.mrf.mxu1 }
 0x1c9   : > { %v2194_v10 = vadd.f32 %v2038_v28, %v1644_v38  ;;  %v2044_v47 = vpop.f32.mrf.mxu3  ;;  %v1008_v12 = vadd.f32 %v1007_v13, %v6321_v35 }
 0x1cb   : > { %v6829_v56 = vadd.f32 %v2588_v26, %v2194_v10  ;;  %5362 = vmatmul.msk.f32.gmra.mxu1 %vm312_vm0, %v6766_v22  ;;  %5432 = vmatmul.msk.f32.gmra.mxu2 %vm312_vm0, %v1177_v40  ;;  %v2591_v30 = vpop.f32.mrf.mxu0  ;;  %v1178_v22 = vld [vmem:[%s5961_s25 + $0x13a] sm:$0xff] }
 0x1cc   : > { %v2279_v26 = vld [vmem:[%s5961_s25 + $0x159] sm:$0xff] }
 0x1ce   : > { %v1491_v45 = vpop.f32.mrf.mxu2  ;;  %5572 = vmatmul.msk.f32.gmra.mxu0 %vm312_vm0, %v2277_v41  ;;  %5504 = vmatmul.msk.f32.gmra.mxu3 %vm312_vm0, %v6836_v43  ;;  %v6878_v41 = vld [vmem:[%s5961_s25 + $0x170] sm:$0xff] }
 0x1cf   : > { %v1645_v49 = vadd.f32 %v1491_v45, %v1008_v12 }
 0x1d0   : > { %v1010_v36 = vpop.f32.mrf.mxu1 }
 0x1d1   : > { %v2195_v4 = vadd.f32 %v2041_v8, %v1645_v49  ;;  %v2047_v34 = vpop.f32.mrf.mxu3  ;;  %v1011_v29 = vadd.f32 %v1010_v36, %v6336_v42 }
 0x1d3   : > { %v6843_v28 = vadd.f32 %v2591_v30, %v2195_v4  ;;  %5363 = vmatmul.msk.f32.gmra.mxu1 %vm312_vm0, %v6780_v21  ;;  %5433 = vmatmul.msk.f32.gmra.mxu2 %vm312_vm0, %v1178_v22  ;;  %v2594_v35 = vpop.f32.mrf.mxu0  ;;  %v1179_v21 = vld [vmem:[%s5961_s25 + $0x142] sm:$0xff] }
 0x1d4   : > { %v2280_v30 = vld [vmem:[%s5961_s25 + $0x161] sm:$0xff] }
 0x1d6   : > { %v1494_v44 = vpop.f32.mrf.mxu2  ;;  %5573 = vmatmul.msk.f32.gmra.mxu0 %vm312_vm0, %v2278_v54  ;;  %5505 = vmatmul.msk.f32.gmra.mxu3 %vm312_vm0, %v6850_v18  ;;  %v6892_v54 = vld [vmem:[%s5961_s25 + $0x178] sm:$0xff] }
 0x1d7   : > { %v1646_v63 = vadd.f32 %v1494_v44, %v1011_v29 }
 0x1d8   : > { %v1013_v52 = vpop.f32.mrf.mxu1 }
 0x1d9   : > { %v2196_v32 = vadd.f32 %v2044_v47, %v1646_v63  ;;  %v2050_v59 = vpop.f32.mrf.mxu3  ;;  %v1014_v6 = vadd.f32 %v1013_v52, %v6351_v46 }
 0x1db   : > { %v6857_v8 = vadd.f32 %v2594_v35, %v2196_v32  ;;  %5364 = vmatmul.msk.f32.gmra.mxu1 %vm312_vm0, %v6794_v0  ;;  %5434 = vmatmul.msk.f32.gmra.mxu2 %vm312_vm0, %v1179_v21  ;;  %v2597_v42 = vpop.f32.mrf.mxu0  ;;  %v1180_v0 = vld [vmem:[%s5961_s25 + $0x14a] sm:$0xff] }
 0x1dc   : > { %v2281_v35 = vld [vmem:[%s5961_s25 + $0x169] sm:$0xff] }
 0x1de   : > { %v1497_v1 = vpop.f32.mrf.mxu2  ;;  %5574 = vmatmul.msk.f32.gmra.mxu0 %vm312_vm0, %v2279_v26  ;;  %5506 = vmatmul.msk.f32.gmra.mxu3 %vm312_vm0, %v6864_v31  ;;  %v6906_v26 = vld [vmem:[%s5961_s25 + $0x180] sm:$0xff] }
 0x1df   : > { %v1647_v38 = vadd.f32 %v1497_v1, %v1014_v6 }
 0x1e0   : > { %v1016_v13 = vpop.f32.mrf.mxu1 }
 0x1e1   : > { %v2197_v40 = vadd.f32 %v2047_v34, %v1647_v38  ;;  %v2053_v10 = vpop.f32.mrf.mxu3  ;;  %v1017_v12 = vadd.f32 %v1016_v13, %v6366_v50 }
 0x1e3   : > { %v6871_v47 = vadd.f32 %v2597_v42, %v2197_v40  ;;  %5365 = vmatmul.msk.f32.gmra.mxu1 %vm312_vm0, %v6808_v23  ;;  %5435 = vmatmul.msk.f32.gmra.mxu2 %vm312_vm0, %v1180_v0  ;;  %v2600_v46 = vpop.f32.mrf.mxu0  ;;  %v1181_v23 = vld [vmem:[%s5961_s25 + $0x152] sm:$0xff] }
 0x1e4   : > { %v2282_v42 = vld [vmem:[%s5961_s25 + $0x171] sm:$0xff] }
 0x1e6   : > { %v1500_v45 = vpop.f32.mrf.mxu2  ;;  %5575 = vmatmul.msk.f32.gmra.mxu0 %vm312_vm0, %v2280_v30  ;;  %5507 = vmatmul.msk.f32.gmra.mxu3 %vm312_vm0, %v6878_v41  ;;  %v6920_v30 = vld [vmem:[%s5961_s25 + $0x188] sm:$0xff] }
 0x1e7   : > { %v1648_v49 = vadd.f32 %v1500_v45, %v1017_v12 }
 0x1e8   : > { %v1019_v36 = vpop.f32.mrf.mxu1 }
 0x1e9   : > { %v2198_v22 = vadd.f32 %v2050_v59, %v1648_v49  ;;  %v2056_v4 = vpop.f32.mrf.mxu3  ;;  %v1020_v29 = vadd.f32 %v1019_v36, %v6381_v55 }
 0x1eb   : > { %v6885_v34 = vadd.f32 %v2600_v46, %v2198_v22  ;;  %5366 = vmatmul.msk.f32.gmra.mxu1 %vm312_vm0, %v6822_v27  ;;  %5436 = vmatmul.msk.f32.gmra.mxu2 %vm312_vm0, %v1181_v23  ;;  %v2603_v50 = vpop.f32.mrf.mxu0  ;;  %v1182_v27 = vld [vmem:[%s5961_s25 + $0x15a] sm:$0xff]  ;;  %v1184_v23 = vld [vmem:[%s5961_s25 + $0x16a] sm:$0xff] }
 0x1ec   : > { %v2283_v46 = vld [vmem:[%s5961_s25 + $0x179] sm:$0xff] }
 0x1ee   : > { %v1503_v44 = vpop.f32.mrf.mxu2  ;;  %5576 = vmatmul.msk.f32.gmra.mxu0 %vm312_vm0, %v2281_v35  ;;  %5508 = vmatmul.msk.f32.gmra.mxu3 %vm312_vm0, %v6892_v54  ;;  %v6934_v35 = vld [vmem:[%s5961_s25 + $0x190] sm:$0xff] }
 0x1ef   : > { %v1649_v63 = vadd.f32 %v1503_v44, %v1020_v29 }
 0x1f0   : > { %v1022_v52 = vpop.f32.mrf.mxu1 }
 0x1f1   : > { %v2199_v21 = vadd.f32 %v2053_v10, %v1649_v63  ;;  %v2059_v32 = vpop.f32.mrf.mxu3  ;;  %v1023_v6 = vadd.f32 %v1022_v52, %v6396_v61 }
 0x1f3   : > { %v6899_v59 = vadd.f32 %v2603_v50, %v2199_v21  ;;  %5367 = vmatmul.msk.f32.gmra.mxu1 %vm312_vm0, %v6836_v43  ;;  %5437 = vmatmul.msk.f32.gmra.mxu2 %vm312_vm0, %v1182_v27  ;;  %v2606_v55 = vpop.f32.mrf.mxu0  ;;  %v1183_v43 = vld [vmem:[%s5961_s25 + $0x162] sm:$0xff]  ;;  %v1185_v27 = vld [vmem:[%s5961_s25 + $0x172] sm:$0xff] }
 0x1f4   : > { %v2284_v50 = vld [vmem:[%s5961_s25 + $0x181] sm:$0xff] }
 0x1f6   : > { %v1506_v1 = vpop.f32.mrf.mxu2  ;;  %5577 = vmatmul.msk.f32.gmra.mxu0 %vm312_vm0, %v2282_v42  ;;  %5509 = vmatmul.msk.f32.gmra.mxu3 %vm312_vm0, %v6906_v26 }
 0x1f7   : > { %v1650_v38 = vadd.f32 %v1506_v1, %v1023_v6  ;;  %v2285_v6 = vld [vmem:[%s5961_s25 + $0x189] sm:$0xff]  ;;  %v6954_v1 = vld [vmem:[%s5961_s25 + $0x198] sm:$0xff] }
 0x1f8   : > { %v1025_v13 = vpop.f32.mrf.mxu1 }
 0x1f9   : > { %v2200_v0 = vadd.f32 %v2056_v4, %v1650_v38  ;;  %v2062_v40 = vpop.f32.mrf.mxu3  ;;  %v1026_v12 = vadd.f32 %v1025_v13, %v6411_v2  ;;  %v5600_v38 = vld [vmem:[%s8012_s1 + $0xa0] sm:$0xff] }
 0x1fa   : > { %3073 = vmatpush.msra.mxu1 %v5600_v38 }
 0x1fb   : > { %v6913_v10 = vadd.f32 %v2606_v55, %v2200_v0  ;;  %5368 = vmatmul.msk.f32.gmra.mxu1 %vm312_vm0, %v6850_v18  ;;  %5438 = vmatmul.msk.f32.gmra.mxu2 %vm312_vm0, %v1183_v43  ;;  %v2609_v61 = vpop.f32.mrf.mxu0 }
 0x1fe   : > { %v1509_v45 = vpop.f32.mrf.mxu2  ;;  %5578 = vmatmul.msk.f32.gmra.mxu0 %vm312_vm0, %v2283_v46  ;;  %5510 = vmatmul.msk.f32.gmra.mxu3 %vm312_vm0, %v6920_v30 }
 0x1ff   : > { %v1651_v49 = vadd.f32 %v1509_v45, %v1026_v12  ;;  %v5810_v12 = vld [vmem:[%s8012_s1 + $0x100] sm:$0xff] }
 0x200   : > { %v1028_v36 = vpop.f32.mrf.mxu1  ;;  %4723 = vmatpush.msra.mxu0 %v5810_v12 }
 0x201   : > { %v2201_v18 = vadd.f32 %v2059_v32, %v1651_v49  ;;  %v2065_v22 = vpop.f32.mrf.mxu3  ;;  %v1029_v29 = vadd.f32 %v1028_v36, %v6426_v7  ;;  %v5740_v7 = vld [vmem:[%s8012_s1 + $0xe0] sm:$0xff]  ;;  %v2286_v49 = vld [vmem:[%s5961_s25 + $0x191] sm:$0xff] }
 0x202   : > { %4173 = vmatpush.msra.mxu3 %v5740_v7  ;;  %v6974_v36 = vld [vmem:[%s5961_s25 + $0x1a0] sm:$0xff] }
 0x203   : > { %v6927_v4 = vadd.f32 %v2609_v61, %v2201_v18  ;;  %5369 = vmatmul.msk.f32.gmra.mxu1 %vm312_vm0, %v6864_v31  ;;  %5439 = vmatmul.msk.f32.gmra.mxu2 %vm312_vm0, %v1184_v23  ;;  %v2612_v2 = vpop.f32.mrf.mxu0  ;;  %v5670_v31 = vld [vmem:[%s8012_s1 + $0xc0] sm:$0xff]  ;;  %v8050_v23 = vld [vmem:[#allocation29_spill] sm:$0xff] }
 0x204   : > { %3623 = vmatpush.msra.mxu2 %v5670_v31 }
 0x206   : > { %v1512_v44 = vpop.f32.mrf.mxu2  ;;  %5579 = vmatmul.msk.f32.gmra.mxu0 %vm312_vm0, %v2284_v50  ;;  %5511 = vmatmul.msk.f32.gmra.mxu3 %vm312_vm0, %v6934_v35 }
 0x207   : > { %v1652_v63 = vadd.f32 %v1512_v44, %v1029_v29 }
 0x208   : > { %v1031_v52 = vpop.f32.mrf.mxu1 }
 0x209   : > { %v2202_v21 = vadd.f32 %v2062_v40, %v1652_v63  ;;  %v2068_v32 = vpop.f32.mrf.mxu3  ;;  %v1032_v13 = vadd.f32 %v1031_v52, %v6441_v11  ;;  %v1186_v40 = vld [vmem:[%s5961_s25 + $0x17a] sm:$0xff] }
 0x20a   : > { %v2287_v52 = vld [vmem:[%s5961_s25 + $0x199] sm:$0xff] }
 0x20b   : > { %v6947_v55 = vadd.f32 %v2612_v2, %v2202_v21  ;;  %5370 = vmatmul.msk.f32.gmra.mxu1 %vm312_vm0, %v6878_v41  ;;  %5440 = vmatmul.msk.f32.gmra.mxu2 %vm312_vm0, %v1185_v27  ;;  %v2615_v42 = vpop.f32.mrf.mxu0  ;;  %v6988_v27 = vld [vmem:[%s5961_s25 + $0x1a8] sm:$0xff]  ;;  %v8051_v21 = vld [vmem:[#allocation32_spill] sm:$0xff] }
 0x20e   : > { %v1515_v43 = vpop.f32.mrf.mxu2  ;;  %5580 = vmatmul.msk.f32.gmra.mxu0 %vm312_vm0, %v2285_v6  ;;  %5512 = vmatmul.msk.f32.gmra.mxu3 %vm312_vm0, %v6954_v1 }
 0x20f   : > { %v1653_v41 = vadd.f32 %v1515_v43, %v1032_v13 }
 0x210   : > { %v1034_v0 = vpop.f32.mrf.mxu1 }
 0x211   : > { %v2203_v61 = vadd.f32 %v2065_v22, %v1653_v41  ;;  %v2071_v46 = vpop.f32.mrf.mxu3  ;;  %v1035_v18 = vadd.f32 %v1034_v0, %v8050_v23  ;;  %v2288_v0 = vld [vmem:[%s5961_s25 + $0x1a1] sm:$0xff] }
 0x213   : > { %v6967_v45 = vadd.f32 %v2615_v42, %v2203_v61  ;;  %5371 = vmatmul.msk.f32.gmra.mxu1 %vm312_vm0, %v6892_v54  ;;  %5441 = vmatmul.msk.f32.gmra.mxu2 %vm312_vm0, %v1186_v40  ;;  %v2618_v11 = vpop.f32.mrf.mxu0  ;;  %v1187_v54 = vld [vmem:[%s5961_s25 + $0x182] sm:$0xff]  ;;  %v7002_v40 = vld [vmem:[%s5961_s25 + $0x1b0] sm:$0xff] }
 0x214   : > { %v8052_v61 = vld [vmem:[#allocation35_spill] sm:$0xff] }
 0x216   : > { %v1518_v22 = vpop.f32.mrf.mxu2  ;;  %5581 = vmatmul.msk.f32.gmra.mxu0 %vm312_vm0, %v2286_v49  ;;  %5513 = vmatmul.msk.f32.gmra.mxu3 %vm312_vm0, %v6974_v36 }
 0x217   : > { %v1654_v2 = vadd.f32 %v1518_v22, %v1035_v18 }
 0x218   : > { %v1037_v50 = vpop.f32.mrf.mxu1 }
 0x219   : > { %v2204_v29 = vadd.f32 %v2068_v32, %v1654_v2  ;;  %v2074_v44 = vpop.f32.mrf.mxu3  ;;  %v1038_v7 = vadd.f32 %v1037_v50, %v8051_v21  ;;  %v2289_v50 = vld [vmem:[%s5961_s25 + $0x1a9] sm:$0xff] }
 0x21b   : > { %v6981_v63 = vadd.f32 %v2618_v11, %v2204_v29  ;;  %5372 = vmatmul.msk.f32.gmra.mxu1 %vm312_vm0, %v6906_v26  ;;  %5442 = vmatmul.msk.f32.gmra.mxu2 %vm312_vm0, %v1187_v54  ;;  %v2621_v31 = vpop.f32.mrf.mxu0  ;;  %v1188_v26 = vld [vmem:[%s5961_s25 + $0x18a] sm:$0xff]  ;;  %v7016_v54 = vld [vmem:[%s5961_s25 + $0x1b8] sm:$0xff]  ;;  %v8053_v29 = vld [vmem:[#allocation2_spill] sm:$0xff] }
 0x21e   : > { %v1521_v42 = vpop.f32.mrf.mxu2  ;;  %5582 = vmatmul.msk.f32.gmra.mxu0 %vm312_vm0, %v2287_v52  ;;  %5514 = vmatmul.msk.f32.gmra.mxu3 %vm312_vm0, %v6988_v27 }
 0x21f   : > { %v1655_v32 = vadd.f32 %v1521_v42, %v1038_v7 }
 0x220   : > { %v1040_v6 = vpop.f32.mrf.mxu1 }
 0x221   : > { %v2205_v38 = vadd.f32 %v2071_v46, %v1655_v32  ;;  %v2077_v13 = vpop.f32.mrf.mxu3  ;;  %v1041_v12 = vadd.f32 %v1040_v6, %v8052_v61 }
 0x223   : > { %v6995_v43 = vadd.f32 %v2621_v31, %v2205_v38  ;;  %5373 = vmatmul.msk.f32.gmra.mxu1 %vm312_vm0, %v6920_v30  ;;  %5443 = vmatmul.msk.f32.gmra.mxu2 %vm312_vm0, %v1188_v26  ;;  %v2624_v41 = vpop.f32.mrf.mxu0  ;;  %v1189_v30 = vld [vmem:[%s5961_s25 + $0x192] sm:$0xff]  ;;  %v7030_v38 = vld [vmem:[%s5961_s25 + $0x1c0] sm:$0xff] }
 0x224   : > { %v2290_v26 = vld [vmem:[%s5961_s25 + $0x1b1] sm:$0xff] }
 0x226   : > { %v1524_v11 = vpop.f32.mrf.mxu2  ;;  %5583 = vmatmul.msk.f32.gmra.mxu0 %vm312_vm0, %v2288_v0  ;;  %5515 = vmatmul.msk.f32.gmra.mxu3 %vm312_vm0, %v7002_v40 }
 0x227   : > { %v1656_v46 = vadd.f32 %v1524_v11, %v1041_v12 }
 0x228   : > { %v1043_v49 = vpop.f32.mrf.mxu1 }
 0x229   : > { %v2206_v23 = vadd.f32 %v2074_v44, %v1656_v46  ;;  %v2080_v18 = vpop.f32.mrf.mxu3  ;;  %v1044_v31 = vadd.f32 %v1043_v49, %v8053_v29 }
 0x22b   : > { %v7009_v22 = vadd.f32 %v2624_v41, %v2206_v23  ;;  %5374 = vmatmul.msk.f32.gmra.mxu1 %vm312_vm0, %v6934_v35  ;;  %5444 = vmatmul.msk.f32.gmra.mxu2 %vm312_vm0, %v1189_v30  ;;  %v2627_v2 = vpop.f32.mrf.mxu0  ;;  %v1190_v35 = vld [vmem:[%s5961_s25 + $0x19a] sm:$0xff]  ;;  %v8054_v41 = vld [vmem:[#allocation4_spill] sm:$0xff] }
 0x22c   : > { %v2291_v23 = vld [vmem:[%s5961_s25 + $0x1b9] sm:$0xff] }
 0x22e   : > { %v1527_v52 = vpop.f32.mrf.mxu2  ;;  %5584 = vmatmul.msk.f32.gmra.mxu0 %vm312_vm0, %v2289_v50  ;;  %5516 = vmatmul.msk.f32.gmra.mxu3 %vm312_vm0, %v7016_v54  ;;  %v8055_v50 = vld [vmem:[#allocation6_spill] sm:$0xff] }
 0x22f   : > { %v1657_v44 = vadd.f32 %v1527_v52, %v1044_v31 }
 0x230   : > { %v1046_v21 = vpop.f32.mrf.mxu1 }
 0x231   : > { %v2207_v7 = vadd.f32 %v2077_v13, %v1657_v44  ;;  %v2083_v42 = vpop.f32.mrf.mxu3  ;;  %v1047_v0 = vadd.f32 %v1046_v21, %v8054_v41  ;;  %v8056_v41 = vld [vmem:[#allocation8_spill] sm:$0xff] }
 0x233   : > { %v7023_v32 = vadd.f32 %v2627_v2, %v2207_v7  ;;  %5375 = vmatmul.msk.f32.gmra.mxu1 %vm312_vm0, %v6954_v1  ;;  %5445 = vmatmul.msk.f32.gmra.mxu2 %vm312_vm0, %v1190_v35  ;;  %v2630_v6 = vpop.f32.mrf.mxu0  ;;  %v1191_v1 = vld [vmem:[%s5961_s25 + $0x1a2] sm:$0xff] }
 0x234   : > { %v7044_v2 = vld [vmem:[%s5961_s25 + $0x1c8] sm:$0xff] }
 0x236   : > { %v1530_v61 = vpop.f32.mrf.mxu2  ;;  %5585 = vmatmul.msk.f32.gmra.mxu0 %vm312_vm0, %v2290_v26  ;;  %5517 = vmatmul.msk.f32.gmra.mxu3 %vm312_vm0, %v7030_v38  ;;  %v7058_v26 = vld [vmem:[%s5961_s25 + $0x1d0] sm:$0xff] }
 0x237   : > { %v1658_v13 = vadd.f32 %v1530_v61, %v1047_v0 }
 0x238   : > { %v1049_v12 = vpop.f32.mrf.mxu1 }
 0x239   : > { %v2208_v11 = vadd.f32 %v2080_v18, %v1658_v13  ;;  %v2086_v46 = vpop.f32.mrf.mxu3  ;;  %v1050_v29 = vadd.f32 %v1049_v12, %v8055_v50  ;;  %v7072_v50 = vld [vmem:[%s5961_s25 + $0x1d8] sm:$0xff] }
 0x23b   : > { %v7037_v49 = vadd.f32 %v2630_v6, %v2208_v11  ;;  %5376 = vmatmul.msk.f32.gmra.mxu1 %vm312_vm0, %v6974_v36  ;;  %5446 = vmatmul.msk.f32.gmra.mxu2 %vm312_vm0, %v1191_v1  ;;  %v2633_v30 = vpop.f32.mrf.mxu0  ;;  %v1192_v36 = vld [vmem:[%s5961_s25 + $0x1aa] sm:$0xff]  ;;  %v2292_v6 = vld [vmem:[%s5961_s25 + $0x1c1] sm:$0xff] }
 0x23e   : > { %v1533_v31 = vpop.f32.mrf.mxu2  ;;  %5586 = vmatmul.msk.f32.gmra.mxu0 %vm312_vm0, %v2291_v23  ;;  %5518 = vmatmul.msk.f32.gmra.mxu3 %vm312_vm0, %v7044_v2  ;;  %v2293_v23 = vld [vmem:[%s5961_s25 + $0x1c9] sm:$0xff] }
 0x23f   : > { %v1659_v18 = vadd.f32 %v1533_v31, %v1050_v29  ;;  %v8057_v29 = vld [vmem:[#allocation10_spill] sm:$0xff] }
 0x240   : > { %v1052_v52 = vpop.f32.mrf.mxu1 }
 0x241   : > { %v2209_v44 = vadd.f32 %v2083_v42, %v1659_v18  ;;  %v2089_v21 = vpop.f32.mrf.mxu3  ;;  %v1053_v0 = vadd.f32 %v1052_v52, %v8056_v41  ;;  %v2294_v41 = vld [vmem:[%s5961_s25 + $0x1d1] sm:$0xff] }
 0x243   : > { %v7051_v35 = vadd.f32 %v2633_v30, %v2209_v44  ;;  %5377 = vmatmul.msk.f32.gmra.mxu1 %vm312_vm0, %v6988_v27  ;;  %5447 = vmatmul.msk.f32.gmra.mxu2 %vm312_vm0, %v1192_v36  ;;  %v2636_v7 = vpop.f32.mrf.mxu0  ;;  %v1193_v27 = vld [vmem:[%s5961_s25 + $0x1b2] sm:$0xff] }
 0x246   : > { %v1536_v61 = vpop.f32.mrf.mxu2  ;;  %5587 = vmatmul.msk.f32.gmra.mxu0 %vm312_vm0, %v2292_v6  ;;  %5519 = vmatmul.msk.f32.gmra.mxu3 %vm312_vm0, %v7058_v26 }
 0x247   : > { %v1660_v42 = vadd.f32 %v1536_v61, %v1053_v0  ;;  %v7086_v0 = vld [vmem:[%s5961_s25 + $0x1e0] sm:$0xff]  ;;  %v8058_v61 = vld [vmem:[#allocation12_spill] sm:$0xff] }
 0x248   : > { %v1055_v13 = vpop.f32.mrf.mxu1 }
 0x249   : > { %v2210_v12 = vadd.f32 %v2086_v46, %v1660_v42  ;;  %v2092_v1 = vpop.f32.mrf.mxu3  ;;  %v1056_v31 = vadd.f32 %v1055_v13, %v8057_v29 }
 0x24b   : > { %v7065_v11 = vadd.f32 %v2636_v7, %v2210_v12  ;;  %5378 = vmatmul.msk.f32.gmra.mxu1 %vm312_vm0, %v7002_v40  ;;  %5448 = vmatmul.msk.f32.gmra.mxu2 %vm312_vm0, %v1193_v27  ;;  %v2639_v30 = vpop.f32.mrf.mxu0  ;;  %v1194_v40 = vld [vmem:[%s5961_s25 + $0x1ba] sm:$0xff] }
 0x24e   : > { %v1539_v18 = vpop.f32.mrf.mxu2  ;;  %5588 = vmatmul.msk.f32.gmra.mxu0 %vm312_vm0, %v2293_v23  ;;  %5520 = vmatmul.msk.f32.gmra.mxu3 %vm312_vm0, %v7072_v50 }
 0x24f   : > { %v1661_v46 = vadd.f32 %v1539_v18, %v1056_v31  ;;  %v2295_v31 = vld [vmem:[%s5961_s25 + $0x1d9] sm:$0xff]  ;;  %v7100_v18 = vld [vmem:[%s5961_s25 + $0x1e8] sm:$0xff] }
 0x250   : > { %v1058_v52 = vpop.f32.mrf.mxu1 }
 0x251   : > { %v2211_v36 = vadd.f32 %v2089_v21, %v1661_v46  ;;  %v2095_v44 = vpop.f32.mrf.mxu3  ;;  %v1059_v42 = vadd.f32 %v1058_v52, %v8058_v61  ;;  %v8059_v46 = vld [vmem:[#allocation14_spill] sm:$0xff] }
 0x253   : > { %v7079_v7 = vadd.f32 %v2639_v30, %v2211_v36  ;;  %5379 = vmatmul.msk.f32.gmra.mxu1 %vm312_vm0, %v7016_v54  ;;  %5449 = vmatmul.msk.f32.gmra.mxu2 %vm312_vm0, %v1194_v40  ;;  %v2642_v6 = vpop.f32.mrf.mxu0  ;;  %v1195_v54 = vld [vmem:[%s5961_s25 + $0x1c2] sm:$0xff] }
 0x256   : > { %v1542_v13 = vpop.f32.mrf.mxu2  ;;  %5589 = vmatmul.msk.f32.gmra.mxu0 %vm312_vm0, %v2294_v41  ;;  %5521 = vmatmul.msk.f32.gmra.mxu3 %vm312_vm0, %v7086_v0 }
 0x257   : > { %v1662_v21 = vadd.f32 %v1542_v13, %v1059_v42  ;;  %v2296_v13 = vld [vmem:[%s5961_s25 + $0x1e1] sm:$0xff] }
 0x258   : > { %v1061_v27 = vpop.f32.mrf.mxu1 }
 0x259   : > { %v2212_v12 = vadd.f32 %v2092_v1, %v1662_v21  ;;  %v2098_v30 = vpop.f32.mrf.mxu3  ;;  %v1062_v52 = vadd.f32 %v1061_v27, %v8059_v46  ;;  %v7114_v21 = vld [vmem:[%s5961_s25 + $0x1f0] sm:$0xff] }
 0x25a   : > { %v8060_v27 = vld [vmem:[#allocation16_spill] sm:$0xff] }
 0x25b   : > { %v7093_v23 = vadd.f32 %v2642_v6, %v2212_v12  ;;  %5380 = vmatmul.msk.f32.gmra.mxu1 %vm312_vm0, %v7030_v38  ;;  %5450 = vmatmul.msk.f32.gmra.mxu2 %vm312_vm0, %v1195_v54  ;;  %v2645_v29 = vpop.f32.mrf.mxu0  ;;  %v1196_v38 = vld [vmem:[%s5961_s25 + $0x1ca] sm:$0xff] }
 0x25e   : > { %v1545_v40 = vpop.f32.mrf.mxu2  ;;  %5590 = vmatmul.msk.f32.gmra.mxu0 %vm312_vm0, %v2295_v31  ;;  %5522 = vmatmul.msk.f32.gmra.mxu3 %vm312_vm0, %v7100_v18 }
 0x25f   : > { %v1663_v1 = vadd.f32 %v1545_v40, %v1062_v52 }
 0x260   : > { %v1064_v36 = vpop.f32.mrf.mxu1 }
 0x261   : > { %v2213_v6 = vadd.f32 %v2095_v44, %v1663_v1  ;;  %v2101_v41 = vpop.f32.mrf.mxu3  ;;  %v1065_v54 = vadd.f32 %v1064_v36, %v8060_v27  ;;  %v2297_v1 = vld [vmem:[%s5961_s25 + $0x1e9] sm:$0xff]  ;;  %v7128_v36 = vld [vmem:[%s5961_s25 + $0x1f8] sm:$0xff] }
 0x263   : > { %v7107_v61 = vadd.f32 %v2645_v29, %v2213_v6  ;;  %5381 = vmatmul.msk.f32.gmra.mxu1 %vm312_vm0, %v7044_v2  ;;  %5451 = vmatmul.msk.f32.gmra.mxu2 %vm312_vm0, %v1196_v38  ;;  %v2648_v42 = vpop.f32.mrf.mxu0  ;;  %v1197_v2 = vld [vmem:[%s5961_s25 + $0x1d2] sm:$0xff]  ;;  %v8061_v38 = vld [vmem:[#allocation18_spill] sm:$0xff] }
 0x266   : > { %v1548_v12 = vpop.f32.mrf.mxu2  ;;  %5591 = vmatmul.msk.f32.gmra.mxu0 %vm312_vm0, %v2296_v13  ;;  %5523 = vmatmul.msk.f32.gmra.mxu3 %vm312_vm0, %v7114_v21 }
 0x267   : > { %v1664_v44 = vadd.f32 %v1548_v12, %v1065_v54 }
 0x268   : > { %v1067_v29 = vpop.f32.mrf.mxu1 }
 0x269   : > { %v2214_v31 = vadd.f32 %v2098_v30, %v1664_v44  ;;  %v2104_v46 = vpop.f32.mrf.mxu3  ;;  %v1068_v6 = vadd.f32 %v1067_v29, %v8061_v38  ;;  %v2298_v29 = vld [vmem:[%s5961_s25 + $0x1f1] sm:$0xff] }
 0x26b   : > { %v7121_v52 = vadd.f32 %v2648_v42, %v2214_v31  ;;  %5382 = vmatmul.msk.f32.gmra.mxu1 %vm312_vm0, %v7058_v26  ;;  %5452 = vmatmul.msk.f32.gmra.mxu2 %vm312_vm0, %v1197_v2  ;;  %v2651_v40 = vpop.f32.mrf.mxu0  ;;  %v1198_v26 = vld [vmem:[%s5961_s25 + $0x1da] sm:$0xff]  ;;  %v8062_v31 = vld [vmem:[#allocation20_spill] sm:$0xff] }
 0x26c   : > { %v7142_v2 = vld [vmem:[%s5961_s25 + $0x200] sm:$0xff] }
 0x26e   : > { %v1551_v13 = vpop.f32.mrf.mxu2  ;;  %5592 = vmatmul.msk.f32.gmra.mxu0 %vm312_vm0, %v2297_v1  ;;  %5524 = vmatmul.msk.f32.gmra.mxu3 %vm312_vm0, %v7128_v36 }
 0x26f   : > { %v1665_v30 = vadd.f32 %v1551_v13, %v1068_v6 }
 0x270   : > { %v1070_v42 = vpop.f32.mrf.mxu1 }
 0x271   : > { %v2215_v27 = vadd.f32 %v2101_v41, %v1665_v30  ;;  %v2107_v54 = vpop.f32.mrf.mxu3  ;;  %v1071_v1 = vadd.f32 %v1070_v42, %v8062_v31 }
 0x273   : > { %v7135_v12 = vadd.f32 %v2651_v40, %v2215_v27  ;;  %5383 = vmatmul.msk.f32.gmra.mxu1 %vm312_vm0, %v7072_v50  ;;  %5453 = vmatmul.msk.f32.gmra.mxu2 %vm312_vm0, %v1198_v26  ;;  %v2654_v44 = vpop.f32.mrf.mxu0  ;;  %v1199_v50 = vld [vmem:[%s5961_s25 + $0x1e2] sm:$0xff]  ;;  %v2299_v26 = vld [vmem:[%s5961_s25 + $0x1f9] sm:$0xff] }
 0x274   : > { %v7156_v27 = vld [vmem:[%s5961_s25 + $0x208] sm:$0xff] }
 0x276   : > { %v1554_v38 = vpop.f32.mrf.mxu2  ;;  %5593 = vmatmul.msk.f32.gmra.mxu0 %vm312_vm0, %v2298_v29  ;;  %5525 = vmatmul.msk.f32.gmra.mxu3 %vm312_vm0, %v7142_v2  ;;  %v8064_v29 = vld [vmem:[#allocation22_spill] sm:$0xff] }
 0x277   : > { %v1666_v41 = vadd.f32 %v1554_v38, %v1071_v1 }
 0x278   : > { %v1073_v40 = vpop.f32.mrf.mxu1 }
 0x279   : > { %v2216_v6 = vadd.f32 %v2104_v46, %v1666_v41  ;;  %v2110_v13 = vpop.f32.mrf.mxu3  ;;  %v1074_v31 = vadd.f32 %v1073_v40, %v8064_v29  ;;  %v8065_v29 = vld [vmem:[#allocation24_spill] sm:$0xff] }
 0x27b   : > { %v7149_v30 = vadd.f32 %v2654_v44, %v2216_v6  ;;  %5384 = vmatmul.msk.f32.gmra.mxu1 %vm312_vm0, %v7086_v0  ;;  %5454 = vmatmul.msk.f32.gmra.mxu2 %vm312_vm0, %v1199_v50  ;;  %v2657_v42 = vpop.f32.mrf.mxu0  ;;  %v1200_v0 = vld [vmem:[%s5961_s25 + $0x1ea] sm:$0xff]  ;;  %v2300_v6 = vld [vmem:[%s5961_s25 + $0x201] sm:$0xff] }
 0x27d   : > { %8063 = vst [vmem:[#allocation29_spill] sm:$0xff] %v7149_v30 }
 0x27e   : > { %v1557_v1 = vpop.f32.mrf.mxu2  ;;  %5594 = vmatmul.msk.f32.gmra.mxu0 %vm312_vm0, %v2299_v26  ;;  %5526 = vmatmul.msk.f32.gmra.mxu3 %vm312_vm0, %v7156_v27  ;;  %v1752_v26 = vld [vmem:[%s5961_s25 + $0x210] sm:$0xff] }
 0x27f   : > { %v1667_v46 = vadd.f32 %v1557_v1, %v1074_v31  ;;  %v1201_v1 = vld [vmem:[%s5961_s25 + $0x1f2] sm:$0xff] }
 0x280   : > { %v1076_v44 = vpop.f32.mrf.mxu1 }
 0x281   : > { %v2217_v38 = vadd.f32 %v2107_v54, %v1667_v46  ;;  %v2113_v41 = vpop.f32.mrf.mxu3  ;;  %v1077_v30 = vadd.f32 %v1076_v44, %v8065_v29  ;;  %v2301_v44 = vld [vmem:[%s5961_s25 + $0x209] sm:$0xff]  ;;  %v8067_v29 = vld [vmem:[#allocation26_spill] sm:$0xff] }
 0x283   : > { %v7163_v50 = vadd.f32 %v2657_v42, %v2217_v38  ;;  %5385 = vmatmul.msk.f32.gmra.mxu1 %vm312_vm0, %v7100_v18  ;;  %5455 = vmatmul.msk.f32.gmra.mxu2 %vm312_vm0, %v1200_v0  ;;  %v2660_v40 = vpop.f32.mrf.mxu0 }
 0x286   : > { %v1560_v31 = vpop.f32.mrf.mxu2  ;;  %5595 = vmatmul.msk.f32.gmra.mxu0 %vm312_vm0, %v2300_v6  ;;  %5527 = vmatmul.msk.f32.gmra.mxu3 %vm312_vm0, %v1752_v26  ;;  %v1753_v6 = vld [vmem:[%s5961_s25 + $0x218] sm:$0xff] }
 0x287   : > { %v1668_v54 = vadd.f32 %v1560_v31, %v1077_v30  ;;  %v1202_v31 = vld [vmem:[%s5961_s25 + $0x1fa] sm:$0xff] }
 0x288   : > { %v1079_v42 = vpop.f32.mrf.mxu1 }
 0x289   : > { %v2218_v46 = vadd.f32 %v2110_v13, %v1668_v54  ;;  %v2116_v18 = vpop.f32.mrf.mxu3  ;;  %v1080_v26 = vadd.f32 %v1079_v42, %v8067_v29  ;;  %v2302_v42 = vld [vmem:[%s5961_s25 + $0x211] sm:$0xff] }
 0x28a   : > { %v8069_v29 = vld [vmem:[#allocation28_spill] sm:$0xff] }
 0x28b   : > { %v7174_v38 = vadd.f32 %v2660_v40, %v2218_v46  ;;  %5386 = vmatmul.msk.f32.gmra.mxu1 %vm312_vm0, %v7114_v21  ;;  %5456 = vmatmul.msk.f32.gmra.mxu2 %vm312_vm0, %v1201_v1  ;;  %v2663_v0 = vpop.f32.mrf.mxu0 }
 0x28d   : > { %8066 = vst [vmem:[#allocation32_spill] sm:$0xff] %v7174_v38 }
 0x28e   : > { %v1563_v30 = vpop.f32.mrf.mxu2  ;;  %5596 = vmatmul.msk.f32.gmra.mxu0 %vm312_vm0, %v2301_v44  ;;  %5528 = vmatmul.msk.f32.gmra.mxu3 %vm312_vm0, %v1753_v6  ;;  %v1754_v44 = vld [vmem:[%s5961_s25 + $0x220] sm:$0xff] }
 0x28f   : > { %v1669_v13 = vadd.f32 %v1563_v30, %v1080_v26  ;;  %v1203_v30 = vld [vmem:[%s5961_s25 + $0x202] sm:$0xff] }
 0x290   : > { %v1082_v40 = vpop.f32.mrf.mxu1 }
 0x291   : > { %v2219_v54 = vadd.f32 %v2113_v41, %v1669_v13  ;;  %v2119_v21 = vpop.f32.mrf.mxu3  ;;  %v1083_v6 = vadd.f32 %v1082_v40, %v8069_v29  ;;  %v2303_v40 = vld [vmem:[%s5961_s25 + $0x219] sm:$0xff]  ;;  %v8071_v29 = vld [vmem:[#allocation31_spill] sm:$0xff] }
 0x293   : > { %v7185_v46 = vadd.f32 %v2663_v0, %v2219_v54  ;;  %5387 = vmatmul.msk.f32.gmra.mxu1 %vm312_vm0, %v7128_v36  ;;  %5457 = vmatmul.msk.f32.gmra.mxu2 %vm312_vm0, %v1202_v31  ;;  %v2666_v1 = vpop.f32.mrf.mxu0 }
 0x295   : > { %8068 = vst [vmem:[#allocation35_spill] sm:$0xff] %v7185_v46  ;;  %v8079_v46 = vld [vmem:[#allocation5_spill] sm:$0xff] }
 0x296   : > { %v1566_v26 = vpop.f32.mrf.mxu2  ;;  %5597 = vmatmul.msk.f32.gmra.mxu0 %vm312_vm0, %v2302_v42  ;;  %5529 = vmatmul.msk.f32.gmra.mxu3 %vm312_vm0, %v1754_v44  ;;  %v3889_v42 = vld [vmem:[%s5961_s25 + $0x31] sm:$0xff] }
 0x297   : > { %v1670_v41 = vadd.f32 %v1566_v26, %v1083_v6  ;;  %v1204_v26 = vld [vmem:[%s5961_s25 + $0x20a] sm:$0xff] }
 0x298   : > { %v1085_v0 = vpop.f32.mrf.mxu1 }
 0x299   : > { %v2220_v13 = vadd.f32 %v2116_v18, %v1670_v41  ;;  %v2122_v36 = vpop.f32.mrf.mxu3  ;;  %v1086_v44 = vadd.f32 %v1085_v0, %v8071_v29  ;;  %v8073_v29 = vld [vmem:[#allocation34_spill] sm:$0xff] }
 0x29b   : > { %v7196_v54 = vadd.f32 %v2666_v1, %v2220_v13  ;;  %5388 = vmatmul.msk.f32.gmra.mxu1 %vm312_vm0, %v7142_v2  ;;  %5458 = vmatmul.msk.f32.gmra.mxu2 %vm312_vm0, %v1203_v30  ;;  %v2669_v31 = vpop.f32.mrf.mxu0  ;;  %v2304_v13 = vld [vmem:[%s5961_s25 + $0x221] sm:$0xff] }
 0x29d   : > { %8070 = vst [vmem:[#allocation2_spill] sm:$0xff] %v7196_v54  ;;  %v8077_v54 = vld [vmem:[#allocation3_spill] sm:$0xff] }
 0x29e   : > { %v1569_v6 = vpop.f32.mrf.mxu2  ;;  %5598 = vmatmul.msk.f32.gmra.mxu0 %vm312_vm0, %v2303_v40  ;;  %5744 = vmatmul.msk.f32.vlgmr.msra.gmra.mxu3 %vm312_vm0, %v3889_v42  ;;  %v3890_v40 = vld [vmem:[%s5961_s25 + $0x39] sm:$0xff] }
 0x29f   : > { %v1671_v18 = vadd.f32 %v1569_v6, %v1086_v44  ;;  %v2789_v6 = vld [vmem:[%s5961_s25 + $0x1a] sm:$0xff] }
 0x2a0   : > { %v1088_v1 = vpop.f32.mrf.mxu1 }
 0x2a1   : > { %v2221_v2 = vadd.f32 %v2119_v21, %v1671_v18  ;;  %v2125_v41 = vpop.f32.mrf.mxu3  ;;  %v1089_v42 = vadd.f32 %v1088_v1, %v8073_v29  ;;  %v3339_v18 = vld [vmem:[%s5961_s25 + $0x30] sm:$0xff] }
 0x2a2   : > { %v4439_v29 = vld [vmem:[%s5961_s25 + $0x32] sm:$0xff] }
 0x2a3   : > { %v7207_v30 = vadd.f32 %v2669_v31, %v2221_v2  ;;  %5389 = vmatmul.msk.f32.gmra.mxu1 %vm312_vm0, %v7156_v27  ;;  %5459 = vmatmul.msk.f32.gmra.mxu2 %vm312_vm0, %v1204_v26  ;;  %v2672_v0 = vpop.f32.mrf.mxu0 }
 0x2a5   : > { %8072 = vst [vmem:[#allocation4_spill] sm:$0xff] %v7207_v30  ;;  %v8075_v30 = vld [vmem:[#allocation36_spill] sm:$0xff] }
 0x2a6   : > { %v1572_v44 = vpop.f32.mrf.mxu2  ;;  %5599 = vmatmul.msk.f32.gmra.mxu0 %vm312_vm0, %v2304_v13  ;;  %5745 = vmatmul.msk.f32.gmra.mxu3 %vm312_vm0, %v3890_v40  ;;  %v3891_v13 = vld [vmem:[%s5961_s25 + $0x41] sm:$0xff] }
 0x2a7   : > { %v1672_v21 = vadd.f32 %v1572_v44, %v1089_v42 }
 0x2a8   : > { %v1091_v31 = vpop.f32.mrf.mxu1 }
 0x2a9   : > { %v2222_v27 = vadd.f32 %v2122_v36, %v1672_v21  ;;  %v2128_v26 = vpop.f32.mrf.mxu3  ;;  %v1092_v40 = vadd.f32 %v1091_v31, %v8075_v30  ;;  %v3340_v21 = vld [vmem:[%s5961_s25 + $0x38] sm:$0xff] }
 0x2aa   : > { %v4440_v31 = vld [vmem:[%s5961_s25 + $0x3a] sm:$0xff] }
 0x2ab   : > { %v7219_v2 = vadd.f32 %v2672_v0, %v2222_v27  ;;  %5604 = vmatmul.msk.f32.vlgmr.msra.gmra.mxu1 %vm312_vm0, %v2789_v6  ;;  %5674 = vmatmul.msk.f32.vlgmr.msra.gmra.mxu2 %vm312_vm0, %v3339_v18  ;;  %v2675_v1 = vpop.f32.mrf.mxu0  ;;  %v2790_v0 = vld [vmem:[%s5961_s25 + $0x22] sm:$0xff] }
 0x2ad   : > { %8074 = vst [vmem:[#allocation6_spill] sm:$0xff] %v7219_v2  ;;  %v3892_v2 = vld [vmem:[%s5961_s25 + $0x49] sm:$0xff] }
 0x2ae   : > { %v1575_v42 = vpop.f32.mrf.mxu2  ;;  %5814 = vmatmul.msk.f32.vlgmr.msra.gmra.mxu0 %vm312_vm0, %v4439_v29  ;;  %5746 = vmatmul.msk.f32.gmra.mxu3 %vm312_vm0, %v3891_v13 }
 0x2af   : > { %v1673_v36 = vadd.f32 %v1575_v42, %v1092_v40 }
 0x2b0   : > { %v1094_v44 = vpop.f32.mrf.mxu1 }
 0x2b1   : > { %v2223_v6 = vadd.f32 %v2125_v41, %v1673_v36  ;;  %v2131_v18 = vpop.f32.mrf.mxu3  ;;  %v1095_v13 = vadd.f32 %v1094_v44, %v8077_v54  ;;  %v3341_v36 = vld [vmem:[%s5961_s25 + $0x40] sm:$0xff]  ;;  %v3893_v44 = vld [vmem:[%s5961_s25 + $0x51] sm:$0xff] }
 0x2b2   : > { %v4441_v54 = vld [vmem:[%s5961_s25 + $0x42] sm:$0xff] }
 0x2b3   : > { %v7230_v27 = vadd.f32 %v2675_v1, %v2223_v6  ;;  %5605 = vmatmul.msk.f32.gmra.mxu1 %vm312_vm0, %v2790_v0  ;;  %5675 = vmatmul.msk.f32.gmra.mxu2 %vm312_vm0, %v3340_v21  ;;  %v2678_v30 = vpop.f32.mrf.mxu0  ;;  %v2791_v1 = vld [vmem:[%s5961_s25 + $0x2a] sm:$0xff] }
 0x2b5   : > { %8076 = vst [vmem:[#allocation8_spill] sm:$0xff] %v7230_v27 }
 0x2b6   : > { %v1578_v40 = vpop.f32.mrf.mxu2  ;;  %5815 = vmatmul.msk.f32.gmra.mxu0 %vm312_vm0, %v4440_v31  ;;  %5747 = vmatmul.msk.f32.gmra.mxu3 %vm312_vm0, %v3892_v2 }
 0x2b7   : > { %v1674_v41 = vadd.f32 %v1578_v40, %v1095_v13 }
 0x2b8   : > { %v1097_v42 = vpop.f32.mrf.mxu1 }
 0x2b9   : > { %v2224_v0 = vadd.f32 %v2128_v26, %v1674_v41  ;;  %v2134_v6 = vpop.f32.mrf.mxu3  ;;  %v1098_v2 = vadd.f32 %v1097_v42, %v8079_v46  ;;  %v4442_v46 = vld [vmem:[%s5961_s25 + $0x4a] sm:$0xff]  ;;  %v3894_v42 = vld [vmem:[%s5961_s25 + $0x59] sm:$0xff] }
 0x2bb   : > { %v7241_v21 = vadd.f32 %v2678_v30, %v2224_v0  ;;  %5606 = vmatmul.msk.f32.gmra.mxu1 %vm312_vm0, %v2791_v1  ;;  %5676 = vmatmul.msk.f32.gmra.mxu2 %vm312_vm0, %v3341_v36  ;;  %v2681_v27 = vpop.f32.mrf.mxu0  ;;  %v3342_v30 = vld [vmem:[%s5961_s25 + $0x48] sm:$0xff] }
 0x2bd   : > { %8078 = vst [vmem:[#allocation10_spill] sm:$0xff] %v7241_v21  ;;  %v8081_v21 = vld [vmem:[#allocation7_spill] sm:$0xff] }
 0x2be   : > { %v1581_v13 = vpop.f32.mrf.mxu2  ;;  %5816 = vmatmul.msk.f32.gmra.mxu0 %vm312_vm0, %v4441_v54  ;;  %5748 = vmatmul.msk.f32.gmra.mxu3 %vm312_vm0, %v3893_v44 }
 0x2bf   : > { %v1675_v26 = vadd.f32 %v1581_v13, %v1098_v2 }
 0x2c0   : > { %v1100_v40 = vpop.f32.mrf.mxu1 }
 0x2c1   : > { %v2225_v41 = vadd.f32 %v2131_v18, %v1675_v26  ;;  %v2137_v1 = vpop.f32.mrf.mxu3  ;;  %v1101_v38 = vadd.f32 %v1100_v40, %v8081_v21  ;;  %v4443_v21 = vld [vmem:[%s5961_s25 + $0x52] sm:$0xff]  ;;  %v3895_v40 = vld [vmem:[%s5961_s25 + $0x61] sm:$0xff] }
 0x2c3   : > { %v7251_v0 = vadd.f32 %v2681_v27, %v2225_v41  ;;  %5607 = vmatmul.msk.f32.gmra.mxu1 %vm312_vm0, %v4439_v29  ;;  %5677 = vmatmul.msk.f32.gmra.mxu2 %vm312_vm0, %v3342_v30  ;;  %v2684_v36 = vpop.f32.mrf.mxu0  ;;  %v3343_v27 = vld [vmem:[%s5961_s25 + $0x50] sm:$0xff]  ;;  %v8083_v41 = vld [vmem:[#allocation9_spill] sm:$0xff] }
 0x2c5   : > { %8080 = vst [vmem:[#allocation12_spill] sm:$0xff] %v7251_v0 }
 0x2c6   : > { %v1584_v44 = vpop.f32.mrf.mxu2  ;;  %5817 = vmatmul.msk.f32.gmra.mxu0 %vm312_vm0, %v4442_v46  ;;  %5749 = vmatmul.msk.f32.gmra.mxu3 %vm312_vm0, %v3894_v42 }
 0x2c7   : > { %v1676_v18 = vadd.f32 %v1584_v44, %v1101_v38 }
 0x2c8   : > { %v1103_v2 = vpop.f32.mrf.mxu1 }
 0x2c9   : > { %v2226_v13 = vadd.f32 %v2134_v6, %v1676_v18  ;;  %v2140_v29 = vpop.f32.mrf.mxu3  ;;  %v1104_v0 = vadd.f32 %v1103_v2, %v8083_v41  ;;  %v4444_v2 = vld [vmem:[%s5961_s25 + $0x5a] sm:$0xff]  ;;  %v8085_v41 = vld [vmem:[#allocation11_spill] sm:$0xff] }
 0x2cb   : > { %v7261_v26 = vadd.f32 %v2684_v36, %v2226_v13  ;;  %5608 = vmatmul.msk.f32.gmra.mxu1 %vm312_vm0, %v4440_v31  ;;  %5678 = vmatmul.msk.f32.gmra.mxu2 %vm312_vm0, %v3343_v27  ;;  %v2687_v30 = vpop.f32.mrf.mxu0  ;;  %v3344_v36 = vld [vmem:[%s5961_s25 + $0x58] sm:$0xff]  ;;  %v3896_v13 = vld [vmem:[%s5961_s25 + $0x69] sm:$0xff] }
 0x2cd   : > { %8082 = vst [vmem:[#allocation14_spill] sm:$0xff] %v7261_v26 }
 0x2ce   : > { %v1587_v42 = vpop.f32.mrf.mxu2  ;;  %5818 = vmatmul.msk.f32.gmra.mxu0 %vm312_vm0, %v4443_v21  ;;  %5750 = vmatmul.msk.f32.gmra.mxu3 %vm312_vm0, %v3895_v40 }
 0x2cf   : > { %v1677_v38 = vadd.f32 %v1587_v42, %v1104_v0 }
 0x2d0   : > { %v1106_v6 = vpop.f32.mrf.mxu1 }
 0x2d1   : > { %v2227_v44 = vadd.f32 %v2137_v1, %v1677_v38  ;;  %v2143_v31 = vpop.f32.mrf.mxu3  ;;  %v1107_v26 = vadd.f32 %v1106_v6, %v8085_v41  ;;  %v4445_v6 = vld [vmem:[%s5961_s25 + $0x62] sm:$0xff]  ;;  %v8087_v41 = vld [vmem:[#allocation13_spill] sm:$0xff] }
 0x2d3   : > { %v7271_v18 = vadd.f32 %v2687_v30, %v2227_v44  ;;  %5609 = vmatmul.msk.f32.gmra.mxu1 %vm312_vm0, %v4441_v54  ;;  %5679 = vmatmul.msk.f32.gmra.mxu2 %vm312_vm0, %v3344_v36  ;;  %v2690_v27 = vpop.f32.mrf.mxu0  ;;  %v3345_v30 = vld [vmem:[%s5961_s25 + $0x60] sm:$0xff]  ;;  %v3897_v44 = vld [vmem:[%s5961_s25 + $0x71] sm:$0xff] }
 0x2d5   : > { %8084 = vst [vmem:[#allocation16_spill] sm:$0xff] %v7271_v18 }
 0x2d6   : > { %v1590_v40 = vpop.f32.mrf.mxu2  ;;  %5819 = vmatmul.msk.f32.gmra.mxu0 %vm312_vm0, %v4444_v2  ;;  %5751 = vmatmul.msk.f32.gmra.mxu3 %vm312_vm0, %v3896_v13 }
 0x2d7   : > { %v1678_v1 = vadd.f32 %v1590_v40, %v1107_v26 }
 0x2d8   : > { %v1109_v0 = vpop.f32.mrf.mxu1 }
 0x2d9   : > { %v2228_v42 = vadd.f32 %v2140_v29, %v1678_v1  ;;  %v2146_v54 = vpop.f32.mrf.mxu3  ;;  %v1110_v18 = vadd.f32 %v1109_v0, %v8087_v41  ;;  %v4446_v0 = vld [vmem:[%s5961_s25 + $0x6a] sm:$0xff] }
 0x2da   : > { %v8089_v41 = vld [vmem:[#allocation15_spill] sm:$0xff] }
 0x2db   : > { %v7281_v38 = vadd.f32 %v2690_v27, %v2228_v42  ;;  %5610 = vmatmul.msk.f32.gmra.mxu1 %vm312_vm0, %v4442_v46  ;;  %5680 = vmatmul.msk.f32.gmra.mxu2 %vm312_vm0, %v3345_v30  ;;  %v2693_v36 = vpop.f32.mrf.mxu0  ;;  %v3346_v27 = vld [vmem:[%s5961_s25 + $0x68] sm:$0xff]  ;;  %v3898_v42 = vld [vmem:[%s5961_s25 + $0x79] sm:$0xff] }
 0x2dd   : > { %8086 = vst [vmem:[#allocation18_spill] sm:$0xff] %v7281_v38 }
 0x2de   : > { %v1593_v13 = vpop.f32.mrf.mxu2  ;;  %5820 = vmatmul.msk.f32.gmra.mxu0 %vm312_vm0, %v4445_v6  ;;  %5752 = vmatmul.msk.f32.gmra.mxu3 %vm312_vm0, %v3897_v44 }
 0x2df   : > { %v1679_v29 = vadd.f32 %v1593_v13, %v1110_v18 }
 0x2e0   : > { %v1112_v26 = vpop.f32.mrf.mxu1 }
 0x2e1   : > { %v2229_v40 = vadd.f32 %v2143_v31, %v1679_v29  ;;  %v2149_v46 = vpop.f32.mrf.mxu3  ;;  %v1113_v38 = vadd.f32 %v1112_v26, %v8089_v41  ;;  %v4447_v26 = vld [vmem:[%s5961_s25 + $0x72] sm:$0xff] }
 0x2e2   : > { %v8091_v41 = vld [vmem:[#allocation17_spill] sm:$0xff] }
 0x2e3   : > { %v7291_v1 = vadd.f32 %v2693_v36, %v2229_v40  ;;  %5611 = vmatmul.msk.f32.gmra.mxu1 %vm312_vm0, %v4443_v21  ;;  %5681 = vmatmul.msk.f32.gmra.mxu2 %vm312_vm0, %v3346_v27  ;;  %v2696_v30 = vpop.f32.mrf.mxu0  ;;  %v3347_v36 = vld [vmem:[%s5961_s25 + $0x70] sm:$0xff]  ;;  %v3899_v40 = vld [vmem:[%s5961_s25 + $0x81] sm:$0xff] }
 0x2e5   : > { %8088 = vst [vmem:[#allocation20_spill] sm:$0xff] %v7291_v1 }
 0x2e6   : > { %v1596_v44 = vpop.f32.mrf.mxu2  ;;  %5821 = vmatmul.msk.f32.gmra.mxu0 %vm312_vm0, %v4446_v0  ;;  %5753 = vmatmul.msk.f32.gmra.mxu3 %vm312_vm0, %v3898_v42 }
 0x2e7   : > { %v1680_v31 = vadd.f32 %v1596_v44, %v1113_v38 }
 0x2e8   : > { %v1115_v18 = vpop.f32.mrf.mxu1 }
 0x2e9   : > { %v2230_v13 = vadd.f32 %v2146_v54, %v1680_v31  ;;  %v2152_v21 = vpop.f32.mrf.mxu3  ;;  %v1116_v1 = vadd.f32 %v1115_v18, %v8091_v41  ;;  %v4448_v18 = vld [vmem:[%s5961_s25 + $0x7a] sm:$0xff]  ;;  %v8093_v41 = vld [vmem:[#allocation19_spill] sm:$0xff] }
 0x2eb   : > { %v7301_v29 = vadd.f32 %v2696_v30, %v2230_v13  ;;  %5612 = vmatmul.msk.f32.gmra.mxu1 %vm312_vm0, %v4444_v2  ;;  %5682 = vmatmul.msk.f32.gmra.mxu2 %vm312_vm0, %v3347_v36  ;;  %v2699_v27 = vpop.f32.mrf.mxu0  ;;  %v3348_v30 = vld [vmem:[%s5961_s25 + $0x78] sm:$0xff]  ;;  %v3900_v13 = vld [vmem:[%s5961_s25 + $0x89] sm:$0xff] }
 0x2ed   : > { %8090 = vst [vmem:[#allocation22_spill] sm:$0xff] %v7301_v29 }
 0x2ee   : > { %v1599_v42 = vpop.f32.mrf.mxu2  ;;  %5822 = vmatmul.msk.f32.gmra.mxu0 %vm312_vm0, %v4447_v26  ;;  %5754 = vmatmul.msk.f32.gmra.mxu3 %vm312_vm0, %v3899_v40 }
 0x2ef   : > { %v1681_v54 = vadd.f32 %v1599_v42, %v1116_v1 }
 0x2f0   : > { %v1118_v38 = vpop.f32.mrf.mxu1 }
 0x2f1   : > { %v2231_v44 = vadd.f32 %v2149_v46, %v1681_v54  ;;  %v2155_v2 = vpop.f32.mrf.mxu3  ;;  %v1119_v29 = vadd.f32 %v1118_v38, %v8093_v41  ;;  %v4449_v38 = vld [vmem:[%s5961_s25 + $0x82] sm:$0xff]  ;;  %v8095_v41 = vld [vmem:[#allocation21_spill] sm:$0xff] }
 0x2f3   : > { %v7311_v31 = vadd.f32 %v2699_v27, %v2231_v44  ;;  %5613 = vmatmul.msk.f32.gmra.mxu1 %vm312_vm0, %v4445_v6  ;;  %5683 = vmatmul.msk.f32.gmra.mxu2 %vm312_vm0, %v3348_v30  ;;  %v2702_v36 = vpop.f32.mrf.mxu0  ;;  %v3349_v27 = vld [vmem:[%s5961_s25 + $0x80] sm:$0xff]  ;;  %v3901_v44 = vld [vmem:[%s5961_s25 + $0x91] sm:$0xff] }
 0x2f5   : > { %8092 = vst [vmem:[#allocation24_spill] sm:$0xff] %v7311_v31 }
 0x2f6   : > { %v1602_v40 = vpop.f32.mrf.mxu2  ;;  %5823 = vmatmul.msk.f32.gmra.mxu0 %vm312_vm0, %v4448_v18  ;;  %5755 = vmatmul.msk.f32.gmra.mxu3 %vm312_vm0, %v3900_v13 }
 0x2f7   : > { %v1682_v46 = vadd.f32 %v1602_v40, %v1119_v29 }
 0x2f8   : > { %v1121_v1 = vpop.f32.mrf.mxu1 }
 0x2f9   : > { %v2232_v42 = vadd.f32 %v2152_v21, %v1682_v46  ;;  %v2158_v6 = vpop.f32.mrf.mxu3  ;;  %v1122_v31 = vadd.f32 %v1121_v1, %v8095_v41  ;;  %v4450_v1 = vld [vmem:[%s5961_s25 + $0x8a] sm:$0xff] }
 0x2fa   : > { %v8097_v41 = vld [vmem:[#allocation23_spill] sm:$0xff] }
 0x2fb   : > { %v7321_v54 = vadd.f32 %v2702_v36, %v2232_v42  ;;  %5614 = vmatmul.msk.f32.gmra.mxu1 %vm312_vm0, %v4446_v0  ;;  %5684 = vmatmul.msk.f32.gmra.mxu2 %vm312_vm0, %v3349_v27  ;;  %v2705_v30 = vpop.f32.mrf.mxu0  ;;  %v3350_v36 = vld [vmem:[%s5961_s25 + $0x88] sm:$0xff]  ;;  %v3902_v42 = vld [vmem:[%s5961_s25 + $0x99] sm:$0xff] }
 0x2fd   : > { %8094 = vst [vmem:[#allocation26_spill] sm:$0xff] %v7321_v54 }
 0x2fe   : > { %v1605_v13 = vpop.f32.mrf.mxu2  ;;  %5824 = vmatmul.msk.f32.gmra.mxu0 %vm312_vm0, %v4449_v38  ;;  %5756 = vmatmul.msk.f32.gmra.mxu3 %vm312_vm0, %v3901_v44 }
 0x2ff   : > { %v1683_v21 = vadd.f32 %v1605_v13, %v1122_v31 }
 0x300   : > { %v1124_v29 = vpop.f32.mrf.mxu1 }
 0x301   : > { %v2233_v40 = vadd.f32 %v2155_v2, %v1683_v21  ;;  %v2161_v0 = vpop.f32.mrf.mxu3  ;;  %v1125_v54 = vadd.f32 %v1124_v29, %v8097_v41  ;;  %v4451_v29 = vld [vmem:[%s5961_s25 + $0x92] sm:$0xff] }
 0x302   : > { %v8099_v41 = vld [vmem:[#allocation25_spill] sm:$0xff] }
 0x303   : > { %v7331_v46 = vadd.f32 %v2705_v30, %v2233_v40  ;;  %5615 = vmatmul.msk.f32.gmra.mxu1 %vm312_vm0, %v4447_v26  ;;  %5685 = vmatmul.msk.f32.gmra.mxu2 %vm312_vm0, %v3350_v36  ;;  %v2708_v27 = vpop.f32.mrf.mxu0  ;;  %v3351_v30 = vld [vmem:[%s5961_s25 + $0x90] sm:$0xff]  ;;  %v3903_v40 = vld [vmem:[%s5961_s25 + $0xa1] sm:$0xff] }
 0x305   : > { %8096 = vst [vmem:[#allocation28_spill] sm:$0xff] %v7331_v46 }
 0x306   : > { %v1608_v44 = vpop.f32.mrf.mxu2  ;;  %5825 = vmatmul.msk.f32.gmra.mxu0 %vm312_vm0, %v4450_v1  ;;  %5757 = vmatmul.msk.f32.gmra.mxu3 %vm312_vm0, %v3902_v42 }
 0x307   : > { %v1684_v2 = vadd.f32 %v1608_v44, %v1125_v54 }
 0x308   : > { %v1127_v31 = vpop.f32.mrf.mxu1 }
 0x309   : > { %v2234_v13 = vadd.f32 %v2158_v6, %v1684_v2  ;;  %v2164_v26 = vpop.f32.mrf.mxu3  ;;  %v1128_v46 = vadd.f32 %v1127_v31, %v8099_v41  ;;  %v4452_v31 = vld [vmem:[%s5961_s25 + $0x9a] sm:$0xff]  ;;  %v8101_v41 = vld [vmem:[#allocation27_spill] sm:$0xff] }
 0x30b   : > { %v7341_v21 = vadd.f32 %v2708_v27, %v2234_v13  ;;  %5616 = vmatmul.msk.f32.gmra.mxu1 %vm312_vm0, %v4448_v18  ;;  %5686 = vmatmul.msk.f32.gmra.mxu2 %vm312_vm0, %v3351_v30  ;;  %v2711_v36 = vpop.f32.mrf.mxu0  ;;  %v3352_v27 = vld [vmem:[%s5961_s25 + $0x98] sm:$0xff]  ;;  %v3904_v13 = vld [vmem:[%s5961_s25 + $0xa9] sm:$0xff] }
 0x30d   : > { %8098 = vst [vmem:[#allocation31_spill] sm:$0xff] %v7341_v21 }
 0x30e   : > { %v1611_v42 = vpop.f32.mrf.mxu2  ;;  %5826 = vmatmul.msk.f32.gmra.mxu0 %vm312_vm0, %v4451_v29  ;;  %5758 = vmatmul.msk.f32.gmra.mxu3 %vm312_vm0, %v3903_v40 }
 0x30f   : > { %v1685_v6 = vadd.f32 %v1611_v42, %v1128_v46 }
 0x310   : > { %v1130_v54 = vpop.f32.mrf.mxu1 }
 0x311   : > { %v2235_v44 = vadd.f32 %v2161_v0, %v1685_v6  ;;  %v2167_v18 = vpop.f32.mrf.mxu3  ;;  %v1131_v21 = vadd.f32 %v1130_v54, %v8101_v41  ;;  %v4453_v54 = vld [vmem:[%s5961_s25 + $0xa2] sm:$0xff] }
 0x312   : > { %v8103_v41 = vld [vmem:[#allocation30_spill] sm:$0xff] }
 0x313   : > { %v7351_v2 = vadd.f32 %v2711_v36, %v2235_v44  ;;  %5617 = vmatmul.msk.f32.gmra.mxu1 %vm312_vm0, %v4449_v38  ;;  %5687 = vmatmul.msk.f32.gmra.mxu2 %vm312_vm0, %v3352_v27  ;;  %v2714_v30 = vpop.f32.mrf.mxu0  ;;  %v3353_v36 = vld [vmem:[%s5961_s25 + $0xa0] sm:$0xff]  ;;  %v3905_v44 = vld [vmem:[%s5961_s25 + $0xb1] sm:$0xff] }
 0x315   : > { %8100 = vst [vmem:[#allocation34_spill] sm:$0xff] %v7351_v2 }
 0x316   : > { %v1614_v40 = vpop.f32.mrf.mxu2  ;;  %5827 = vmatmul.msk.f32.gmra.mxu0 %vm312_vm0, %v4452_v31  ;;  %5759 = vmatmul.msk.f32.gmra.mxu3 %vm312_vm0, %v3904_v13 }
 0x317   : > { %v1686_v0 = vadd.f32 %v1614_v40, %v1131_v21 }
 0x318   : > { %v1133_v46 = vpop.f32.mrf.mxu1 }
 0x319   : > { %v2236_v42 = vadd.f32 %v2164_v26, %v1686_v0  ;;  %v2170_v38 = vpop.f32.mrf.mxu3  ;;  %v1134_v2 = vadd.f32 %v1133_v46, %v8103_v41  ;;  %v4454_v46 = vld [vmem:[%s5961_s25 + $0xaa] sm:$0xff]  ;;  %v8104_v41 = vld [vmem:[#allocation33_spill] sm:$0xff] }
 0x31b   : > { %v7361_v6 = vadd.f32 %v2714_v30, %v2236_v42  ;;  %5618 = vmatmul.msk.f32.gmra.mxu1 %vm312_vm0, %v4450_v1  ;;  %5688 = vmatmul.msk.f32.gmra.mxu2 %vm312_vm0, %v3353_v36  ;;  %v2717_v27 = vpop.f32.mrf.mxu0  ;;  %v3354_v30 = vld [vmem:[%s5961_s25 + $0xa8] sm:$0xff]  ;;  %v3906_v42 = vld [vmem:[%s5961_s25 + $0xb9] sm:$0xff] }
 0x31d   : > { %8102 = vst [vmem:[#allocation36_spill] sm:$0xff] %v7361_v6 }
 0x31e   : > { %v1617_v13 = vpop.f32.mrf.mxu2  ;;  %5828 = vmatmul.msk.f32.gmra.mxu0 %vm312_vm0, %v4453_v54  ;;  %5760 = vmatmul.msk.f32.gmra.mxu3 %vm312_vm0, %v3905_v44 }
 0x31f   : > { %v1687_v26 = vadd.f32 %v1617_v13, %v1134_v2 }
 0x320   : > { %v1136_v21 = vpop.f32.mrf.mxu1 }
 0x321   : > { %v2237_v40 = vadd.f32 %v2167_v18, %v1687_v26  ;;  %v4175_v1 = vpop.f32.mrf.mxu3  ;;  %v1137_v6 = vadd.f32 %v1136_v21, %v8104_v41  ;;  %v4455_v21 = vld [vmem:[%s5961_s25 + $0xb2] sm:$0xff] }
 0x323   : > { %v7371_v0 = vadd.f32 %v2717_v27, %v2237_v40  ;;  %5619 = vmatmul.msk.f32.gmra.mxu1 %vm312_vm0, %v4451_v29  ;;  %5689 = vmatmul.msk.f32.gmra.mxu2 %vm312_vm0, %v3354_v30  ;;  %v2720_v36 = vpop.f32.mrf.mxu0  ;;  %v3355_v27 = vld [vmem:[%s5961_s25 + $0xb0] sm:$0xff]  ;;  %v3907_v40 = vld [vmem:[%s5961_s25 + $0xc1] sm:$0xff] }
 0x326   : > { %v1620_v44 = vpop.f32.mrf.mxu2  ;;  %5829 = vmatmul.msk.f32.gmra.mxu0 %vm312_vm0, %v4454_v46  ;;  %5761 = vmatmul.msk.f32.gmra.mxu3 %vm312_vm0, %v3906_v42  ;;  %v3356_v42 = vld [vmem:[%s5961_s25 + $0xb8] sm:$0xff] }
 0x327   : > { %v1688_v18 = vadd.f32 %v1620_v44, %v1137_v6 }
 0x328   : > { %v3075_v2 = vpop.f32.mrf.mxu1 }
 0x329   : > { %v2238_v13 = vadd.f32 %v2170_v38, %v1688_v18  ;;  %v4178_v29 = vpop.f32.mrf.mxu3  ;;  %v3273_v41 = vadd.f32 %v3075_v2, %v6526_v20  ;;  %v4456_v2 = vld [vmem:[%s5961_s25 + $0xba] sm:$0xff] }
 0x32b   : > { %v7381_v26 = vadd.f32 %v2720_v36, %v2238_v13  ;;  %5620 = vmatmul.msk.f32.gmra.mxu1 %vm312_vm0, %v4452_v31  ;;  %5690 = vmatmul.msk.f32.gmra.mxu2 %vm312_vm0, %v3355_v27  ;;  %v4725_v30 = vpop.f32.mrf.mxu0  ;;  %v7394_v31 = vld [vmem:[%s8013_s2] ss:$0 sm:$0xff]  ;;  %v3908_v13 = vld [vmem:[%s5961_s25 + $0xc9] sm:$0xff] }
 0x32d   : > { %8105 = vst [vmem:[#allocation3_spill] sm:$0xff] %v7381_v26  ;;  %v3909_v26 = vld [vmem:[%s5961_s25 + $0xd1] sm:$0xff] }
 0x32e   : > { %v3625_v6 = vpop.f32.mrf.mxu2  ;;  %5830 = vmatmul.msk.f32.gmra.mxu0 %vm312_vm0, %v4455_v21  ;;  %5762 = vmatmul.msk.f32.gmra.mxu3 %vm312_vm0, %v3907_v40 }
 0x32f   : > { %v3823_v38 = vadd.f32 %v3625_v6, %v3273_v41 }
 0x330   : > { %v3078_v36 = vpop.f32.mrf.mxu1 }
 0x331   : > { %v4373_v44 = vadd.f32 %v4175_v1, %v3823_v38  ;;  %v4181_v18 = vpop.f32.mrf.mxu3  ;;  %v3274_v40 = vadd.f32 %v3078_v36, %v6539_v3  ;;  %v3357_v3 = vld [vmem:[%s5961_s25 + $0xc0] sm:$0xff] }
 0x333   : > { %v4923_v27 = vadd.f32 %v4725_v30, %v4373_v44  ;;  %5621 = vmatmul.msk.f32.gmra.mxu1 %vm312_vm0, %v4453_v54  ;;  %5691 = vmatmul.msk.f32.gmra.mxu2 %vm312_vm0, %v3356_v42  ;;  %v4728_v20 = vpop.f32.mrf.mxu0 }
 0x335   : > { %v4993_v1 = vadd.f32 %v7394_v31, %v4923_v27  ;;  %v4457_v27 = vld [vmem:[%s5961_s25 + $0xc2] sm:$0xff] }
 0x336   : > { %v3628_v30 = vpop.f32.mrf.mxu2  ;;  %5831 = vmatmul.msk.f32.gmra.mxu0 %vm312_vm0, %v4456_v2  ;;  %5763 = vmatmul.msk.f32.gmra.mxu3 %vm312_vm0, %v3908_v13 }
 0x337   : > { %v5059_v54 = vmax.f32 %v4993_v1, 0.0  ;;  %v3824_v41 = vadd.f32 %v3628_v30, %v3274_v40 }
 0x338   : > { %v3081_v6 = vpop.f32.mrf.mxu1 }
 0x339   : > { %5126 = vst.msk [vmem:[%s7406_s22] sm:$0xff] %vm5125_vm1, %v5059_v54  ;;  %v4374_v38 = vadd.f32 %v4178_v29, %v3824_v41  ;;  %v4184_v36 = vpop.f32.mrf.mxu3  ;;  %v3275_v13 = vadd.f32 %v3081_v6, %v6552_v19 }
 0x33b   : > { %v4924_v42 = vadd.f32 %v4728_v20, %v4374_v38  ;;  %5622 = vmatmul.msk.f32.gmra.mxu1 %vm312_vm0, %v4454_v46  ;;  %5692 = vmatmul.msk.f32.gmra.mxu2 %vm312_vm0, %v3357_v3  ;;  %v4731_v44 = vpop.f32.mrf.mxu0  ;;  %v3358_v46 = vld [vmem:[%s5961_s25 + $0xc8] sm:$0xff]  ;;  %v3910_v38 = vld [vmem:[%s5961_s25 + $0xd9] sm:$0xff] }
 0x33c   : > { %v4458_v3 = vld [vmem:[%s5961_s25 + $0xca] sm:$0xff] }
 0x33d   : > { %v4994_v40 = vadd.f32 %v7394_v31, %v4924_v42 }
 0x33e   : > { %v3631_v1 = vpop.f32.mrf.mxu2  ;;  %5832 = vmatmul.msk.f32.gmra.mxu0 %vm312_vm0, %v4457_v27  ;;  %5764 = vmatmul.msk.f32.gmra.mxu3 %vm312_vm0, %v3909_v26 }
 0x33f   : > { %v5060_v29 = vmax.f32 %v4994_v40, 0.0  ;;  %v3825_v20 = vadd.f32 %v3631_v1, %v3275_v13 }
 0x340   : > { %v3084_v30 = vpop.f32.mrf.mxu1 }
 0x341   : > { %5127 = vst.msk [vmem:[%s7406_s22 + $0x8] sm:$0xff] %vm5125_vm1, %v5060_v29  ;;  %v4375_v54 = vadd.f32 %v4181_v18, %v3825_v20  ;;  %v4187_v41 = vpop.f32.mrf.mxu3  ;;  %v3276_v26 = vadd.f32 %v3084_v30, %v6565_v24  ;;  %v4459_v30 = vld [vmem:[%s5961_s25 + $0xd2] sm:$0xff] }
 0x343   : > { %v4925_v19 = vadd.f32 %v4731_v44, %v4375_v54  ;;  %5623 = vmatmul.msk.f32.gmra.mxu1 %vm312_vm0, %v4455_v21  ;;  %5693 = vmatmul.msk.f32.gmra.mxu2 %vm312_vm0, %v3358_v46  ;;  %v4734_v6 = vpop.f32.mrf.mxu0  ;;  %v3359_v21 = vld [vmem:[%s5961_s25 + $0xd0] sm:$0xff]  ;;  %v3911_v46 = vld [vmem:[%s5961_s25 + $0xe1] sm:$0xff] }
 0x345   : > { %v4995_v42 = vadd.f32 %v7394_v31, %v4925_v19 }
 0x346   : > { %v3634_v13 = vpop.f32.mrf.mxu2  ;;  %5833 = vmatmul.msk.f32.gmra.mxu0 %vm312_vm0, %v4458_v3  ;;  %5765 = vmatmul.msk.f32.gmra.mxu3 %vm312_vm0, %v3910_v38 }
 0x347   : > { %v5061_v18 = vmax.f32 %v4995_v42, 0.0  ;;  %v3826_v44 = vadd.f32 %v3634_v13, %v3276_v26 }
 0x348   : > { %v3087_v40 = vpop.f32.mrf.mxu1 }
 0x349   : > { %5128 = vst.msk [vmem:[%s7406_s22 + $0x10] sm:$0xff] %vm5125_vm1, %v5061_v18  ;;  %v4376_v1 = vadd.f32 %v4184_v36, %v3826_v44  ;;  %v4190_v29 = vpop.f32.mrf.mxu3  ;;  %v3277_v54 = vadd.f32 %v3087_v40, %v6579_v60  ;;  %v4460_v44 = vld [vmem:[%s5961_s25 + $0xda] sm:$0xff]  ;;  %v3912_v40 = vld [vmem:[%s5961_s25 + $0xe9] sm:$0xff] }
 0x34b   : > { %v4926_v24 = vadd.f32 %v4734_v6, %v4376_v1  ;;  %5624 = vmatmul.msk.f32.gmra.mxu1 %vm312_vm0, %v4456_v2  ;;  %5694 = vmatmul.msk.f32.gmra.mxu2 %vm312_vm0, %v3359_v21  ;;  %v4737_v20 = vpop.f32.mrf.mxu0  ;;  %v3360_v2 = vld [vmem:[%s5961_s25 + $0xd8] sm:$0xff] }
 0x34d   : > { %v4996_v19 = vadd.f32 %v7394_v31, %v4926_v24 }
 0x34e   : > { %v3637_v38 = vpop.f32.mrf.mxu2  ;;  %5834 = vmatmul.msk.f32.gmra.mxu0 %vm312_vm0, %v4459_v30  ;;  %5766 = vmatmul.msk.f32.gmra.mxu3 %vm312_vm0, %v3911_v46 }
 0x34f   : > { %v5062_v36 = vmax.f32 %v4996_v19, 0.0  ;;  %v3827_v6 = vadd.f32 %v3637_v38, %v3277_v54 }
 0x350   : > { %v3090_v26 = vpop.f32.mrf.mxu1 }
 0x351   : > { %5129 = vst.msk [vmem:[%s7406_s22 + $0x18] sm:$0xff] %vm5125_vm1, %v5062_v36  ;;  %v4377_v42 = vadd.f32 %v4187_v41, %v3827_v6  ;;  %v4193_v13 = vpop.f32.mrf.mxu3  ;;  %v3278_v21 = vadd.f32 %v3090_v26, %v6593_v37  ;;  %v4461_v36 = vld [vmem:[%s5961_s25 + $0xe2] sm:$0xff]  ;;  %v3913_v6 = vld [vmem:[%s5961_s25 + $0xf1] sm:$0xff] }
 0x353   : > { %v4927_v60 = vadd.f32 %v4737_v20, %v4377_v42  ;;  %5625 = vmatmul.msk.f32.gmra.mxu1 %vm312_vm0, %v4457_v27  ;;  %5695 = vmatmul.msk.f32.gmra.mxu2 %vm312_vm0, %v3360_v2  ;;  %v4740_v18 = vpop.f32.mrf.mxu0  ;;  %v3361_v27 = vld [vmem:[%s5961_s25 + $0xe0] sm:$0xff] }
 0x355   : > { %v4997_v1 = vadd.f32 %v7394_v31, %v4927_v60 }
 0x356   : > { %v3640_v24 = vpop.f32.mrf.mxu2  ;;  %5835 = vmatmul.msk.f32.gmra.mxu0 %vm312_vm0, %v4460_v44  ;;  %5767 = vmatmul.msk.f32.gmra.mxu3 %vm312_vm0, %v3912_v40 }
 0x357   : > { %v5063_v41 = vmax.f32 %v4997_v1, 0.0  ;;  %v3828_v20 = vadd.f32 %v3640_v24, %v3278_v21  ;;  %v4462_v24 = vld [vmem:[%s5961_s25 + $0xea] sm:$0xff] }
 0x358   : > { %v3093_v46 = vpop.f32.mrf.mxu1 }
 0x359   : > { %5130 = vst.msk [vmem:[%s7406_s22 + $0x20] sm:$0xff] %vm5125_vm1, %v5063_v41  ;;  %v4378_v54 = vadd.f32 %v4190_v29, %v3828_v20  ;;  %v4196_v19 = vpop.f32.mrf.mxu3  ;;  %v3279_v26 = vadd.f32 %v3093_v46, %v6607_v57  ;;  %v3914_v41 = vld [vmem:[%s5961_s25 + $0xf9] sm:$0xff] }
 0x35b   : > { %v4928_v37 = vadd.f32 %v4740_v18, %v4378_v54  ;;  %5626 = vmatmul.msk.f32.gmra.mxu1 %vm312_vm0, %v4458_v3  ;;  %5696 = vmatmul.msk.f32.gmra.mxu2 %vm312_vm0, %v3361_v27  ;;  %v4743_v38 = vpop.f32.mrf.mxu0  ;;  %v3362_v3 = vld [vmem:[%s5961_s25 + $0xe8] sm:$0xff] }
 0x35d   : > { %v4998_v2 = vadd.f32 %v7394_v31, %v4928_v37 }
 0x35e   : > { %v3643_v42 = vpop.f32.mrf.mxu2  ;;  %5836 = vmatmul.msk.f32.gmra.mxu0 %vm312_vm0, %v4461_v36  ;;  %5768 = vmatmul.msk.f32.gmra.mxu3 %vm312_vm0, %v3913_v6 }
 0x35f   : > { %v5064_v29 = vmax.f32 %v4998_v2, 0.0  ;;  %v3829_v60 = vadd.f32 %v3643_v42, %v3279_v26  ;;  %v4463_v2 = vld [vmem:[%s5961_s25 + $0xf2] sm:$0xff]  ;;  %v3915_v42 = vld [vmem:[%s5961_s25 + $0x101] sm:$0xff] }
 0x360   : > { %v3096_v18 = vpop.f32.mrf.mxu1 }
 0x361   : > { %5131 = vst.msk [vmem:[%s7406_s22 + $0x28] sm:$0xff] %vm5125_vm1, %v5064_v29  ;;  %v4379_v40 = vadd.f32 %v4193_v13, %v3829_v60  ;;  %v4199_v21 = vpop.f32.mrf.mxu3  ;;  %v3280_v20 = vadd.f32 %v3096_v18, %v6621_v14 }
 0x363   : > { %v4929_v57 = vadd.f32 %v4743_v38, %v4379_v40  ;;  %5627 = vmatmul.msk.f32.gmra.mxu1 %vm312_vm0, %v4459_v30  ;;  %5697 = vmatmul.msk.f32.gmra.mxu2 %vm312_vm0, %v3362_v3  ;;  %v4746_v1 = vpop.f32.mrf.mxu0  ;;  %v3363_v30 = vld [vmem:[%s5961_s25 + $0xf0] sm:$0xff] }
 0x365   : > { %v4999_v46 = vadd.f32 %v7394_v31, %v4929_v57 }
 0x366   : > { %v3646_v27 = vpop.f32.mrf.mxu2  ;;  %5837 = vmatmul.msk.f32.gmra.mxu0 %vm312_vm0, %v4462_v24  ;;  %5769 = vmatmul.msk.f32.gmra.mxu3 %vm312_vm0, %v3914_v41 }
 0x367   : > { %v5065_v13 = vmax.f32 %v4999_v46, 0.0  ;;  %v3830_v54 = vadd.f32 %v3646_v27, %v3280_v20  ;;  %v4464_v20 = vld [vmem:[%s5961_s25 + $0xfa] sm:$0xff]  ;;  %v3916_v46 = vld [vmem:[%s5961_s25 + $0x109] sm:$0xff] }
 0x368   : > { %v3099_v37 = vpop.f32.mrf.mxu1 }
 0x369   : > { %5132 = vst.msk [vmem:[%s7406_s22 + $0x30] sm:$0xff] %vm5125_vm1, %v5065_v13  ;;  %v4380_v38 = vadd.f32 %v4196_v19, %v3830_v54  ;;  %v4202_v6 = vpop.f32.mrf.mxu3  ;;  %v3281_v29 = vadd.f32 %v3099_v37, %v6635_v39 }
 0x36b   : > { %v4930_v14 = vadd.f32 %v4746_v1, %v4380_v38  ;;  %5628 = vmatmul.msk.f32.gmra.mxu1 %vm312_vm0, %v4460_v44  ;;  %5698 = vmatmul.msk.f32.gmra.mxu2 %vm312_vm0, %v3363_v30  ;;  %v4749_v26 = vpop.f32.mrf.mxu0  ;;  %v3364_v44 = vld [vmem:[%s5961_s25 + $0xf8] sm:$0xff] }
 0x36d   : > { %v5000_v60 = vadd.f32 %v7394_v31, %v4930_v14 }
 0x36e   : > { %v3649_v18 = vpop.f32.mrf.mxu2  ;;  %5838 = vmatmul.msk.f32.gmra.mxu0 %vm312_vm0, %v4463_v2  ;;  %5770 = vmatmul.msk.f32.gmra.mxu3 %vm312_vm0, %v3915_v42  ;;  %v4465_v42 = vld [vmem:[%s5961_s25 + $0x102] sm:$0xff] }
 0x36f   : > { %v5066_v19 = vmax.f32 %v5000_v60, 0.0  ;;  %v3831_v3 = vadd.f32 %v3649_v18, %v3281_v29  ;;  %v3917_v29 = vld [vmem:[%s5961_s25 + $0x111] sm:$0xff] }
 0x370   : > { %v3102_v40 = vpop.f32.mrf.mxu1 }
 0x371   : > { %5133 = vst.msk [vmem:[%s7406_s22 + $0x38] sm:$0xff] %vm5125_vm1, %v5066_v19  ;;  %v4381_v57 = vadd.f32 %v4199_v21, %v3831_v3  ;;  %v4205_v1 = vpop.f32.mrf.mxu3  ;;  %v3282_v27 = vadd.f32 %v3102_v40, %v6649_v16 }
 0x373   : > { %v4931_v39 = vadd.f32 %v4749_v26, %v4381_v57  ;;  %5629 = vmatmul.msk.f32.gmra.mxu1 %vm312_vm0, %v4461_v36  ;;  %5699 = vmatmul.msk.f32.gmra.mxu2 %vm312_vm0, %v3364_v44  ;;  %v4752_v41 = vpop.f32.mrf.mxu0  ;;  %v3365_v36 = vld [vmem:[%s5961_s25 + $0x100] sm:$0xff] }
 0x375   : > { %v5001_v13 = vadd.f32 %v7394_v31, %v4931_v39 }
 0x376   : > { %v3652_v54 = vpop.f32.mrf.mxu2  ;;  %5839 = vmatmul.msk.f32.gmra.mxu0 %vm312_vm0, %v4464_v20  ;;  %5771 = vmatmul.msk.f32.gmra.mxu3 %vm312_vm0, %v3916_v46  ;;  %v3918_v46 = vld [vmem:[%s5961_s25 + $0x119] sm:$0xff] }
 0x377   : > { %v5067_v21 = vmax.f32 %v5001_v13, 0.0  ;;  %v3832_v37 = vadd.f32 %v3652_v54, %v3282_v27 }
 0x378   : > { %v3105_v30 = vpop.f32.mrf.mxu1 }
 0x379   : > { %5134 = vst.msk [vmem:[%s7406_s22 + $0x40] sm:$0xff] %vm5125_vm1, %v5067_v21  ;;  %v4382_v38 = vadd.f32 %v4202_v6, %v3832_v37  ;;  %v4208_v14 = vpop.f32.mrf.mxu3  ;;  %v3283_v60 = vadd.f32 %v3105_v30, %v6663_v53 }
 0x37b   : > { %v4932_v16 = vadd.f32 %v4752_v41, %v4382_v38  ;;  %5630 = vmatmul.msk.f32.gmra.mxu1 %vm312_vm0, %v4462_v24  ;;  %5700 = vmatmul.msk.f32.gmra.mxu2 %vm312_vm0, %v3365_v36  ;;  %v4755_v26 = vpop.f32.mrf.mxu0  ;;  %v3366_v24 = vld [vmem:[%s5961_s25 + $0x108] sm:$0xff] }
 0x37c   : > { %v4466_v41 = vld [vmem:[%s5961_s25 + $0x10a] sm:$0xff] }
 0x37d   : > { %v5002_v18 = vadd.f32 %v7394_v31, %v4932_v16  ;;  %v4467_v16 = vld [vmem:[%s5961_s25 + $0x112] sm:$0xff] }
 0x37e   : > { %v3655_v19 = vpop.f32.mrf.mxu2  ;;  %5840 = vmatmul.msk.f32.gmra.mxu0 %vm312_vm0, %v4465_v42  ;;  %5772 = vmatmul.msk.f32.gmra.mxu3 %vm312_vm0, %v3917_v29 }
 0x37f   : > { %v5068_v6 = vmax.f32 %v5002_v18, 0.0  ;;  %v3833_v3 = vadd.f32 %v3655_v19, %v3283_v60 }
 0x380   : > { %v3108_v40 = vpop.f32.mrf.mxu1 }
 0x381   : > { %5135 = vst.msk [vmem:[%s7406_s22 + $0x48] sm:$0xff] %vm5125_vm1, %v5068_v6  ;;  %v4383_v44 = vadd.f32 %v4205_v1, %v3833_v3  ;;  %v4211_v57 = vpop.f32.mrf.mxu3  ;;  %v3284_v27 = vadd.f32 %v3108_v40, %v6677_v62 }
 0x383   : > { %v4933_v53 = vadd.f32 %v4755_v26, %v4383_v44  ;;  %5631 = vmatmul.msk.f32.gmra.mxu1 %vm312_vm0, %v4463_v2  ;;  %5701 = vmatmul.msk.f32.gmra.mxu2 %vm312_vm0, %v3366_v24  ;;  %v4758_v39 = vpop.f32.mrf.mxu0  ;;  %v3367_v2 = vld [vmem:[%s5961_s25 + $0x110] sm:$0xff]  ;;  %v3919_v26 = vld [vmem:[%s5961_s25 + $0x121] sm:$0xff] }
 0x384   : > { %v4468_v44 = vld [vmem:[%s5961_s25 + $0x11a] sm:$0xff] }
 0x385   : > { %v5003_v13 = vadd.f32 %v7394_v31, %v4933_v53  ;;  %v3920_v53 = vld [vmem:[%s5961_s25 + $0x129] sm:$0xff] }
 0x386   : > { %v3658_v54 = vpop.f32.mrf.mxu2  ;;  %5841 = vmatmul.msk.f32.gmra.mxu0 %vm312_vm0, %v4466_v41  ;;  %5773 = vmatmul.msk.f32.gmra.mxu3 %vm312_vm0, %v3918_v46 }
 0x387   : > { %v5069_v1 = vmax.f32 %v5003_v13, 0.0  ;;  %v3834_v21 = vadd.f32 %v3658_v54, %v3284_v27 }
 0x388   : > { %v3111_v37 = vpop.f32.mrf.mxu1 }
 0x389   : > { %5136 = vst.msk [vmem:[%s7406_s22 + $0x50] sm:$0xff] %vm5125_vm1, %v5069_v1  ;;  %v4384_v30 = vadd.f32 %v4208_v14, %v3834_v21  ;;  %v4214_v36 = vpop.f32.mrf.mxu3  ;;  %v3285_v29 = vadd.f32 %v3111_v37, %v6691_v48 }
 0x38b   : > { %v4934_v62 = vadd.f32 %v4758_v39, %v4384_v30  ;;  %5632 = vmatmul.msk.f32.gmra.mxu1 %vm312_vm0, %v4464_v20  ;;  %5702 = vmatmul.msk.f32.gmra.mxu2 %vm312_vm0, %v3367_v2  ;;  %v4761_v38 = vpop.f32.mrf.mxu0  ;;  %v3368_v20 = vld [vmem:[%s5961_s25 + $0x118] sm:$0xff]  ;;  %v4469_v2 = vld [vmem:[%s5961_s25 + $0x122] sm:$0xff] }
 0x38c   : > { %v3921_v30 = vld [vmem:[%s5961_s25 + $0x131] sm:$0xff] }
 0x38d   : > { %v5004_v60 = vadd.f32 %v7394_v31, %v4934_v62 }
 0x38e   : > { %v3661_v18 = vpop.f32.mrf.mxu2  ;;  %5842 = vmatmul.msk.f32.gmra.mxu0 %vm312_vm0, %v4467_v16  ;;  %5774 = vmatmul.msk.f32.gmra.mxu3 %vm312_vm0, %v3919_v26 }
 0x38f   : > { %v5070_v14 = vmax.f32 %v5004_v60, 0.0  ;;  %v3835_v19 = vadd.f32 %v3661_v18, %v3285_v29 }
 0x390   : > { %v3114_v6 = vpop.f32.mrf.mxu1 }
 0x391   : > { %5137 = vst.msk [vmem:[%s7406_s22 + $0x58] sm:$0xff] %vm5125_vm1, %v5070_v14  ;;  %v4385_v3 = vadd.f32 %v4211_v57, %v3835_v19  ;;  %v4217_v40 = vpop.f32.mrf.mxu3  ;;  %v3286_v39 = vadd.f32 %v3114_v6, %v6714_v15  ;;  %v4470_v6 = vld [vmem:[%s5961_s25 + $0x12a] sm:$0xff] }
 0x393   : > { %v4935_v48 = vadd.f32 %v4761_v38, %v4385_v3  ;;  %5633 = vmatmul.msk.f32.gmra.mxu1 %vm312_vm0, %v4465_v42  ;;  %5703 = vmatmul.msk.f32.gmra.mxu2 %vm312_vm0, %v3368_v20  ;;  %v4764_v24 = vpop.f32.mrf.mxu0  ;;  %v3369_v42 = vld [vmem:[%s5961_s25 + $0x120] sm:$0xff] }
 0x394   : > { %v3922_v20 = vld [vmem:[%s5961_s25 + $0x139] sm:$0xff] }
 0x395   : > { %v5005_v46 = vadd.f32 %v7394_v31, %v4935_v48 }
 0x396   : > { %v3664_v27 = vpop.f32.mrf.mxu2  ;;  %5843 = vmatmul.msk.f32.gmra.mxu0 %vm312_vm0, %v4468_v44  ;;  %5775 = vmatmul.msk.f32.gmra.mxu3 %vm312_vm0, %v3920_v53 }
 0x397   : > { %v5071_v57 = vmax.f32 %v5005_v46, 0.0  ;;  %v3836_v13 = vadd.f32 %v3664_v27, %v3286_v39 }
 0x398   : > { %v3117_v54 = vpop.f32.mrf.mxu1 }
 0x399   : > { %5138 = vst.msk [vmem:[%s7406_s22 + $0x60] sm:$0xff] %vm5125_vm1, %v5071_v57  ;;  %v4386_v1 = vadd.f32 %v4214_v36, %v3836_v13  ;;  %v4220_v21 = vpop.f32.mrf.mxu3  ;;  %v3287_v62 = vadd.f32 %v3117_v54, %v6731_v9  ;;  %v4471_v13 = vld [vmem:[%s5961_s25 + $0x132] sm:$0xff]  ;;  %v3923_v54 = vld [vmem:[%s5961_s25 + $0x141] sm:$0xff] }
 0x39b   : > { %v4936_v15 = vadd.f32 %v4764_v24, %v4386_v1  ;;  %5634 = vmatmul.msk.f32.gmra.mxu1 %vm312_vm0, %v4466_v41  ;;  %5704 = vmatmul.msk.f32.gmra.mxu2 %vm312_vm0, %v3369_v42  ;;  %v4767_v37 = vpop.f32.mrf.mxu0  ;;  %v3370_v41 = vld [vmem:[%s5961_s25 + $0x128] sm:$0xff] }
 0x39d   : > { %v5006_v38 = vadd.f32 %v7394_v31, %v4936_v15 }
 0x39e   : > { %v3667_v26 = vpop.f32.mrf.mxu2  ;;  %5844 = vmatmul.msk.f32.gmra.mxu0 %vm312_vm0, %v4469_v2  ;;  %5776 = vmatmul.msk.f32.gmra.mxu3 %vm312_vm0, %v3921_v30 }
 0x39f   : > { %v5072_v36 = vmax.f32 %v5006_v38, 0.0  ;;  %v3837_v29 = vadd.f32 %v3667_v26, %v3287_v62 }
 0x3a0   : > { %v3120_v60 = vpop.f32.mrf.mxu1 }
 0x3a1   : > { %5139 = vst.msk [vmem:[%s7406_s22 + $0x68] sm:$0xff] %vm5125_vm1, %v5072_v36  ;;  %v4387_v18 = vadd.f32 %v4217_v40, %v3837_v29  ;;  %v4223_v14 = vpop.f32.mrf.mxu3  ;;  %v3288_v3 = vadd.f32 %v3120_v60, %v6745_v17  ;;  %v4472_v36 = vld [vmem:[%s5961_s25 + $0x13a] sm:$0xff]  ;;  %v3924_v29 = vld [vmem:[%s5961_s25 + $0x149] sm:$0xff] }
 0x3a3   : > { %v4937_v9 = vadd.f32 %v4767_v37, %v4387_v18  ;;  %5635 = vmatmul.msk.f32.gmra.mxu1 %vm312_vm0, %v4467_v16  ;;  %5705 = vmatmul.msk.f32.gmra.mxu2 %vm312_vm0, %v3370_v41  ;;  %v4770_v19 = vpop.f32.mrf.mxu0  ;;  %v3371_v16 = vld [vmem:[%s5961_s25 + $0x130] sm:$0xff] }
 0x3a5   : > { %v5007_v48 = vadd.f32 %v7394_v31, %v4937_v9 }
 0x3a6   : > { %v3670_v24 = vpop.f32.mrf.mxu2  ;;  %5845 = vmatmul.msk.f32.gmra.mxu0 %vm312_vm0, %v4470_v6  ;;  %5777 = vmatmul.msk.f32.gmra.mxu3 %vm312_vm0, %v3922_v20 }
 0x3a7   : > { %v5073_v40 = vmax.f32 %v5007_v48, 0.0  ;;  %v3838_v53 = vadd.f32 %v3670_v24, %v3288_v3  ;;  %v4473_v24 = vld [vmem:[%s5961_s25 + $0x142] sm:$0xff] }
 0x3a8   : > { %v3123_v39 = vpop.f32.mrf.mxu1 }
 0x3a9   : > { %5140 = vst.msk [vmem:[%s7406_s22 + $0x70] sm:$0xff] %vm5125_vm1, %v5073_v40  ;;  %v4388_v46 = vadd.f32 %v4220_v21, %v3838_v53  ;;  %v4226_v27 = vpop.f32.mrf.mxu3  ;;  %v3289_v42 = vadd.f32 %v3123_v39, %v6759_v25  ;;  %v3925_v40 = vld [vmem:[%s5961_s25 + $0x151] sm:$0xff] }
 0x3ab   : > { %v4938_v17 = vadd.f32 %v4770_v19, %v4388_v46  ;;  %5636 = vmatmul.msk.f32.gmra.mxu1 %vm312_vm0, %v4468_v44  ;;  %5706 = vmatmul.msk.f32.gmra.mxu2 %vm312_vm0, %v3371_v16  ;;  %v4773_v57 = vpop.f32.mrf.mxu0  ;;  %v3372_v44 = vld [vmem:[%s5961_s25 + $0x138] sm:$0xff] }
 0x3ad   : > { %v5008_v1 = vadd.f32 %v7394_v31, %v4938_v17 }
 0x3ae   : > { %v3673_v15 = vpop.f32.mrf.mxu2  ;;  %5846 = vmatmul.msk.f32.gmra.mxu0 %vm312_vm0, %v4471_v13  ;;  %5778 = vmatmul.msk.f32.gmra.mxu3 %vm312_vm0, %v3923_v54 }
 0x3af   : > { %v5074_v21 = vmax.f32 %v5008_v1, 0.0  ;;  %v3839_v37 = vadd.f32 %v3673_v15, %v3289_v42  ;;  %v4474_v1 = vld [vmem:[%s5961_s25 + $0x14a] sm:$0xff]  ;;  %v3926_v15 = vld [vmem:[%s5961_s25 + $0x159] sm:$0xff] }
 0x3b0   : > { %v3126_v30 = vpop.f32.mrf.mxu1 }
 0x3b1   : > { %5141 = vst.msk [vmem:[%s7406_s22 + $0x78] sm:$0xff] %vm5125_vm1, %v5074_v21  ;;  %v4389_v62 = vadd.f32 %v4223_v14, %v3839_v37  ;;  %v4229_v38 = vpop.f32.mrf.mxu3  ;;  %v3290_v60 = vadd.f32 %v3126_v30, %v6773_v58 }
 0x3b3   : > { %v4939_v25 = vadd.f32 %v4773_v57, %v4389_v62  ;;  %5637 = vmatmul.msk.f32.gmra.mxu1 %vm312_vm0, %v4469_v2  ;;  %5707 = vmatmul.msk.f32.gmra.mxu2 %vm312_vm0, %v3372_v44  ;;  %v4776_v26 = vpop.f32.mrf.mxu0  ;;  %v3373_v2 = vld [vmem:[%s5961_s25 + $0x140] sm:$0xff] }
 0x3b5   : > { %v5009_v41 = vadd.f32 %v7394_v31, %v4939_v25 }
 0x3b6   : > { %v3676_v18 = vpop.f32.mrf.mxu2  ;;  %5847 = vmatmul.msk.f32.gmra.mxu0 %vm312_vm0, %v4472_v36  ;;  %5779 = vmatmul.msk.f32.gmra.mxu3 %vm312_vm0, %v3924_v29 }
 0x3b7   : > { %v5075_v14 = vmax.f32 %v5009_v41, 0.0  ;;  %v3840_v9 = vadd.f32 %v3676_v18, %v3290_v60  ;;  %v4475_v60 = vld [vmem:[%s5961_s25 + $0x152] sm:$0xff]  ;;  %v3927_v41 = vld [vmem:[%s5961_s25 + $0x161] sm:$0xff] }
 0x3b8   : > { %v3129_v19 = vpop.f32.mrf.mxu1 }
 0x3b9   : > { %5142 = vst.msk [vmem:[%s7406_s22 + $0x80] sm:$0xff] %vm5125_vm1, %v5075_v14  ;;  %v4390_v20 = vadd.f32 %v4226_v27, %v3840_v9  ;;  %v4232_v3 = vpop.f32.mrf.mxu3  ;;  %v3291_v53 = vadd.f32 %v3129_v19, %v6787_v5 }
 0x3bb   : > { %v4940_v58 = vadd.f32 %v4776_v26, %v4390_v20  ;;  %5638 = vmatmul.msk.f32.gmra.mxu1 %vm312_vm0, %v4470_v6  ;;  %5708 = vmatmul.msk.f32.gmra.mxu2 %vm312_vm0, %v3373_v2  ;;  %v4779_v48 = vpop.f32.mrf.mxu0  ;;  %v3374_v6 = vld [vmem:[%s5961_s25 + $0x148] sm:$0xff] }
 0x3bd   : > { %v5010_v39 = vadd.f32 %v7394_v31, %v4940_v58 }
 0x3be   : > { %v3679_v16 = vpop.f32.mrf.mxu2  ;;  %5848 = vmatmul.msk.f32.gmra.mxu0 %vm312_vm0, %v4473_v24  ;;  %5780 = vmatmul.msk.f32.gmra.mxu3 %vm312_vm0, %v3925_v40  ;;  %v4476_v40 = vld [vmem:[%s5961_s25 + $0x15a] sm:$0xff] }
 0x3bf   : > { %v5076_v46 = vmax.f32 %v5010_v39, 0.0  ;;  %v3841_v27 = vadd.f32 %v3679_v16, %v3291_v53  ;;  %v3928_v53 = vld [vmem:[%s5961_s25 + $0x169] sm:$0xff] }
 0x3c0   : > { %v3132_v17 = vpop.f32.mrf.mxu1 }
 0x3c1   : > { %5143 = vst.msk [vmem:[%s7406_s22 + $0x88] sm:$0xff] %vm5125_vm1, %v5076_v46  ;;  %v4391_v57 = vadd.f32 %v4229_v38, %v3841_v27  ;;  %v4235_v54 = vpop.f32.mrf.mxu3  ;;  %v3292_v21 = vadd.f32 %v3132_v17, %v6801_v51 }
 0x3c3   : > { %v4941_v5 = vadd.f32 %v4779_v48, %v4391_v57  ;;  %5639 = vmatmul.msk.f32.gmra.mxu1 %vm312_vm0, %v4471_v13  ;;  %5709 = vmatmul.msk.f32.gmra.mxu2 %vm312_vm0, %v3374_v6  ;;  %v4782_v42 = vpop.f32.mrf.mxu0  ;;  %v3375_v13 = vld [vmem:[%s5961_s25 + $0x150] sm:$0xff] }
 0x3c5   : > { %v5011_v37 = vadd.f32 %v7394_v31, %v4941_v5 }
 0x3c6   : > { %v3682_v30 = vpop.f32.mrf.mxu2  ;;  %5849 = vmatmul.msk.f32.gmra.mxu0 %vm312_vm0, %v4474_v1  ;;  %5781 = vmatmul.msk.f32.gmra.mxu3 %vm312_vm0, %v3926_v15  ;;  %v3929_v15 = vld [vmem:[%s5961_s25 + $0x171] sm:$0xff] }
 0x3c7   : > { %v5077_v44 = vmax.f32 %v5011_v37, 0.0  ;;  %v3842_v62 = vadd.f32 %v3682_v30, %v3292_v21 }
 0x3c8   : > { %v3135_v38 = vpop.f32.mrf.mxu1 }
 0x3c9   : > { %5144 = vst.msk [vmem:[%s7406_s22 + $0x90] sm:$0xff] %vm5125_vm1, %v5077_v44  ;;  %v4392_v25 = vadd.f32 %v4232_v3, %v3842_v62  ;;  %v4238_v26 = vpop.f32.mrf.mxu3  ;;  %v3293_v18 = vadd.f32 %v3135_v38, %v6815_v33 }
 0x3cb   : > { %v4942_v51 = vadd.f32 %v4782_v42, %v4392_v25  ;;  %5640 = vmatmul.msk.f32.gmra.mxu1 %vm312_vm0, %v4472_v36  ;;  %5710 = vmatmul.msk.f32.gmra.mxu2 %vm312_vm0, %v3375_v13  ;;  %v4785_v29 = vpop.f32.mrf.mxu0  ;;  %v3376_v36 = vld [vmem:[%s5961_s25 + $0x158] sm:$0xff]  ;;  %v4477_v42 = vld [vmem:[%s5961_s25 + $0x162] sm:$0xff] }
 0x3cd   : > { %v5012_v14 = vadd.f32 %v7394_v31, %v4942_v51  ;;  %v4478_v51 = vld [vmem:[%s5961_s25 + $0x16a] sm:$0xff] }
 0x3ce   : > { %v3685_v9 = vpop.f32.mrf.mxu2  ;;  %5850 = vmatmul.msk.f32.gmra.mxu0 %vm312_vm0, %v4475_v60  ;;  %5782 = vmatmul.msk.f32.gmra.mxu3 %vm312_vm0, %v3927_v41 }
 0x3cf   : > { %v5078_v19 = vmax.f32 %v5012_v14, 0.0  ;;  %v3843_v2 = vadd.f32 %v3685_v9, %v3293_v18 }
 0x3d0   : > { %v3138_v20 = vpop.f32.mrf.mxu1 }
 0x3d1   : > { %5145 = vst.msk [vmem:[%s7406_s22 + $0x98] sm:$0xff] %vm5125_vm1, %v5078_v19  ;;  %v4393_v3 = vadd.f32 %v4235_v54, %v3843_v2  ;;  %v4241_v58 = vpop.f32.mrf.mxu3  ;;  %v3294_v39 = vadd.f32 %v3138_v20, %v6829_v56 }
 0x3d3   : > { %v4943_v33 = vadd.f32 %v4785_v29, %v4393_v3  ;;  %5641 = vmatmul.msk.f32.gmra.mxu1 %vm312_vm0, %v4473_v24  ;;  %5711 = vmatmul.msk.f32.gmra.mxu2 %vm312_vm0, %v3376_v36  ;;  %v4788_v48 = vpop.f32.mrf.mxu0  ;;  %v3377_v24 = vld [vmem:[%s5961_s25 + $0x160] sm:$0xff] }
 0x3d4   : > { %v3930_v29 = vld [vmem:[%s5961_s25 + $0x179] sm:$0xff] }
 0x3d5   : > { %v5013_v16 = vadd.f32 %v7394_v31, %v4943_v33  ;;  %v3931_v33 = vld [vmem:[%s5961_s25 + $0x181] sm:$0xff] }
 0x3d6   : > { %v3688_v46 = vpop.f32.mrf.mxu2  ;;  %5851 = vmatmul.msk.f32.gmra.mxu0 %vm312_vm0, %v4476_v40  ;;  %5783 = vmatmul.msk.f32.gmra.mxu3 %vm312_vm0, %v3928_v53 }
 0x3d7   : > { %v5079_v27 = vmax.f32 %v5013_v16, 0.0  ;;  %v3844_v17 = vadd.f32 %v3688_v46, %v3294_v39 }
 0x3d8   : > { %v3141_v6 = vpop.f32.mrf.mxu1 }
 0x3d9   : > { %5146 = vst.msk [vmem:[%s7406_s22 + $0xa0] sm:$0xff] %vm5125_vm1, %v5079_v27  ;;  %v4394_v57 = vadd.f32 %v4238_v26, %v3844_v17  ;;  %v4244_v54 = vpop.f32.mrf.mxu3  ;;  %v3295_v21 = vadd.f32 %v3141_v6, %v6843_v28 }
 0x3db   : > { %v4944_v56 = vadd.f32 %v4788_v48, %v4394_v57  ;;  %5642 = vmatmul.msk.f32.gmra.mxu1 %vm312_vm0, %v4474_v1  ;;  %5712 = vmatmul.msk.f32.gmra.mxu2 %vm312_vm0, %v3377_v24  ;;  %v4791_v5 = vpop.f32.mrf.mxu0  ;;  %v3378_v1 = vld [vmem:[%s5961_s25 + $0x168] sm:$0xff]  ;;  %v4480_v57 = vld [vmem:[%s5961_s25 + $0x17a] sm:$0xff] }
 0x3dd   : > { %v5014_v37 = vadd.f32 %v7394_v31, %v4944_v56 }
 0x3de   : > { %v3691_v30 = vpop.f32.mrf.mxu2  ;;  %5852 = vmatmul.msk.f32.gmra.mxu0 %vm312_vm0, %v4477_v42  ;;  %5784 = vmatmul.msk.f32.gmra.mxu3 %vm312_vm0, %v3929_v15 }
 0x3df   : > { %v5080_v44 = vmax.f32 %v5014_v37, 0.0  ;;  %v3845_v62 = vadd.f32 %v3691_v30, %v3295_v21 }
 0x3e0   : > { %v3144_v38 = vpop.f32.mrf.mxu1 }
 0x3e1   : > { %5147 = vst.msk [vmem:[%s7406_s22 + $0xa8] sm:$0xff] %vm5125_vm1, %v5080_v44  ;;  %v4395_v13 = vadd.f32 %v4241_v58, %v3845_v62  ;;  %v4247_v25 = vpop.f32.mrf.mxu3  ;;  %v3296_v41 = vadd.f32 %v3144_v38, %v6857_v8  ;;  %v4479_v58 = vld [vmem:[%s5961_s25 + $0x172] sm:$0xff] }
 0x3e3   : > { %v4945_v28 = vadd.f32 %v4791_v5, %v4395_v13  ;;  %5643 = vmatmul.msk.f32.gmra.mxu1 %vm312_vm0, %v4475_v60  ;;  %5713 = vmatmul.msk.f32.gmra.mxu2 %vm312_vm0, %v3378_v1  ;;  %v4794_v26 = vpop.f32.mrf.mxu0  ;;  %v3379_v60 = vld [vmem:[%s5961_s25 + $0x170] sm:$0xff]  ;;  %v4481_v1 = vld [vmem:[%s5961_s25 + $0x182] sm:$0xff] }
 0x3e4   : > { %v3933_v13 = vld [vmem:[%s5961_s25 + $0x191] sm:$0xff] }
 0x3e5   : > { %v5015_v18 = vadd.f32 %v7394_v31, %v4945_v28 }
 0x3e6   : > { %v3694_v14 = vpop.f32.mrf.mxu2  ;;  %5853 = vmatmul.msk.f32.gmra.mxu0 %vm312_vm0, %v4478_v51  ;;  %5785 = vmatmul.msk.f32.gmra.mxu3 %vm312_vm0, %v3930_v29 }
 0x3e7   : > { %v5081_v9 = vmax.f32 %v5015_v18, 0.0  ;;  %v3846_v19 = vadd.f32 %v3694_v14, %v3296_v41 }
 0x3e8   : > { %v3147_v2 = vpop.f32.mrf.mxu1 }
 0x3e9   : > { %5148 = vst.msk [vmem:[%s7406_s22 + $0xb0] sm:$0xff] %vm5125_vm1, %v5081_v9  ;;  %v4396_v20 = vadd.f32 %v4244_v54, %v3846_v19  ;;  %v4250_v36 = vpop.f32.mrf.mxu3  ;;  %v3297_v48 = vadd.f32 %v3147_v2, %v6871_v47  ;;  %v3932_v54 = vld [vmem:[%s5961_s25 + $0x189] sm:$0xff] }
 0x3ea   : > { %v4482_v2 = vld [vmem:[%s5961_s25 + $0x18a] sm:$0xff] }
 0x3eb   : > { %v4946_v8 = vadd.f32 %v4794_v26, %v4396_v20  ;;  %5644 = vmatmul.msk.f32.gmra.mxu1 %vm312_vm0, %v4476_v40  ;;  %5714 = vmatmul.msk.f32.gmra.mxu2 %vm312_vm0, %v3379_v60  ;;  %v4797_v3 = vpop.f32.mrf.mxu0  ;;  %v3380_v40 = vld [vmem:[%s5961_s25 + $0x178] sm:$0xff] }
 0x3ec   : > { %v3934_v60 = vld [vmem:[%s5961_s25 + $0x199] sm:$0xff] }
 0x3ed   : > { %v5016_v53 = vadd.f32 %v7394_v31, %v4946_v8 }
 0x3ee   : > { %v3697_v39 = vpop.f32.mrf.mxu2  ;;  %5854 = vmatmul.msk.f32.gmra.mxu0 %vm312_vm0, %v4479_v58  ;;  %5786 = vmatmul.msk.f32.gmra.mxu3 %vm312_vm0, %v3931_v33 }
 0x3ef   : > { %v5082_v16 = vmax.f32 %v5016_v53, 0.0  ;;  %v3847_v46 = vadd.f32 %v3697_v39, %v3297_v48 }
 0x3f0   : > { %v3150_v27 = vpop.f32.mrf.mxu1 }
 0x3f1   : > { %5149 = vst.msk [vmem:[%s7406_s22 + $0xb8] sm:$0xff] %vm5125_vm1, %v5082_v16  ;;  %v4397_v17 = vadd.f32 %v4247_v25, %v3847_v46  ;;  %v4253_v6 = vpop.f32.mrf.mxu3  ;;  %v3298_v56 = vadd.f32 %v3150_v27, %v6885_v34  ;;  %v4483_v46 = vld [vmem:[%s5961_s25 + $0x192] sm:$0xff]  ;;  %v3935_v27 = vld [vmem:[%s5961_s25 + $0x1a1] sm:$0xff] }
 0x3f3   : > { %v4947_v47 = vadd.f32 %v4797_v3, %v4397_v17  ;;  %5645 = vmatmul.msk.f32.gmra.mxu1 %vm312_vm0, %v4477_v42  ;;  %5715 = vmatmul.msk.f32.gmra.mxu2 %vm312_vm0, %v3380_v40  ;;  %v4800_v24 = vpop.f32.mrf.mxu0  ;;  %v3381_v42 = vld [vmem:[%s5961_s25 + $0x180] sm:$0xff] }
 0x3f5   : > { %v5017_v5 = vadd.f32 %v7394_v31, %v4947_v47 }
 0x3f6   : > { %v3700_v15 = vpop.f32.mrf.mxu2  ;;  %5855 = vmatmul.msk.f32.gmra.mxu0 %vm312_vm0, %v4480_v57  ;;  %5787 = vmatmul.msk.f32.gmra.mxu3 %vm312_vm0, %v3932_v54 }
 0x3f7   : > { %v5083_v21 = vmax.f32 %v5017_v5, 0.0  ;;  %v3848_v37 = vadd.f32 %v3700_v15, %v3298_v56 }
 0x3f8   : > { %v3153_v30 = vpop.f32.mrf.mxu1 }
 0x3f9   : > { %5150 = vst.msk [vmem:[%s7406_s22 + $0xc0] sm:$0xff] %vm5125_vm1, %v5083_v21  ;;  %v4398_v44 = vadd.f32 %v4250_v36, %v3848_v37  ;;  %v4256_v62 = vpop.f32.mrf.mxu3  ;;  %v3299_v25 = vadd.f32 %v3153_v30, %v6899_v59  ;;  %v3936_v21 = vld [vmem:[%s5961_s25 + $0x1a9] sm:$0xff]  ;;  %v7718_v30 = vld [vmem:[%s8013_s2] ss:$0 sm:$0xff] }
 0x3fb   : > { %v4948_v34 = vadd.f32 %v4800_v24, %v4398_v44  ;;  %5646 = vmatmul.msk.f32.gmra.mxu1 %vm312_vm0, %v4478_v51  ;;  %5716 = vmatmul.msk.f32.gmra.mxu2 %vm312_vm0, %v3381_v42  ;;  %v4803_v38 = vpop.f32.mrf.mxu0  ;;  %v3382_v51 = vld [vmem:[%s5961_s25 + $0x188] sm:$0xff] }
 0x3fd   : > { %v5018_v28 = vadd.f32 %v7394_v31, %v4948_v34 }
 0x3fe   : > { %v3703_v26 = vpop.f32.mrf.mxu2  ;;  %5856 = vmatmul.msk.f32.gmra.mxu0 %vm312_vm0, %v4481_v1  ;;  %5788 = vmatmul.msk.f32.gmra.mxu3 %vm312_vm0, %v3933_v13 }
 0x3ff   : > { %v5084_v29 = vmax.f32 %v5018_v28, 0.0  ;;  %v3849_v41 = vadd.f32 %v3703_v26, %v3299_v25  ;;  %v4485_v26 = vld [vmem:[%s5961_s25 + $0x1a2] sm:$0xff] }
 0x400   : > { %v3156_v18 = vpop.f32.mrf.mxu1 }
 0x401   : > { %5151 = vst.msk [vmem:[%s7406_s22 + $0xc8] sm:$0xff] %vm5125_vm1, %v5084_v29  ;;  %v4399_v14 = vadd.f32 %v4253_v6, %v3849_v41  ;;  %v4259_v9 = vpop.f32.mrf.mxu3  ;;  %v3300_v20 = vadd.f32 %v3156_v18, %v6913_v10  ;;  %v3937_v29 = vld [vmem:[%s5961_s25 + $0x1b1] sm:$0xff] }
 0x403   : > { %v4949_v59 = vadd.f32 %v4803_v38, %v4399_v14  ;;  %5647 = vmatmul.msk.f32.gmra.mxu1 %vm312_vm0, %v4479_v58  ;;  %5717 = vmatmul.msk.f32.gmra.mxu2 %vm312_vm0, %v3382_v51  ;;  %v4806_v19 = vpop.f32.mrf.mxu0  ;;  %v3383_v58 = vld [vmem:[%s5961_s25 + $0x190] sm:$0xff] }
 0x405   : > { %v5019_v36 = vadd.f32 %v7394_v31, %v4949_v59 }
 0x406   : > { %v3706_v8 = vpop.f32.mrf.mxu2  ;;  %5857 = vmatmul.msk.f32.gmra.mxu0 %vm312_vm0, %v4482_v2  ;;  %5789 = vmatmul.msk.f32.gmra.mxu3 %vm312_vm0, %v3934_v60 }
 0x407   : > { %v5085_v3 = vmax.f32 %v5019_v36, 0.0  ;;  %v3850_v33 = vadd.f32 %v3706_v8, %v3300_v20  ;;  %v4486_v36 = vld [vmem:[%s5961_s25 + $0x1aa] sm:$0xff]  ;;  %v3938_v8 = vld [vmem:[%s5961_s25 + $0x1b9] sm:$0xff] }
 0x408   : > { %v3159_v48 = vpop.f32.mrf.mxu1 }
 0x409   : > { %5152 = vst.msk [vmem:[%s7406_s22 + $0xd0] sm:$0xff] %vm5125_vm1, %v5085_v3  ;;  %v4400_v53 = vadd.f32 %v4256_v62, %v3850_v33  ;;  %v4262_v39 = vpop.f32.mrf.mxu3  ;;  %v3301_v40 = vadd.f32 %v3159_v48, %v6927_v4 }
 0x40b   : > { %v4950_v10 = vadd.f32 %v4806_v19, %v4400_v53  ;;  %5648 = vmatmul.msk.f32.gmra.mxu1 %vm312_vm0, %v4480_v57  ;;  %5718 = vmatmul.msk.f32.gmra.mxu2 %vm312_vm0, %v3383_v58  ;;  %v4809_v16 = vpop.f32.mrf.mxu0  ;;  %v3384_v57 = vld [vmem:[%s5961_s25 + $0x198] sm:$0xff]  ;;  %v3386_v19 = vld [vmem:[%s5961_s25 + $0x1a8] sm:$0xff] }
 0x40d   : > { %v5020_v17 = vadd.f32 %v7394_v31, %v4950_v10  ;;  %v4484_v31 = vld [vmem:[%s5961_s25 + $0x19a] sm:$0xff]  ;;  %v3387_v10 = vld [vmem:[%s5961_s25 + $0x1b0] sm:$0xff] }
 0x40e   : > { %v3709_v6 = vpop.f32.mrf.mxu2  ;;  %5858 = vmatmul.msk.f32.gmra.mxu0 %vm312_vm0, %v4483_v46  ;;  %5790 = vmatmul.msk.f32.gmra.mxu3 %vm312_vm0, %v3935_v27 }
 0x40f   : > { %v5086_v47 = vmax.f32 %v5020_v17, 0.0  ;;  %v3851_v24 = vadd.f32 %v3709_v6, %v3301_v40  ;;  %v4487_v40 = vld [vmem:[%s5961_s25 + $0x1b2] sm:$0xff]  ;;  %v3939_v17 = vld [vmem:[%s5961_s25 + $0x1c1] sm:$0xff] }
 0x410   : > { %v3162_v54 = vpop.f32.mrf.mxu1 }
 0x411   : > { %5153 = vst.msk [vmem:[%s7406_s22 + $0xd8] sm:$0xff] %vm5125_vm1, %v5086_v47  ;;  %v4401_v56 = vadd.f32 %v4259_v9, %v3851_v24  ;;  %v4265_v5 = vpop.f32.mrf.mxu3  ;;  %v3302_v37 = vadd.f32 %v3162_v54, %v6947_v55 }
 0x413   : > { %v4951_v15 = vadd.f32 %v4809_v16, %v4401_v56  ;;  %5649 = vmatmul.msk.f32.gmra.mxu1 %vm312_vm0, %v4481_v1  ;;  %5719 = vmatmul.msk.f32.gmra.mxu2 %vm312_vm0, %v3384_v57  ;;  %v4812_v4 = vpop.f32.mrf.mxu0  ;;  %v3385_v1 = vld [vmem:[%s5961_s25 + $0x1a0] sm:$0xff] }
 0x415   : > { %v5021_v42 = vadd.f32 %v7718_v30, %v4951_v15 }
 0x416   : > { %v3712_v44 = vpop.f32.mrf.mxu2  ;;  %5859 = vmatmul.msk.f32.gmra.mxu0 %vm312_vm0, %v4484_v31  ;;  %5791 = vmatmul.msk.f32.gmra.mxu3 %vm312_vm0, %v3936_v21  ;;  %v4488_v21 = vld [vmem:[%s5961_s25 + $0x1ba] sm:$0xff] }
 0x417   : > { %v5087_v62 = vmax.f32 %v5021_v42, 0.0  ;;  %v3852_v34 = vadd.f32 %v3712_v44, %v3302_v37  ;;  %v3940_v37 = vld [vmem:[%s5961_s25 + $0x1c9] sm:$0xff] }
 0x418   : > { %v3165_v38 = vpop.f32.mrf.mxu1 }
 0x419   : > { %5154 = vst.msk [vmem:[%s7406_s22 + $0xe0] sm:$0xff] %vm5125_vm1, %v5087_v62  ;;  %v4402_v55 = vadd.f32 %v4262_v39, %v3852_v34  ;;  %v4268_v13 = vpop.f32.mrf.mxu3  ;;  %v3303_v41 = vadd.f32 %v3165_v38, %v6967_v45 }
 0x41b   : > { %v4952_v25 = vadd.f32 %v4812_v4, %v4402_v55  ;;  %5650 = vmatmul.msk.f32.gmra.mxu1 %vm312_vm0, %v4482_v2  ;;  %5720 = vmatmul.msk.f32.gmra.mxu2 %vm312_vm0, %v3385_v1  ;;  %v4815_v28 = vpop.f32.mrf.mxu0  ;;  %v3389_v55 = vld [vmem:[%s5961_s25 + $0x1c0] sm:$0xff] }
 0x41d   : > { %v5022_v18 = vadd.f32 %v7718_v30, %v4952_v25 }
 0x41e   : > { %v3715_v51 = vpop.f32.mrf.mxu2  ;;  %5860 = vmatmul.msk.f32.gmra.mxu0 %vm312_vm0, %v4485_v26  ;;  %5792 = vmatmul.msk.f32.gmra.mxu3 %vm312_vm0, %v3937_v29  ;;  %v3941_v29 = vld [vmem:[%s5961_s25 + $0x1d1] sm:$0xff] }
 0x41f   : > { %v5088_v14 = vmax.f32 %v5022_v18, 0.0  ;;  %v3853_v9 = vadd.f32 %v3715_v51, %v3303_v41 }
 0x420   : > { %v3168_v59 = vpop.f32.mrf.mxu1 }
 0x421   : > { %5155 = vst.msk [vmem:[%s7406_s22 + $0xe8] sm:$0xff] %vm5125_vm1, %v5088_v14  ;;  %v4403_v2 = vadd.f32 %v4265_v5, %v3853_v9  ;;  %v4271_v60 = vpop.f32.mrf.mxu3  ;;  %v3304_v3 = vadd.f32 %v3168_v59, %v6981_v63  ;;  %v3388_v5 = vld [vmem:[%s5961_s25 + $0x1b8] sm:$0xff] }
 0x423   : > { %v4953_v45 = vadd.f32 %v4815_v28, %v4403_v2  ;;  %5651 = vmatmul.msk.f32.gmra.mxu1 %vm312_vm0, %v4483_v46  ;;  %5721 = vmatmul.msk.f32.gmra.mxu2 %vm312_vm0, %v3386_v19  ;;  %v4818_v20 = vpop.f32.mrf.mxu0  ;;  %v3390_v19 = vld [vmem:[%s5961_s25 + $0x1c8] sm:$0xff] }
 0x425   : > { %v5023_v33 = vadd.f32 %v7718_v30, %v4953_v45 }
 0x426   : > { %v3718_v48 = vpop.f32.mrf.mxu2  ;;  %5861 = vmatmul.msk.f32.gmra.mxu0 %vm312_vm0, %v4486_v36  ;;  %5793 = vmatmul.msk.f32.gmra.mxu3 %vm312_vm0, %v3938_v8 }
 0x427   : > { %v5089_v58 = vmax.f32 %v5023_v33, 0.0  ;;  %v3854_v53 = vadd.f32 %v3718_v48, %v3304_v3 }
 0x428   : > { %v3171_v39 = vpop.f32.mrf.mxu1 }
 0x429   : > { %5156 = vst.msk [vmem:[%s7406_s22 + $0xf0] sm:$0xff] %vm5125_vm1, %v5089_v58  ;;  %v4404_v16 = vadd.f32 %v4268_v13, %v3854_v53  ;;  %v4274_v46 = vpop.f32.mrf.mxu3  ;;  %v3305_v6 = vadd.f32 %v3171_v39, %v6995_v43  ;;  %v3391_v39 = vld [vmem:[%s5961_s25 + $0x1d0] sm:$0xff] }
 0x42b   : > { %v4954_v63 = vadd.f32 %v4818_v20, %v4404_v16  ;;  %5652 = vmatmul.msk.f32.gmra.mxu1 %vm312_vm0, %v4484_v31  ;;  %5722 = vmatmul.msk.f32.gmra.mxu2 %vm312_vm0, %v3387_v10  ;;  %v4821_v27 = vpop.f32.mrf.mxu0  ;;  %v4490_v20 = vld [vmem:[%s5961_s25 + $0x1ca] sm:$0xff] }
 0x42d   : > { %v5024_v47 = vadd.f32 %v7718_v30, %v4954_v63  ;;  %v4491_v63 = vld [vmem:[%s5961_s25 + $0x1d2] sm:$0xff] }
 0x42e   : > { %v3721_v24 = vpop.f32.mrf.mxu2  ;;  %5862 = vmatmul.msk.f32.gmra.mxu0 %vm312_vm0, %v4487_v40  ;;  %5794 = vmatmul.msk.f32.gmra.mxu3 %vm312_vm0, %v3939_v17 }
 0x42f   : > { %v5090_v54 = vmax.f32 %v5024_v47, 0.0  ;;  %v3855_v57 = vadd.f32 %v3721_v24, %v3305_v6 }
 0x430   : > { %v3174_v56 = vpop.f32.mrf.mxu1 }
 0x431   : > { %5157 = vst.msk [vmem:[%s7406_s22 + $0xf8] sm:$0xff] %vm5125_vm1, %v5090_v54  ;;  %v4405_v15 = vadd.f32 %v4271_v60, %v3855_v57  ;;  %v4277_v4 = vpop.f32.mrf.mxu3  ;;  %v3306_v42 = vadd.f32 %v3174_v56, %v7009_v22  ;;  %v3392_v57 = vld [vmem:[%s5961_s25 + $0x1d8] sm:$0xff] }
 0x433   : > { %v4955_v43 = vadd.f32 %v4821_v27, %v4405_v15  ;;  %5653 = vmatmul.msk.f32.gmra.mxu1 %vm312_vm0, %v4485_v26  ;;  %5723 = vmatmul.msk.f32.gmra.mxu2 %vm312_vm0, %v3388_v5  ;;  %v4824_v31 = vpop.f32.mrf.mxu0  ;;  %v4489_v26 = vld [vmem:[%s5961_s25 + $0x1c2] sm:$0xff] }
 0x434   : > { %v3943_v27 = vld [vmem:[%s5961_s25 + $0x1e1] sm:$0xff] }
 0x435   : > { %v5025_v44 = vadd.f32 %v7718_v30, %v4955_v43  ;;  %v3944_v43 = vld [vmem:[%s5961_s25 + $0x1e9] sm:$0xff] }
 0x436   : > { %v3724_v62 = vpop.f32.mrf.mxu2  ;;  %5863 = vmatmul.msk.f32.gmra.mxu0 %vm312_vm0, %v4488_v21  ;;  %5795 = vmatmul.msk.f32.gmra.mxu3 %vm312_vm0, %v3940_v37 }
 0x437   : > { %v5091_v34 = vmax.f32 %v5025_v44, 0.0  ;;  %v3856_v38 = vadd.f32 %v3724_v62, %v3306_v42 }
 0x438   : > { %v3177_v1 = vpop.f32.mrf.mxu1 }
 0x439   : > { %5158 = vst.msk [vmem:[%s7406_s22 + $0x100] sm:$0xff] %vm5125_vm1, %v5091_v34  ;;  %v4406_v13 = vadd.f32 %v4274_v46, %v3856_v38  ;;  %v4280_v25 = vpop.f32.mrf.mxu3  ;;  %v3307_v41 = vadd.f32 %v3177_v1, %v7023_v32  ;;  %v3393_v34 = vld [vmem:[%s5961_s25 + $0x1e0] sm:$0xff] }
 0x43b   : > { %v4956_v22 = vadd.f32 %v4824_v31, %v4406_v13  ;;  %5654 = vmatmul.msk.f32.gmra.mxu1 %vm312_vm0, %v4486_v36  ;;  %5724 = vmatmul.msk.f32.gmra.mxu2 %vm312_vm0, %v3389_v55  ;;  %v4827_v28 = vpop.f32.mrf.mxu0  ;;  %v3942_v36 = vld [vmem:[%s5961_s25 + $0x1d9] sm:$0xff]  ;;  %v4493_v13 = vld [vmem:[%s5961_s25 + $0x1e2] sm:$0xff] }
 0x43d   : > { %v5026_v18 = vadd.f32 %v7718_v30, %v4956_v22 }
 0x43e   : > { %v3727_v51 = vpop.f32.mrf.mxu2  ;;  %5864 = vmatmul.msk.f32.gmra.mxu0 %vm312_vm0, %v4489_v26  ;;  %5796 = vmatmul.msk.f32.gmra.mxu3 %vm312_vm0, %v3941_v29 }
 0x43f   : > { %v5092_v14 = vmax.f32 %v5026_v18, 0.0  ;;  %v3857_v9 = vadd.f32 %v3727_v51, %v3307_v41  ;;  %v3394_v51 = vld [vmem:[%s5961_s25 + $0x1e8] sm:$0xff] }
 0x440   : > { %v3180_v59 = vpop.f32.mrf.mxu1 }
 0x441   : > { %5159 = vst.msk [vmem:[%s7406_s22 + $0x108] sm:$0xff] %vm5125_vm1, %v5092_v14  ;;  %v4407_v2 = vadd.f32 %v4277_v4, %v3857_v9  ;;  %v4283_v60 = vpop.f32.mrf.mxu3  ;;  %v3308_v8 = vadd.f32 %v3180_v59, %v7037_v49  ;;  %v4492_v4 = vld [vmem:[%s5961_s25 + $0x1da] sm:$0xff] }
 0x443   : > { %v4957_v32 = vadd.f32 %v4827_v28, %v4407_v2  ;;  %5655 = vmatmul.msk.f32.gmra.mxu1 %vm312_vm0, %v4487_v40  ;;  %5725 = vmatmul.msk.f32.gmra.mxu2 %vm312_vm0, %v3390_v19  ;;  %v4830_v45 = vpop.f32.mrf.mxu0  ;;  %v4494_v19 = vld [vmem:[%s5961_s25 + $0x1ea] sm:$0xff]  ;;  %v3946_v2 = vld [vmem:[%s5961_s25 + $0x1f9] sm:$0xff] }
 0x445   : > { %v5027_v3 = vadd.f32 %v7718_v30, %v4957_v32 }
 0x446   : > { %v3730_v33 = vpop.f32.mrf.mxu2  ;;  %5865 = vmatmul.msk.f32.gmra.mxu0 %vm312_vm0, %v4490_v20  ;;  %5797 = vmatmul.msk.f32.gmra.mxu3 %vm312_vm0, %v3942_v36 }
 0x447   : > { %v5093_v48 = vmax.f32 %v5027_v3, 0.0  ;;  %v3858_v58 = vadd.f32 %v3730_v33, %v3308_v8  ;;  %v3395_v3 = vld [vmem:[%s5961_s25 + $0x1f0] sm:$0xff] }
 0x448   : > { %v3183_v53 = vpop.f32.mrf.mxu1 }
 0x449   : > { %5160 = vst.msk [vmem:[%s7406_s22 + $0x110] sm:$0xff] %vm5125_vm1, %v5093_v48  ;;  %v4408_v10 = vadd.f32 %v4280_v25, %v3858_v58  ;;  %v4286_v16 = vpop.f32.mrf.mxu3  ;;  %v3309_v40 = vadd.f32 %v3183_v53, %v7051_v35  ;;  %v3945_v25 = vld [vmem:[%s5961_s25 + $0x1f1] sm:$0xff] }
 0x44a   : > { %v4495_v53 = vld [vmem:[%s5961_s25 + $0x1f2] sm:$0xff] }
 0x44b   : > { %v4958_v49 = vadd.f32 %v4830_v45, %v4408_v10  ;;  %5656 = vmatmul.msk.f32.gmra.mxu1 %vm312_vm0, %v4488_v21  ;;  %5726 = vmatmul.msk.f32.gmra.mxu2 %vm312_vm0, %v3391_v39  ;;  %v4833_v46 = vpop.f32.mrf.mxu0  ;;  %v3947_v39 = vld [vmem:[%s5961_s25 + $0x201] sm:$0xff] }
 0x44d   : > { %v5028_v17 = vadd.f32 %v7718_v30, %v4958_v49 }
 0x44e   : > { %v3733_v6 = vpop.f32.mrf.mxu2  ;;  %5866 = vmatmul.msk.f32.gmra.mxu0 %vm312_vm0, %v4491_v63  ;;  %5798 = vmatmul.msk.f32.gmra.mxu3 %vm312_vm0, %v3943_v27 }
 0x44f   : > { %v5094_v47 = vmax.f32 %v5028_v17, 0.0  ;;  %v3859_v24 = vadd.f32 %v3733_v6, %v3309_v40  ;;  %v3396_v40 = vld [vmem:[%s5961_s25 + $0x1f8] sm:$0xff] }
 0x450   : > { %v3186_v54 = vpop.f32.mrf.mxu1 }
 0x451   : > { %5161 = vst.msk [vmem:[%s7406_s22 + $0x118] sm:$0xff] %vm5125_vm1, %v5094_v47  ;;  %v4409_v56 = vadd.f32 %v4283_v60, %v3859_v24  ;;  %v4289_v5 = vpop.f32.mrf.mxu3  ;;  %v3310_v31 = vadd.f32 %v3186_v54, %v7065_v11  ;;  %v4496_v24 = vld [vmem:[%s5961_s25 + $0x1fa] sm:$0xff]  ;;  %v3948_v54 = vld [vmem:[%s5961_s25 + $0x209] sm:$0xff] }
 0x453   : > { %v4959_v35 = vadd.f32 %v4833_v46, %v4409_v56  ;;  %5657 = vmatmul.msk.f32.gmra.mxu1 %vm312_vm0, %v4489_v26  ;;  %5727 = vmatmul.msk.f32.gmra.mxu2 %vm312_vm0, %v3392_v57  ;;  %v4836_v15 = vpop.f32.mrf.mxu0 }
 0x455   : > { %v5029_v21 = vadd.f32 %v7718_v30, %v4959_v35 }
 0x456   : > { %v3736_v37 = vpop.f32.mrf.mxu2  ;;  %5867 = vmatmul.msk.f32.gmra.mxu0 %vm312_vm0, %v4492_v4  ;;  %5799 = vmatmul.msk.f32.gmra.mxu3 %vm312_vm0, %v3944_v43  ;;  %v3397_v43 = vld [vmem:[%s5961_s25 + $0x200] sm:$0xff] }
 0x457   : > { %v5095_v42 = vmax.f32 %v5029_v21, 0.0  ;;  %v3860_v44 = vadd.f32 %v3736_v37, %v3310_v31 }
 0x458   : > { %v3189_v62 = vpop.f32.mrf.mxu1 }
 0x459   : > { %5162 = vst.msk [vmem:[%s7406_s22 + $0x120] sm:$0xff] %vm5125_vm1, %v5095_v42  ;;  %v4410_v38 = vadd.f32 %v4286_v16, %v3860_v44  ;;  %v4292_v1 = vpop.f32.mrf.mxu3  ;;  %v3311_v22 = vadd.f32 %v3189_v62, %v7079_v7  ;;  %v4497_v42 = vld [vmem:[%s5961_s25 + $0x202] sm:$0xff]  ;;  %v3949_v44 = vld [vmem:[%s5961_s25 + $0x211] sm:$0xff] }
 0x45b   : > { %v4960_v11 = vadd.f32 %v4836_v15, %v4410_v38  ;;  %5658 = vmatmul.msk.f32.gmra.mxu1 %vm312_vm0, %v4490_v20  ;;  %5728 = vmatmul.msk.f32.gmra.mxu2 %vm312_vm0, %v3393_v34  ;;  %v4839_v55 = vpop.f32.mrf.mxu0 }
 0x45d   : > { %v5030_v28 = vadd.f32 %v7718_v30, %v4960_v11 }
 0x45e   : > { %v3739_v26 = vpop.f32.mrf.mxu2  ;;  %5868 = vmatmul.msk.f32.gmra.mxu0 %vm312_vm0, %v4493_v13  ;;  %5800 = vmatmul.msk.f32.gmra.mxu3 %vm312_vm0, %v3945_v25 }
 0x45f   : > { %v5096_v29 = vmax.f32 %v5030_v28, 0.0  ;;  %v3861_v41 = vadd.f32 %v3739_v26, %v3311_v22  ;;  %v4498_v26 = vld [vmem:[%s5961_s25 + $0x20a] sm:$0xff] }
 0x460   : > { %v3192_v18 = vpop.f32.mrf.mxu1 }
 0x461   : > { %5163 = vst.msk [vmem:[%s7406_s22 + $0x128] sm:$0xff] %vm5125_vm1, %v5096_v29  ;;  %v4411_v14 = vadd.f32 %v4289_v5, %v3861_v41  ;;  %v4295_v9 = vpop.f32.mrf.mxu3  ;;  %v3312_v60 = vadd.f32 %v3192_v18, %v7093_v23  ;;  %v3950_v29 = vld [vmem:[%s5961_s25 + $0x219] sm:$0xff] }
 0x462   : > { %v8106_v41 = vld [vmem:[#allocation29_spill] sm:$0xff] }
 0x463   : > { %v4961_v7 = vadd.f32 %v4839_v55, %v4411_v14  ;;  %5659 = vmatmul.msk.f32.gmra.mxu1 %vm312_vm0, %v4491_v63  ;;  %5729 = vmatmul.msk.f32.gmra.mxu2 %vm312_vm0, %v3394_v51  ;;  %v4842_v59 = vpop.f32.mrf.mxu0 }
 0x465   : > { %v5031_v32 = vadd.f32 %v7718_v30, %v4961_v7 }
 0x466   : > { %v3742_v45 = vpop.f32.mrf.mxu2  ;;  %5869 = vmatmul.msk.f32.gmra.mxu0 %vm312_vm0, %v4494_v19  ;;  %5801 = vmatmul.msk.f32.gmra.mxu3 %vm312_vm0, %v3946_v2 }
 0x467   : > { %v5097_v20 = vmax.f32 %v5031_v32, 0.0  ;;  %v3862_v36 = vadd.f32 %v3742_v45, %v3312_v60 }
 0x468   : > { %v3195_v8 = vpop.f32.mrf.mxu1 }
 0x469   : > { %5164 = vst.msk [vmem:[%s7406_s22 + $0x130] sm:$0xff] %vm5125_vm1, %v5097_v20  ;;  %v4412_v33 = vadd.f32 %v4292_v1, %v3862_v36  ;;  %v4298_v48 = vpop.f32.mrf.mxu3  ;;  %v3313_v10 = vadd.f32 %v3195_v8, %v7107_v61  ;;  %v4499_v20 = vld [vmem:[%s5961_s25 + $0x212] sm:$0xff]  ;;  %v3951_v36 = vld [vmem:[%s5961_s25 + $0x221] sm:$0xff] }
 0x46b   : > { %v4962_v23 = vadd.f32 %v4842_v59, %v4412_v33  ;;  %5660 = vmatmul.msk.f32.gmra.mxu1 %vm312_vm0, %v4492_v4  ;;  %5730 = vmatmul.msk.f32.gmra.mxu2 %vm312_vm0, %v3395_v3  ;;  %v4845_v58 = vpop.f32.mrf.mxu0 }
 0x46d   : > { %v5032_v16 = vadd.f32 %v7718_v30, %v4962_v23 }
 0x46e   : > { %v3745_v49 = vpop.f32.mrf.mxu2  ;;  %5870 = vmatmul.msk.f32.gmra.mxu0 %vm312_vm0, %v4495_v53  ;;  %5802 = vmatmul.msk.f32.gmra.mxu3 %vm312_vm0, %v3947_v39 }
 0x46f   : > { %v5098_v46 = vmax.f32 %v5032_v16, 0.0  ;;  %v3863_v63 = vadd.f32 %v3745_v49, %v3313_v10  ;;  %v4500_v49 = vld [vmem:[%s5961_s25 + $0x21a] sm:$0xff] }
 0x470   : > { %v3198_v27 = vpop.f32.mrf.mxu1 }
 0x471   : > { %5165 = vst.msk [vmem:[%s7406_s22 + $0x138] sm:$0xff] %vm5125_vm1, %v5098_v46  ;;  %v4413_v17 = vadd.f32 %v4295_v9, %v3863_v63  ;;  %v4301_v6 = vpop.f32.mrf.mxu3  ;;  %v3314_v57 = vadd.f32 %v3198_v27, %v7121_v52  ;;  %v3952_v46 = vld [vmem:[%s5961_s25 + $0x229] sm:$0xff] }
 0x472   : > { %v8107_v63 = vld [vmem:[#allocation32_spill] sm:$0xff] }
 0x473   : > { %v4963_v61 = vadd.f32 %v4845_v58, %v4413_v17  ;;  %5661 = vmatmul.msk.f32.gmra.mxu1 %vm312_vm0, %v4493_v13  ;;  %5731 = vmatmul.msk.f32.gmra.mxu2 %vm312_vm0, %v3396_v40  ;;  %v4848_v47 = vpop.f32.mrf.mxu0  ;;  %v3398_v13 = vld [vmem:[%s5961_s25 + $0x208] sm:$0xff] }
 0x475   : > { %v5033_v56 = vadd.f32 %v7718_v30, %v4963_v61 }
 0x476   : > { %v3748_v5 = vpop.f32.mrf.mxu2  ;;  %5871 = vmatmul.msk.f32.gmra.mxu0 %vm312_vm0, %v4496_v24  ;;  %5803 = vmatmul.msk.f32.gmra.mxu3 %vm312_vm0, %v3948_v54 }
 0x477   : > { %v5099_v35 = vmax.f32 %v5033_v56, 0.0  ;;  %v3864_v15 = vadd.f32 %v3748_v5, %v3314_v57 }
 0x478   : > { %v3201_v4 = vpop.f32.mrf.mxu1 }
 0x479   : > { %5166 = vst.msk [vmem:[%s7406_s22 + $0x140] sm:$0xff] %vm5125_vm1, %v5099_v35  ;;  %v4414_v31 = vadd.f32 %v4298_v48, %v3864_v15  ;;  %v4304_v21 = vpop.f32.mrf.mxu3  ;;  %v3315_v62 = vadd.f32 %v3201_v4, %v7135_v12  ;;  %v4501_v35 = vld [vmem:[%s5961_s25 + $0x222] sm:$0xff]  ;;  %v3953_v15 = vld [vmem:[%s5961_s25 + $0x231] sm:$0xff] }
 0x47a   : > { %v8108_v4 = vld [vmem:[#allocation35_spill] sm:$0xff] }
 0x47b   : > { %v4964_v52 = vadd.f32 %v4848_v47, %v4414_v31  ;;  %5662 = vmatmul.msk.f32.gmra.mxu1 %vm312_vm0, %v4494_v19  ;;  %5732 = vmatmul.msk.f32.gmra.mxu2 %vm312_vm0, %v3397_v43  ;;  %v4851_v37 = vpop.f32.mrf.mxu0  ;;  %v3399_v19 = vld [vmem:[%s5961_s25 + $0x210] sm:$0xff] }
 0x47d   : > { %v5034_v34 = vadd.f32 %v7718_v30, %v4964_v52 }
 0x47e   : > { %v3751_v38 = vpop.f32.mrf.mxu2  ;;  %5872 = vmatmul.msk.f32.gmra.mxu0 %vm312_vm0, %v4497_v42  ;;  %5804 = vmatmul.msk.f32.gmra.mxu3 %vm312_vm0, %v3949_v44  ;;  %v3402_v44 = vld [vmem:[%s5961_s25 + $0x228] sm:$0xff] }
 0x47f   : > { %v5100_v1 = vmax.f32 %v5034_v34, 0.0  ;;  %v3865_v11 = vadd.f32 %v3751_v38, %v3315_v62 }
 0x480   : > { %v3204_v55 = vpop.f32.mrf.mxu1 }
 0x481   : > { %5167 = vst.msk [vmem:[%s7406_s22 + $0x148] sm:$0xff] %vm5125_vm1, %v5100_v1  ;;  %v4415_v25 = vadd.f32 %v4301_v6, %v3865_v11  ;;  %v4307_v22 = vpop.f32.mrf.mxu3  ;;  %v3316_v18 = vadd.f32 %v3204_v55, %v8106_v41  ;;  %v4502_v11 = vld [vmem:[%s5961_s25 + $0x22a] sm:$0xff]  ;;  %v3954_v55 = vld [vmem:[%s5961_s25 + $0x239] sm:$0xff] }
 0x482   : > { %v3403_v41 = vld [vmem:[%s5961_s25 + $0x230] sm:$0xff] }
 0x483   : > { %v4965_v12 = vadd.f32 %v4851_v37, %v4415_v25  ;;  %5663 = vmatmul.msk.f32.gmra.mxu1 %vm312_vm0, %v4495_v53  ;;  %5733 = vmatmul.msk.f32.gmra.mxu2 %vm312_vm0, %v3398_v13  ;;  %v4854_v28 = vpop.f32.mrf.mxu0  ;;  %v3400_v53 = vld [vmem:[%s5961_s25 + $0x218] sm:$0xff]  ;;  %v8109_v13 = vld [vmem:[#allocation2_spill] sm:$0xff] }
 0x485   : > { %v5035_v51 = vadd.f32 %v7718_v30, %v4965_v12 }
 0x486   : > { %v3754_v14 = vpop.f32.mrf.mxu2  ;;  %5873 = vmatmul.msk.f32.gmra.mxu0 %vm312_vm0, %v4498_v26  ;;  %5805 = vmatmul.msk.f32.gmra.mxu3 %vm312_vm0, %v3950_v29 }
 0x487   : > { %v5101_v9 = vmax.f32 %v5035_v51, 0.0  ;;  %v3866_v7 = vadd.f32 %v3754_v14, %v3316_v18 }
 0x488   : > { %v3207_v59 = vpop.f32.mrf.mxu1 }
 0x489   : > { %5168 = vst.msk [vmem:[%s7406_s22 + $0x150] sm:$0xff] %vm5125_vm1, %v5101_v9  ;;  %v4416_v2 = vadd.f32 %v4304_v21, %v3866_v7  ;;  %v4310_v60 = vpop.f32.mrf.mxu3  ;;  %v3317_v8 = vadd.f32 %v3207_v59, %v7163_v50  ;;  %v4503_v7 = vld [vmem:[%s5961_s25 + $0x232] sm:$0xff] }
 0x48a   : > { %v8110_v59 = vld [vmem:[#allocation4_spill] sm:$0xff] }
 0x48b   : > { %v4966_v32 = vadd.f32 %v4854_v28, %v4416_v2  ;;  %5664 = vmatmul.msk.f32.gmra.mxu1 %vm312_vm0, %v4496_v24  ;;  %5734 = vmatmul.msk.f32.gmra.mxu2 %vm312_vm0, %v3399_v19  ;;  %v4857_v45 = vpop.f32.mrf.mxu0  ;;  %v3401_v24 = vld [vmem:[%s5961_s25 + $0x220] sm:$0xff] }
 0x48d   : > { %v5036_v3 = vadd.f32 %v7718_v30, %v4966_v32 }
 0x48e   : > { %v3757_v33 = vpop.f32.mrf.mxu2  ;;  %5874 = vmatmul.msk.f32.gmra.mxu0 %vm312_vm0, %v4499_v20  ;;  %5806 = vmatmul.msk.f32.gmra.mxu3 %vm312_vm0, %v3951_v36  ;;  %v3404_v36 = vld [vmem:[%s5961_s25 + $0x238] sm:$0xff] }
 0x48f   : > { %v5102_v48 = vmax.f32 %v5036_v3, 0.0  ;;  %v3867_v23 = vadd.f32 %v3757_v33, %v3317_v8 }
 0x490   : > { %v3210_v58 = vpop.f32.mrf.mxu1 }
 0x491   : > { %5169 = vst.msk [vmem:[%s7406_s22 + $0x158] sm:$0xff] %vm5125_vm1, %v5102_v48  ;;  %v4417_v39 = vadd.f32 %v4307_v22, %v3867_v23  ;;  %v4313_v10 = vpop.f32.mrf.mxu3  ;;  %v3318_v27 = vadd.f32 %v3210_v58, %v8107_v63  ;;  %v4504_v23 = vld [vmem:[%s5961_s25 + $0x23a] sm:$0xff] }
 0x492   : > { %v8111_v58 = vld [vmem:[#allocation6_spill] sm:$0xff] }
 0x493   : > { %v4967_v50 = vadd.f32 %v4857_v45, %v4417_v39  ;;  %5665 = vmatmul.msk.f32.gmra.mxu1 %vm312_vm0, %v4497_v42  ;;  %5735 = vmatmul.msk.f32.gmra.mxu2 %vm312_vm0, %v3400_v53  ;;  %v4860_v16 = vpop.f32.mrf.mxu0 }
 0x495   : > { %v5037_v40 = vadd.f32 %v7718_v30, %v4967_v50 }
 0x496   : > { %v3760_v17 = vpop.f32.mrf.mxu2  ;;  %5875 = vmatmul.msk.f32.gmra.mxu0 %vm312_vm0, %v4500_v49  ;;  %5807 = vmatmul.msk.f32.gmra.mxu3 %vm312_vm0, %v3952_v46 }
 0x497   : > { %v5103_v6 = vmax.f32 %v5037_v40, 0.0  ;;  %v3868_v61 = vadd.f32 %v3760_v17, %v3318_v27  ;;  %v8112_v17 = vld [vmem:[#allocation8_spill] sm:$0xff] }
 0x498   : > { %v3213_v47 = vpop.f32.mrf.mxu1 }
 0x499   : > { %5170 = vst.msk [vmem:[%s7406_s22 + $0x160] sm:$0xff] %vm5125_vm1, %v5103_v6  ;;  %v4418_v54 = vadd.f32 %v4310_v60, %v3868_v61  ;;  %v4316_v57 = vpop.f32.mrf.mxu3  ;;  %v3319_v43 = vadd.f32 %v3213_v47, %v8108_v4  ;;  %v8113_v4 = vld [vmem:[#allocation10_spill] sm:$0xff] }
 0x49b   : > { %v4968_v56 = vadd.f32 %v4860_v16, %v4418_v54  ;;  %5666 = vmatmul.msk.f32.gmra.mxu1 %vm312_vm0, %v4498_v26  ;;  %5736 = vmatmul.msk.f32.gmra.mxu2 %vm312_vm0, %v3401_v24  ;;  %v4863_v5 = vpop.f32.mrf.mxu0 }
 0x49d   : > { %v5038_v31 = vadd.f32 %v7718_v30, %v4968_v56 }
 0x49e   : > { %v3763_v21 = vpop.f32.mrf.mxu2  ;;  %5876 = vmatmul.msk.f32.gmra.mxu0 %vm312_vm0, %v4501_v35  ;;  %5808 = vmatmul.msk.f32.gmra.mxu3 %vm312_vm0, %v3953_v15 }
 0x49f   : > { %v5104_v52 = vmax.f32 %v5038_v31, 0.0  ;;  %v3869_v37 = vadd.f32 %v3763_v21, %v3319_v43 }
 0x4a0   : > { %v3216_v42 = vpop.f32.mrf.mxu1 }
 0x4a1   : > { %5171 = vst.msk [vmem:[%s7406_s22 + $0x168] sm:$0xff] %vm5125_vm1, %v5104_v52  ;;  %v4419_v62 = vadd.f32 %v4313_v10, %v3869_v37  ;;  %v4319_v34 = vpop.f32.mrf.mxu3  ;;  %v3320_v25 = vadd.f32 %v3216_v42, %v8109_v13 }
 0x4a3   : > { %v4969_v38 = vadd.f32 %v4863_v5, %v4419_v62  ;;  %5667 = vmatmul.msk.f32.gmra.mxu1 %vm312_vm0, %v4499_v20  ;;  %5737 = vmatmul.msk.f32.gmra.mxu2 %vm312_vm0, %v3402_v44  ;;  %v4866_v1 = vpop.f32.mrf.mxu0 }
 0x4a5   : > { %v5039_v22 = vadd.f32 %v7718_v30, %v4969_v38 }
 0x4a6   : > { %v3766_v12 = vpop.f32.mrf.mxu2  ;;  %5877 = vmatmul.msk.f32.gmra.mxu0 %vm312_vm0, %v4502_v11  ;;  %5809 = vmatmul.msk.f32.gmra.mxu3 %vm312_vm0, %v3954_v55 }
 0x4a7   : > { %v5105_v28 = vmax.f32 %v5039_v22, 0.0  ;;  %v3870_v26 = vadd.f32 %v3766_v12, %v3320_v25 }
 0x4a8   : > { %v3219_v29 = vpop.f32.mrf.mxu1 }
 0x4a9   : > { %5172 = vst.msk [vmem:[%s7406_s22 + $0x170] sm:$0xff] %vm5125_vm1, %v5105_v28  ;;  %v4420_v18 = vadd.f32 %v4316_v57, %v3870_v26  ;;  %v4322_v51 = vpop.f32.mrf.mxu3  ;;  %v3321_v19 = vadd.f32 %v3219_v29, %v8110_v59 }
 0x4ab   : > { %v4970_v14 = vadd.f32 %v4866_v1, %v4420_v18  ;;  %5668 = vmatmul.msk.f32.gmra.mxu1 %vm312_vm0, %v4500_v49  ;;  %5738 = vmatmul.msk.f32.gmra.mxu2 %vm312_vm0, %v3403_v41  ;;  %v4869_v9 = vpop.f32.mrf.mxu0  ;;  %v8114_v1 = vld [vmem:[#allocation12_spill] sm:$0xff]  ;;  %v8115_v18 = vld [vmem:[#allocation14_spill] sm:$0xff] }
 0x4ad   : > { %v5040_v2 = vadd.f32 %v7718_v30, %v4970_v14 }
 0x4ae   : > { %v3769_v60 = vpop.f32.mrf.mxu2  ;;  %5878 = vmatmul.msk.f32.gmra.mxu0 %vm312_vm0, %v4503_v7 }
 0x4af   : > { %v5106_v32 = vmax.f32 %v5040_v2, 0.0  ;;  %v3871_v45 = vadd.f32 %v3769_v60, %v3321_v19 }
 0x4b0   : > { %v3222_v20 = vpop.f32.mrf.mxu1 }
 0x4b1   : > { %5173 = vst.msk [vmem:[%s7406_s22 + $0x178] sm:$0xff] %vm5125_vm1, %v5106_v32  ;;  %v4421_v8 = vadd.f32 %v4319_v34, %v3871_v45  ;;  %v4325_v3 = vpop.f32.mrf.mxu3  ;;  %v3322_v53 = vadd.f32 %v3222_v20, %v8111_v58  ;;  %v8116_v20 = vld [vmem:[#allocation16_spill] sm:$0xff] }
 0x4b3   : > { %v4971_v33 = vadd.f32 %v4869_v9, %v4421_v8  ;;  %5669 = vmatmul.msk.f32.gmra.mxu1 %vm312_vm0, %v4501_v35  ;;  %5739 = vmatmul.msk.f32.gmra.mxu2 %vm312_vm0, %v3404_v36  ;;  %v4872_v48 = vpop.f32.mrf.mxu0 }
 0x4b5   : > { %v5041_v39 = vadd.f32 %v7718_v30, %v4971_v33 }
 0x4b6   : > { %v3772_v10 = vpop.f32.mrf.mxu2  ;;  %5879 = vmatmul.msk.f32.gmra.mxu0 %vm312_vm0, %v4504_v23 }
 0x4b7   : > { %v5107_v50 = vmax.f32 %v5041_v39, 0.0  ;;  %v3872_v16 = vadd.f32 %v3772_v10, %v3322_v53 }
 0x4b8   : > { %v3225_v49 = vpop.f32.mrf.mxu1 }
 0x4b9   : > { %5174 = vst.msk [vmem:[%s7406_s22 + $0x180] sm:$0xff] %vm5125_vm1, %v5107_v50  ;;  %v4422_v46 = vadd.f32 %v4322_v51, %v3872_v16  ;;  %v4328_v63 = vpop.f32.mrf.mxu3  ;;  %v3323_v6 = vadd.f32 %v3225_v49, %v8112_v17  ;;  %v8117_v50 = vld [vmem:[#allocation18_spill] sm:$0xff] }
 0x4bb   : > { %v4972_v27 = vadd.f32 %v4872_v48, %v4422_v46  ;;  %v4875_v40 = vpop.f32.mrf.mxu0 }
 0x4bd   : > { %v5042_v61 = vadd.f32 %v7718_v30, %v4972_v27 }
 0x4be   : > { %v3775_v47 = vpop.f32.mrf.mxu2 }
 0x4bf   : > { %v5108_v24 = vmax.f32 %v5042_v61, 0.0  ;;  %v3873_v54 = vadd.f32 %v3775_v47, %v3323_v6 }
 0x4c0   : > { %v3228_v57 = vpop.f32.mrf.mxu1 }
 0x4c1   : > { %5175 = vst.msk [vmem:[%s7406_s22 + $0x188] sm:$0xff] %vm5125_vm1, %v5108_v24  ;;  %v4423_v56 = vadd.f32 %v4325_v3, %v3873_v54  ;;  %v4331_v5 = vpop.f32.mrf.mxu3  ;;  %v3324_v43 = vadd.f32 %v3228_v57, %v8113_v4  ;;  %v8118_v24 = vld [vmem:[#allocation20_spill] sm:$0xff] }
 0x4c3   : > { %v4973_v35 = vadd.f32 %v4875_v40, %v4423_v56  ;;  %v4878_v15 = vpop.f32.mrf.mxu0 }
 0x4c5   : > { %v5043_v31 = vadd.f32 %v7718_v30, %v4973_v35 }
 0x4c6   : > { %v3778_v21 = vpop.f32.mrf.mxu2 }
 0x4c7   : > { %v5109_v52 = vmax.f32 %v5043_v31, 0.0  ;;  %v3874_v37 = vadd.f32 %v3778_v21, %v3324_v43 }
 0x4c8   : > { %v3231_v42 = vpop.f32.mrf.mxu1 }
 0x4c9   : > { %5176 = vst.msk [vmem:[%s7406_s22 + $0x190] sm:$0xff] %vm5125_vm1, %v5109_v52  ;;  %v4424_v44 = vadd.f32 %v4328_v63, %v3874_v37  ;;  %v4334_v62 = vpop.f32.mrf.mxu3  ;;  %v3325_v11 = vadd.f32 %v3231_v42, %v8114_v1  ;;  %v8119_v52 = vld [vmem:[#allocation22_spill] sm:$0xff] }
 0x4cb   : > { %v4974_v34 = vadd.f32 %v4878_v15, %v4424_v44  ;;  %v4881_v38 = vpop.f32.mrf.mxu0 }
 0x4cd   : > { %v5044_v55 = vadd.f32 %v7718_v30, %v4974_v34 }
 0x4ce   : > { %v3781_v13 = vpop.f32.mrf.mxu2 }
 0x4cf   : > { %v5110_v25 = vmax.f32 %v5044_v55, 0.0  ;;  %v3875_v22 = vadd.f32 %v3781_v13, %v3325_v11 }
 0x4d0   : > { %v3234_v12 = vpop.f32.mrf.mxu1 }
 0x4d1   : > { %5177 = vst.msk [vmem:[%s7406_s22 + $0x198] sm:$0xff] %vm5125_vm1, %v5110_v25  ;;  %v4425_v28 = vadd.f32 %v4331_v5, %v3875_v22  ;;  %v4337_v26 = vpop.f32.mrf.mxu3  ;;  %v3326_v51 = vadd.f32 %v3234_v12, %v8115_v18  ;;  %v8120_v25 = vld [vmem:[#allocation24_spill] sm:$0xff] }
 0x4d3   : > { %v4975_v29 = vadd.f32 %v4881_v38, %v4425_v28  ;;  %v4884_v41 = vpop.f32.mrf.mxu0 }
 0x4d5   : > { %v5045_v14 = vadd.f32 %v7718_v30, %v4975_v29 }
 0x4d6   : > { %v3784_v9 = vpop.f32.mrf.mxu2 }
 0x4d7   : > { %v5111_v7 = vmax.f32 %v5045_v14, 0.0  ;;  %v3876_v59 = vadd.f32 %v3784_v9, %v3326_v51 }
 0x4d8   : > { %v3237_v19 = vpop.f32.mrf.mxu1 }
 0x4d9   : > { %5178 = vst.msk [vmem:[%s7406_s22 + $0x1a0] sm:$0xff] %vm5125_vm1, %v5111_v7  ;;  %v4426_v2 = vadd.f32 %v4334_v62, %v3876_v59  ;;  %v4340_v60 = vpop.f32.mrf.mxu3  ;;  %v3327_v36 = vadd.f32 %v3237_v19, %v8116_v20  ;;  %v8121_v7 = vld [vmem:[#allocation26_spill] sm:$0xff] }
 0x4db   : > { %v4976_v32 = vadd.f32 %v4884_v41, %v4426_v2  ;;  %v4887_v45 = vpop.f32.mrf.mxu0 }
 0x4dd   : > { %v5046_v8 = vadd.f32 %v7718_v30, %v4976_v32 }
 0x4de   : > { %v3787_v3 = vpop.f32.mrf.mxu2 }
 0x4df   : > { %v5112_v33 = vmax.f32 %v5046_v8, 0.0  ;;  %v3877_v48 = vadd.f32 %v3787_v3, %v3327_v36  ;;  %v8122_v3 = vld [vmem:[#allocation28_spill] sm:$0xff] }
 0x4e0   : > { %v3240_v23 = vpop.f32.mrf.mxu1 }
 0x4e1   : > { %5179 = vst.msk [vmem:[%s7406_s22 + $0x1a8] sm:$0xff] %vm5125_vm1, %v5112_v33  ;;  %v4427_v58 = vadd.f32 %v4337_v26, %v3877_v48  ;;  %v4343_v53 = vpop.f32.mrf.mxu3  ;;  %v3328_v16 = vadd.f32 %v3240_v23, %v8117_v50 }
 0x4e3   : > { %v4977_v39 = vadd.f32 %v4887_v45, %v4427_v58  ;;  %v4890_v10 = vpop.f32.mrf.mxu0 }
 0x4e5   : > { %v5047_v49 = vadd.f32 %v7718_v30, %v4977_v39 }
 0x4e6   : > { %v3790_v46 = vpop.f32.mrf.mxu2 }
 0x4e7   : > { %v5113_v63 = vmax.f32 %v5047_v49, 0.0  ;;  %v3878_v27 = vadd.f32 %v3790_v46, %v3328_v16  ;;  %v8123_v46 = vld [vmem:[#allocation31_spill] sm:$0xff] }
 0x4e8   : > { %v3243_v40 = vpop.f32.mrf.mxu1 }
 0x4e9   : > { %5180 = vst.msk [vmem:[%s7406_s22 + $0x1b0] sm:$0xff] %vm5125_vm1, %v5113_v63  ;;  %v4428_v17 = vadd.f32 %v4340_v60, %v3878_v27  ;;  %v4346_v6 = vpop.f32.mrf.mxu3  ;;  %v3329_v54 = vadd.f32 %v3243_v40, %v8118_v24 }
 0x4eb   : > { %v4978_v61 = vadd.f32 %v4890_v10, %v4428_v17  ;;  %v4893_v47 = vpop.f32.mrf.mxu0 }
 0x4ed   : > { %v5048_v57 = vadd.f32 %v7718_v30, %v4978_v61 }
 0x4ee   : > { %v3793_v56 = vpop.f32.mrf.mxu2 }
 0x4ef   : > { %v5114_v5 = vmax.f32 %v5048_v57, 0.0  ;;  %v3879_v35 = vadd.f32 %v3793_v56, %v3329_v54  ;;  %v8124_v56 = vld [vmem:[#allocation34_spill] sm:$0xff] }
 0x4f0   : > { %v3246_v15 = vpop.f32.mrf.mxu1 }
 0x4f1   : > { %5181 = vst.msk [vmem:[%s7406_s22 + $0x1b8] sm:$0xff] %vm5125_vm1, %v5114_v5  ;;  %v4429_v4 = vadd.f32 %v4343_v53, %v3879_v35  ;;  %v4349_v43 = vpop.f32.mrf.mxu3  ;;  %v3330_v37 = vadd.f32 %v3246_v15, %v8119_v52 }
 0x4f3   : > { %v4979_v31 = vadd.f32 %v4893_v47, %v4429_v4  ;;  %v4896_v21 = vpop.f32.mrf.mxu0 }
 0x4f5   : > { %v5049_v42 = vadd.f32 %v7718_v30, %v4979_v31 }
 0x4f6   : > { %v3796_v44 = vpop.f32.mrf.mxu2 }
 0x4f7   : > { %v5115_v62 = vmax.f32 %v5049_v42, 0.0  ;;  %v3880_v34 = vadd.f32 %v3796_v44, %v3330_v37  ;;  %v8125_v44 = vld [vmem:[#allocation36_spill] sm:$0xff] }
 0x4f8   : > { %v3249_v38 = vpop.f32.mrf.mxu1 }
 0x4f9   : > { %5182 = vst.msk [vmem:[%s7406_s22 + $0x1c0] sm:$0xff] %vm5125_vm1, %v5115_v62  ;;  %v4430_v1 = vadd.f32 %v4346_v6, %v3880_v34  ;;  %v4352_v11 = vpop.f32.mrf.mxu3  ;;  %v3331_v22 = vadd.f32 %v3249_v38, %v8120_v25 }
 0x4fb   : > { %v4980_v55 = vadd.f32 %v4896_v21, %v4430_v1  ;;  %v4899_v13 = vpop.f32.mrf.mxu0 }
 0x4fd   : > { %v5050_v12 = vadd.f32 %v7718_v30, %v4980_v55 }
 0x4fe   : > { %v3799_v28 = vpop.f32.mrf.mxu2 }
 0x4ff   : > { %v5116_v26 = vmax.f32 %v5050_v12, 0.0  ;;  %v3881_v29 = vadd.f32 %v3799_v28, %v3331_v22  ;;  %v5906_v28 = vld [vmem:[%s8013_s2] ss:$0 sm:$0xff] }
 0x500   : > { %v3252_v41 = vpop.f32.mrf.mxu1 }
 0x501   : > { %5183 = vst.msk [vmem:[%s7406_s22 + $0x1c8] sm:$0xff] %vm5125_vm1, %v5116_v26  ;;  %v4431_v18 = vadd.f32 %v4349_v43, %v3881_v29  ;;  %v4355_v9 = vpop.f32.mrf.mxu3  ;;  %v3332_v59 = vadd.f32 %v3252_v41, %v8121_v7  ;;  %v8126_v7 = vld [vmem:[#allocation3_spill] sm:$0xff] }
 0x503   : > { %v4981_v51 = vadd.f32 %v4899_v13, %v4431_v18  ;;  %v4902_v14 = vpop.f32.mrf.mxu0 }
 0x505   : > { %v5051_v19 = vadd.f32 %v7718_v30, %v4981_v51 }
 0x506   : > { %v3802_v2 = vpop.f32.mrf.mxu2 }
 0x507   : > { %v5117_v60 = vmax.f32 %v5051_v19, 0.0  ;;  %v3882_v32 = vadd.f32 %v3802_v2, %v3332_v59 }
 0x508   : > { %v3255_v45 = vpop.f32.mrf.mxu1 }
 0x509   : > { %5184 = vst.msk [vmem:[%s7406_s22 + $0x1d0] sm:$0xff] %vm5125_vm1, %v5117_v60  ;;  %v4432_v20 = vadd.f32 %v4352_v11, %v3882_v32  ;;  %v3333_v33 = vadd.f32 %v3255_v45, %v8122_v3  ;;  %v4358_v58 = vpop.f32.mrf.mxu3 }
 0x50b   : > { %v4982_v36 = vadd.f32 %v4902_v14, %v4432_v20  ;;  %v4905_v8 = vpop.f32.mrf.mxu0 }
 0x50d   : > { %v5052_v48 = vadd.f32 %v7718_v30, %v4982_v36 }
 0x50e   : > { %v3805_v23 = vpop.f32.mrf.mxu2 }
 0x50f   : > { %v5118_v53 = vmax.f32 %v5052_v48, 0.0  ;;  %v3883_v39 = vadd.f32 %v3805_v23, %v3333_v33 }
 0x510   : > { %v3258_v10 = vpop.f32.mrf.mxu1 }
 0x511   : > { %5185 = vst.msk [vmem:[%s7406_s22 + $0x1d8] sm:$0xff] %vm5125_vm1, %v5118_v53  ;;  %v4433_v50 = vadd.f32 %v4355_v9, %v3883_v39  ;;  %v3334_v63 = vadd.f32 %v3258_v10, %v8123_v46  ;;  %v4361_v47 = vpop.f32.mrf.mxu3 }
 0x513   : > { %v4983_v16 = vadd.f32 %v4905_v8, %v4433_v50  ;;  %v4908_v49 = vpop.f32.mrf.mxu0 }
 0x515   : > { %v5053_v27 = vadd.f32 %v7718_v30, %v4983_v16 }
 0x516   : > { %v3808_v40 = vpop.f32.mrf.mxu2 }
 0x517   : > { %v5119_v17 = vmax.f32 %v5053_v27, 0.0  ;;  %v3884_v6 = vadd.f32 %v3808_v40, %v3334_v63 }
 0x518   : > { %v3261_v61 = vpop.f32.mrf.mxu1 }
 0x519   : > { %5186 = vst.msk [vmem:[%s7406_s22 + $0x1e0] sm:$0xff] %vm5125_vm1, %v5119_v17  ;;  %v4434_v24 = vadd.f32 %v4358_v58, %v3884_v6  ;;  %v3335_v5 = vadd.f32 %v3261_v61, %v8124_v56  ;;  %v4364_v52 = vpop.f32.mrf.mxu3 }
 0x51b   : > { %v4984_v54 = vadd.f32 %v4908_v49, %v4434_v24  ;;  %v4911_v57 = vpop.f32.mrf.mxu0 }
 0x51d   : > { %v5054_v35 = vadd.f32 %v7718_v30, %v4984_v54 }
 0x51e   : > { %v3811_v15 = vpop.f32.mrf.mxu2 }
 0x51f   : > { %v5120_v4 = vmax.f32 %v5054_v35, 0.0  ;;  %v3885_v43 = vadd.f32 %v3811_v15, %v3335_v5 }
 0x520   : > { %v3264_v31 = vpop.f32.mrf.mxu1 }
 0x521   : > { %5187 = vst.msk [vmem:[%s7406_s22 + $0x1e8] sm:$0xff] %vm5125_vm1, %v5120_v4  ;;  %v4435_v21 = vadd.f32 %v4361_v47, %v3885_v43  ;;  %v3336_v62 = vadd.f32 %v3264_v31, %v8125_v44  ;;  %v4367_v22 = vpop.f32.mrf.mxu3 }
 0x523   : > { %v4985_v37 = vadd.f32 %v4911_v57, %v4435_v21  ;;  %v4914_v42 = vpop.f32.mrf.mxu0 }
 0x525   : > { %v5055_v34 = vadd.f32 %v7718_v30, %v4985_v37 }
 0x526   : > { %v3814_v38 = vpop.f32.mrf.mxu2 }
 0x527   : > { %v5121_v1 = vmax.f32 %v5055_v34, 0.0  ;;  %v3886_v11 = vadd.f32 %v3814_v38, %v3336_v62 }
 0x528   : > { %v3267_v55 = vpop.f32.mrf.mxu1 }
 0x529   : > { %5188 = vst.msk [vmem:[%s7406_s22 + $0x1f0] sm:$0xff] %vm5125_vm1, %v5121_v1  ;;  %v4436_v13 = vadd.f32 %v4364_v52, %v3886_v11  ;;  %v3337_v12 = vadd.f32 %v3267_v55, %v7371_v0  ;;  %v4370_v2 = vpop.f32.mrf.mxu3 }
 0x52b   : > { %v4986_v25 = vadd.f32 %v4914_v42, %v4436_v13  ;;  %v4917_v30 = vpop.f32.mrf.mxu0 }
 0x52d   : > { %v5056_v26 = vadd.f32 %v5906_v28, %v4986_v25 }
 0x52e   : > { %v3817_v29 = vpop.f32.mrf.mxu2 }
 0x52f   : > { %v5122_v41 = vmax.f32 %v5056_v26, 0.0  ;;  %v3887_v18 = vadd.f32 %v3817_v29, %v3337_v12 }
 0x530   : > { %v3270_v14 = vpop.f32.mrf.mxu1 }
 0x531   : > { %5189 = vst.msk [vmem:[%s7406_s22 + $0x1f8] sm:$0xff] %vm5125_vm1, %v5122_v41  ;;  %v4437_v51 = vadd.f32 %v4367_v22, %v3887_v18  ;;  %v3338_v59 = vadd.f32 %v3270_v14, %v8126_v7 }
 0x533   : > { %v4987_v9 = vadd.f32 %v4917_v30, %v4437_v51  ;;  %v4920_v45 = vpop.f32.mrf.mxu0 }
 0x535   : > { %v5057_v19 = vadd.f32 %v5906_v28, %v4987_v9 }
 0x536   : > { %v3820_v0 = vpop.f32.mrf.mxu2 }
 0x537   : > { %v5123_v60 = vmax.f32 %v5057_v19, 0.0  ;;  %v3888_v32 = vadd.f32 %v3820_v0, %v3338_v59 }
 0x539   : > { %5190 = vst.msk [vmem:[%s7406_s22 + $0x200] sm:$0xff] %vm5125_vm1, %v5123_v60  ;;  %v4438_v20 = vadd.f32 %v4370_v2, %v3888_v32 }
 0x53b   : > { %v4988_v36 = vadd.f32 %v4920_v45, %v4438_v20 }
 0x53d   : > { %v5058_v8 = vadd.f32 %v5906_v28, %v4988_v36 }
 0x53f   : > { %v5124_v3 = vmax.f32 %v5058_v8, 0.0 }
 0x541   : > { %5191 = vst.msk [vmem:[%s7406_s22 + $0x208] sm:$0xff] %vm5125_vm1, %v5124_v3 }
 0x542 PF: > { %s13_s12 = sadd.s32 1, %s5913_s12  }
 0x543   : > { %p10_p4 = scmp.ge.s32.totalorder %s13_s12, 4  }
 0x545   :  { %12 = sbr.rel (!%p10_p4) target bundleno = 1 (0x1), region = 70 }

// kernel: cnn1_forward.5
= control target key start
LH: loop header
LB: loop body
LE: loop exit
PB: predicated region body
PF: predicated region fallthrough
CT: control target
= control target key end

     0   :  { %s5560_s0 = inlined_call_operand.vmem [shape: f32[2,7744], index: 0, kind: input, shape index: {}]   ;;  %s5561_s1 = inlined_call_operand.vmem [shape: f32[7744,128], index: 1, kind: input, shape index: {}]   ;;  %s5562_s2 = inlined_call_operand.vmem [shape: f32[1,128], index: 2, kind: input, shape index: {}]   ;;  %s5563_s3 = inlined_call_operand.vmem [shape: f32[128,2], index: 3, kind: input, shape index: {}]   ;;  %s5564_s4 = inlined_call_operand.vmem [shape: f32[1,2], index: 4, kind: input, shape index: {}]   ;;  %s5565_s5 = inlined_call_operand.hbm [shape: f32[2,2], index: 5, kind: output, shape index: {}]  }
   0x1   :  { %v52_v0 = vld [vmem:[%s5561_s1 + $0x78] sm:$0xff]  ;;  %v51_v2 = vld [vmem:[%s5561_s1 + $0x70] sm:$0xff]  ;;  %v50_v6 = vld [vmem:[%s5561_s1 + $0x68] sm:$0xff] }
   0x2   :  { %v84_v1 = vld [vmem:[%s5561_s1 + $0x178] sm:$0xff]  ;;  %1166 = vmatpush.msra.mxu0 %v52_v0  ;;  %v83_v4 = vld [vmem:[%s5561_s1 + $0x170] sm:$0xff]  ;;  %v82_v8 = vld [vmem:[%s5561_s1 + $0x168] sm:$0xff] }
   0x3   :  { %1206 = vmatpush.msra.mxu2 %v84_v1  ;;  %v68_v3 = vld [vmem:[%s5561_s1 + $0xf8] sm:$0xff]  ;;  %v67_v7 = vld [vmem:[%s5561_s1 + $0xf0] sm:$0xff]  ;;  %v66_v10 = vld [vmem:[%s5561_s1 + $0xe8] sm:$0xff] }
   0x4   :  { %v100_v5 = vld [vmem:[%s5561_s1 + $0x1f8] sm:$0xff]  ;;  %1186 = vmatpush.msra.mxu1 %v68_v3  ;;  %1167 = vmatpush.msra.mxu0 %v51_v2  ;;  %v99_v9 = vld [vmem:[%s5561_s1 + $0x1f0] sm:$0xff]  ;;  %v49_v11 = vld [vmem:[%s5561_s1 + $0x60] sm:$0xff] }
   0x5   :  { %1226 = vmatpush.msra.mxu3 %v100_v5  ;;  %1207 = vmatpush.msra.mxu2 %v83_v4  ;;  %v81_v12 = vld [vmem:[%s5561_s1 + $0x160] sm:$0xff]  ;;  %v98_v13 = vld [vmem:[%s5561_s1 + $0x1e8] sm:$0xff]  ;;  %v48_v16 = vld [vmem:[%s5561_s1 + $0x58] sm:$0xff] }
   0x6   :  { %1187 = vmatpush.msra.mxu1 %v67_v7  ;;  %1168 = vmatpush.msra.mxu0 %v50_v6  ;;  %v65_v14 = vld [vmem:[%s5561_s1 + $0xe0] sm:$0xff]  ;;  %v80_v17 = vld [vmem:[%s5561_s1 + $0x158] sm:$0xff]  ;;  %v47_v20 = vld [vmem:[%s5561_s1 + $0x50] sm:$0xff] }
   0x7   :  { %1227 = vmatpush.msra.mxu3 %v99_v9  ;;  %1208 = vmatpush.msra.mxu2 %v82_v8  ;;  %v97_v15 = vld [vmem:[%s5561_s1 + $0x1e0] sm:$0xff]  ;;  %v64_v18 = vld [vmem:[%s5561_s1 + $0xd8] sm:$0xff]  ;;  %v79_v21 = vld [vmem:[%s5561_s1 + $0x150] sm:$0xff] }
   0x8   :  { %1188 = vmatpush.msra.mxu1 %v66_v10  ;;  %1169 = vmatpush.msra.mxu0 %v49_v11  ;;  %v96_v19 = vld [vmem:[%s5561_s1 + $0x1d8] sm:$0xff]  ;;  %v63_v22 = vld [vmem:[%s5561_s1 + $0xd0] sm:$0xff]  ;;  %v46_v24 = vld [vmem:[%s5561_s1 + $0x48] sm:$0xff] }
   0x9   :  { %1228 = vmatpush.msra.mxu3 %v98_v13  ;;  %1209 = vmatpush.msra.mxu2 %v81_v12  ;;  %v95_v23 = vld [vmem:[%s5561_s1 + $0x1d0] sm:$0xff]  ;;  %v78_v25 = vld [vmem:[%s5561_s1 + $0x148] sm:$0xff]  ;;  %v45_v28 = vld [vmem:[%s5561_s1 + $0x40] sm:$0xff] }
   0xa   :  { %1189 = vmatpush.msra.mxu1 %v65_v14  ;;  %1170 = vmatpush.msra.mxu0 %v48_v16  ;;  %v62_v26 = vld [vmem:[%s5561_s1 + $0xc8] sm:$0xff]  ;;  %v77_v29 = vld [vmem:[%s5561_s1 + $0x140] sm:$0xff]  ;;  %v44_v32 = vld [vmem:[%s5561_s1 + $0x38] sm:$0xff] }
   0xb   :  { %1229 = vmatpush.msra.mxu3 %v97_v15  ;;  %1210 = vmatpush.msra.mxu2 %v80_v17  ;;  %v94_v27 = vld [vmem:[%s5561_s1 + $0x1c8] sm:$0xff]  ;;  %v61_v30 = vld [vmem:[%s5561_s1 + $0xc0] sm:$0xff]  ;;  %v76_v33 = vld [vmem:[%s5561_s1 + $0x138] sm:$0xff] }
   0xc   :  { %1190 = vmatpush.msra.mxu1 %v64_v18  ;;  %1171 = vmatpush.msra.mxu0 %v47_v20  ;;  %v93_v31 = vld [vmem:[%s5561_s1 + $0x1c0] sm:$0xff]  ;;  %v60_v34 = vld [vmem:[%s5561_s1 + $0xb8] sm:$0xff]  ;;  %v43_v36 = vld [vmem:[%s5561_s1 + $0x30] sm:$0xff] }
   0xd   :  { %1230 = vmatpush.msra.mxu3 %v96_v19  ;;  %1211 = vmatpush.msra.mxu2 %v79_v21  ;;  %v92_v35 = vld [vmem:[%s5561_s1 + $0x1b8] sm:$0xff]  ;;  %v75_v37 = vld [vmem:[%s5561_s1 + $0x130] sm:$0xff]  ;;  %v42_v40 = vld [vmem:[%s5561_s1 + $0x28] sm:$0xff] }
   0xe   :  { %1191 = vmatpush.msra.mxu1 %v63_v22  ;;  %1172 = vmatpush.msra.mxu0 %v46_v24  ;;  %v59_v38 = vld [vmem:[%s5561_s1 + $0xb0] sm:$0xff]  ;;  %v74_v41 = vld [vmem:[%s5561_s1 + $0x128] sm:$0xff]  ;;  %v41_v44 = vld [vmem:[%s5561_s1 + $0x20] sm:$0xff] }
   0xf   :  { %1231 = vmatpush.msra.mxu3 %v95_v23  ;;  %1212 = vmatpush.msra.mxu2 %v78_v25  ;;  %v91_v39 = vld [vmem:[%s5561_s1 + $0x1b0] sm:$0xff]  ;;  %v58_v42 = vld [vmem:[%s5561_s1 + $0xa8] sm:$0xff]  ;;  %v73_v45 = vld [vmem:[%s5561_s1 + $0x120] sm:$0xff] }
  0x10   :  { %1192 = vmatpush.msra.mxu1 %v62_v26  ;;  %1173 = vmatpush.msra.mxu0 %v45_v28  ;;  %v90_v43 = vld [vmem:[%s5561_s1 + $0x1a8] sm:$0xff]  ;;  %v57_v46 = vld [vmem:[%s5561_s1 + $0xa0] sm:$0xff]  ;;  %v40_v48 = vld [vmem:[%s5561_s1 + $0x18] sm:$0xff] }
  0x11   :  { %1232 = vmatpush.msra.mxu3 %v94_v27  ;;  %1213 = vmatpush.msra.mxu2 %v77_v29  ;;  %v89_v47 = vld [vmem:[%s5561_s1 + $0x1a0] sm:$0xff]  ;;  %v72_v49 = vld [vmem:[%s5561_s1 + $0x118] sm:$0xff]  ;;  %v39_v52 = vld [vmem:[%s5561_s1 + $0x10] sm:$0xff] }
  0x12   :  { %1193 = vmatpush.msra.mxu1 %v61_v30  ;;  %1174 = vmatpush.msra.mxu0 %v44_v32  ;;  %v56_v50 = vld [vmem:[%s5561_s1 + $0x98] sm:$0xff]  ;;  %v71_v53 = vld [vmem:[%s5561_s1 + $0x110] sm:$0xff]  ;;  %v38_v56 = vld [vmem:[%s5561_s1 + $0x8] sm:$0xff] }
  0x13   :  { %1233 = vmatpush.msra.mxu3 %v93_v31  ;;  %1214 = vmatpush.msra.mxu2 %v76_v33  ;;  %v88_v51 = vld [vmem:[%s5561_s1 + $0x198] sm:$0xff]  ;;  %v55_v54 = vld [vmem:[%s5561_s1 + $0x90] sm:$0xff]  ;;  %v70_v57 = vld [vmem:[%s5561_s1 + $0x108] sm:$0xff] }
  0x14   :  { %1194 = vmatpush.msra.mxu1 %v60_v34  ;;  %1175 = vmatpush.msra.mxu0 %v43_v36  ;;  %v87_v55 = vld [vmem:[%s5561_s1 + $0x190] sm:$0xff]  ;;  %v54_v58 = vld [vmem:[%s5561_s1 + $0x88] sm:$0xff]  ;;  %v37_v60 = vld [vmem:[%s5561_s1] sm:$0xff] }
  0x15   :  { %1234 = vmatpush.msra.mxu3 %v92_v35  ;;  %1215 = vmatpush.msra.mxu2 %v75_v37  ;;  %v86_v59 = vld [vmem:[%s5561_s1 + $0x188] sm:$0xff]  ;;  %v69_v61 = vld [vmem:[%s5561_s1 + $0x100] sm:$0xff]  ;;  %v116_v62 = vld [vmem:[%s5561_s1 + $0x278] sm:$0xff] }
  0x16   :  { %1195 = vmatpush.msra.mxu1 %v59_v38  ;;  %1176 = vmatpush.msra.mxu0 %v42_v40  ;;  %v148_v63 = vld [vmem:[%s5561_s1 + $0x378] sm:$0xff]  ;;  %v53_v0 = vld [vmem:[%s5561_s1 + $0x80] sm:$0xff]  ;;  %v115_v2 = vld [vmem:[%s5561_s1 + $0x270] sm:$0xff] }
  0x17   :  { %1235 = vmatpush.msra.mxu3 %v91_v39  ;;  %1216 = vmatpush.msra.mxu2 %v74_v41  ;;  %v85_v1 = vld [vmem:[%s5561_s1 + $0x180] sm:$0xff]  ;;  %v132_v3 = vld [vmem:[%s5561_s1 + $0x2f8] sm:$0xff]  ;;  %v147_v4 = vld [vmem:[%s5561_s1 + $0x370] sm:$0xff] }
  0x18   :  { %1196 = vmatpush.msra.mxu1 %v58_v42  ;;  %1177 = vmatpush.msra.mxu0 %v41_v44  ;;  %v164_v5 = vld [vmem:[%s5561_s1 + $0x3f8] sm:$0xff]  ;;  %v114_v6 = vld [vmem:[%s5561_s1 + $0x268] sm:$0xff]  ;;  %v131_v7 = vld [vmem:[%s5561_s1 + $0x2f0] sm:$0xff] }
  0x19   :  { %1236 = vmatpush.msra.mxu3 %v90_v43  ;;  %1217 = vmatpush.msra.mxu2 %v73_v45  ;;  %v146_v8 = vld [vmem:[%s5561_s1 + $0x368] sm:$0xff]  ;;  %v163_v9 = vld [vmem:[%s5561_s1 + $0x3f0] sm:$0xff]  ;;  %v113_v10 = vld [vmem:[%s5561_s1 + $0x260] sm:$0xff] }
  0x1a   :  { %1197 = vmatpush.msra.mxu1 %v57_v46  ;;  %1178 = vmatpush.msra.mxu0 %v40_v48  ;;  %v130_v11 = vld [vmem:[%s5561_s1 + $0x2e8] sm:$0xff]  ;;  %v145_v12 = vld [vmem:[%s5561_s1 + $0x360] sm:$0xff]  ;;  %v112_v14 = vld [vmem:[%s5561_s1 + $0x258] sm:$0xff] }
  0x1b   :  { %1237 = vmatpush.msra.mxu3 %v89_v47  ;;  %1218 = vmatpush.msra.mxu2 %v72_v49  ;;  %v162_v13 = vld [vmem:[%s5561_s1 + $0x3e8] sm:$0xff]  ;;  %v129_v15 = vld [vmem:[%s5561_s1 + $0x2e0] sm:$0xff]  ;;  %v144_v16 = vld [vmem:[%s5561_s1 + $0x358] sm:$0xff] }
  0x1c   :  { %1198 = vmatpush.msra.mxu1 %v56_v50  ;;  %1179 = vmatpush.msra.mxu0 %v39_v52  ;;  %v161_v17 = vld [vmem:[%s5561_s1 + $0x3e0] sm:$0xff]  ;;  %v111_v18 = vld [vmem:[%s5561_s1 + $0x250] sm:$0xff]  ;;  %v128_v19 = vld [vmem:[%s5561_s1 + $0x2d8] sm:$0xff] }
  0x1d   :  { %1238 = vmatpush.msra.mxu3 %v88_v51  ;;  %1219 = vmatpush.msra.mxu2 %v71_v53  ;;  %v143_v20 = vld [vmem:[%s5561_s1 + $0x350] sm:$0xff]  ;;  %v160_v21 = vld [vmem:[%s5561_s1 + $0x3d8] sm:$0xff]  ;;  %v21_v22 = vld [vmem:[%s5560_s0] sm:$0xff] }
  0x1e   :  { %1199 = vmatpush.msra.mxu1 %v55_v54  ;;  %1180 = vmatpush.msra.mxu0 %v38_v56  ;;  %v110_v23 = vld [vmem:[%s5561_s1 + $0x248] sm:$0xff]  ;;  %v127_v24 = vld [vmem:[%s5561_s1 + $0x2d0] sm:$0xff]  ;;  %1025 = vst [vmem:[#allocation1] ss:$4 sm:$0xff] %v21_v22  ;;  %v109_v27 = vld [vmem:[%s5561_s1 + $0x240] sm:$0xff] }
  0x1f   :  { %1239 = vmatpush.msra.mxu3 %v87_v55  ;;  %1220 = vmatpush.msra.mxu2 %v70_v57  ;;  %v142_v25 = vld [vmem:[%s5561_s1 + $0x348] sm:$0xff]  ;;  %v159_v26 = vld [vmem:[%s5561_s1 + $0x3d0] sm:$0xff]  ;;  %v141_v29 = vld [vmem:[%s5561_s1 + $0x340] sm:$0xff] }
  0x20   :  { %1200 = vmatpush.msra.mxu1 %v54_v58  ;;  %1181 = vmatpush.msra.mxu0 %v37_v60  ;;  %v126_v28 = vld [vmem:[%s5561_s1 + $0x2c8] sm:$0xff]  ;;  %v108_v31 = vld [vmem:[%s5561_s1 + $0x238] sm:$0xff]  ;;  %v125_v32 = vld [vmem:[%s5561_s1 + $0x2c0] sm:$0xff] }
  0x21   :  { %1240 = vmatpush.msra.mxu3 %v86_v59  ;;  %1221 = vmatpush.msra.mxu2 %v69_v61  ;;  %v158_v30 = vld [vmem:[%s5561_s1 + $0x3c8] sm:$0xff]  ;;  %v140_v33 = vld [vmem:[%s5561_s1 + $0x338] sm:$0xff]  ;;  %v157_v34 = vld [vmem:[%s5561_s1 + $0x3c0] sm:$0xff] }
  0x22   :  { %1246 = vmatpush.msrb.mxu0 %v116_v62  ;;  %1201 = vmatpush.msra.mxu1 %v53_v0  ;;  %v107_v35 = vld [vmem:[%s5561_s1 + $0x230] sm:$0xff]  ;;  %v124_v36 = vld [vmem:[%s5561_s1 + $0x2b8] sm:$0xff]  ;;  %v22_v39 = vld [vmem:[%s5560_s0 + $0x8] sm:$0xff] }
  0x23   :  { %1286 = vmatpush.msrb.mxu2 %v148_v63  ;;  %1241 = vmatpush.msra.mxu3 %v85_v1  ;;  %v139_v37 = vld [vmem:[%s5561_s1 + $0x330] sm:$0xff]  ;;  %v156_v38 = vld [vmem:[%s5561_s1 + $0x3b8] sm:$0xff]  ;;  %v106_v40 = vld [vmem:[%s5561_s1 + $0x228] sm:$0xff]  ;;  %1027 = vst [vmem:[#allocation1 + $0x20] ss:$4 sm:$0xff] %v22_v39 }
  0x24   :  { %1247 = vmatpush.msrb.mxu0 %v115_v2  ;;  %1266 = vmatpush.msrb.mxu1 %v132_v3  ;;  %v123_v41 = vld [vmem:[%s5561_s1 + $0x2b0] sm:$0xff]  ;;  %v138_v43 = vld [vmem:[%s5561_s1 + $0x328] sm:$0xff]  ;;  %v105_v49 = vld [vmem:[%s5561_s1 + $0x220] sm:$0xff] }
  0x25   :  { %1287 = vmatpush.msrb.mxu2 %v147_v4  ;;  %1306 = vmatpush.msrb.mxu3 %v164_v5  ;;  %v23_v42 = vld [vmem:[%s5560_s0 + $0x10] sm:$0xff]  ;;  %v2830_v45 = vld.sshfl [vmem:[#allocation1] sm:$0xff pattern:$0x73625140]  ;;  %v122_v50 = vld [vmem:[%s5561_s1 + $0x2a8] sm:$0xff] }
  0x26   :  { %1248 = vmatpush.msrb.mxu0 %v114_v6  ;;  %1267 = vmatpush.msrb.mxu1 %v131_v7  ;;  %v1030_v44 = vld.sshfl [vmem:[#allocation1 + $0x10] sm:$0xff pattern:$0x73625140]  ;;  %v2832_v46 = vld.sshfl [vmem:[#allocation1 + $0x18] sm:$0xff pattern:$0x73625140] }
  0x27   :  { %1288 = vmatpush.msrb.mxu2 %v146_v8  ;;  %1307 = vmatpush.msrb.mxu3 %v163_v9  ;;  %v2834_v47 = vld.sshfl [vmem:[#allocation1 + $0x8] sm:$0xff pattern:$0x73625140]  ;;  %v155_v48 = vld [vmem:[%s5561_s1 + $0x3b0] sm:$0xff]  ;;  %v137_v51 = vld [vmem:[%s5561_s1 + $0x320] sm:$0xff] }
  0x28   :  { %1249 = vmatpush.msrb.mxu0 %v113_v10  ;;  %1268 = vmatpush.msrb.mxu1 %v130_v11  ;;  %1036 = vst [vmem:[#allocation1] ss:$4 sm:$0xff] %v23_v42  ;;  %v154_v52 = vld [vmem:[%s5561_s1 + $0x3a8] sm:$0xff]  ;;  %v104_v53 = vld [vmem:[%s5561_s1 + $0x218] sm:$0xff]  ;;  %v121_v54 = vld [vmem:[%s5561_s1 + $0x2a0] sm:$0xff] }
  0x29   :  { %1289 = vmatpush.msrb.mxu2 %v145_v12  ;;  %1308 = vmatpush.msrb.mxu3 %v162_v13  ;;  %v136_v55 = vld [vmem:[%s5561_s1 + $0x318] sm:$0xff]  ;;  %v153_v56 = vld [vmem:[%s5561_s1 + $0x3a0] sm:$0xff]  ;;  %v103_v57 = vld [vmem:[%s5561_s1 + $0x210] sm:$0xff] }
  0x2a   :  { %1250 = vmatpush.msrb.mxu0 %v112_v14  ;;  %1269 = vmatpush.msrb.mxu1 %v129_v15  ;;  %v120_v58 = vld [vmem:[%s5561_s1 + $0x298] sm:$0xff]  ;;  %v2872_v60 = vld.sshfl [vmem:[#allocation1 + $0x30] sm:$0xff pattern:$0x73625140]  ;;  %v102_v2 = vld [vmem:[%s5561_s1 + $0x208] sm:$0xff] }
  0x2b   :  { %1290 = vmatpush.msrb.mxu2 %v144_v16  ;;  %1309 = vmatpush.msrb.mxu3 %v161_v17  ;;  %v24_v59 = vld [vmem:[%s5560_s0 + $0x18] sm:$0xff]  ;;  %v2874_v61 = vld.sshfl [vmem:[#allocation1 + $0x20] sm:$0xff pattern:$0x73625140]  ;;  %v135_v0 = vld [vmem:[%s5561_s1 + $0x310] sm:$0xff] }
  0x2c   :  { %1251 = vmatpush.msrb.mxu0 %v111_v18  ;;  %1270 = vmatpush.msrb.mxu1 %v128_v19  ;;  %v2876_v62 = vld.sshfl [vmem:[#allocation1 + $0x38] sm:$0xff pattern:$0x73625140]  ;;  %v2878_v63 = vld.sshfl [vmem:[#allocation1 + $0x28] sm:$0xff pattern:$0x73625140] }
  0x2d   :  { %1291 = vmatpush.msrb.mxu2 %v143_v20  ;;  %1310 = vmatpush.msrb.mxu3 %v160_v21  ;;  %v152_v1 = vld [vmem:[%s5561_s1 + $0x398] sm:$0xff]  ;;  %1037 = vst [vmem:[#allocation1 + $0x20] ss:$4 sm:$0xff] %v24_v59  ;;  %v119_v3 = vld [vmem:[%s5561_s1 + $0x290] sm:$0xff]  ;;  %v134_v4 = vld [vmem:[%s5561_s1 + $0x308] sm:$0xff] }
  0x2e   :  { %1252 = vmatpush.msrb.mxu0 %v110_v23  ;;  %1271 = vmatpush.msrb.mxu1 %v127_v24  ;;  %v151_v5 = vld [vmem:[%s5561_s1 + $0x390] sm:$0xff]  ;;  %v101_v6 = vld [vmem:[%s5561_s1 + $0x200] sm:$0xff]  ;;  %v118_v7 = vld [vmem:[%s5561_s1 + $0x288] sm:$0xff] }
  0x2f   :  { %1292 = vmatpush.msrb.mxu2 %v142_v25  ;;  %1311 = vmatpush.msrb.mxu3 %v159_v26  ;;  %v133_v8 = vld [vmem:[%s5561_s1 + $0x300] sm:$0xff]  ;;  %v150_v9 = vld [vmem:[%s5561_s1 + $0x388] sm:$0xff]  ;;  %v180_v10 = vld [vmem:[%s5561_s1 + $0x478] sm:$0xff] }
  0x30   :  { %1253 = vmatpush.msrb.mxu0 %v109_v27  ;;  %1272 = vmatpush.msrb.mxu1 %v126_v28  ;;  %v212_v11 = vld [vmem:[%s5561_s1 + $0x578] sm:$0xff]  ;;  %v117_v12 = vld [vmem:[%s5561_s1 + $0x280] sm:$0xff]  ;;  %v179_v14 = vld [vmem:[%s5561_s1 + $0x470] sm:$0xff] }
  0x31   :  { %1293 = vmatpush.msrb.mxu2 %v141_v29  ;;  %1312 = vmatpush.msrb.mxu3 %v158_v30  ;;  %v149_v13 = vld [vmem:[%s5561_s1 + $0x380] sm:$0xff]  ;;  %v196_v15 = vld [vmem:[%s5561_s1 + $0x4f8] sm:$0xff]  ;;  %v211_v16 = vld [vmem:[%s5561_s1 + $0x570] sm:$0xff] }
  0x32   :  { %1254 = vmatpush.msrb.mxu0 %v108_v31  ;;  %1273 = vmatpush.msrb.mxu1 %v125_v32  ;;  %v228_v17 = vld [vmem:[%s5561_s1 + $0x5f8] sm:$0xff]  ;;  %v178_v18 = vld [vmem:[%s5561_s1 + $0x468] sm:$0xff]  ;;  %v195_v19 = vld [vmem:[%s5561_s1 + $0x4f0] sm:$0xff] }
  0x33   :  { %1294 = vmatpush.msrb.mxu2 %v140_v33  ;;  %1313 = vmatpush.msrb.mxu3 %v157_v34  ;;  %v210_v20 = vld [vmem:[%s5561_s1 + $0x568] sm:$0xff]  ;;  %v227_v21 = vld [vmem:[%s5561_s1 + $0x5f0] sm:$0xff]  ;;  %v177_v22 = vld [vmem:[%s5561_s1 + $0x460] sm:$0xff] }
  0x34   :  { %1255 = vmatpush.msrb.mxu0 %v107_v35  ;;  %1274 = vmatpush.msrb.mxu1 %v124_v36  ;;  %v194_v23 = vld [vmem:[%s5561_s1 + $0x4e8] sm:$0xff]  ;;  %v209_v24 = vld [vmem:[%s5561_s1 + $0x560] sm:$0xff]  ;;  %v2960_v26 = vld.sshfl [vmem:[#allocation1 + $0x10] sm:$0xff pattern:$0x73625140] }
  0x35   :  { %1295 = vmatpush.msrb.mxu2 %v139_v37  ;;  %1314 = vmatpush.msrb.mxu3 %v156_v38  ;;  %v2958_v25 = vld.sshfl [vmem:[#allocation1] sm:$0xff pattern:$0x73625140]  ;;  %v2962_v27 = vld.sshfl [vmem:[#allocation1 + $0x8] sm:$0xff pattern:$0x73625140] }
  0x36   :  { %1256 = vmatpush.msrb.mxu0 %v106_v40  ;;  %1275 = vmatpush.msrb.mxu1 %v123_v41  ;;  %v226_v28 = vld [vmem:[%s5561_s1 + $0x5e8] sm:$0xff]  ;;  %v25_v29 = vld [vmem:[%s5560_s0 + $0x20] sm:$0xff]  ;;  %v2970_v30 = vld.sshfl [vmem:[#allocation1 + $0x18] sm:$0xff pattern:$0x73625140] }
  0x37   :  { %1296 = vmatpush.msrb.mxu2 %v138_v43  ;;  %1315 = vmatpush.msrb.mxu3 %v155_v48  ;;  %v176_v31 = vld [vmem:[%s5561_s1 + $0x458] sm:$0xff]  ;;  %v193_v32 = vld [vmem:[%s5561_s1 + $0x4e0] sm:$0xff]  ;;  %1046 = vst [vmem:[#allocation1] ss:$4 sm:$0xff] %v25_v29  ;;  %v175_v35 = vld [vmem:[%s5561_s1 + $0x450] sm:$0xff] }
  0x38   :  { %1257 = vmatpush.msrb.mxu0 %v105_v49  ;;  %1276 = vmatpush.msrb.mxu1 %v122_v50  ;;  %v208_v33 = vld [vmem:[%s5561_s1 + $0x558] sm:$0xff]  ;;  %v225_v34 = vld [vmem:[%s5561_s1 + $0x5e0] sm:$0xff] }
  0x39   :  { %1297 = vmatpush.msrb.mxu2 %v137_v51  ;;  %1316 = vmatpush.msrb.mxu3 %v154_v52  ;;  %v192_v36 = vld [vmem:[%s5561_s1 + $0x4d8] sm:$0xff] }
  0x3a   :  { %1258 = vmatpush.msrb.mxu0 %v104_v53  ;;  %1277 = vmatpush.msrb.mxu1 %v121_v54 }
  0x3b   :  { %1298 = vmatpush.msrb.mxu2 %v136_v55  ;;  %1317 = vmatpush.msrb.mxu3 %v153_v56 }
  0x3c   :  { %1259 = vmatpush.msrb.mxu0 %v103_v57  ;;  %1278 = vmatpush.msrb.mxu1 %v120_v58 }
  0x3d   :  { %1299 = vmatpush.msrb.mxu2 %v135_v0  ;;  %1318 = vmatpush.msrb.mxu3 %v152_v1 }
  0x3e   :  { %1260 = vmatpush.msrb.mxu0 %v102_v2  ;;  %1279 = vmatpush.msrb.mxu1 %v119_v3 }
  0x3f   :  { %1300 = vmatpush.msrb.mxu2 %v134_v4  ;;  %1319 = vmatpush.msrb.mxu3 %v151_v5 }
  0x40   :  { %1222 = vmatmul.f32.vlgmr.msra.gmra.mxu2 %v1030_v44  ;;  %1261 = vmatpush.msrb.mxu0 %v101_v6 }
  0x41   :  { %1280 = vmatpush.msrb.mxu1 %v118_v7  ;;  %1301 = vmatpush.msrb.mxu2 %v133_v8 }
  0x42   :  { %1320 = vmatpush.msrb.mxu3 %v150_v9  ;;  %1182 = vmatmul.f32.vlgmr.msra.gmra.mxu0 %v2830_v45 }
  0x43   :  { %1242 = vmatmul.f32.vlgmr.msra.gmra.mxu3 %v2832_v46  ;;  %1326 = vmatpush.msra.mxu0 %v180_v10 }
  0x44   :  { %1366 = vmatpush.msra.mxu2 %v212_v11  ;;  %1281 = vmatpush.msrb.mxu1 %v117_v12 }
  0x45   :  { %1321 = vmatpush.msrb.mxu3 %v149_v13  ;;  %1202 = vmatmul.f32.vlgmr.msra.gmra.mxu1 %v2834_v47 }
  0x46   :  { %1327 = vmatpush.msra.mxu0 %v179_v14  ;;  %1346 = vmatpush.msra.mxu1 %v196_v15 }
  0x47   :  { %1367 = vmatpush.msra.mxu2 %v211_v16  ;;  %1386 = vmatpush.msra.mxu3 %v228_v17 }
  0x48   :  { %1328 = vmatpush.msra.mxu0 %v178_v18  ;;  %1347 = vmatpush.msra.mxu1 %v195_v19 }
  0x49   :  { %1368 = vmatpush.msra.mxu2 %v210_v20  ;;  %1387 = vmatpush.msra.mxu3 %v227_v21 }
  0x4a   :  { %1302 = vmatmul.f32.vlgmr.msrb.gmra.mxu2 %v2872_v60  ;;  %1329 = vmatpush.msra.mxu0 %v177_v22 }
  0x4b   :  { %1348 = vmatpush.msra.mxu1 %v194_v23  ;;  %1369 = vmatpush.msra.mxu2 %v209_v24 }
  0x4c   :  { %1388 = vmatpush.msra.mxu3 %v226_v28  ;;  %1262 = vmatmul.f32.vlgmr.msrb.gmra.mxu0 %v2874_v61 }
  0x4d   :  { %1322 = vmatmul.f32.vlgmr.msrb.gmra.mxu3 %v2876_v62  ;;  %1330 = vmatpush.msra.mxu0 %v176_v31 }
  0x4e   :  { %10 = vsyncpa [#allocation3], 0  ;;  %1349 = vmatpush.msra.mxu1 %v193_v32  ;;  %1370 = vmatpush.msra.mxu2 %v208_v33  ;;  %v207_v37 = vld [vmem:[%s5561_s1 + $0x550] sm:$0xff]  ;;  %v224_v38 = vld [vmem:[%s5561_s1 + $0x5d8] sm:$0xff]  ;;  %vm1163_vm0 = vcmask 523264   ;;  %s2475_s30 = smov [#allocation2]  }
  0x4f   :  { %1389 = vmatpush.msra.mxu3 %v225_v34  ;;  %1282 = vmatmul.f32.vlgmr.msrb.gmra.mxu1 %v2878_v63  ;;  %v174_v39 = vld [vmem:[%s5561_s1 + $0x448] sm:$0xff]  ;;  %v191_v40 = vld [vmem:[%s5561_s1 + $0x4d0] sm:$0xff]  ;;  %v173_v43 = vld [vmem:[%s5561_s1 + $0x440] sm:$0xff]  ;;  %s2434_s6 = sshll.u32 %s2475_s30, 4  ;;  %s2436_s9 = sshll.u32 %s5565_s5, 4  ;;  %vm2427_vm1 = vcmask 9216   ;;  %s2435_s6 = int_to_ptr.vmem [resolvable:$true] %s2434_s6  ;;  %s2437_s9 = int_to_ptr.hbm [resolvable:$true] %s2436_s9 }
  0x50   :  { %1331 = vmatpush.msra.mxu0 %v175_v35  ;;  %1350 = vmatpush.msra.mxu1 %v192_v36  ;;  %v206_v41 = vld [vmem:[%s5561_s1 + $0x548] sm:$0xff]  ;;  %v223_v42 = vld [vmem:[%s5561_s1 + $0x5d0] sm:$0xff]  ;;  %v205_v45 = vld [vmem:[%s5561_s1 + $0x540] sm:$0xff] }
  0x51   :  { %1371 = vmatpush.msra.mxu2 %v207_v37  ;;  %1390 = vmatpush.msra.mxu3 %v224_v38  ;;  %v190_v44 = vld [vmem:[%s5561_s1 + $0x4c8] sm:$0xff]  ;;  %v172_v47 = vld [vmem:[%s5561_s1 + $0x438] sm:$0xff]  ;;  %v189_v48 = vld [vmem:[%s5561_s1 + $0x4c0] sm:$0xff] }
  0x52   :  { %1332 = vmatpush.msra.mxu0 %v174_v39  ;;  %1351 = vmatpush.msra.mxu1 %v191_v40  ;;  %v222_v46 = vld [vmem:[%s5561_s1 + $0x5c8] sm:$0xff]  ;;  %v204_v49 = vld [vmem:[%s5561_s1 + $0x538] sm:$0xff]  ;;  %v221_v50 = vld [vmem:[%s5561_s1 + $0x5c0] sm:$0xff] }
  0x53   :  { %1372 = vmatpush.msra.mxu2 %v206_v41  ;;  %1391 = vmatpush.msra.mxu3 %v223_v42  ;;  %v171_v51 = vld [vmem:[%s5561_s1 + $0x430] sm:$0xff]  ;;  %v188_v52 = vld [vmem:[%s5561_s1 + $0x4b8] sm:$0xff]  ;;  %v170_v55 = vld [vmem:[%s5561_s1 + $0x428] sm:$0xff] }
  0x54   :  { %1333 = vmatpush.msra.mxu0 %v173_v43  ;;  %1352 = vmatpush.msra.mxu1 %v190_v44  ;;  %v203_v53 = vld [vmem:[%s5561_s1 + $0x530] sm:$0xff]  ;;  %v220_v54 = vld [vmem:[%s5561_s1 + $0x5b8] sm:$0xff]  ;;  %v202_v57 = vld [vmem:[%s5561_s1 + $0x528] sm:$0xff] }
  0x55   :  { %1373 = vmatpush.msra.mxu2 %v205_v45  ;;  %1392 = vmatpush.msra.mxu3 %v222_v46  ;;  %v187_v56 = vld [vmem:[%s5561_s1 + $0x4b0] sm:$0xff]  ;;  %v169_v59 = vld [vmem:[%s5561_s1 + $0x420] sm:$0xff]  ;;  %v186_v60 = vld [vmem:[%s5561_s1 + $0x4a8] sm:$0xff] }
  0x56   :  { %1334 = vmatpush.msra.mxu0 %v172_v47  ;;  %1353 = vmatpush.msra.mxu1 %v189_v48  ;;  %v219_v58 = vld [vmem:[%s5561_s1 + $0x5b0] sm:$0xff]  ;;  %v201_v61 = vld [vmem:[%s5561_s1 + $0x520] sm:$0xff]  ;;  %v218_v62 = vld [vmem:[%s5561_s1 + $0x5a8] sm:$0xff] }
  0x57   :  { %1374 = vmatpush.msra.mxu2 %v204_v49  ;;  %1393 = vmatpush.msra.mxu3 %v221_v50  ;;  %v168_v63 = vld [vmem:[%s5561_s1 + $0x418] sm:$0xff]  ;;  %v185_v0 = vld [vmem:[%s5561_s1 + $0x4a0] sm:$0xff]  ;;  %v167_v3 = vld [vmem:[%s5561_s1 + $0x410] sm:$0xff] }
  0x58   :  { %1335 = vmatpush.msra.mxu0 %v171_v51  ;;  %1354 = vmatpush.msra.mxu1 %v188_v52  ;;  %v200_v1 = vld [vmem:[%s5561_s1 + $0x518] sm:$0xff]  ;;  %v217_v2 = vld [vmem:[%s5561_s1 + $0x5a0] sm:$0xff]  ;;  %v199_v5 = vld [vmem:[%s5561_s1 + $0x510] sm:$0xff] }
  0x59   :  { %1375 = vmatpush.msra.mxu2 %v203_v53  ;;  %1394 = vmatpush.msra.mxu3 %v220_v54  ;;  %v184_v4 = vld [vmem:[%s5561_s1 + $0x498] sm:$0xff]  ;;  %v166_v7 = vld [vmem:[%s5561_s1 + $0x408] sm:$0xff]  ;;  %v183_v8 = vld [vmem:[%s5561_s1 + $0x490] sm:$0xff] }
  0x5a   :  { %1336 = vmatpush.msra.mxu0 %v170_v55  ;;  %1355 = vmatpush.msra.mxu1 %v187_v56  ;;  %v216_v6 = vld [vmem:[%s5561_s1 + $0x598] sm:$0xff]  ;;  %v198_v9 = vld [vmem:[%s5561_s1 + $0x508] sm:$0xff]  ;;  %v215_v10 = vld [vmem:[%s5561_s1 + $0x590] sm:$0xff] }
  0x5b   :  { %1376 = vmatpush.msra.mxu2 %v202_v57  ;;  %1395 = vmatpush.msra.mxu3 %v219_v58  ;;  %v165_v11 = vld [vmem:[%s5561_s1 + $0x400] sm:$0xff]  ;;  %v182_v12 = vld [vmem:[%s5561_s1 + $0x488] sm:$0xff]  ;;  %v244_v15 = vld [vmem:[%s5561_s1 + $0x678] sm:$0xff] }
  0x5c   :  { %1337 = vmatpush.msra.mxu0 %v169_v59  ;;  %1356 = vmatpush.msra.mxu1 %v186_v60  ;;  %v197_v13 = vld [vmem:[%s5561_s1 + $0x500] sm:$0xff]  ;;  %v214_v14 = vld [vmem:[%s5561_s1 + $0x588] sm:$0xff]  ;;  %v276_v16 = vld [vmem:[%s5561_s1 + $0x778] sm:$0xff] }
  0x5d   :  { %1377 = vmatpush.msra.mxu2 %v201_v61  ;;  %1396 = vmatpush.msra.mxu3 %v218_v62  ;;  %v181_v17 = vld [vmem:[%s5561_s1 + $0x480] sm:$0xff]  ;;  %v243_v19 = vld [vmem:[%s5561_s1 + $0x670] sm:$0xff]  ;;  %v260_v20 = vld [vmem:[%s5561_s1 + $0x6f8] sm:$0xff] }
  0x5e   :  { %1338 = vmatpush.msra.mxu0 %v168_v63  ;;  %1357 = vmatpush.msra.mxu1 %v185_v0  ;;  %v213_v18 = vld [vmem:[%s5561_s1 + $0x580] sm:$0xff]  ;;  %v275_v21 = vld [vmem:[%s5561_s1 + $0x770] sm:$0xff]  ;;  %v292_v22 = vld [vmem:[%s5561_s1 + $0x7f8] sm:$0xff] }
  0x5f   :  { %1378 = vmatpush.msra.mxu2 %v200_v1  ;;  %1397 = vmatpush.msra.mxu3 %v217_v2  ;;  %v242_v23 = vld [vmem:[%s5561_s1 + $0x668] sm:$0xff]  ;;  %v259_v24 = vld [vmem:[%s5561_s1 + $0x6f0] sm:$0xff]  ;;  %v241_v28 = vld [vmem:[%s5561_s1 + $0x660] sm:$0xff] }
  0x60   :  { %1339 = vmatpush.msra.mxu0 %v167_v3  ;;  %1358 = vmatpush.msra.mxu1 %v184_v4  ;;  %v3163_v29 = vld.sshfl [vmem:[#allocation1 + $0x20] sm:$0xff pattern:$0x73625140]  ;;  %v3165_v31 = vld.sshfl [vmem:[#allocation1 + $0x30] sm:$0xff pattern:$0x73625140] }
  0x61   :  { %1379 = vmatpush.msra.mxu2 %v199_v5  ;;  %1398 = vmatpush.msra.mxu3 %v216_v6  ;;  %v3167_v32 = vld.sshfl [vmem:[#allocation1 + $0x28] sm:$0xff pattern:$0x73625140]  ;;  %v3175_v33 = vld.sshfl [vmem:[#allocation1 + $0x38] sm:$0xff pattern:$0x73625140] }
  0x62   :  { %1340 = vmatpush.msra.mxu0 %v166_v7  ;;  %1359 = vmatpush.msra.mxu1 %v183_v8  ;;  %v273_v34 = vld [vmem:[%s5561_s1 + $0x760] sm:$0xff]  ;;  %v290_v35 = vld [vmem:[%s5561_s1 + $0x7e8] sm:$0xff]  ;;  %v240_v36 = vld [vmem:[%s5561_s1 + $0x658] sm:$0xff] }
  0x63   :  { %1380 = vmatpush.msra.mxu2 %v198_v9  ;;  %1399 = vmatpush.msra.mxu3 %v215_v10  ;;  %v257_v37 = vld [vmem:[%s5561_s1 + $0x6e0] sm:$0xff]  ;;  %v272_v38 = vld [vmem:[%s5561_s1 + $0x758] sm:$0xff]  ;;  %v239_v40 = vld [vmem:[%s5561_s1 + $0x650] sm:$0xff] }
  0x64   :  { %1341 = vmatpush.msra.mxu0 %v165_v11  ;;  %1360 = vmatpush.msra.mxu1 %v182_v12  ;;  %v289_v39 = vld [vmem:[%s5561_s1 + $0x7e0] sm:$0xff]  ;;  %v256_v41 = vld [vmem:[%s5561_s1 + $0x6d8] sm:$0xff]  ;;  %v271_v42 = vld [vmem:[%s5561_s1 + $0x750] sm:$0xff] }
  0x65   :  { %1381 = vmatpush.msra.mxu2 %v197_v13  ;;  %1400 = vmatpush.msra.mxu3 %v214_v14  ;;  %v288_v43 = vld [vmem:[%s5561_s1 + $0x7d8] sm:$0xff]  ;;  %v238_v44 = vld [vmem:[%s5561_s1 + $0x648] sm:$0xff]  ;;  %v255_v45 = vld [vmem:[%s5561_s1 + $0x6d0] sm:$0xff] }
  0x66   :  { %1342 = vmatmul.f32.vlgmr.msra.gmra.mxu0 %v2958_v25  ;;  %1382 = vmatmul.f32.vlgmr.msra.gmra.mxu2 %v2960_v26  ;;  %v274_v25 = vld [vmem:[%s5561_s1 + $0x768] sm:$0xff]  ;;  %v291_v26 = vld [vmem:[%s5561_s1 + $0x7f0] sm:$0xff]  ;;  %v237_v48 = vld [vmem:[%s5561_s1 + $0x640] sm:$0xff] }
  0x67   :  { %1406 = vmatpush.msrb.mxu0 %v244_v15  ;;  %1446 = vmatpush.msrb.mxu2 %v276_v16  ;;  %v270_v46 = vld [vmem:[%s5561_s1 + $0x748] sm:$0xff]  ;;  %v287_v47 = vld [vmem:[%s5561_s1 + $0x7d0] sm:$0xff]  ;;  %v269_v50 = vld [vmem:[%s5561_s1 + $0x740] sm:$0xff] }
  0x68   :  { %1361 = vmatpush.msra.mxu1 %v181_v17  ;;  %1401 = vmatpush.msra.mxu3 %v213_v18  ;;  %v254_v49 = vld [vmem:[%s5561_s1 + $0x6c8] sm:$0xff]  ;;  %v236_v52 = vld [vmem:[%s5561_s1 + $0x638] sm:$0xff]  ;;  %v253_v53 = vld [vmem:[%s5561_s1 + $0x6c0] sm:$0xff] }
  0x69   :  { %1362 = vmatmul.f32.vlgmr.msra.gmra.mxu1 %v2962_v27  ;;  %1402 = vmatmul.f32.vlgmr.msra.gmra.mxu3 %v2970_v30  ;;  %v258_v27 = vld [vmem:[%s5561_s1 + $0x6e8] sm:$0xff]  ;;  %v268_v54 = vld [vmem:[%s5561_s1 + $0x738] sm:$0xff]  ;;  %v285_v55 = vld [vmem:[%s5561_s1 + $0x7c0] sm:$0xff] }
  0x6a   :  { %1407 = vmatpush.msrb.mxu0 %v243_v19  ;;  %1426 = vmatpush.msrb.mxu1 %v260_v20  ;;  %v26_v30 = vld [vmem:[%s5560_s0 + $0x28] sm:$0xff]  ;;  %v235_v56 = vld [vmem:[%s5561_s1 + $0x630] sm:$0xff]  ;;  %v252_v57 = vld [vmem:[%s5561_s1 + $0x6b8] sm:$0xff] }
  0x6b   :  { %1447 = vmatpush.msrb.mxu2 %v275_v21  ;;  %1466 = vmatpush.msrb.mxu3 %v292_v22  ;;  %1047 = vst [vmem:[#allocation1 + $0x20] ss:$4 sm:$0xff] %v26_v30  ;;  %v286_v51 = vld [vmem:[%s5561_s1 + $0x7c8] sm:$0xff]  ;;  %v267_v58 = vld [vmem:[%s5561_s1 + $0x730] sm:$0xff]  ;;  %v284_v59 = vld [vmem:[%s5561_s1 + $0x7b8] sm:$0xff] }
  0x6c   :  { %1408 = vmatpush.msrb.mxu0 %v242_v23  ;;  %1427 = vmatpush.msrb.mxu1 %v259_v24  ;;  %v234_v60 = vld [vmem:[%s5561_s1 + $0x628] sm:$0xff]  ;;  %v251_v61 = vld [vmem:[%s5561_s1 + $0x6b0] sm:$0xff]  ;;  %v233_v0 = vld [vmem:[%s5561_s1 + $0x620] sm:$0xff] }
  0x6d   :  { %1448 = vmatpush.msrb.mxu2 %v274_v25  ;;  %1467 = vmatpush.msrb.mxu3 %v291_v26  ;;  %v266_v62 = vld [vmem:[%s5561_s1 + $0x728] sm:$0xff]  ;;  %v283_v63 = vld [vmem:[%s5561_s1 + $0x7b0] sm:$0xff]  ;;  %v265_v2 = vld [vmem:[%s5561_s1 + $0x720] sm:$0xff] }
  0x6e   :  { %1409 = vmatpush.msrb.mxu0 %v241_v28  ;;  %1428 = vmatpush.msrb.mxu1 %v258_v27  ;;  %v250_v1 = vld [vmem:[%s5561_s1 + $0x6a8] sm:$0xff]  ;;  %v232_v4 = vld [vmem:[%s5561_s1 + $0x618] sm:$0xff]  ;;  %v249_v5 = vld [vmem:[%s5561_s1 + $0x6a0] sm:$0xff] }
  0x6f   :  { %1449 = vmatpush.msrb.mxu2 %v273_v34  ;;  %1468 = vmatpush.msrb.mxu3 %v290_v35  ;;  %v282_v3 = vld [vmem:[%s5561_s1 + $0x7a8] sm:$0xff]  ;;  %v264_v6 = vld [vmem:[%s5561_s1 + $0x718] sm:$0xff]  ;;  %v281_v7 = vld [vmem:[%s5561_s1 + $0x7a0] sm:$0xff] }
  0x70   :  { %1410 = vmatpush.msrb.mxu0 %v240_v36  ;;  %1429 = vmatpush.msrb.mxu1 %v257_v37  ;;  %v231_v8 = vld [vmem:[%s5561_s1 + $0x610] sm:$0xff]  ;;  %v248_v9 = vld [vmem:[%s5561_s1 + $0x698] sm:$0xff]  ;;  %v230_v12 = vld [vmem:[%s5561_s1 + $0x608] sm:$0xff] }
  0x71   :  { %1450 = vmatpush.msrb.mxu2 %v272_v38  ;;  %1469 = vmatpush.msrb.mxu3 %v289_v39  ;;  %v263_v10 = vld [vmem:[%s5561_s1 + $0x710] sm:$0xff]  ;;  %v280_v11 = vld [vmem:[%s5561_s1 + $0x798] sm:$0xff]  ;;  %v262_v14 = vld [vmem:[%s5561_s1 + $0x708] sm:$0xff] }
  0x72   :  { %1411 = vmatpush.msrb.mxu0 %v239_v40  ;;  %1430 = vmatpush.msrb.mxu1 %v256_v41  ;;  %v247_v13 = vld [vmem:[%s5561_s1 + $0x690] sm:$0xff]  ;;  %v229_v16 = vld [vmem:[%s5561_s1 + $0x600] sm:$0xff]  ;;  %v246_v17 = vld [vmem:[%s5561_s1 + $0x688] sm:$0xff] }
  0x73   :  { %1451 = vmatpush.msrb.mxu2 %v271_v42  ;;  %1470 = vmatpush.msrb.mxu3 %v288_v43  ;;  %v279_v15 = vld [vmem:[%s5561_s1 + $0x790] sm:$0xff]  ;;  %v261_v18 = vld [vmem:[%s5561_s1 + $0x700] sm:$0xff]  ;;  %v278_v19 = vld [vmem:[%s5561_s1 + $0x788] sm:$0xff] }
  0x74   :  { %1412 = vmatpush.msrb.mxu0 %v238_v44  ;;  %1431 = vmatpush.msrb.mxu1 %v255_v45  ;;  %v308_v20 = vld [vmem:[%s5561_s1 + $0x878] sm:$0xff]  ;;  %v245_v22 = vld [vmem:[%s5561_s1 + $0x680] sm:$0xff]  ;;  %v307_v24 = vld [vmem:[%s5561_s1 + $0x870] sm:$0xff] }
  0x75   :  { %1452 = vmatpush.msrb.mxu2 %v270_v46  ;;  %1471 = vmatpush.msrb.mxu3 %v287_v47  ;;  %v340_v21 = vld [vmem:[%s5561_s1 + $0x978] sm:$0xff]  ;;  %v277_v23 = vld [vmem:[%s5561_s1 + $0x780] sm:$0xff]  ;;  %v339_v26 = vld [vmem:[%s5561_s1 + $0x970] sm:$0xff] }
  0x76   :  { %1413 = vmatpush.msrb.mxu0 %v237_v48  ;;  %1432 = vmatpush.msrb.mxu1 %v254_v49  ;;  %v324_v25 = vld [vmem:[%s5561_s1 + $0x8f8] sm:$0xff]  ;;  %v338_v27 = vld [vmem:[%s5561_s1 + $0x968] sm:$0xff]  ;;  %v305_v30 = vld [vmem:[%s5561_s1 + $0x860] sm:$0xff] }
  0x77   :  { %1453 = vmatpush.msrb.mxu2 %v269_v50  ;;  %1472 = vmatpush.msrb.mxu3 %v286_v51  ;;  %v356_v28 = vld [vmem:[%s5561_s1 + $0x9f8] sm:$0xff]  ;;  %v337_v34 = vld [vmem:[%s5561_s1 + $0x960] sm:$0xff]  ;;  %v354_v35 = vld [vmem:[%s5561_s1 + $0x9e8] sm:$0xff] }
  0x78   :  { %1414 = vmatpush.msrb.mxu0 %v236_v52  ;;  %1433 = vmatpush.msrb.mxu1 %v253_v53  ;;  %v304_v36 = vld [vmem:[%s5561_s1 + $0x858] sm:$0xff]  ;;  %v321_v37 = vld [vmem:[%s5561_s1 + $0x8e0] sm:$0xff]  ;;  %v303_v40 = vld [vmem:[%s5561_s1 + $0x850] sm:$0xff] }
  0x79   :  { %1454 = vmatpush.msrb.mxu2 %v268_v54  ;;  %1473 = vmatpush.msrb.mxu3 %v285_v55  ;;  %v336_v38 = vld [vmem:[%s5561_s1 + $0x958] sm:$0xff]  ;;  %v353_v39 = vld [vmem:[%s5561_s1 + $0x9e0] sm:$0xff]  ;;  %v335_v42 = vld [vmem:[%s5561_s1 + $0x950] sm:$0xff] }
  0x7a   :  { %1415 = vmatpush.msrb.mxu0 %v235_v56  ;;  %1434 = vmatpush.msrb.mxu1 %v252_v57  ;;  %v320_v41 = vld [vmem:[%s5561_s1 + $0x8d8] sm:$0xff]  ;;  %v302_v44 = vld [vmem:[%s5561_s1 + $0x848] sm:$0xff]  ;;  %v319_v45 = vld [vmem:[%s5561_s1 + $0x8d0] sm:$0xff] }
  0x7b   :  { %1455 = vmatpush.msrb.mxu2 %v267_v58  ;;  %1474 = vmatpush.msrb.mxu3 %v284_v59  ;;  %v352_v43 = vld [vmem:[%s5561_s1 + $0x9d8] sm:$0xff]  ;;  %v334_v46 = vld [vmem:[%s5561_s1 + $0x948] sm:$0xff]  ;;  %v351_v47 = vld [vmem:[%s5561_s1 + $0x9d0] sm:$0xff] }
  0x7c   :  { %1416 = vmatpush.msrb.mxu0 %v234_v60  ;;  %1435 = vmatpush.msrb.mxu1 %v251_v61  ;;  %v301_v48 = vld [vmem:[%s5561_s1 + $0x840] sm:$0xff]  ;;  %v318_v49 = vld [vmem:[%s5561_s1 + $0x8c8] sm:$0xff]  ;;  %v300_v52 = vld [vmem:[%s5561_s1 + $0x838] sm:$0xff] }
  0x7d   :  { %1456 = vmatpush.msrb.mxu2 %v266_v62  ;;  %1475 = vmatpush.msrb.mxu3 %v283_v63  ;;  %v333_v50 = vld [vmem:[%s5561_s1 + $0x940] sm:$0xff]  ;;  %v350_v51 = vld [vmem:[%s5561_s1 + $0x9c8] sm:$0xff]  ;;  %v332_v54 = vld [vmem:[%s5561_s1 + $0x938] sm:$0xff] }
  0x7e   :  { %1417 = vmatpush.msrb.mxu0 %v233_v0  ;;  %1436 = vmatpush.msrb.mxu1 %v250_v1  ;;  %v317_v53 = vld [vmem:[%s5561_s1 + $0x8c0] sm:$0xff]  ;;  %v299_v56 = vld [vmem:[%s5561_s1 + $0x830] sm:$0xff]  ;;  %v316_v57 = vld [vmem:[%s5561_s1 + $0x8b8] sm:$0xff] }
  0x7f   :  { %1457 = vmatpush.msrb.mxu2 %v265_v2  ;;  %1476 = vmatpush.msrb.mxu3 %v282_v3  ;;  %v349_v55 = vld [vmem:[%s5561_s1 + $0x9c0] sm:$0xff]  ;;  %v331_v58 = vld [vmem:[%s5561_s1 + $0x930] sm:$0xff]  ;;  %v348_v59 = vld [vmem:[%s5561_s1 + $0x9b8] sm:$0xff] }
  0x80   :  { %1418 = vmatpush.msrb.mxu0 %v232_v4  ;;  %1437 = vmatpush.msrb.mxu1 %v249_v5  ;;  %v298_v60 = vld [vmem:[%s5561_s1 + $0x828] sm:$0xff]  ;;  %v315_v61 = vld [vmem:[%s5561_s1 + $0x8b0] sm:$0xff]  ;;  %v297_v0 = vld [vmem:[%s5561_s1 + $0x820] sm:$0xff] }
  0x81   :  { %1458 = vmatpush.msrb.mxu2 %v264_v6  ;;  %1477 = vmatpush.msrb.mxu3 %v281_v7  ;;  %v330_v62 = vld [vmem:[%s5561_s1 + $0x928] sm:$0xff]  ;;  %v347_v63 = vld [vmem:[%s5561_s1 + $0x9b0] sm:$0xff]  ;;  %v329_v2 = vld [vmem:[%s5561_s1 + $0x920] sm:$0xff] }
  0x82   :  { %1419 = vmatpush.msrb.mxu0 %v231_v8  ;;  %1438 = vmatpush.msrb.mxu1 %v248_v9  ;;  %v314_v1 = vld [vmem:[%s5561_s1 + $0x8a8] sm:$0xff]  ;;  %v296_v4 = vld [vmem:[%s5561_s1 + $0x818] sm:$0xff]  ;;  %v313_v5 = vld [vmem:[%s5561_s1 + $0x8a0] sm:$0xff] }
  0x83   :  { %1459 = vmatpush.msrb.mxu2 %v263_v10  ;;  %1478 = vmatpush.msrb.mxu3 %v280_v11  ;;  %v346_v3 = vld [vmem:[%s5561_s1 + $0x9a8] sm:$0xff]  ;;  %v328_v6 = vld [vmem:[%s5561_s1 + $0x918] sm:$0xff]  ;;  %v345_v7 = vld [vmem:[%s5561_s1 + $0x9a0] sm:$0xff] }
  0x84   :  { %1420 = vmatpush.msrb.mxu0 %v230_v12  ;;  %1439 = vmatpush.msrb.mxu1 %v247_v13  ;;  %v295_v8 = vld [vmem:[%s5561_s1 + $0x810] sm:$0xff]  ;;  %v312_v9 = vld [vmem:[%s5561_s1 + $0x898] sm:$0xff]  ;;  %v294_v12 = vld [vmem:[%s5561_s1 + $0x808] sm:$0xff] }
  0x85   :  { %1460 = vmatpush.msrb.mxu2 %v262_v14  ;;  %1479 = vmatpush.msrb.mxu3 %v279_v15  ;;  %v327_v10 = vld [vmem:[%s5561_s1 + $0x910] sm:$0xff]  ;;  %v344_v11 = vld [vmem:[%s5561_s1 + $0x998] sm:$0xff]  ;;  %v326_v14 = vld [vmem:[%s5561_s1 + $0x908] sm:$0xff] }
  0x86   :  { %1421 = vmatpush.msrb.mxu0 %v229_v16  ;;  %1440 = vmatpush.msrb.mxu1 %v246_v17  ;;  %v311_v13 = vld [vmem:[%s5561_s1 + $0x890] sm:$0xff]  ;;  %v293_v16 = vld [vmem:[%s5561_s1 + $0x800] sm:$0xff]  ;;  %v310_v17 = vld [vmem:[%s5561_s1 + $0x888] sm:$0xff] }
  0x87   :  { %1461 = vmatpush.msrb.mxu2 %v261_v18  ;;  %1480 = vmatpush.msrb.mxu3 %v278_v19  ;;  %v343_v15 = vld [vmem:[%s5561_s1 + $0x990] sm:$0xff]  ;;  %v325_v18 = vld [vmem:[%s5561_s1 + $0x900] sm:$0xff]  ;;  %v342_v19 = vld [vmem:[%s5561_s1 + $0x988] sm:$0xff] }
  0x88   :  { %1422 = vmatmul.f32.vlgmr.msrb.gmra.mxu0 %v3163_v29  ;;  %1462 = vmatmul.f32.vlgmr.msrb.gmra.mxu2 %v3165_v31  ;;  %v306_v29 = vld [vmem:[%s5561_s1 + $0x868] sm:$0xff]  ;;  %v323_v31 = vld [vmem:[%s5561_s1 + $0x8f0] sm:$0xff] }
  0x89   :  { %1486 = vmatpush.msra.mxu0 %v308_v20  ;;  %1526 = vmatpush.msra.mxu2 %v340_v21  ;;  %v1048_v20 = vld.sshfl [vmem:[#allocation1] sm:$0xff pattern:$0x73625140]  ;;  %v1050_v21 = vld.sshfl [vmem:[#allocation1 + $0x10] sm:$0xff pattern:$0x73625140] }
  0x8a   :  { %1441 = vmatpush.msrb.mxu1 %v245_v22  ;;  %1481 = vmatpush.msrb.mxu3 %v277_v23  ;;  %v372_v22 = vld [vmem:[%s5561_s1 + $0xa78] sm:$0xff] }
  0x8b   :  { %1442 = vmatmul.f32.vlgmr.msrb.gmra.mxu1 %v3167_v32  ;;  %1482 = vmatmul.f32.vlgmr.msrb.gmra.mxu3 %v3175_v33  ;;  %v355_v32 = vld [vmem:[%s5561_s1 + $0x9f0] sm:$0xff]  ;;  %v322_v33 = vld [vmem:[%s5561_s1 + $0x8e8] sm:$0xff]  ;;  %v404_v23 = vld [vmem:[%s5561_s1 + $0xb78] sm:$0xff] }
  0x8c   :  { %1487 = vmatpush.msra.mxu0 %v307_v24  ;;  %1506 = vmatpush.msra.mxu1 %v324_v25  ;;  %v309_v24 = vld [vmem:[%s5561_s1 + $0x880] sm:$0xff] }
  0x8d   :  { %1527 = vmatpush.msra.mxu2 %v339_v26  ;;  %1546 = vmatpush.msra.mxu3 %v356_v28  ;;  %v341_v25 = vld [vmem:[%s5561_s1 + $0x980] sm:$0xff]  ;;  %v1049_v26 = vld.sshfl [vmem:[#allocation1 + $0x8] sm:$0xff pattern:$0x73625140] }
  0x8e   :  { %1488 = vmatpush.msra.mxu0 %v306_v29  ;;  %1507 = vmatpush.msra.mxu1 %v323_v31  ;;  %v1051_v28 = vld.sshfl [vmem:[#allocation1 + $0x18] sm:$0xff pattern:$0x73625140]  ;;  %v371_v29 = vld [vmem:[%s5561_s1 + $0xa70] sm:$0xff] }
  0x8f   :  { %1528 = vmatpush.msra.mxu2 %v338_v27  ;;  %1547 = vmatpush.msra.mxu3 %v355_v32  ;;  %v388_v31 = vld [vmem:[%s5561_s1 + $0xaf8] sm:$0xff]  ;;  %v403_v27 = vld [vmem:[%s5561_s1 + $0xb70] sm:$0xff] }
  0x90   :  { %1489 = vmatpush.msra.mxu0 %v305_v30  ;;  %1508 = vmatpush.msra.mxu1 %v322_v33  ;;  %v420_v32 = vld [vmem:[%s5561_s1 + $0xbf8] sm:$0xff]  ;;  %v370_v30 = vld [vmem:[%s5561_s1 + $0xa68] sm:$0xff]  ;;  %v387_v33 = vld [vmem:[%s5561_s1 + $0xaf0] sm:$0xff] }
  0x91   :  { %1529 = vmatpush.msra.mxu2 %v337_v34  ;;  %1548 = vmatpush.msra.mxu3 %v354_v35  ;;  %v402_v34 = vld [vmem:[%s5561_s1 + $0xb68] sm:$0xff]  ;;  %v419_v35 = vld [vmem:[%s5561_s1 + $0xbf0] sm:$0xff] }
  0x92   :  { %1490 = vmatpush.msra.mxu0 %v304_v36  ;;  %1509 = vmatpush.msra.mxu1 %v321_v37  ;;  %v369_v36 = vld [vmem:[%s5561_s1 + $0xa60] sm:$0xff]  ;;  %v386_v37 = vld [vmem:[%s5561_s1 + $0xae8] sm:$0xff] }
  0x93   :  { %1530 = vmatpush.msra.mxu2 %v336_v38  ;;  %1549 = vmatpush.msra.mxu3 %v353_v39  ;;  %v401_v38 = vld [vmem:[%s5561_s1 + $0xb60] sm:$0xff]  ;;  %v418_v39 = vld [vmem:[%s5561_s1 + $0xbe8] sm:$0xff] }
  0x94   :  { %1491 = vmatpush.msra.mxu0 %v303_v40  ;;  %1510 = vmatpush.msra.mxu1 %v320_v41  ;;  %v368_v40 = vld [vmem:[%s5561_s1 + $0xa58] sm:$0xff]  ;;  %v385_v41 = vld [vmem:[%s5561_s1 + $0xae0] sm:$0xff] }
  0x95   :  { %1531 = vmatpush.msra.mxu2 %v335_v42  ;;  %1550 = vmatpush.msra.mxu3 %v352_v43  ;;  %v400_v42 = vld [vmem:[%s5561_s1 + $0xb58] sm:$0xff]  ;;  %v417_v43 = vld [vmem:[%s5561_s1 + $0xbe0] sm:$0xff] }
  0x96   :  { %1492 = vmatpush.msra.mxu0 %v302_v44  ;;  %1511 = vmatpush.msra.mxu1 %v319_v45  ;;  %v367_v44 = vld [vmem:[%s5561_s1 + $0xa50] sm:$0xff]  ;;  %v384_v45 = vld [vmem:[%s5561_s1 + $0xad8] sm:$0xff] }
  0x97   :  { %1532 = vmatpush.msra.mxu2 %v334_v46  ;;  %1551 = vmatpush.msra.mxu3 %v351_v47  ;;  %v399_v46 = vld [vmem:[%s5561_s1 + $0xb50] sm:$0xff]  ;;  %v416_v47 = vld [vmem:[%s5561_s1 + $0xbd8] sm:$0xff] }
  0x98   :  { %1493 = vmatpush.msra.mxu0 %v301_v48  ;;  %1512 = vmatpush.msra.mxu1 %v318_v49  ;;  %v366_v48 = vld [vmem:[%s5561_s1 + $0xa48] sm:$0xff]  ;;  %v383_v49 = vld [vmem:[%s5561_s1 + $0xad0] sm:$0xff] }
  0x99   :  { %1533 = vmatpush.msra.mxu2 %v333_v50  ;;  %1552 = vmatpush.msra.mxu3 %v350_v51  ;;  %v398_v50 = vld [vmem:[%s5561_s1 + $0xb48] sm:$0xff]  ;;  %v415_v51 = vld [vmem:[%s5561_s1 + $0xbd0] sm:$0xff] }
  0x9a   :  { %1494 = vmatpush.msra.mxu0 %v300_v52  ;;  %1513 = vmatpush.msra.mxu1 %v317_v53  ;;  %v365_v52 = vld [vmem:[%s5561_s1 + $0xa40] sm:$0xff]  ;;  %v382_v53 = vld [vmem:[%s5561_s1 + $0xac8] sm:$0xff] }
  0x9b   :  { %1534 = vmatpush.msra.mxu2 %v332_v54  ;;  %1553 = vmatpush.msra.mxu3 %v349_v55  ;;  %v397_v54 = vld [vmem:[%s5561_s1 + $0xb40] sm:$0xff]  ;;  %v414_v55 = vld [vmem:[%s5561_s1 + $0xbc8] sm:$0xff] }
  0x9c   :  { %1495 = vmatpush.msra.mxu0 %v299_v56  ;;  %1514 = vmatpush.msra.mxu1 %v316_v57  ;;  %v364_v56 = vld [vmem:[%s5561_s1 + $0xa38] sm:$0xff]  ;;  %v381_v57 = vld [vmem:[%s5561_s1 + $0xac0] sm:$0xff] }
  0x9d   :  { %1535 = vmatpush.msra.mxu2 %v331_v58  ;;  %1554 = vmatpush.msra.mxu3 %v348_v59  ;;  %v396_v58 = vld [vmem:[%s5561_s1 + $0xb38] sm:$0xff]  ;;  %v413_v59 = vld [vmem:[%s5561_s1 + $0xbc0] sm:$0xff] }
  0x9e   :  { %1496 = vmatpush.msra.mxu0 %v298_v60  ;;  %1515 = vmatpush.msra.mxu1 %v315_v61  ;;  %v363_v60 = vld [vmem:[%s5561_s1 + $0xa30] sm:$0xff]  ;;  %v380_v61 = vld [vmem:[%s5561_s1 + $0xab8] sm:$0xff] }
  0x9f   :  { %1536 = vmatpush.msra.mxu2 %v330_v62  ;;  %1555 = vmatpush.msra.mxu3 %v347_v63  ;;  %v395_v62 = vld [vmem:[%s5561_s1 + $0xb30] sm:$0xff]  ;;  %v412_v63 = vld [vmem:[%s5561_s1 + $0xbb8] sm:$0xff] }
  0xa0   :  { %1497 = vmatpush.msra.mxu0 %v297_v0  ;;  %1516 = vmatpush.msra.mxu1 %v314_v1  ;;  %v362_v0 = vld [vmem:[%s5561_s1 + $0xa28] sm:$0xff]  ;;  %v379_v1 = vld [vmem:[%s5561_s1 + $0xab0] sm:$0xff] }
  0xa1   :  { %1537 = vmatpush.msra.mxu2 %v329_v2  ;;  %1556 = vmatpush.msra.mxu3 %v346_v3  ;;  %v394_v2 = vld [vmem:[%s5561_s1 + $0xb28] sm:$0xff]  ;;  %v411_v3 = vld [vmem:[%s5561_s1 + $0xbb0] sm:$0xff] }
  0xa2   :  { %1498 = vmatpush.msra.mxu0 %v296_v4  ;;  %1517 = vmatpush.msra.mxu1 %v313_v5  ;;  %v361_v4 = vld [vmem:[%s5561_s1 + $0xa20] sm:$0xff]  ;;  %v378_v5 = vld [vmem:[%s5561_s1 + $0xaa8] sm:$0xff] }
  0xa3   :  { %1538 = vmatpush.msra.mxu2 %v328_v6  ;;  %1557 = vmatpush.msra.mxu3 %v345_v7  ;;  %v393_v6 = vld [vmem:[%s5561_s1 + $0xb20] sm:$0xff]  ;;  %v410_v7 = vld [vmem:[%s5561_s1 + $0xba8] sm:$0xff] }
  0xa4   :  { %1499 = vmatpush.msra.mxu0 %v295_v8  ;;  %1518 = vmatpush.msra.mxu1 %v312_v9  ;;  %v360_v8 = vld [vmem:[%s5561_s1 + $0xa18] sm:$0xff]  ;;  %v377_v9 = vld [vmem:[%s5561_s1 + $0xaa0] sm:$0xff] }
  0xa5   :  { %1539 = vmatpush.msra.mxu2 %v327_v10  ;;  %1558 = vmatpush.msra.mxu3 %v344_v11  ;;  %v392_v10 = vld [vmem:[%s5561_s1 + $0xb18] sm:$0xff]  ;;  %v409_v11 = vld [vmem:[%s5561_s1 + $0xba0] sm:$0xff] }
  0xa6   :  { %1500 = vmatpush.msra.mxu0 %v294_v12  ;;  %1519 = vmatpush.msra.mxu1 %v311_v13  ;;  %v359_v12 = vld [vmem:[%s5561_s1 + $0xa10] sm:$0xff]  ;;  %v376_v13 = vld [vmem:[%s5561_s1 + $0xa98] sm:$0xff] }
  0xa7   :  { %1540 = vmatpush.msra.mxu2 %v326_v14  ;;  %1559 = vmatpush.msra.mxu3 %v343_v15  ;;  %v391_v14 = vld [vmem:[%s5561_s1 + $0xb10] sm:$0xff]  ;;  %v408_v15 = vld [vmem:[%s5561_s1 + $0xb98] sm:$0xff] }
  0xa8   :  { %1501 = vmatpush.msra.mxu0 %v293_v16  ;;  %1520 = vmatpush.msra.mxu1 %v310_v17  ;;  %v358_v16 = vld [vmem:[%s5561_s1 + $0xa08] sm:$0xff]  ;;  %v375_v17 = vld [vmem:[%s5561_s1 + $0xa90] sm:$0xff] }
  0xa9   :  { %1541 = vmatpush.msra.mxu2 %v325_v18  ;;  %1560 = vmatpush.msra.mxu3 %v342_v19  ;;  %v27_v18 = vld [vmem:[%s5560_s0 + $0x30] sm:$0xff]  ;;  %v390_v19 = vld [vmem:[%s5561_s1 + $0xb08] sm:$0xff] }
  0xaa   :  { %1502 = vmatmul.f32.vlgmr.msra.gmra.mxu0 %v1048_v20  ;;  %1542 = vmatmul.f32.vlgmr.msra.gmra.mxu2 %v1050_v21  ;;  %v407_v20 = vld [vmem:[%s5561_s1 + $0xb90] sm:$0xff]  ;;  %1056 = vst [vmem:[#allocation1] ss:$4 sm:$0xff] %v27_v18  ;;  %v357_v21 = vld [vmem:[%s5561_s1 + $0xa00] sm:$0xff]  ;;  %v440_v18 = vld [vmem:[%s5561_s1 + $0xc98] sm:$0xff] }
  0xab   :  { %1566 = vmatpush.msrb.mxu0 %v372_v22  ;;  %1606 = vmatpush.msrb.mxu2 %v404_v23  ;;  %v374_v22 = vld [vmem:[%s5561_s1 + $0xa88] sm:$0xff]  ;;  %v389_v23 = vld [vmem:[%s5561_s1 + $0xb00] sm:$0xff] }
  0xac   :  { %1521 = vmatpush.msra.mxu1 %v309_v24  ;;  %1561 = vmatpush.msra.mxu3 %v341_v25  ;;  %v406_v24 = vld [vmem:[%s5561_s1 + $0xb88] sm:$0xff]  ;;  %v1052_v25 = vld.sshfl [vmem:[#allocation1 + $0x20] sm:$0xff pattern:$0x73625140] }
  0xad   :  { %1522 = vmatmul.f32.vlgmr.msra.gmra.mxu1 %v1049_v26  ;;  %1562 = vmatmul.f32.vlgmr.msra.gmra.mxu3 %v1051_v28  ;;  %v1054_v26 = vld.sshfl [vmem:[#allocation1 + $0x30] sm:$0xff pattern:$0x73625140]  ;;  %v436_v28 = vld [vmem:[%s5561_s1 + $0xc78] sm:$0xff] }
  0xae   :  { %1567 = vmatpush.msrb.mxu0 %v371_v29  ;;  %1586 = vmatpush.msrb.mxu1 %v388_v31  ;;  %v468_v29 = vld [vmem:[%s5561_s1 + $0xd78] sm:$0xff]  ;;  %v373_v31 = vld [vmem:[%s5561_s1 + $0xa80] sm:$0xff] }
  0xaf   :  { %1607 = vmatpush.msrb.mxu2 %v403_v27  ;;  %1626 = vmatpush.msrb.mxu3 %v420_v32  ;;  %v405_v27 = vld [vmem:[%s5561_s1 + $0xb80] sm:$0xff]  ;;  %v1053_v32 = vld.sshfl [vmem:[#allocation1 + $0x28] sm:$0xff pattern:$0x73625140] }
  0xb0   :  { %1568 = vmatpush.msrb.mxu0 %v370_v30  ;;  %1587 = vmatpush.msrb.mxu1 %v387_v33  ;;  %v1055_v30 = vld.sshfl [vmem:[#allocation1 + $0x38] sm:$0xff pattern:$0x73625140]  ;;  %v435_v33 = vld [vmem:[%s5561_s1 + $0xc70] sm:$0xff] }
  0xb1   :  { %1608 = vmatpush.msrb.mxu2 %v402_v34  ;;  %1627 = vmatpush.msrb.mxu3 %v419_v35  ;;  %v452_v34 = vld [vmem:[%s5561_s1 + $0xcf8] sm:$0xff]  ;;  %v467_v35 = vld [vmem:[%s5561_s1 + $0xd70] sm:$0xff] }
  0xb2   :  { %1569 = vmatpush.msrb.mxu0 %v369_v36  ;;  %1588 = vmatpush.msrb.mxu1 %v386_v37  ;;  %v484_v36 = vld [vmem:[%s5561_s1 + $0xdf8] sm:$0xff]  ;;  %v434_v37 = vld [vmem:[%s5561_s1 + $0xc68] sm:$0xff] }
  0xb3   :  { %1609 = vmatpush.msrb.mxu2 %v401_v38  ;;  %1628 = vmatpush.msrb.mxu3 %v418_v39  ;;  %v451_v38 = vld [vmem:[%s5561_s1 + $0xcf0] sm:$0xff]  ;;  %v466_v39 = vld [vmem:[%s5561_s1 + $0xd68] sm:$0xff] }
  0xb4   :  { %1570 = vmatpush.msrb.mxu0 %v368_v40  ;;  %1589 = vmatpush.msrb.mxu1 %v385_v41  ;;  %v483_v40 = vld [vmem:[%s5561_s1 + $0xdf0] sm:$0xff]  ;;  %v433_v41 = vld [vmem:[%s5561_s1 + $0xc60] sm:$0xff] }
  0xb5   :  { %1610 = vmatpush.msrb.mxu2 %v400_v42  ;;  %1629 = vmatpush.msrb.mxu3 %v417_v43  ;;  %v450_v42 = vld [vmem:[%s5561_s1 + $0xce8] sm:$0xff]  ;;  %v465_v43 = vld [vmem:[%s5561_s1 + $0xd60] sm:$0xff] }
  0xb6   :  { %1571 = vmatpush.msrb.mxu0 %v367_v44  ;;  %1590 = vmatpush.msrb.mxu1 %v384_v45  ;;  %v482_v44 = vld [vmem:[%s5561_s1 + $0xde8] sm:$0xff]  ;;  %v432_v45 = vld [vmem:[%s5561_s1 + $0xc58] sm:$0xff] }
  0xb7   :  { %1611 = vmatpush.msrb.mxu2 %v399_v46  ;;  %1630 = vmatpush.msrb.mxu3 %v416_v47  ;;  %v449_v46 = vld [vmem:[%s5561_s1 + $0xce0] sm:$0xff]  ;;  %v464_v47 = vld [vmem:[%s5561_s1 + $0xd58] sm:$0xff] }
  0xb8   :  { %1572 = vmatpush.msrb.mxu0 %v366_v48  ;;  %1591 = vmatpush.msrb.mxu1 %v383_v49  ;;  %v481_v48 = vld [vmem:[%s5561_s1 + $0xde0] sm:$0xff]  ;;  %v431_v49 = vld [vmem:[%s5561_s1 + $0xc50] sm:$0xff] }
  0xb9   :  { %1612 = vmatpush.msrb.mxu2 %v398_v50  ;;  %1631 = vmatpush.msrb.mxu3 %v415_v51  ;;  %v448_v50 = vld [vmem:[%s5561_s1 + $0xcd8] sm:$0xff]  ;;  %v463_v51 = vld [vmem:[%s5561_s1 + $0xd50] sm:$0xff] }
  0xba   :  { %1573 = vmatpush.msrb.mxu0 %v365_v52  ;;  %1592 = vmatpush.msrb.mxu1 %v382_v53  ;;  %v480_v52 = vld [vmem:[%s5561_s1 + $0xdd8] sm:$0xff]  ;;  %v430_v53 = vld [vmem:[%s5561_s1 + $0xc48] sm:$0xff] }
  0xbb   :  { %1613 = vmatpush.msrb.mxu2 %v397_v54  ;;  %1632 = vmatpush.msrb.mxu3 %v414_v55  ;;  %v447_v54 = vld [vmem:[%s5561_s1 + $0xcd0] sm:$0xff]  ;;  %v462_v55 = vld [vmem:[%s5561_s1 + $0xd48] sm:$0xff] }
  0xbc   :  { %1574 = vmatpush.msrb.mxu0 %v364_v56  ;;  %1593 = vmatpush.msrb.mxu1 %v381_v57  ;;  %v479_v56 = vld [vmem:[%s5561_s1 + $0xdd0] sm:$0xff]  ;;  %v429_v57 = vld [vmem:[%s5561_s1 + $0xc40] sm:$0xff] }
  0xbd   :  { %1614 = vmatpush.msrb.mxu2 %v396_v58  ;;  %1633 = vmatpush.msrb.mxu3 %v413_v59  ;;  %v446_v58 = vld [vmem:[%s5561_s1 + $0xcc8] sm:$0xff]  ;;  %v461_v59 = vld [vmem:[%s5561_s1 + $0xd40] sm:$0xff] }
  0xbe   :  { %1575 = vmatpush.msrb.mxu0 %v363_v60  ;;  %1594 = vmatpush.msrb.mxu1 %v380_v61  ;;  %v478_v60 = vld [vmem:[%s5561_s1 + $0xdc8] sm:$0xff]  ;;  %v428_v61 = vld [vmem:[%s5561_s1 + $0xc38] sm:$0xff] }
  0xbf   :  { %1615 = vmatpush.msrb.mxu2 %v395_v62  ;;  %1634 = vmatpush.msrb.mxu3 %v412_v63  ;;  %v445_v62 = vld [vmem:[%s5561_s1 + $0xcc0] sm:$0xff]  ;;  %v460_v63 = vld [vmem:[%s5561_s1 + $0xd38] sm:$0xff] }
  0xc0   :  { %1576 = vmatpush.msrb.mxu0 %v362_v0  ;;  %1595 = vmatpush.msrb.mxu1 %v379_v1  ;;  %v477_v0 = vld [vmem:[%s5561_s1 + $0xdc0] sm:$0xff]  ;;  %v427_v1 = vld [vmem:[%s5561_s1 + $0xc30] sm:$0xff] }
  0xc1   :  { %1616 = vmatpush.msrb.mxu2 %v394_v2  ;;  %1635 = vmatpush.msrb.mxu3 %v411_v3  ;;  %v444_v2 = vld [vmem:[%s5561_s1 + $0xcb8] sm:$0xff]  ;;  %v459_v3 = vld [vmem:[%s5561_s1 + $0xd30] sm:$0xff] }
  0xc2   :  { %1577 = vmatpush.msrb.mxu0 %v361_v4  ;;  %1596 = vmatpush.msrb.mxu1 %v378_v5  ;;  %v476_v4 = vld [vmem:[%s5561_s1 + $0xdb8] sm:$0xff]  ;;  %v426_v5 = vld [vmem:[%s5561_s1 + $0xc28] sm:$0xff] }
  0xc3   :  { %1617 = vmatpush.msrb.mxu2 %v393_v6  ;;  %1636 = vmatpush.msrb.mxu3 %v410_v7  ;;  %v443_v6 = vld [vmem:[%s5561_s1 + $0xcb0] sm:$0xff]  ;;  %v458_v7 = vld [vmem:[%s5561_s1 + $0xd28] sm:$0xff] }
  0xc4   :  { %1578 = vmatpush.msrb.mxu0 %v360_v8  ;;  %1597 = vmatpush.msrb.mxu1 %v377_v9  ;;  %v475_v8 = vld [vmem:[%s5561_s1 + $0xdb0] sm:$0xff]  ;;  %v425_v9 = vld [vmem:[%s5561_s1 + $0xc20] sm:$0xff] }
  0xc5   :  { %1618 = vmatpush.msrb.mxu2 %v392_v10  ;;  %1637 = vmatpush.msrb.mxu3 %v409_v11  ;;  %v442_v10 = vld [vmem:[%s5561_s1 + $0xca8] sm:$0xff]  ;;  %v457_v11 = vld [vmem:[%s5561_s1 + $0xd20] sm:$0xff] }
  0xc6   :  { %1579 = vmatpush.msrb.mxu0 %v359_v12  ;;  %1598 = vmatpush.msrb.mxu1 %v376_v13  ;;  %v474_v12 = vld [vmem:[%s5561_s1 + $0xda8] sm:$0xff]  ;;  %v424_v13 = vld [vmem:[%s5561_s1 + $0xc18] sm:$0xff] }
  0xc7   :  { %1619 = vmatpush.msrb.mxu2 %v391_v14  ;;  %1638 = vmatpush.msrb.mxu3 %v408_v15  ;;  %v441_v14 = vld [vmem:[%s5561_s1 + $0xca0] sm:$0xff]  ;;  %v456_v15 = vld [vmem:[%s5561_s1 + $0xd18] sm:$0xff] }
  0xc8   :  { %1580 = vmatpush.msrb.mxu0 %v358_v16  ;;  %1599 = vmatpush.msrb.mxu1 %v375_v17  ;;  %v473_v16 = vld [vmem:[%s5561_s1 + $0xda0] sm:$0xff]  ;;  %v423_v17 = vld [vmem:[%s5561_s1 + $0xc10] sm:$0xff] }
  0xc9   :  { %1620 = vmatpush.msrb.mxu2 %v390_v19  ;;  %1639 = vmatpush.msrb.mxu3 %v407_v20  ;;  %v455_v19 = vld [vmem:[%s5561_s1 + $0xd10] sm:$0xff]  ;;  %v472_v20 = vld [vmem:[%s5561_s1 + $0xd98] sm:$0xff] }
  0xca   :  { %1581 = vmatpush.msrb.mxu0 %v357_v21  ;;  %1600 = vmatpush.msrb.mxu1 %v374_v22  ;;  %v422_v21 = vld [vmem:[%s5561_s1 + $0xc08] sm:$0xff]  ;;  %v439_v22 = vld [vmem:[%s5561_s1 + $0xc90] sm:$0xff] }
  0xcb   :  { %1621 = vmatpush.msrb.mxu2 %v389_v23  ;;  %1640 = vmatpush.msrb.mxu3 %v406_v24  ;;  %v28_v23 = vld [vmem:[%s5560_s0 + $0x38] sm:$0xff]  ;;  %v454_v24 = vld [vmem:[%s5561_s1 + $0xd08] sm:$0xff] }
  0xcc   :  { %1582 = vmatmul.f32.vlgmr.msrb.gmra.mxu0 %v1052_v25  ;;  %1622 = vmatmul.f32.vlgmr.msrb.gmra.mxu2 %v1054_v26  ;;  %v471_v25 = vld [vmem:[%s5561_s1 + $0xd90] sm:$0xff]  ;;  %1057 = vst [vmem:[#allocation1 + $0x20] ss:$4 sm:$0xff] %v28_v23  ;;  %v421_v26 = vld [vmem:[%s5561_s1 + $0xc00] sm:$0xff]  ;;  %v504_v23 = vld [vmem:[%s5561_s1 + $0xe98] sm:$0xff] }
  0xcd   :  { %1646 = vmatpush.msra.mxu0 %v436_v28  ;;  %1686 = vmatpush.msra.mxu2 %v468_v29  ;;  %v438_v28 = vld [vmem:[%s5561_s1 + $0xc88] sm:$0xff]  ;;  %v453_v29 = vld [vmem:[%s5561_s1 + $0xd00] sm:$0xff] }
  0xce   :  { %1601 = vmatpush.msrb.mxu1 %v373_v31  ;;  %1641 = vmatpush.msrb.mxu3 %v405_v27  ;;  %v470_v31 = vld [vmem:[%s5561_s1 + $0xd88] sm:$0xff]  ;;  %v1058_v27 = vld.sshfl [vmem:[#allocation1] sm:$0xff pattern:$0x73625140] }
  0xcf   :  { %1602 = vmatmul.f32.vlgmr.msrb.gmra.mxu1 %v1053_v32  ;;  %1642 = vmatmul.f32.vlgmr.msrb.gmra.mxu3 %v1055_v30  ;;  %v1060_v32 = vld.sshfl [vmem:[#allocation1 + $0x10] sm:$0xff pattern:$0x73625140]  ;;  %v500_v30 = vld [vmem:[%s5561_s1 + $0xe78] sm:$0xff] }
  0xd0   :  { %1647 = vmatpush.msra.mxu0 %v435_v33  ;;  %1666 = vmatpush.msra.mxu1 %v452_v34  ;;  %v532_v33 = vld [vmem:[%s5561_s1 + $0xf78] sm:$0xff]  ;;  %v437_v34 = vld [vmem:[%s5561_s1 + $0xc80] sm:$0xff] }
  0xd1   :  { %1687 = vmatpush.msra.mxu2 %v467_v35  ;;  %1706 = vmatpush.msra.mxu3 %v484_v36  ;;  %v469_v35 = vld [vmem:[%s5561_s1 + $0xd80] sm:$0xff]  ;;  %v1059_v36 = vld.sshfl [vmem:[#allocation1 + $0x8] sm:$0xff pattern:$0x73625140] }
  0xd2   :  { %1648 = vmatpush.msra.mxu0 %v434_v37  ;;  %1667 = vmatpush.msra.mxu1 %v451_v38  ;;  %v1061_v37 = vld.sshfl [vmem:[#allocation1 + $0x18] sm:$0xff pattern:$0x73625140]  ;;  %v499_v38 = vld [vmem:[%s5561_s1 + $0xe70] sm:$0xff] }
  0xd3   :  { %1688 = vmatpush.msra.mxu2 %v466_v39  ;;  %1707 = vmatpush.msra.mxu3 %v483_v40  ;;  %v516_v39 = vld [vmem:[%s5561_s1 + $0xef8] sm:$0xff]  ;;  %v531_v40 = vld [vmem:[%s5561_s1 + $0xf70] sm:$0xff] }
  0xd4   :  { %1649 = vmatpush.msra.mxu0 %v433_v41  ;;  %1668 = vmatpush.msra.mxu1 %v450_v42  ;;  %v548_v41 = vld [vmem:[%s5561_s1 + $0xff8] sm:$0xff]  ;;  %v498_v42 = vld [vmem:[%s5561_s1 + $0xe68] sm:$0xff] }
  0xd5   :  { %1689 = vmatpush.msra.mxu2 %v465_v43  ;;  %1708 = vmatpush.msra.mxu3 %v482_v44  ;;  %v515_v43 = vld [vmem:[%s5561_s1 + $0xef0] sm:$0xff]  ;;  %v530_v44 = vld [vmem:[%s5561_s1 + $0xf68] sm:$0xff] }
  0xd6   :  { %1650 = vmatpush.msra.mxu0 %v432_v45  ;;  %1669 = vmatpush.msra.mxu1 %v449_v46  ;;  %v547_v45 = vld [vmem:[%s5561_s1 + $0xff0] sm:$0xff]  ;;  %v497_v46 = vld [vmem:[%s5561_s1 + $0xe60] sm:$0xff] }
  0xd7   :  { %1690 = vmatpush.msra.mxu2 %v464_v47  ;;  %1709 = vmatpush.msra.mxu3 %v481_v48  ;;  %v514_v47 = vld [vmem:[%s5561_s1 + $0xee8] sm:$0xff]  ;;  %v529_v48 = vld [vmem:[%s5561_s1 + $0xf60] sm:$0xff] }
  0xd8   :  { %1651 = vmatpush.msra.mxu0 %v431_v49  ;;  %1670 = vmatpush.msra.mxu1 %v448_v50  ;;  %v546_v49 = vld [vmem:[%s5561_s1 + $0xfe8] sm:$0xff]  ;;  %v496_v50 = vld [vmem:[%s5561_s1 + $0xe58] sm:$0xff] }
  0xd9   :  { %1691 = vmatpush.msra.mxu2 %v463_v51  ;;  %1710 = vmatpush.msra.mxu3 %v480_v52  ;;  %v513_v51 = vld [vmem:[%s5561_s1 + $0xee0] sm:$0xff]  ;;  %v528_v52 = vld [vmem:[%s5561_s1 + $0xf58] sm:$0xff] }
  0xda   :  { %1652 = vmatpush.msra.mxu0 %v430_v53  ;;  %1671 = vmatpush.msra.mxu1 %v447_v54  ;;  %v545_v53 = vld [vmem:[%s5561_s1 + $0xfe0] sm:$0xff]  ;;  %v495_v54 = vld [vmem:[%s5561_s1 + $0xe50] sm:$0xff] }
  0xdb   :  { %1692 = vmatpush.msra.mxu2 %v462_v55  ;;  %1711 = vmatpush.msra.mxu3 %v479_v56  ;;  %v512_v55 = vld [vmem:[%s5561_s1 + $0xed8] sm:$0xff]  ;;  %v527_v56 = vld [vmem:[%s5561_s1 + $0xf50] sm:$0xff] }
  0xdc   :  { %1653 = vmatpush.msra.mxu0 %v429_v57  ;;  %1672 = vmatpush.msra.mxu1 %v446_v58  ;;  %v544_v57 = vld [vmem:[%s5561_s1 + $0xfd8] sm:$0xff]  ;;  %v494_v58 = vld [vmem:[%s5561_s1 + $0xe48] sm:$0xff] }
  0xdd   :  { %1693 = vmatpush.msra.mxu2 %v461_v59  ;;  %1712 = vmatpush.msra.mxu3 %v478_v60  ;;  %v511_v59 = vld [vmem:[%s5561_s1 + $0xed0] sm:$0xff]  ;;  %v526_v60 = vld [vmem:[%s5561_s1 + $0xf48] sm:$0xff] }
  0xde   :  { %1654 = vmatpush.msra.mxu0 %v428_v61  ;;  %1673 = vmatpush.msra.mxu1 %v445_v62  ;;  %v543_v61 = vld [vmem:[%s5561_s1 + $0xfd0] sm:$0xff]  ;;  %v493_v62 = vld [vmem:[%s5561_s1 + $0xe40] sm:$0xff] }
  0xdf   :  { %1694 = vmatpush.msra.mxu2 %v460_v63  ;;  %1713 = vmatpush.msra.mxu3 %v477_v0  ;;  %v510_v63 = vld [vmem:[%s5561_s1 + $0xec8] sm:$0xff]  ;;  %v525_v0 = vld [vmem:[%s5561_s1 + $0xf40] sm:$0xff] }
  0xe0   :  { %1655 = vmatpush.msra.mxu0 %v427_v1  ;;  %1674 = vmatpush.msra.mxu1 %v444_v2  ;;  %v542_v1 = vld [vmem:[%s5561_s1 + $0xfc8] sm:$0xff]  ;;  %v492_v2 = vld [vmem:[%s5561_s1 + $0xe38] sm:$0xff] }
  0xe1   :  { %1695 = vmatpush.msra.mxu2 %v459_v3  ;;  %1714 = vmatpush.msra.mxu3 %v476_v4  ;;  %v509_v3 = vld [vmem:[%s5561_s1 + $0xec0] sm:$0xff]  ;;  %v524_v4 = vld [vmem:[%s5561_s1 + $0xf38] sm:$0xff] }
  0xe2   :  { %1656 = vmatpush.msra.mxu0 %v426_v5  ;;  %1675 = vmatpush.msra.mxu1 %v443_v6  ;;  %v541_v5 = vld [vmem:[%s5561_s1 + $0xfc0] sm:$0xff]  ;;  %v491_v6 = vld [vmem:[%s5561_s1 + $0xe30] sm:$0xff] }
  0xe3   :  { %1696 = vmatpush.msra.mxu2 %v458_v7  ;;  %1715 = vmatpush.msra.mxu3 %v475_v8  ;;  %v508_v7 = vld [vmem:[%s5561_s1 + $0xeb8] sm:$0xff]  ;;  %v523_v8 = vld [vmem:[%s5561_s1 + $0xf30] sm:$0xff] }
  0xe4   :  { %1657 = vmatpush.msra.mxu0 %v425_v9  ;;  %1676 = vmatpush.msra.mxu1 %v442_v10  ;;  %v540_v9 = vld [vmem:[%s5561_s1 + $0xfb8] sm:$0xff]  ;;  %v490_v10 = vld [vmem:[%s5561_s1 + $0xe28] sm:$0xff] }
  0xe5   :  { %1697 = vmatpush.msra.mxu2 %v457_v11  ;;  %1716 = vmatpush.msra.mxu3 %v474_v12  ;;  %v507_v11 = vld [vmem:[%s5561_s1 + $0xeb0] sm:$0xff]  ;;  %v522_v12 = vld [vmem:[%s5561_s1 + $0xf28] sm:$0xff] }
  0xe6   :  { %1658 = vmatpush.msra.mxu0 %v424_v13  ;;  %1677 = vmatpush.msra.mxu1 %v441_v14  ;;  %v539_v13 = vld [vmem:[%s5561_s1 + $0xfb0] sm:$0xff]  ;;  %v489_v14 = vld [vmem:[%s5561_s1 + $0xe20] sm:$0xff] }
  0xe7   :  { %1698 = vmatpush.msra.mxu2 %v456_v15  ;;  %1717 = vmatpush.msra.mxu3 %v473_v16  ;;  %v506_v15 = vld [vmem:[%s5561_s1 + $0xea8] sm:$0xff]  ;;  %v521_v16 = vld [vmem:[%s5561_s1 + $0xf20] sm:$0xff] }
  0xe8   :  { %1659 = vmatpush.msra.mxu0 %v423_v17  ;;  %1678 = vmatpush.msra.mxu1 %v440_v18  ;;  %v538_v17 = vld [vmem:[%s5561_s1 + $0xfa8] sm:$0xff]  ;;  %v488_v18 = vld [vmem:[%s5561_s1 + $0xe18] sm:$0xff] }
  0xe9   :  { %1699 = vmatpush.msra.mxu2 %v455_v19  ;;  %1718 = vmatpush.msra.mxu3 %v472_v20  ;;  %v505_v19 = vld [vmem:[%s5561_s1 + $0xea0] sm:$0xff]  ;;  %v520_v20 = vld [vmem:[%s5561_s1 + $0xf18] sm:$0xff] }
  0xea   :  { %1660 = vmatpush.msra.mxu0 %v422_v21  ;;  %1679 = vmatpush.msra.mxu1 %v439_v22  ;;  %v537_v21 = vld [vmem:[%s5561_s1 + $0xfa0] sm:$0xff]  ;;  %v487_v22 = vld [vmem:[%s5561_s1 + $0xe10] sm:$0xff] }
  0xeb   :  { %1700 = vmatpush.msra.mxu2 %v454_v24  ;;  %1719 = vmatpush.msra.mxu3 %v471_v25  ;;  %v519_v24 = vld [vmem:[%s5561_s1 + $0xf10] sm:$0xff]  ;;  %v536_v25 = vld [vmem:[%s5561_s1 + $0xf98] sm:$0xff] }
  0xec   :  { %1661 = vmatpush.msra.mxu0 %v421_v26  ;;  %1680 = vmatpush.msra.mxu1 %v438_v28  ;;  %v486_v26 = vld [vmem:[%s5561_s1 + $0xe08] sm:$0xff]  ;;  %v503_v28 = vld [vmem:[%s5561_s1 + $0xe90] sm:$0xff] }
  0xed   :  { %1701 = vmatpush.msra.mxu2 %v453_v29  ;;  %1720 = vmatpush.msra.mxu3 %v470_v31  ;;  %v29_v29 = vld [vmem:[%s5560_s0 + $0x40] sm:$0xff]  ;;  %v518_v31 = vld [vmem:[%s5561_s1 + $0xf08] sm:$0xff] }
  0xee   :  { %1662 = vmatmul.f32.vlgmr.msra.gmra.mxu0 %v1058_v27  ;;  %1702 = vmatmul.f32.vlgmr.msra.gmra.mxu2 %v1060_v32  ;;  %v535_v27 = vld [vmem:[%s5561_s1 + $0xf90] sm:$0xff]  ;;  %1066 = vst [vmem:[#allocation1] ss:$4 sm:$0xff] %v29_v29  ;;  %v485_v32 = vld [vmem:[%s5561_s1 + $0xe00] sm:$0xff]  ;;  %v568_v29 = vld [vmem:[%s5561_s1 + $0x1098] sm:$0xff] }
  0xef   :  { %1726 = vmatpush.msrb.mxu0 %v500_v30  ;;  %1766 = vmatpush.msrb.mxu2 %v532_v33  ;;  %v502_v30 = vld [vmem:[%s5561_s1 + $0xe88] sm:$0xff]  ;;  %v517_v33 = vld [vmem:[%s5561_s1 + $0xf00] sm:$0xff] }
  0xf0   :  { %1681 = vmatpush.msra.mxu1 %v437_v34  ;;  %1721 = vmatpush.msra.mxu3 %v469_v35  ;;  %v534_v34 = vld [vmem:[%s5561_s1 + $0xf88] sm:$0xff]  ;;  %v1062_v35 = vld.sshfl [vmem:[#allocation1 + $0x20] sm:$0xff pattern:$0x73625140] }
  0xf1   :  { %1682 = vmatmul.f32.vlgmr.msra.gmra.mxu1 %v1059_v36  ;;  %1722 = vmatmul.f32.vlgmr.msra.gmra.mxu3 %v1061_v37  ;;  %v1064_v36 = vld.sshfl [vmem:[#allocation1 + $0x30] sm:$0xff pattern:$0x73625140]  ;;  %v564_v37 = vld [vmem:[%s5561_s1 + $0x1078] sm:$0xff] }
  0xf2   :  { %1727 = vmatpush.msrb.mxu0 %v499_v38  ;;  %1746 = vmatpush.msrb.mxu1 %v516_v39  ;;  %v596_v38 = vld [vmem:[%s5561_s1 + $0x1178] sm:$0xff]  ;;  %v501_v39 = vld [vmem:[%s5561_s1 + $0xe80] sm:$0xff] }
  0xf3   :  { %1767 = vmatpush.msrb.mxu2 %v531_v40  ;;  %1786 = vmatpush.msrb.mxu3 %v548_v41  ;;  %v533_v40 = vld [vmem:[%s5561_s1 + $0xf80] sm:$0xff]  ;;  %v1063_v41 = vld.sshfl [vmem:[#allocation1 + $0x28] sm:$0xff pattern:$0x73625140] }
  0xf4   :  { %1728 = vmatpush.msrb.mxu0 %v498_v42  ;;  %1747 = vmatpush.msrb.mxu1 %v515_v43  ;;  %v1065_v42 = vld.sshfl [vmem:[#allocation1 + $0x38] sm:$0xff pattern:$0x73625140]  ;;  %v563_v43 = vld [vmem:[%s5561_s1 + $0x1070] sm:$0xff] }
  0xf5   :  { %1768 = vmatpush.msrb.mxu2 %v530_v44  ;;  %1787 = vmatpush.msrb.mxu3 %v547_v45  ;;  %v580_v44 = vld [vmem:[%s5561_s1 + $0x10f8] sm:$0xff]  ;;  %v595_v45 = vld [vmem:[%s5561_s1 + $0x1170] sm:$0xff] }
  0xf6   :  { %1729 = vmatpush.msrb.mxu0 %v497_v46  ;;  %1748 = vmatpush.msrb.mxu1 %v514_v47  ;;  %v612_v46 = vld [vmem:[%s5561_s1 + $0x11f8] sm:$0xff]  ;;  %v562_v47 = vld [vmem:[%s5561_s1 + $0x1068] sm:$0xff] }
  0xf7   :  { %1769 = vmatpush.msrb.mxu2 %v529_v48  ;;  %1788 = vmatpush.msrb.mxu3 %v546_v49  ;;  %v579_v48 = vld [vmem:[%s5561_s1 + $0x10f0] sm:$0xff]  ;;  %v594_v49 = vld [vmem:[%s5561_s1 + $0x1168] sm:$0xff] }
  0xf8   :  { %1730 = vmatpush.msrb.mxu0 %v496_v50  ;;  %1749 = vmatpush.msrb.mxu1 %v513_v51  ;;  %v611_v50 = vld [vmem:[%s5561_s1 + $0x11f0] sm:$0xff]  ;;  %v561_v51 = vld [vmem:[%s5561_s1 + $0x1060] sm:$0xff] }
  0xf9   :  { %1770 = vmatpush.msrb.mxu2 %v528_v52  ;;  %1789 = vmatpush.msrb.mxu3 %v545_v53  ;;  %v578_v52 = vld [vmem:[%s5561_s1 + $0x10e8] sm:$0xff]  ;;  %v593_v53 = vld [vmem:[%s5561_s1 + $0x1160] sm:$0xff] }
  0xfa   :  { %1731 = vmatpush.msrb.mxu0 %v495_v54  ;;  %1750 = vmatpush.msrb.mxu1 %v512_v55  ;;  %v610_v54 = vld [vmem:[%s5561_s1 + $0x11e8] sm:$0xff]  ;;  %v560_v55 = vld [vmem:[%s5561_s1 + $0x1058] sm:$0xff] }
  0xfb   :  { %1771 = vmatpush.msrb.mxu2 %v527_v56  ;;  %1790 = vmatpush.msrb.mxu3 %v544_v57  ;;  %v577_v56 = vld [vmem:[%s5561_s1 + $0x10e0] sm:$0xff]  ;;  %v592_v57 = vld [vmem:[%s5561_s1 + $0x1158] sm:$0xff] }
  0xfc   :  { %1732 = vmatpush.msrb.mxu0 %v494_v58  ;;  %1751 = vmatpush.msrb.mxu1 %v511_v59  ;;  %v609_v58 = vld [vmem:[%s5561_s1 + $0x11e0] sm:$0xff]  ;;  %v559_v59 = vld [vmem:[%s5561_s1 + $0x1050] sm:$0xff] }
  0xfd   :  { %1772 = vmatpush.msrb.mxu2 %v526_v60  ;;  %1791 = vmatpush.msrb.mxu3 %v543_v61  ;;  %v576_v60 = vld [vmem:[%s5561_s1 + $0x10d8] sm:$0xff]  ;;  %v591_v61 = vld [vmem:[%s5561_s1 + $0x1150] sm:$0xff] }
  0xfe   :  { %1733 = vmatpush.msrb.mxu0 %v493_v62  ;;  %1752 = vmatpush.msrb.mxu1 %v510_v63  ;;  %v608_v62 = vld [vmem:[%s5561_s1 + $0x11d8] sm:$0xff]  ;;  %v558_v63 = vld [vmem:[%s5561_s1 + $0x1048] sm:$0xff] }
  0xff   :  { %1773 = vmatpush.msrb.mxu2 %v525_v0  ;;  %1792 = vmatpush.msrb.mxu3 %v542_v1  ;;  %v575_v0 = vld [vmem:[%s5561_s1 + $0x10d0] sm:$0xff]  ;;  %v590_v1 = vld [vmem:[%s5561_s1 + $0x1148] sm:$0xff] }
 0x100   :  { %1734 = vmatpush.msrb.mxu0 %v492_v2  ;;  %1753 = vmatpush.msrb.mxu1 %v509_v3  ;;  %v607_v2 = vld [vmem:[%s5561_s1 + $0x11d0] sm:$0xff]  ;;  %v557_v3 = vld [vmem:[%s5561_s1 + $0x1040] sm:$0xff] }
 0x101   :  { %1774 = vmatpush.msrb.mxu2 %v524_v4  ;;  %1793 = vmatpush.msrb.mxu3 %v541_v5  ;;  %v574_v4 = vld [vmem:[%s5561_s1 + $0x10c8] sm:$0xff]  ;;  %v589_v5 = vld [vmem:[%s5561_s1 + $0x1140] sm:$0xff] }
 0x102   :  { %1735 = vmatpush.msrb.mxu0 %v491_v6  ;;  %1754 = vmatpush.msrb.mxu1 %v508_v7  ;;  %v606_v6 = vld [vmem:[%s5561_s1 + $0x11c8] sm:$0xff]  ;;  %v556_v7 = vld [vmem:[%s5561_s1 + $0x1038] sm:$0xff] }
 0x103   :  { %1775 = vmatpush.msrb.mxu2 %v523_v8  ;;  %1794 = vmatpush.msrb.mxu3 %v540_v9  ;;  %v573_v8 = vld [vmem:[%s5561_s1 + $0x10c0] sm:$0xff]  ;;  %v588_v9 = vld [vmem:[%s5561_s1 + $0x1138] sm:$0xff] }
 0x104   :  { %1736 = vmatpush.msrb.mxu0 %v490_v10  ;;  %1755 = vmatpush.msrb.mxu1 %v507_v11  ;;  %v605_v10 = vld [vmem:[%s5561_s1 + $0x11c0] sm:$0xff]  ;;  %v555_v11 = vld [vmem:[%s5561_s1 + $0x1030] sm:$0xff] }
 0x105   :  { %1776 = vmatpush.msrb.mxu2 %v522_v12  ;;  %1795 = vmatpush.msrb.mxu3 %v539_v13  ;;  %v572_v12 = vld [vmem:[%s5561_s1 + $0x10b8] sm:$0xff]  ;;  %v587_v13 = vld [vmem:[%s5561_s1 + $0x1130] sm:$0xff] }
 0x106   :  { %1737 = vmatpush.msrb.mxu0 %v489_v14  ;;  %1756 = vmatpush.msrb.mxu1 %v506_v15  ;;  %v604_v14 = vld [vmem:[%s5561_s1 + $0x11b8] sm:$0xff]  ;;  %v554_v15 = vld [vmem:[%s5561_s1 + $0x1028] sm:$0xff] }
 0x107   :  { %1777 = vmatpush.msrb.mxu2 %v521_v16  ;;  %1796 = vmatpush.msrb.mxu3 %v538_v17  ;;  %v571_v16 = vld [vmem:[%s5561_s1 + $0x10b0] sm:$0xff]  ;;  %v586_v17 = vld [vmem:[%s5561_s1 + $0x1128] sm:$0xff] }
 0x108   :  { %1738 = vmatpush.msrb.mxu0 %v488_v18  ;;  %1757 = vmatpush.msrb.mxu1 %v505_v19  ;;  %v603_v18 = vld [vmem:[%s5561_s1 + $0x11b0] sm:$0xff]  ;;  %v553_v19 = vld [vmem:[%s5561_s1 + $0x1020] sm:$0xff] }
 0x109   :  { %1778 = vmatpush.msrb.mxu2 %v520_v20  ;;  %1797 = vmatpush.msrb.mxu3 %v537_v21  ;;  %v570_v20 = vld [vmem:[%s5561_s1 + $0x10a8] sm:$0xff]  ;;  %v585_v21 = vld [vmem:[%s5561_s1 + $0x1120] sm:$0xff] }
 0x10a   :  { %1739 = vmatpush.msrb.mxu0 %v487_v22  ;;  %1758 = vmatpush.msrb.mxu1 %v504_v23  ;;  %v602_v22 = vld [vmem:[%s5561_s1 + $0x11a8] sm:$0xff]  ;;  %v552_v23 = vld [vmem:[%s5561_s1 + $0x1018] sm:$0xff] }
 0x10b   :  { %1779 = vmatpush.msrb.mxu2 %v519_v24  ;;  %1798 = vmatpush.msrb.mxu3 %v536_v25  ;;  %v569_v24 = vld [vmem:[%s5561_s1 + $0x10a0] sm:$0xff]  ;;  %v584_v25 = vld [vmem:[%s5561_s1 + $0x1118] sm:$0xff] }
 0x10c   :  { %1740 = vmatpush.msrb.mxu0 %v486_v26  ;;  %1759 = vmatpush.msrb.mxu1 %v503_v28  ;;  %v601_v26 = vld [vmem:[%s5561_s1 + $0x11a0] sm:$0xff]  ;;  %v551_v28 = vld [vmem:[%s5561_s1 + $0x1010] sm:$0xff] }
 0x10d   :  { %1780 = vmatpush.msrb.mxu2 %v518_v31  ;;  %1799 = vmatpush.msrb.mxu3 %v535_v27  ;;  %v583_v31 = vld [vmem:[%s5561_s1 + $0x1110] sm:$0xff]  ;;  %v600_v27 = vld [vmem:[%s5561_s1 + $0x1198] sm:$0xff] }
 0x10e   :  { %1741 = vmatpush.msrb.mxu0 %v485_v32  ;;  %1760 = vmatpush.msrb.mxu1 %v502_v30  ;;  %v550_v32 = vld [vmem:[%s5561_s1 + $0x1008] sm:$0xff]  ;;  %v567_v30 = vld [vmem:[%s5561_s1 + $0x1090] sm:$0xff] }
 0x10f   :  { %1781 = vmatpush.msrb.mxu2 %v517_v33  ;;  %1800 = vmatpush.msrb.mxu3 %v534_v34  ;;  %v30_v33 = vld [vmem:[%s5560_s0 + $0x48] sm:$0xff] }
 0x110   :  { %1742 = vmatmul.f32.vlgmr.msrb.gmra.mxu0 %v1062_v35  ;;  %1782 = vmatmul.f32.vlgmr.msrb.gmra.mxu2 %v1064_v36  ;;  %v582_v34 = vld [vmem:[%s5561_s1 + $0x1108] sm:$0xff]  ;;  %v599_v35 = vld [vmem:[%s5561_s1 + $0x1190] sm:$0xff]  ;;  %1067 = vst [vmem:[#allocation1 + $0x20] ss:$4 sm:$0xff] %v30_v33  ;;  %v549_v36 = vld [vmem:[%s5561_s1 + $0x1000] sm:$0xff] }
 0x111   :  { %1806 = vmatpush.msra.mxu0 %v564_v37  ;;  %1846 = vmatpush.msra.mxu2 %v596_v38  ;;  %v566_v37 = vld [vmem:[%s5561_s1 + $0x1088] sm:$0xff]  ;;  %v581_v38 = vld [vmem:[%s5561_s1 + $0x1100] sm:$0xff]  ;;  %v632_v33 = vld [vmem:[%s5561_s1 + $0x1298] sm:$0xff] }
 0x112   :  { %1761 = vmatpush.msrb.mxu1 %v501_v39  ;;  %1801 = vmatpush.msrb.mxu3 %v533_v40  ;;  %v598_v39 = vld [vmem:[%s5561_s1 + $0x1188] sm:$0xff]  ;;  %v1068_v40 = vld.sshfl [vmem:[#allocation1] sm:$0xff pattern:$0x73625140] }
 0x113   :  { %1762 = vmatmul.f32.vlgmr.msrb.gmra.mxu1 %v1063_v41  ;;  %1802 = vmatmul.f32.vlgmr.msrb.gmra.mxu3 %v1065_v42  ;;  %v1070_v41 = vld.sshfl [vmem:[#allocation1 + $0x10] sm:$0xff pattern:$0x73625140]  ;;  %v628_v42 = vld [vmem:[%s5561_s1 + $0x1278] sm:$0xff] }
 0x114   :  { %1807 = vmatpush.msra.mxu0 %v563_v43  ;;  %1826 = vmatpush.msra.mxu1 %v580_v44  ;;  %v660_v43 = vld [vmem:[%s5561_s1 + $0x1378] sm:$0xff]  ;;  %v565_v44 = vld [vmem:[%s5561_s1 + $0x1080] sm:$0xff] }
 0x115   :  { %1847 = vmatpush.msra.mxu2 %v595_v45  ;;  %1866 = vmatpush.msra.mxu3 %v612_v46  ;;  %v597_v45 = vld [vmem:[%s5561_s1 + $0x1180] sm:$0xff]  ;;  %v1069_v46 = vld.sshfl [vmem:[#allocation1 + $0x8] sm:$0xff pattern:$0x73625140] }
 0x116   :  { %1808 = vmatpush.msra.mxu0 %v562_v47  ;;  %1827 = vmatpush.msra.mxu1 %v579_v48  ;;  %v1071_v47 = vld.sshfl [vmem:[#allocation1 + $0x18] sm:$0xff pattern:$0x73625140]  ;;  %v627_v48 = vld [vmem:[%s5561_s1 + $0x1270] sm:$0xff] }
 0x117   :  { %1848 = vmatpush.msra.mxu2 %v594_v49  ;;  %1867 = vmatpush.msra.mxu3 %v611_v50  ;;  %v644_v49 = vld [vmem:[%s5561_s1 + $0x12f8] sm:$0xff]  ;;  %v659_v50 = vld [vmem:[%s5561_s1 + $0x1370] sm:$0xff] }
 0x118   :  { %1809 = vmatpush.msra.mxu0 %v561_v51  ;;  %1828 = vmatpush.msra.mxu1 %v578_v52  ;;  %v676_v51 = vld [vmem:[%s5561_s1 + $0x13f8] sm:$0xff]  ;;  %v626_v52 = vld [vmem:[%s5561_s1 + $0x1268] sm:$0xff] }
 0x119   :  { %1849 = vmatpush.msra.mxu2 %v593_v53  ;;  %1868 = vmatpush.msra.mxu3 %v610_v54  ;;  %v643_v53 = vld [vmem:[%s5561_s1 + $0x12f0] sm:$0xff]  ;;  %v658_v54 = vld [vmem:[%s5561_s1 + $0x1368] sm:$0xff] }
 0x11a   :  { %1810 = vmatpush.msra.mxu0 %v560_v55  ;;  %1829 = vmatpush.msra.mxu1 %v577_v56  ;;  %v675_v55 = vld [vmem:[%s5561_s1 + $0x13f0] sm:$0xff]  ;;  %v625_v56 = vld [vmem:[%s5561_s1 + $0x1260] sm:$0xff] }
 0x11b   :  { %1850 = vmatpush.msra.mxu2 %v592_v57  ;;  %1869 = vmatpush.msra.mxu3 %v609_v58  ;;  %v642_v57 = vld [vmem:[%s5561_s1 + $0x12e8] sm:$0xff]  ;;  %v657_v58 = vld [vmem:[%s5561_s1 + $0x1360] sm:$0xff] }
 0x11c   :  { %1811 = vmatpush.msra.mxu0 %v559_v59  ;;  %1830 = vmatpush.msra.mxu1 %v576_v60  ;;  %v674_v59 = vld [vmem:[%s5561_s1 + $0x13e8] sm:$0xff]  ;;  %v624_v60 = vld [vmem:[%s5561_s1 + $0x1258] sm:$0xff] }
 0x11d   :  { %1851 = vmatpush.msra.mxu2 %v591_v61  ;;  %1870 = vmatpush.msra.mxu3 %v608_v62  ;;  %v641_v61 = vld [vmem:[%s5561_s1 + $0x12e0] sm:$0xff]  ;;  %v656_v62 = vld [vmem:[%s5561_s1 + $0x1358] sm:$0xff] }
 0x11e   :  { %1812 = vmatpush.msra.mxu0 %v558_v63  ;;  %1831 = vmatpush.msra.mxu1 %v575_v0  ;;  %v673_v63 = vld [vmem:[%s5561_s1 + $0x13e0] sm:$0xff]  ;;  %v623_v0 = vld [vmem:[%s5561_s1 + $0x1250] sm:$0xff] }
 0x11f   :  { %1852 = vmatpush.msra.mxu2 %v590_v1  ;;  %1871 = vmatpush.msra.mxu3 %v607_v2  ;;  %v640_v1 = vld [vmem:[%s5561_s1 + $0x12d8] sm:$0xff]  ;;  %v655_v2 = vld [vmem:[%s5561_s1 + $0x1350] sm:$0xff] }
 0x120   :  { %1813 = vmatpush.msra.mxu0 %v557_v3  ;;  %1832 = vmatpush.msra.mxu1 %v574_v4  ;;  %v672_v3 = vld [vmem:[%s5561_s1 + $0x13d8] sm:$0xff]  ;;  %v622_v4 = vld [vmem:[%s5561_s1 + $0x1248] sm:$0xff] }
 0x121   :  { %1853 = vmatpush.msra.mxu2 %v589_v5  ;;  %1872 = vmatpush.msra.mxu3 %v606_v6  ;;  %v639_v5 = vld [vmem:[%s5561_s1 + $0x12d0] sm:$0xff]  ;;  %v654_v6 = vld [vmem:[%s5561_s1 + $0x1348] sm:$0xff] }
 0x122   :  { %1814 = vmatpush.msra.mxu0 %v556_v7  ;;  %1833 = vmatpush.msra.mxu1 %v573_v8  ;;  %v671_v7 = vld [vmem:[%s5561_s1 + $0x13d0] sm:$0xff]  ;;  %v621_v8 = vld [vmem:[%s5561_s1 + $0x1240] sm:$0xff] }
 0x123   :  { %1854 = vmatpush.msra.mxu2 %v588_v9  ;;  %1873 = vmatpush.msra.mxu3 %v605_v10  ;;  %v638_v9 = vld [vmem:[%s5561_s1 + $0x12c8] sm:$0xff]  ;;  %v653_v10 = vld [vmem:[%s5561_s1 + $0x1340] sm:$0xff] }
 0x124   :  { %1815 = vmatpush.msra.mxu0 %v555_v11  ;;  %1834 = vmatpush.msra.mxu1 %v572_v12  ;;  %v670_v11 = vld [vmem:[%s5561_s1 + $0x13c8] sm:$0xff]  ;;  %v620_v12 = vld [vmem:[%s5561_s1 + $0x1238] sm:$0xff] }
 0x125   :  { %1855 = vmatpush.msra.mxu2 %v587_v13  ;;  %1874 = vmatpush.msra.mxu3 %v604_v14  ;;  %v637_v13 = vld [vmem:[%s5561_s1 + $0x12c0] sm:$0xff]  ;;  %v652_v14 = vld [vmem:[%s5561_s1 + $0x1338] sm:$0xff] }
 0x126   :  { %1816 = vmatpush.msra.mxu0 %v554_v15  ;;  %1835 = vmatpush.msra.mxu1 %v571_v16  ;;  %v669_v15 = vld [vmem:[%s5561_s1 + $0x13c0] sm:$0xff]  ;;  %v619_v16 = vld [vmem:[%s5561_s1 + $0x1230] sm:$0xff] }
 0x127   :  { %1856 = vmatpush.msra.mxu2 %v586_v17  ;;  %1875 = vmatpush.msra.mxu3 %v603_v18  ;;  %v636_v17 = vld [vmem:[%s5561_s1 + $0x12b8] sm:$0xff]  ;;  %v651_v18 = vld [vmem:[%s5561_s1 + $0x1330] sm:$0xff] }
 0x128   :  { %1817 = vmatpush.msra.mxu0 %v553_v19  ;;  %1836 = vmatpush.msra.mxu1 %v570_v20  ;;  %v668_v19 = vld [vmem:[%s5561_s1 + $0x13b8] sm:$0xff]  ;;  %v618_v20 = vld [vmem:[%s5561_s1 + $0x1228] sm:$0xff] }
 0x129   :  { %1857 = vmatpush.msra.mxu2 %v585_v21  ;;  %1876 = vmatpush.msra.mxu3 %v602_v22  ;;  %v635_v21 = vld [vmem:[%s5561_s1 + $0x12b0] sm:$0xff]  ;;  %v650_v22 = vld [vmem:[%s5561_s1 + $0x1328] sm:$0xff] }
 0x12a   :  { %1818 = vmatpush.msra.mxu0 %v552_v23  ;;  %1837 = vmatpush.msra.mxu1 %v569_v24  ;;  %v667_v23 = vld [vmem:[%s5561_s1 + $0x13b0] sm:$0xff]  ;;  %v617_v24 = vld [vmem:[%s5561_s1 + $0x1220] sm:$0xff] }
 0x12b   :  { %1858 = vmatpush.msra.mxu2 %v584_v25  ;;  %1877 = vmatpush.msra.mxu3 %v601_v26  ;;  %v634_v25 = vld [vmem:[%s5561_s1 + $0x12a8] sm:$0xff]  ;;  %v649_v26 = vld [vmem:[%s5561_s1 + $0x1320] sm:$0xff] }
 0x12c   :  { %1819 = vmatpush.msra.mxu0 %v551_v28  ;;  %1838 = vmatpush.msra.mxu1 %v568_v29  ;;  %v666_v28 = vld [vmem:[%s5561_s1 + $0x13a8] sm:$0xff]  ;;  %v616_v29 = vld [vmem:[%s5561_s1 + $0x1218] sm:$0xff] }
 0x12d   :  { %1859 = vmatpush.msra.mxu2 %v583_v31  ;;  %1878 = vmatpush.msra.mxu3 %v600_v27  ;;  %v633_v31 = vld [vmem:[%s5561_s1 + $0x12a0] sm:$0xff]  ;;  %v648_v27 = vld [vmem:[%s5561_s1 + $0x1318] sm:$0xff] }
 0x12e   :  { %1820 = vmatpush.msra.mxu0 %v550_v32  ;;  %1839 = vmatpush.msra.mxu1 %v567_v30  ;;  %v665_v32 = vld [vmem:[%s5561_s1 + $0x13a0] sm:$0xff]  ;;  %v615_v30 = vld [vmem:[%s5561_s1 + $0x1210] sm:$0xff] }
 0x12f   :  { %1860 = vmatpush.msra.mxu2 %v582_v34  ;;  %1879 = vmatpush.msra.mxu3 %v599_v35  ;;  %v647_v34 = vld [vmem:[%s5561_s1 + $0x1310] sm:$0xff]  ;;  %v664_v35 = vld [vmem:[%s5561_s1 + $0x1398] sm:$0xff] }
 0x130   :  { %1821 = vmatpush.msra.mxu0 %v549_v36  ;;  %1840 = vmatpush.msra.mxu1 %v566_v37  ;;  %v614_v36 = vld [vmem:[%s5561_s1 + $0x1208] sm:$0xff]  ;;  %v631_v37 = vld [vmem:[%s5561_s1 + $0x1290] sm:$0xff] }
 0x131   :  { %1861 = vmatpush.msra.mxu2 %v581_v38  ;;  %1880 = vmatpush.msra.mxu3 %v598_v39  ;;  %v31_v38 = vld [vmem:[%s5560_s0 + $0x50] sm:$0xff]  ;;  %v646_v39 = vld [vmem:[%s5561_s1 + $0x1308] sm:$0xff] }
 0x132   :  { %1822 = vmatmul.f32.vlgmr.msra.gmra.mxu0 %v1068_v40  ;;  %1862 = vmatmul.f32.vlgmr.msra.gmra.mxu2 %v1070_v41  ;;  %v663_v40 = vld [vmem:[%s5561_s1 + $0x1390] sm:$0xff]  ;;  %1076 = vst [vmem:[#allocation1] ss:$4 sm:$0xff] %v31_v38  ;;  %v613_v41 = vld [vmem:[%s5561_s1 + $0x1200] sm:$0xff]  ;;  %v696_v38 = vld [vmem:[%s5561_s1 + $0x1498] sm:$0xff] }
 0x133   :  { %1886 = vmatpush.msrb.mxu0 %v628_v42  ;;  %1926 = vmatpush.msrb.mxu2 %v660_v43  ;;  %v630_v42 = vld [vmem:[%s5561_s1 + $0x1288] sm:$0xff]  ;;  %v645_v43 = vld [vmem:[%s5561_s1 + $0x1300] sm:$0xff] }
 0x134   :  { %1841 = vmatpush.msra.mxu1 %v565_v44  ;;  %1881 = vmatpush.msra.mxu3 %v597_v45  ;;  %v662_v44 = vld [vmem:[%s5561_s1 + $0x1388] sm:$0xff]  ;;  %v1072_v45 = vld.sshfl [vmem:[#allocation1 + $0x20] sm:$0xff pattern:$0x73625140] }
 0x135   :  { %1842 = vmatmul.f32.vlgmr.msra.gmra.mxu1 %v1069_v46  ;;  %1882 = vmatmul.f32.vlgmr.msra.gmra.mxu3 %v1071_v47  ;;  %v1074_v46 = vld.sshfl [vmem:[#allocation1 + $0x30] sm:$0xff pattern:$0x73625140]  ;;  %v692_v47 = vld [vmem:[%s5561_s1 + $0x1478] sm:$0xff] }
 0x136   :  { %1887 = vmatpush.msrb.mxu0 %v627_v48  ;;  %1906 = vmatpush.msrb.mxu1 %v644_v49  ;;  %v724_v48 = vld [vmem:[%s5561_s1 + $0x1578] sm:$0xff]  ;;  %v629_v49 = vld [vmem:[%s5561_s1 + $0x1280] sm:$0xff] }
 0x137   :  { %1927 = vmatpush.msrb.mxu2 %v659_v50  ;;  %1946 = vmatpush.msrb.mxu3 %v676_v51  ;;  %v661_v50 = vld [vmem:[%s5561_s1 + $0x1380] sm:$0xff]  ;;  %v1073_v51 = vld.sshfl [vmem:[#allocation1 + $0x28] sm:$0xff pattern:$0x73625140] }
 0x138   :  { %1888 = vmatpush.msrb.mxu0 %v626_v52  ;;  %1907 = vmatpush.msrb.mxu1 %v643_v53  ;;  %v1075_v52 = vld.sshfl [vmem:[#allocation1 + $0x38] sm:$0xff pattern:$0x73625140]  ;;  %v691_v53 = vld [vmem:[%s5561_s1 + $0x1470] sm:$0xff] }
 0x139   :  { %1928 = vmatpush.msrb.mxu2 %v658_v54  ;;  %1947 = vmatpush.msrb.mxu3 %v675_v55  ;;  %v708_v54 = vld [vmem:[%s5561_s1 + $0x14f8] sm:$0xff]  ;;  %v723_v55 = vld [vmem:[%s5561_s1 + $0x1570] sm:$0xff] }
 0x13a   :  { %1889 = vmatpush.msrb.mxu0 %v625_v56  ;;  %1908 = vmatpush.msrb.mxu1 %v642_v57  ;;  %v740_v56 = vld [vmem:[%s5561_s1 + $0x15f8] sm:$0xff]  ;;  %v690_v57 = vld [vmem:[%s5561_s1 + $0x1468] sm:$0xff] }
 0x13b   :  { %1929 = vmatpush.msrb.mxu2 %v657_v58  ;;  %1948 = vmatpush.msrb.mxu3 %v674_v59  ;;  %v707_v58 = vld [vmem:[%s5561_s1 + $0x14f0] sm:$0xff]  ;;  %v722_v59 = vld [vmem:[%s5561_s1 + $0x1568] sm:$0xff] }
 0x13c   :  { %1890 = vmatpush.msrb.mxu0 %v624_v60  ;;  %1909 = vmatpush.msrb.mxu1 %v641_v61  ;;  %v739_v60 = vld [vmem:[%s5561_s1 + $0x15f0] sm:$0xff]  ;;  %v689_v61 = vld [vmem:[%s5561_s1 + $0x1460] sm:$0xff] }
 0x13d   :  { %1930 = vmatpush.msrb.mxu2 %v656_v62  ;;  %1949 = vmatpush.msrb.mxu3 %v673_v63  ;;  %v706_v62 = vld [vmem:[%s5561_s1 + $0x14e8] sm:$0xff]  ;;  %v721_v63 = vld [vmem:[%s5561_s1 + $0x1560] sm:$0xff] }
 0x13e   :  { %1891 = vmatpush.msrb.mxu0 %v623_v0  ;;  %1910 = vmatpush.msrb.mxu1 %v640_v1  ;;  %v738_v0 = vld [vmem:[%s5561_s1 + $0x15e8] sm:$0xff]  ;;  %v688_v1 = vld [vmem:[%s5561_s1 + $0x1458] sm:$0xff] }
 0x13f   :  { %1931 = vmatpush.msrb.mxu2 %v655_v2  ;;  %1950 = vmatpush.msrb.mxu3 %v672_v3  ;;  %v705_v2 = vld [vmem:[%s5561_s1 + $0x14e0] sm:$0xff]  ;;  %v720_v3 = vld [vmem:[%s5561_s1 + $0x1558] sm:$0xff] }
 0x140   :  { %1892 = vmatpush.msrb.mxu0 %v622_v4  ;;  %1911 = vmatpush.msrb.mxu1 %v639_v5  ;;  %v737_v4 = vld [vmem:[%s5561_s1 + $0x15e0] sm:$0xff]  ;;  %v687_v5 = vld [vmem:[%s5561_s1 + $0x1450] sm:$0xff] }
 0x141   :  { %1932 = vmatpush.msrb.mxu2 %v654_v6  ;;  %1951 = vmatpush.msrb.mxu3 %v671_v7  ;;  %v704_v6 = vld [vmem:[%s5561_s1 + $0x14d8] sm:$0xff]  ;;  %v719_v7 = vld [vmem:[%s5561_s1 + $0x1550] sm:$0xff] }
 0x142   :  { %1893 = vmatpush.msrb.mxu0 %v621_v8  ;;  %1912 = vmatpush.msrb.mxu1 %v638_v9  ;;  %v736_v8 = vld [vmem:[%s5561_s1 + $0x15d8] sm:$0xff]  ;;  %v686_v9 = vld [vmem:[%s5561_s1 + $0x1448] sm:$0xff] }
 0x143   :  { %1933 = vmatpush.msrb.mxu2 %v653_v10  ;;  %1952 = vmatpush.msrb.mxu3 %v670_v11  ;;  %v703_v10 = vld [vmem:[%s5561_s1 + $0x14d0] sm:$0xff]  ;;  %v718_v11 = vld [vmem:[%s5561_s1 + $0x1548] sm:$0xff] }
 0x144   :  { %1894 = vmatpush.msrb.mxu0 %v620_v12  ;;  %1913 = vmatpush.msrb.mxu1 %v637_v13  ;;  %v735_v12 = vld [vmem:[%s5561_s1 + $0x15d0] sm:$0xff]  ;;  %v685_v13 = vld [vmem:[%s5561_s1 + $0x1440] sm:$0xff] }
 0x145   :  { %1934 = vmatpush.msrb.mxu2 %v652_v14  ;;  %1953 = vmatpush.msrb.mxu3 %v669_v15  ;;  %v702_v14 = vld [vmem:[%s5561_s1 + $0x14c8] sm:$0xff]  ;;  %v717_v15 = vld [vmem:[%s5561_s1 + $0x1540] sm:$0xff] }
 0x146   :  { %1895 = vmatpush.msrb.mxu0 %v619_v16  ;;  %1914 = vmatpush.msrb.mxu1 %v636_v17  ;;  %v734_v16 = vld [vmem:[%s5561_s1 + $0x15c8] sm:$0xff]  ;;  %v684_v17 = vld [vmem:[%s5561_s1 + $0x1438] sm:$0xff] }
 0x147   :  { %1935 = vmatpush.msrb.mxu2 %v651_v18  ;;  %1954 = vmatpush.msrb.mxu3 %v668_v19  ;;  %v701_v18 = vld [vmem:[%s5561_s1 + $0x14c0] sm:$0xff]  ;;  %v716_v19 = vld [vmem:[%s5561_s1 + $0x1538] sm:$0xff] }
 0x148   :  { %1896 = vmatpush.msrb.mxu0 %v618_v20  ;;  %1915 = vmatpush.msrb.mxu1 %v635_v21  ;;  %v733_v20 = vld [vmem:[%s5561_s1 + $0x15c0] sm:$0xff]  ;;  %v683_v21 = vld [vmem:[%s5561_s1 + $0x1430] sm:$0xff] }
 0x149   :  { %1936 = vmatpush.msrb.mxu2 %v650_v22  ;;  %1955 = vmatpush.msrb.mxu3 %v667_v23  ;;  %v700_v22 = vld [vmem:[%s5561_s1 + $0x14b8] sm:$0xff]  ;;  %v715_v23 = vld [vmem:[%s5561_s1 + $0x1530] sm:$0xff] }
 0x14a   :  { %1897 = vmatpush.msrb.mxu0 %v617_v24  ;;  %1916 = vmatpush.msrb.mxu1 %v634_v25  ;;  %v732_v24 = vld [vmem:[%s5561_s1 + $0x15b8] sm:$0xff]  ;;  %v682_v25 = vld [vmem:[%s5561_s1 + $0x1428] sm:$0xff] }
 0x14b   :  { %1937 = vmatpush.msrb.mxu2 %v649_v26  ;;  %1956 = vmatpush.msrb.mxu3 %v666_v28  ;;  %v699_v26 = vld [vmem:[%s5561_s1 + $0x14b0] sm:$0xff]  ;;  %v714_v28 = vld [vmem:[%s5561_s1 + $0x1528] sm:$0xff] }
 0x14c   :  { %1898 = vmatpush.msrb.mxu0 %v616_v29  ;;  %1917 = vmatpush.msrb.mxu1 %v633_v31  ;;  %v731_v29 = vld [vmem:[%s5561_s1 + $0x15b0] sm:$0xff]  ;;  %v681_v31 = vld [vmem:[%s5561_s1 + $0x1420] sm:$0xff] }
 0x14d   :  { %1938 = vmatpush.msrb.mxu2 %v648_v27  ;;  %1957 = vmatpush.msrb.mxu3 %v665_v32  ;;  %v698_v27 = vld [vmem:[%s5561_s1 + $0x14a8] sm:$0xff]  ;;  %v713_v32 = vld [vmem:[%s5561_s1 + $0x1520] sm:$0xff] }
 0x14e   :  { %1899 = vmatpush.msrb.mxu0 %v615_v30  ;;  %1918 = vmatpush.msrb.mxu1 %v632_v33  ;;  %v730_v30 = vld [vmem:[%s5561_s1 + $0x15a8] sm:$0xff]  ;;  %v680_v33 = vld [vmem:[%s5561_s1 + $0x1418] sm:$0xff] }
 0x14f   :  { %1939 = vmatpush.msrb.mxu2 %v647_v34  ;;  %1958 = vmatpush.msrb.mxu3 %v664_v35  ;;  %v697_v34 = vld [vmem:[%s5561_s1 + $0x14a0] sm:$0xff]  ;;  %v712_v35 = vld [vmem:[%s5561_s1 + $0x1518] sm:$0xff] }
 0x150   :  { %1900 = vmatpush.msrb.mxu0 %v614_v36  ;;  %1919 = vmatpush.msrb.mxu1 %v631_v37  ;;  %v729_v36 = vld [vmem:[%s5561_s1 + $0x15a0] sm:$0xff]  ;;  %v679_v37 = vld [vmem:[%s5561_s1 + $0x1410] sm:$0xff] }
 0x151   :  { %1940 = vmatpush.msrb.mxu2 %v646_v39  ;;  %1959 = vmatpush.msrb.mxu3 %v663_v40  ;;  %v711_v39 = vld [vmem:[%s5561_s1 + $0x1510] sm:$0xff]  ;;  %v728_v40 = vld [vmem:[%s5561_s1 + $0x1598] sm:$0xff] }
 0x152   :  { %1901 = vmatpush.msrb.mxu0 %v613_v41  ;;  %1920 = vmatpush.msrb.mxu1 %v630_v42  ;;  %v678_v41 = vld [vmem:[%s5561_s1 + $0x1408] sm:$0xff]  ;;  %v695_v42 = vld [vmem:[%s5561_s1 + $0x1490] sm:$0xff] }
 0x153   :  { %1941 = vmatpush.msrb.mxu2 %v645_v43  ;;  %1960 = vmatpush.msrb.mxu3 %v662_v44  ;;  %v32_v43 = vld [vmem:[%s5560_s0 + $0x58] sm:$0xff]  ;;  %v710_v44 = vld [vmem:[%s5561_s1 + $0x1508] sm:$0xff] }
 0x154   :  { %1902 = vmatmul.f32.vlgmr.msrb.gmra.mxu0 %v1072_v45  ;;  %1942 = vmatmul.f32.vlgmr.msrb.gmra.mxu2 %v1074_v46  ;;  %v727_v45 = vld [vmem:[%s5561_s1 + $0x1590] sm:$0xff]  ;;  %1077 = vst [vmem:[#allocation1 + $0x20] ss:$4 sm:$0xff] %v32_v43  ;;  %v677_v46 = vld [vmem:[%s5561_s1 + $0x1400] sm:$0xff]  ;;  %v760_v43 = vld [vmem:[%s5561_s1 + $0x1698] sm:$0xff] }
 0x155   :  { %1966 = vmatpush.msra.mxu0 %v692_v47  ;;  %2006 = vmatpush.msra.mxu2 %v724_v48  ;;  %v694_v47 = vld [vmem:[%s5561_s1 + $0x1488] sm:$0xff]  ;;  %v709_v48 = vld [vmem:[%s5561_s1 + $0x1500] sm:$0xff] }
 0x156   :  { %1921 = vmatpush.msrb.mxu1 %v629_v49  ;;  %1961 = vmatpush.msrb.mxu3 %v661_v50  ;;  %v726_v49 = vld [vmem:[%s5561_s1 + $0x1588] sm:$0xff]  ;;  %v1078_v50 = vld.sshfl [vmem:[#allocation1] sm:$0xff pattern:$0x73625140] }
 0x157   :  { %1922 = vmatmul.f32.vlgmr.msrb.gmra.mxu1 %v1073_v51  ;;  %1962 = vmatmul.f32.vlgmr.msrb.gmra.mxu3 %v1075_v52  ;;  %v1080_v51 = vld.sshfl [vmem:[#allocation1 + $0x10] sm:$0xff pattern:$0x73625140]  ;;  %v756_v52 = vld [vmem:[%s5561_s1 + $0x1678] sm:$0xff] }
 0x158   :  { %1967 = vmatpush.msra.mxu0 %v691_v53  ;;  %1986 = vmatpush.msra.mxu1 %v708_v54  ;;  %v788_v53 = vld [vmem:[%s5561_s1 + $0x1778] sm:$0xff]  ;;  %v693_v54 = vld [vmem:[%s5561_s1 + $0x1480] sm:$0xff] }
 0x159   :  { %2007 = vmatpush.msra.mxu2 %v723_v55  ;;  %2026 = vmatpush.msra.mxu3 %v740_v56  ;;  %v725_v55 = vld [vmem:[%s5561_s1 + $0x1580] sm:$0xff]  ;;  %v1079_v56 = vld.sshfl [vmem:[#allocation1 + $0x8] sm:$0xff pattern:$0x73625140] }
 0x15a   :  { %1968 = vmatpush.msra.mxu0 %v690_v57  ;;  %1987 = vmatpush.msra.mxu1 %v707_v58  ;;  %v1081_v57 = vld.sshfl [vmem:[#allocation1 + $0x18] sm:$0xff pattern:$0x73625140]  ;;  %v755_v58 = vld [vmem:[%s5561_s1 + $0x1670] sm:$0xff] }
 0x15b   :  { %2008 = vmatpush.msra.mxu2 %v722_v59  ;;  %2027 = vmatpush.msra.mxu3 %v739_v60  ;;  %v772_v59 = vld [vmem:[%s5561_s1 + $0x16f8] sm:$0xff]  ;;  %v787_v60 = vld [vmem:[%s5561_s1 + $0x1770] sm:$0xff] }
 0x15c   :  { %1969 = vmatpush.msra.mxu0 %v689_v61  ;;  %1988 = vmatpush.msra.mxu1 %v706_v62  ;;  %v804_v61 = vld [vmem:[%s5561_s1 + $0x17f8] sm:$0xff]  ;;  %v754_v62 = vld [vmem:[%s5561_s1 + $0x1668] sm:$0xff] }
 0x15d   :  { %2009 = vmatpush.msra.mxu2 %v721_v63  ;;  %2028 = vmatpush.msra.mxu3 %v738_v0  ;;  %v771_v63 = vld [vmem:[%s5561_s1 + $0x16f0] sm:$0xff]  ;;  %v786_v0 = vld [vmem:[%s5561_s1 + $0x1768] sm:$0xff] }
 0x15e   :  { %1970 = vmatpush.msra.mxu0 %v688_v1  ;;  %1989 = vmatpush.msra.mxu1 %v705_v2  ;;  %v803_v1 = vld [vmem:[%s5561_s1 + $0x17f0] sm:$0xff]  ;;  %v753_v2 = vld [vmem:[%s5561_s1 + $0x1660] sm:$0xff] }
 0x15f   :  { %2010 = vmatpush.msra.mxu2 %v720_v3  ;;  %2029 = vmatpush.msra.mxu3 %v737_v4  ;;  %v770_v3 = vld [vmem:[%s5561_s1 + $0x16e8] sm:$0xff]  ;;  %v785_v4 = vld [vmem:[%s5561_s1 + $0x1760] sm:$0xff] }
 0x160   :  { %1971 = vmatpush.msra.mxu0 %v687_v5  ;;  %1990 = vmatpush.msra.mxu1 %v704_v6  ;;  %v802_v5 = vld [vmem:[%s5561_s1 + $0x17e8] sm:$0xff]  ;;  %v752_v6 = vld [vmem:[%s5561_s1 + $0x1658] sm:$0xff] }
 0x161   :  { %2011 = vmatpush.msra.mxu2 %v719_v7  ;;  %2030 = vmatpush.msra.mxu3 %v736_v8  ;;  %v769_v7 = vld [vmem:[%s5561_s1 + $0x16e0] sm:$0xff]  ;;  %v784_v8 = vld [vmem:[%s5561_s1 + $0x1758] sm:$0xff] }
 0x162   :  { %1972 = vmatpush.msra.mxu0 %v686_v9  ;;  %1991 = vmatpush.msra.mxu1 %v703_v10  ;;  %v801_v9 = vld [vmem:[%s5561_s1 + $0x17e0] sm:$0xff]  ;;  %v751_v10 = vld [vmem:[%s5561_s1 + $0x1650] sm:$0xff] }
 0x163   :  { %2012 = vmatpush.msra.mxu2 %v718_v11  ;;  %2031 = vmatpush.msra.mxu3 %v735_v12  ;;  %v768_v11 = vld [vmem:[%s5561_s1 + $0x16d8] sm:$0xff]  ;;  %v783_v12 = vld [vmem:[%s5561_s1 + $0x1750] sm:$0xff] }
 0x164   :  { %1973 = vmatpush.msra.mxu0 %v685_v13  ;;  %1992 = vmatpush.msra.mxu1 %v702_v14  ;;  %v800_v13 = vld [vmem:[%s5561_s1 + $0x17d8] sm:$0xff]  ;;  %v750_v14 = vld [vmem:[%s5561_s1 + $0x1648] sm:$0xff] }
 0x165   :  { %2013 = vmatpush.msra.mxu2 %v717_v15  ;;  %2032 = vmatpush.msra.mxu3 %v734_v16  ;;  %v767_v15 = vld [vmem:[%s5561_s1 + $0x16d0] sm:$0xff]  ;;  %v782_v16 = vld [vmem:[%s5561_s1 + $0x1748] sm:$0xff] }
 0x166   :  { %1974 = vmatpush.msra.mxu0 %v684_v17  ;;  %1993 = vmatpush.msra.mxu1 %v701_v18  ;;  %v799_v17 = vld [vmem:[%s5561_s1 + $0x17d0] sm:$0xff]  ;;  %v749_v18 = vld [vmem:[%s5561_s1 + $0x1640] sm:$0xff] }
 0x167   :  { %2014 = vmatpush.msra.mxu2 %v716_v19  ;;  %2033 = vmatpush.msra.mxu3 %v733_v20  ;;  %v766_v19 = vld [vmem:[%s5561_s1 + $0x16c8] sm:$0xff]  ;;  %v781_v20 = vld [vmem:[%s5561_s1 + $0x1740] sm:$0xff] }
 0x168   :  { %1975 = vmatpush.msra.mxu0 %v683_v21  ;;  %1994 = vmatpush.msra.mxu1 %v700_v22  ;;  %v798_v21 = vld [vmem:[%s5561_s1 + $0x17c8] sm:$0xff]  ;;  %v748_v22 = vld [vmem:[%s5561_s1 + $0x1638] sm:$0xff] }
 0x169   :  { %2015 = vmatpush.msra.mxu2 %v715_v23  ;;  %2034 = vmatpush.msra.mxu3 %v732_v24  ;;  %v765_v23 = vld [vmem:[%s5561_s1 + $0x16c0] sm:$0xff]  ;;  %v780_v24 = vld [vmem:[%s5561_s1 + $0x1738] sm:$0xff] }
 0x16a   :  { %1976 = vmatpush.msra.mxu0 %v682_v25  ;;  %1995 = vmatpush.msra.mxu1 %v699_v26  ;;  %v797_v25 = vld [vmem:[%s5561_s1 + $0x17c0] sm:$0xff]  ;;  %v747_v26 = vld [vmem:[%s5561_s1 + $0x1630] sm:$0xff] }
 0x16b   :  { %2016 = vmatpush.msra.mxu2 %v714_v28  ;;  %2035 = vmatpush.msra.mxu3 %v731_v29  ;;  %v764_v28 = vld [vmem:[%s5561_s1 + $0x16b8] sm:$0xff]  ;;  %v779_v29 = vld [vmem:[%s5561_s1 + $0x1730] sm:$0xff] }
 0x16c   :  { %1977 = vmatpush.msra.mxu0 %v681_v31  ;;  %1996 = vmatpush.msra.mxu1 %v698_v27  ;;  %v796_v31 = vld [vmem:[%s5561_s1 + $0x17b8] sm:$0xff]  ;;  %v746_v27 = vld [vmem:[%s5561_s1 + $0x1628] sm:$0xff] }
 0x16d   :  { %2017 = vmatpush.msra.mxu2 %v713_v32  ;;  %2036 = vmatpush.msra.mxu3 %v730_v30  ;;  %v763_v32 = vld [vmem:[%s5561_s1 + $0x16b0] sm:$0xff]  ;;  %v778_v30 = vld [vmem:[%s5561_s1 + $0x1728] sm:$0xff] }
 0x16e   :  { %1978 = vmatpush.msra.mxu0 %v680_v33  ;;  %1997 = vmatpush.msra.mxu1 %v697_v34  ;;  %v795_v33 = vld [vmem:[%s5561_s1 + $0x17b0] sm:$0xff]  ;;  %v745_v34 = vld [vmem:[%s5561_s1 + $0x1620] sm:$0xff] }
 0x16f   :  { %2018 = vmatpush.msra.mxu2 %v712_v35  ;;  %2037 = vmatpush.msra.mxu3 %v729_v36  ;;  %v762_v35 = vld [vmem:[%s5561_s1 + $0x16a8] sm:$0xff]  ;;  %v777_v36 = vld [vmem:[%s5561_s1 + $0x1720] sm:$0xff] }
 0x170   :  { %1979 = vmatpush.msra.mxu0 %v679_v37  ;;  %1998 = vmatpush.msra.mxu1 %v696_v38  ;;  %v794_v37 = vld [vmem:[%s5561_s1 + $0x17a8] sm:$0xff]  ;;  %v744_v38 = vld [vmem:[%s5561_s1 + $0x1618] sm:$0xff] }
 0x171   :  { %2019 = vmatpush.msra.mxu2 %v711_v39  ;;  %2038 = vmatpush.msra.mxu3 %v728_v40  ;;  %v761_v39 = vld [vmem:[%s5561_s1 + $0x16a0] sm:$0xff]  ;;  %v776_v40 = vld [vmem:[%s5561_s1 + $0x1718] sm:$0xff] }
 0x172   :  { %1980 = vmatpush.msra.mxu0 %v678_v41  ;;  %1999 = vmatpush.msra.mxu1 %v695_v42  ;;  %v793_v41 = vld [vmem:[%s5561_s1 + $0x17a0] sm:$0xff]  ;;  %v743_v42 = vld [vmem:[%s5561_s1 + $0x1610] sm:$0xff] }
 0x173   :  { %2020 = vmatpush.msra.mxu2 %v710_v44  ;;  %2039 = vmatpush.msra.mxu3 %v727_v45  ;;  %v775_v44 = vld [vmem:[%s5561_s1 + $0x1710] sm:$0xff]  ;;  %v792_v45 = vld [vmem:[%s5561_s1 + $0x1798] sm:$0xff] }
 0x174   :  { %1981 = vmatpush.msra.mxu0 %v677_v46  ;;  %2000 = vmatpush.msra.mxu1 %v694_v47  ;;  %v742_v46 = vld [vmem:[%s5561_s1 + $0x1608] sm:$0xff]  ;;  %v759_v47 = vld [vmem:[%s5561_s1 + $0x1690] sm:$0xff] }
 0x175   :  { %2021 = vmatpush.msra.mxu2 %v709_v48  ;;  %2040 = vmatpush.msra.mxu3 %v726_v49  ;;  %v33_v48 = vld [vmem:[%s5560_s0 + $0x60] sm:$0xff]  ;;  %v774_v49 = vld [vmem:[%s5561_s1 + $0x1708] sm:$0xff] }
 0x176   :  { %1982 = vmatmul.f32.vlgmr.msra.gmra.mxu0 %v1078_v50  ;;  %2022 = vmatmul.f32.vlgmr.msra.gmra.mxu2 %v1080_v51  ;;  %v791_v50 = vld [vmem:[%s5561_s1 + $0x1790] sm:$0xff]  ;;  %1086 = vst [vmem:[#allocation1] ss:$4 sm:$0xff] %v33_v48  ;;  %v741_v51 = vld [vmem:[%s5561_s1 + $0x1600] sm:$0xff]  ;;  %v824_v48 = vld [vmem:[%s5561_s1 + $0x1898] sm:$0xff] }
 0x177   :  { %2046 = vmatpush.msrb.mxu0 %v756_v52  ;;  %2086 = vmatpush.msrb.mxu2 %v788_v53  ;;  %v758_v52 = vld [vmem:[%s5561_s1 + $0x1688] sm:$0xff]  ;;  %v773_v53 = vld [vmem:[%s5561_s1 + $0x1700] sm:$0xff] }
 0x178   :  { %2001 = vmatpush.msra.mxu1 %v693_v54  ;;  %2041 = vmatpush.msra.mxu3 %v725_v55  ;;  %v790_v54 = vld [vmem:[%s5561_s1 + $0x1788] sm:$0xff]  ;;  %v1082_v55 = vld.sshfl [vmem:[#allocation1 + $0x20] sm:$0xff pattern:$0x73625140] }
 0x179   :  { %2002 = vmatmul.f32.vlgmr.msra.gmra.mxu1 %v1079_v56  ;;  %2042 = vmatmul.f32.vlgmr.msra.gmra.mxu3 %v1081_v57  ;;  %v1084_v56 = vld.sshfl [vmem:[#allocation1 + $0x30] sm:$0xff pattern:$0x73625140]  ;;  %v820_v57 = vld [vmem:[%s5561_s1 + $0x1878] sm:$0xff] }
 0x17a   :  { %2047 = vmatpush.msrb.mxu0 %v755_v58  ;;  %2066 = vmatpush.msrb.mxu1 %v772_v59  ;;  %v852_v58 = vld [vmem:[%s5561_s1 + $0x1978] sm:$0xff]  ;;  %v757_v59 = vld [vmem:[%s5561_s1 + $0x1680] sm:$0xff] }
 0x17b   :  { %2087 = vmatpush.msrb.mxu2 %v787_v60  ;;  %2106 = vmatpush.msrb.mxu3 %v804_v61  ;;  %v789_v60 = vld [vmem:[%s5561_s1 + $0x1780] sm:$0xff]  ;;  %v1083_v61 = vld.sshfl [vmem:[#allocation1 + $0x28] sm:$0xff pattern:$0x73625140] }
 0x17c   :  { %2048 = vmatpush.msrb.mxu0 %v754_v62  ;;  %2067 = vmatpush.msrb.mxu1 %v771_v63  ;;  %v1085_v62 = vld.sshfl [vmem:[#allocation1 + $0x38] sm:$0xff pattern:$0x73625140]  ;;  %v819_v63 = vld [vmem:[%s5561_s1 + $0x1870] sm:$0xff] }
 0x17d   :  { %2088 = vmatpush.msrb.mxu2 %v786_v0  ;;  %2107 = vmatpush.msrb.mxu3 %v803_v1  ;;  %v836_v0 = vld [vmem:[%s5561_s1 + $0x18f8] sm:$0xff]  ;;  %v851_v1 = vld [vmem:[%s5561_s1 + $0x1970] sm:$0xff] }
 0x17e   :  { %2049 = vmatpush.msrb.mxu0 %v753_v2  ;;  %2068 = vmatpush.msrb.mxu1 %v770_v3  ;;  %v868_v2 = vld [vmem:[%s5561_s1 + $0x19f8] sm:$0xff]  ;;  %v818_v3 = vld [vmem:[%s5561_s1 + $0x1868] sm:$0xff] }
 0x17f   :  { %2089 = vmatpush.msrb.mxu2 %v785_v4  ;;  %2108 = vmatpush.msrb.mxu3 %v802_v5  ;;  %v835_v4 = vld [vmem:[%s5561_s1 + $0x18f0] sm:$0xff]  ;;  %v850_v5 = vld [vmem:[%s5561_s1 + $0x1968] sm:$0xff] }
 0x180   :  { %2050 = vmatpush.msrb.mxu0 %v752_v6  ;;  %2069 = vmatpush.msrb.mxu1 %v769_v7  ;;  %v867_v6 = vld [vmem:[%s5561_s1 + $0x19f0] sm:$0xff]  ;;  %v817_v7 = vld [vmem:[%s5561_s1 + $0x1860] sm:$0xff] }
 0x181   :  { %2090 = vmatpush.msrb.mxu2 %v784_v8  ;;  %2109 = vmatpush.msrb.mxu3 %v801_v9  ;;  %v834_v8 = vld [vmem:[%s5561_s1 + $0x18e8] sm:$0xff]  ;;  %v849_v9 = vld [vmem:[%s5561_s1 + $0x1960] sm:$0xff] }
 0x182   :  { %2051 = vmatpush.msrb.mxu0 %v751_v10  ;;  %2070 = vmatpush.msrb.mxu1 %v768_v11  ;;  %v866_v10 = vld [vmem:[%s5561_s1 + $0x19e8] sm:$0xff]  ;;  %v816_v11 = vld [vmem:[%s5561_s1 + $0x1858] sm:$0xff] }
 0x183   :  { %2091 = vmatpush.msrb.mxu2 %v783_v12  ;;  %2110 = vmatpush.msrb.mxu3 %v800_v13  ;;  %v833_v12 = vld [vmem:[%s5561_s1 + $0x18e0] sm:$0xff]  ;;  %v848_v13 = vld [vmem:[%s5561_s1 + $0x1958] sm:$0xff] }
 0x184   :  { %2052 = vmatpush.msrb.mxu0 %v750_v14  ;;  %2071 = vmatpush.msrb.mxu1 %v767_v15  ;;  %v865_v14 = vld [vmem:[%s5561_s1 + $0x19e0] sm:$0xff]  ;;  %v815_v15 = vld [vmem:[%s5561_s1 + $0x1850] sm:$0xff] }
 0x185   :  { %2092 = vmatpush.msrb.mxu2 %v782_v16  ;;  %2111 = vmatpush.msrb.mxu3 %v799_v17  ;;  %v832_v16 = vld [vmem:[%s5561_s1 + $0x18d8] sm:$0xff]  ;;  %v847_v17 = vld [vmem:[%s5561_s1 + $0x1950] sm:$0xff] }
 0x186   :  { %2053 = vmatpush.msrb.mxu0 %v749_v18  ;;  %2072 = vmatpush.msrb.mxu1 %v766_v19  ;;  %v864_v18 = vld [vmem:[%s5561_s1 + $0x19d8] sm:$0xff]  ;;  %v814_v19 = vld [vmem:[%s5561_s1 + $0x1848] sm:$0xff] }
 0x187   :  { %2093 = vmatpush.msrb.mxu2 %v781_v20  ;;  %2112 = vmatpush.msrb.mxu3 %v798_v21  ;;  %v831_v20 = vld [vmem:[%s5561_s1 + $0x18d0] sm:$0xff]  ;;  %v846_v21 = vld [vmem:[%s5561_s1 + $0x1948] sm:$0xff] }
 0x188   :  { %2054 = vmatpush.msrb.mxu0 %v748_v22  ;;  %2073 = vmatpush.msrb.mxu1 %v765_v23  ;;  %v863_v22 = vld [vmem:[%s5561_s1 + $0x19d0] sm:$0xff]  ;;  %v813_v23 = vld [vmem:[%s5561_s1 + $0x1840] sm:$0xff] }
 0x189   :  { %2094 = vmatpush.msrb.mxu2 %v780_v24  ;;  %2113 = vmatpush.msrb.mxu3 %v797_v25  ;;  %v830_v24 = vld [vmem:[%s5561_s1 + $0x18c8] sm:$0xff]  ;;  %v845_v25 = vld [vmem:[%s5561_s1 + $0x1940] sm:$0xff] }
 0x18a   :  { %2055 = vmatpush.msrb.mxu0 %v747_v26  ;;  %2074 = vmatpush.msrb.mxu1 %v764_v28  ;;  %v862_v26 = vld [vmem:[%s5561_s1 + $0x19c8] sm:$0xff]  ;;  %v812_v28 = vld [vmem:[%s5561_s1 + $0x1838] sm:$0xff] }
 0x18b   :  { %2095 = vmatpush.msrb.mxu2 %v779_v29  ;;  %2114 = vmatpush.msrb.mxu3 %v796_v31  ;;  %v829_v29 = vld [vmem:[%s5561_s1 + $0x18c0] sm:$0xff]  ;;  %v844_v31 = vld [vmem:[%s5561_s1 + $0x1938] sm:$0xff] }
 0x18c   :  { %2056 = vmatpush.msrb.mxu0 %v746_v27  ;;  %2075 = vmatpush.msrb.mxu1 %v763_v32  ;;  %v861_v27 = vld [vmem:[%s5561_s1 + $0x19c0] sm:$0xff]  ;;  %v811_v32 = vld [vmem:[%s5561_s1 + $0x1830] sm:$0xff] }
 0x18d   :  { %2096 = vmatpush.msrb.mxu2 %v778_v30  ;;  %2115 = vmatpush.msrb.mxu3 %v795_v33  ;;  %v828_v30 = vld [vmem:[%s5561_s1 + $0x18b8] sm:$0xff]  ;;  %v843_v33 = vld [vmem:[%s5561_s1 + $0x1930] sm:$0xff] }
 0x18e   :  { %2057 = vmatpush.msrb.mxu0 %v745_v34  ;;  %2076 = vmatpush.msrb.mxu1 %v762_v35  ;;  %v860_v34 = vld [vmem:[%s5561_s1 + $0x19b8] sm:$0xff]  ;;  %v810_v35 = vld [vmem:[%s5561_s1 + $0x1828] sm:$0xff] }
 0x18f   :  { %2097 = vmatpush.msrb.mxu2 %v777_v36  ;;  %2116 = vmatpush.msrb.mxu3 %v794_v37  ;;  %v827_v36 = vld [vmem:[%s5561_s1 + $0x18b0] sm:$0xff]  ;;  %v842_v37 = vld [vmem:[%s5561_s1 + $0x1928] sm:$0xff] }
 0x190   :  { %2058 = vmatpush.msrb.mxu0 %v744_v38  ;;  %2077 = vmatpush.msrb.mxu1 %v761_v39  ;;  %v859_v38 = vld [vmem:[%s5561_s1 + $0x19b0] sm:$0xff]  ;;  %v809_v39 = vld [vmem:[%s5561_s1 + $0x1820] sm:$0xff] }
 0x191   :  { %2098 = vmatpush.msrb.mxu2 %v776_v40  ;;  %2117 = vmatpush.msrb.mxu3 %v793_v41  ;;  %v826_v40 = vld [vmem:[%s5561_s1 + $0x18a8] sm:$0xff]  ;;  %v841_v41 = vld [vmem:[%s5561_s1 + $0x1920] sm:$0xff] }
 0x192   :  { %2059 = vmatpush.msrb.mxu0 %v743_v42  ;;  %2078 = vmatpush.msrb.mxu1 %v760_v43  ;;  %v858_v42 = vld [vmem:[%s5561_s1 + $0x19a8] sm:$0xff]  ;;  %v808_v43 = vld [vmem:[%s5561_s1 + $0x1818] sm:$0xff] }
 0x193   :  { %2099 = vmatpush.msrb.mxu2 %v775_v44  ;;  %2118 = vmatpush.msrb.mxu3 %v792_v45  ;;  %v825_v44 = vld [vmem:[%s5561_s1 + $0x18a0] sm:$0xff]  ;;  %v840_v45 = vld [vmem:[%s5561_s1 + $0x1918] sm:$0xff] }
 0x194   :  { %2060 = vmatpush.msrb.mxu0 %v742_v46  ;;  %2079 = vmatpush.msrb.mxu1 %v759_v47  ;;  %v857_v46 = vld [vmem:[%s5561_s1 + $0x19a0] sm:$0xff]  ;;  %v807_v47 = vld [vmem:[%s5561_s1 + $0x1810] sm:$0xff] }
 0x195   :  { %2100 = vmatpush.msrb.mxu2 %v774_v49  ;;  %2119 = vmatpush.msrb.mxu3 %v791_v50  ;;  %v839_v49 = vld [vmem:[%s5561_s1 + $0x1910] sm:$0xff]  ;;  %v856_v50 = vld [vmem:[%s5561_s1 + $0x1998] sm:$0xff] }
 0x196   :  { %2061 = vmatpush.msrb.mxu0 %v741_v51  ;;  %2080 = vmatpush.msrb.mxu1 %v758_v52  ;;  %v806_v51 = vld [vmem:[%s5561_s1 + $0x1808] sm:$0xff]  ;;  %v823_v52 = vld [vmem:[%s5561_s1 + $0x1890] sm:$0xff] }
 0x197   :  { %2101 = vmatpush.msrb.mxu2 %v773_v53  ;;  %2120 = vmatpush.msrb.mxu3 %v790_v54  ;;  %v34_v53 = vld [vmem:[%s5560_s0 + $0x68] sm:$0xff] }
 0x198   :  { %2062 = vmatmul.f32.vlgmr.msrb.gmra.mxu0 %v1082_v55  ;;  %2102 = vmatmul.f32.vlgmr.msrb.gmra.mxu2 %v1084_v56  ;;  %v838_v54 = vld [vmem:[%s5561_s1 + $0x1908] sm:$0xff]  ;;  %v855_v55 = vld [vmem:[%s5561_s1 + $0x1990] sm:$0xff]  ;;  %1087 = vst [vmem:[#allocation1 + $0x20] ss:$4 sm:$0xff] %v34_v53  ;;  %v805_v56 = vld [vmem:[%s5561_s1 + $0x1800] sm:$0xff] }
 0x199   :  { %2126 = vmatpush.msra.mxu0 %v820_v57  ;;  %2166 = vmatpush.msra.mxu2 %v852_v58  ;;  %v822_v57 = vld [vmem:[%s5561_s1 + $0x1888] sm:$0xff]  ;;  %v837_v58 = vld [vmem:[%s5561_s1 + $0x1900] sm:$0xff]  ;;  %v904_v53 = vld [vmem:[%s5561_s1 + $0x1b18] sm:$0xff] }
 0x19a   :  { %2081 = vmatpush.msrb.mxu1 %v757_v59  ;;  %2121 = vmatpush.msrb.mxu3 %v789_v60  ;;  %v854_v59 = vld [vmem:[%s5561_s1 + $0x1988] sm:$0xff]  ;;  %v1088_v60 = vld.sshfl [vmem:[#allocation1] sm:$0xff pattern:$0x73625140] }
 0x19b   :  { %2082 = vmatmul.f32.vlgmr.msrb.gmra.mxu1 %v1083_v61  ;;  %2122 = vmatmul.f32.vlgmr.msrb.gmra.mxu3 %v1085_v62  ;;  %v1090_v61 = vld.sshfl [vmem:[#allocation1 + $0x10] sm:$0xff pattern:$0x73625140]  ;;  %v884_v62 = vld [vmem:[%s5561_s1 + $0x1a78] sm:$0xff] }
 0x19c   :  { %2127 = vmatpush.msra.mxu0 %v819_v63  ;;  %2146 = vmatpush.msra.mxu1 %v836_v0  ;;  %v916_v63 = vld [vmem:[%s5561_s1 + $0x1b78] sm:$0xff]  ;;  %v821_v0 = vld [vmem:[%s5561_s1 + $0x1880] sm:$0xff] }
 0x19d   :  { %2167 = vmatpush.msra.mxu2 %v851_v1  ;;  %2186 = vmatpush.msra.mxu3 %v868_v2  ;;  %v853_v1 = vld [vmem:[%s5561_s1 + $0x1980] sm:$0xff]  ;;  %v1089_v2 = vld.sshfl [vmem:[#allocation1 + $0x8] sm:$0xff pattern:$0x73625140] }
 0x19e   :  { %2128 = vmatpush.msra.mxu0 %v818_v3  ;;  %2147 = vmatpush.msra.mxu1 %v835_v4  ;;  %v1091_v3 = vld.sshfl [vmem:[#allocation1 + $0x18] sm:$0xff pattern:$0x73625140]  ;;  %v883_v4 = vld [vmem:[%s5561_s1 + $0x1a70] sm:$0xff] }
 0x19f   :  { %2168 = vmatpush.msra.mxu2 %v850_v5  ;;  %2187 = vmatpush.msra.mxu3 %v867_v6  ;;  %v900_v5 = vld [vmem:[%s5561_s1 + $0x1af8] sm:$0xff]  ;;  %v915_v6 = vld [vmem:[%s5561_s1 + $0x1b70] sm:$0xff] }
 0x1a0   :  { %2129 = vmatpush.msra.mxu0 %v817_v7  ;;  %2148 = vmatpush.msra.mxu1 %v834_v8  ;;  %v932_v7 = vld [vmem:[%s5561_s1 + $0x1bf8] sm:$0xff]  ;;  %v882_v8 = vld [vmem:[%s5561_s1 + $0x1a68] sm:$0xff] }
 0x1a1   :  { %2169 = vmatpush.msra.mxu2 %v849_v9  ;;  %2188 = vmatpush.msra.mxu3 %v866_v10  ;;  %v899_v9 = vld [vmem:[%s5561_s1 + $0x1af0] sm:$0xff]  ;;  %v914_v10 = vld [vmem:[%s5561_s1 + $0x1b68] sm:$0xff] }
 0x1a2   :  { %2130 = vmatpush.msra.mxu0 %v816_v11  ;;  %2149 = vmatpush.msra.mxu1 %v833_v12  ;;  %v931_v11 = vld [vmem:[%s5561_s1 + $0x1bf0] sm:$0xff]  ;;  %v881_v12 = vld [vmem:[%s5561_s1 + $0x1a60] sm:$0xff] }
 0x1a3   :  { %2170 = vmatpush.msra.mxu2 %v848_v13  ;;  %2189 = vmatpush.msra.mxu3 %v865_v14  ;;  %v898_v13 = vld [vmem:[%s5561_s1 + $0x1ae8] sm:$0xff]  ;;  %v913_v14 = vld [vmem:[%s5561_s1 + $0x1b60] sm:$0xff] }
 0x1a4   :  { %2131 = vmatpush.msra.mxu0 %v815_v15  ;;  %2150 = vmatpush.msra.mxu1 %v832_v16  ;;  %v930_v15 = vld [vmem:[%s5561_s1 + $0x1be8] sm:$0xff]  ;;  %v880_v16 = vld [vmem:[%s5561_s1 + $0x1a58] sm:$0xff] }
 0x1a5   :  { %2171 = vmatpush.msra.mxu2 %v847_v17  ;;  %2190 = vmatpush.msra.mxu3 %v864_v18  ;;  %v897_v17 = vld [vmem:[%s5561_s1 + $0x1ae0] sm:$0xff]  ;;  %v912_v18 = vld [vmem:[%s5561_s1 + $0x1b58] sm:$0xff] }
 0x1a6   :  { %2132 = vmatpush.msra.mxu0 %v814_v19  ;;  %2151 = vmatpush.msra.mxu1 %v831_v20  ;;  %v929_v19 = vld [vmem:[%s5561_s1 + $0x1be0] sm:$0xff]  ;;  %v879_v20 = vld [vmem:[%s5561_s1 + $0x1a50] sm:$0xff] }
 0x1a7   :  { %2172 = vmatpush.msra.mxu2 %v846_v21  ;;  %2191 = vmatpush.msra.mxu3 %v863_v22  ;;  %v896_v21 = vld [vmem:[%s5561_s1 + $0x1ad8] sm:$0xff]  ;;  %v911_v22 = vld [vmem:[%s5561_s1 + $0x1b50] sm:$0xff] }
 0x1a8   :  { %2133 = vmatpush.msra.mxu0 %v813_v23  ;;  %2152 = vmatpush.msra.mxu1 %v830_v24  ;;  %v928_v23 = vld [vmem:[%s5561_s1 + $0x1bd8] sm:$0xff]  ;;  %v878_v24 = vld [vmem:[%s5561_s1 + $0x1a48] sm:$0xff] }
 0x1a9   :  { %2173 = vmatpush.msra.mxu2 %v845_v25  ;;  %2192 = vmatpush.msra.mxu3 %v862_v26  ;;  %v895_v25 = vld [vmem:[%s5561_s1 + $0x1ad0] sm:$0xff]  ;;  %v910_v26 = vld [vmem:[%s5561_s1 + $0x1b48] sm:$0xff] }
 0x1aa   :  { %2134 = vmatpush.msra.mxu0 %v812_v28  ;;  %2153 = vmatpush.msra.mxu1 %v829_v29  ;;  %v927_v28 = vld [vmem:[%s5561_s1 + $0x1bd0] sm:$0xff]  ;;  %v877_v29 = vld [vmem:[%s5561_s1 + $0x1a40] sm:$0xff] }
 0x1ab   :  { %2174 = vmatpush.msra.mxu2 %v844_v31  ;;  %2193 = vmatpush.msra.mxu3 %v861_v27  ;;  %v894_v31 = vld [vmem:[%s5561_s1 + $0x1ac8] sm:$0xff]  ;;  %v909_v27 = vld [vmem:[%s5561_s1 + $0x1b40] sm:$0xff] }
 0x1ac   :  { %2135 = vmatpush.msra.mxu0 %v811_v32  ;;  %2154 = vmatpush.msra.mxu1 %v828_v30  ;;  %v926_v32 = vld [vmem:[%s5561_s1 + $0x1bc8] sm:$0xff]  ;;  %v876_v30 = vld [vmem:[%s5561_s1 + $0x1a38] sm:$0xff] }
 0x1ad   :  { %2175 = vmatpush.msra.mxu2 %v843_v33  ;;  %2194 = vmatpush.msra.mxu3 %v860_v34  ;;  %v893_v33 = vld [vmem:[%s5561_s1 + $0x1ac0] sm:$0xff]  ;;  %v908_v34 = vld [vmem:[%s5561_s1 + $0x1b38] sm:$0xff] }
 0x1ae   :  { %2136 = vmatpush.msra.mxu0 %v810_v35  ;;  %2155 = vmatpush.msra.mxu1 %v827_v36  ;;  %v925_v35 = vld [vmem:[%s5561_s1 + $0x1bc0] sm:$0xff]  ;;  %v875_v36 = vld [vmem:[%s5561_s1 + $0x1a30] sm:$0xff] }
 0x1af   :  { %2176 = vmatpush.msra.mxu2 %v842_v37  ;;  %2195 = vmatpush.msra.mxu3 %v859_v38  ;;  %v892_v37 = vld [vmem:[%s5561_s1 + $0x1ab8] sm:$0xff]  ;;  %v907_v38 = vld [vmem:[%s5561_s1 + $0x1b30] sm:$0xff] }
 0x1b0   :  { %2137 = vmatpush.msra.mxu0 %v809_v39  ;;  %2156 = vmatpush.msra.mxu1 %v826_v40  ;;  %v924_v39 = vld [vmem:[%s5561_s1 + $0x1bb8] sm:$0xff]  ;;  %v874_v40 = vld [vmem:[%s5561_s1 + $0x1a28] sm:$0xff] }
 0x1b1   :  { %2177 = vmatpush.msra.mxu2 %v841_v41  ;;  %2196 = vmatpush.msra.mxu3 %v858_v42  ;;  %v891_v41 = vld [vmem:[%s5561_s1 + $0x1ab0] sm:$0xff]  ;;  %v2447_v42 = vld [vmem:[%s5562_s2] ss:$0 sm:$0xff] }
 0x1b2   :  { %2138 = vmatpush.msra.mxu0 %v808_v43  ;;  %2157 = vmatpush.msra.mxu1 %v825_v44  ;;  %v906_v43 = vld [vmem:[%s5561_s1 + $0x1b28] sm:$0xff]  ;;  %v923_v44 = vld [vmem:[%s5561_s1 + $0x1bb0] sm:$0xff] }
 0x1b3   :  { %2178 = vmatpush.msra.mxu2 %v840_v45  ;;  %2197 = vmatpush.msra.mxu3 %v857_v46  ;;  %v1183_v45 = vpop.f32.mrf.mxu0  ;;  %v873_v46 = vld [vmem:[%s5561_s1 + $0x1a20] sm:$0xff] }
 0x1b4   :  { %2139 = vmatpush.msra.mxu0 %v807_v47  ;;  %2158 = vmatpush.msra.mxu1 %v824_v48  ;;  %v890_v47 = vld [vmem:[%s5561_s1 + $0x1aa8] sm:$0xff]  ;;  %v905_v48 = vld [vmem:[%s5561_s1 + $0x1b20] sm:$0xff] }
 0x1b5   :  { %2179 = vmatpush.msra.mxu2 %v839_v49  ;;  %2198 = vmatpush.msra.mxu3 %v856_v50  ;;  %v922_v49 = vld [vmem:[%s5561_s1 + $0x1ba8] sm:$0xff]  ;;  %v872_v50 = vld [vmem:[%s5561_s1 + $0x1a18] sm:$0xff] }
 0x1b6   :  { %2140 = vmatpush.msra.mxu0 %v806_v51  ;;  %2159 = vmatpush.msra.mxu1 %v823_v52  ;;  %v889_v51 = vld [vmem:[%s5561_s1 + $0x1aa0] sm:$0xff]  ;;  %v1184_v52 = vadd.f32 %v2447_v42, %v1183_v45  ;;  %v992_v42 = vld [vmem:[%s5561_s1 + $0x1dd8] sm:$0xff]  ;;  %v959_v45 = vld [vmem:[%s5561_s1 + $0x1cd0] sm:$0xff] }
 0x1b7   :  { %2180 = vmatpush.msra.mxu2 %v838_v54  ;;  %2199 = vmatpush.msra.mxu3 %v855_v55  ;;  %v921_v54 = vld [vmem:[%s5561_s1 + $0x1ba0] sm:$0xff]  ;;  %v1203_v55 = vpop.f32.mrf.mxu1 }
 0x1b8   :  { %2141 = vmatpush.msra.mxu0 %v805_v56  ;;  %2160 = vmatpush.msra.mxu1 %v822_v57  ;;  %v871_v56 = vld [vmem:[%s5561_s1 + $0x1a10] sm:$0xff]  ;;  %v888_v57 = vld [vmem:[%s5561_s1 + $0x1a98] sm:$0xff] }
 0x1b9   :  { %2181 = vmatpush.msra.mxu2 %v837_v58  ;;  %2200 = vmatpush.msra.mxu3 %v854_v59  ;;  %v903_v58 = vld [vmem:[%s5561_s1 + $0x1b10] sm:$0xff]  ;;  %v920_v59 = vld [vmem:[%s5561_s1 + $0x1b98] sm:$0xff] }
 0x1ba   :  { %2142 = vmatmul.f32.vlgmr.msra.gmra.mxu0 %v1088_v60  ;;  %2182 = vmatmul.f32.vlgmr.msra.gmra.mxu2 %v1090_v61  ;;  %v870_v60 = vld [vmem:[%s5561_s1 + $0x1a08] sm:$0xff]  ;;  %v887_v61 = vld [vmem:[%s5561_s1 + $0x1a90] sm:$0xff] }
 0x1bb   :  { %2206 = vmatpush.msrb.mxu0 %v884_v62  ;;  %2246 = vmatpush.msrb.mxu2 %v916_v63  ;;  %v35_v62 = vld [vmem:[%s5560_s0 + $0x70] sm:$0xff]  ;;  %v1204_v63 = vadd.f32 %v1203_v55, %v1184_v52  ;;  %v990_v52 = vld [vmem:[%s5561_s1 + $0x1dc8] sm:$0xff]  ;;  %v957_v55 = vld [vmem:[%s5561_s1 + $0x1cc0] sm:$0xff] }
 0x1bc   :  { %2161 = vmatpush.msra.mxu1 %v821_v0  ;;  %2201 = vmatpush.msra.mxu3 %v853_v1  ;;  %v902_v0 = vld [vmem:[%s5561_s1 + $0x1b08] sm:$0xff]  ;;  %v919_v1 = vld [vmem:[%s5561_s1 + $0x1b90] sm:$0xff]  ;;  %1096 = vst [vmem:[#allocation1] ss:$4 sm:$0xff] %v35_v62 }
 0x1bd   :  { %2162 = vmatmul.f32.vlgmr.msra.gmra.mxu1 %v1089_v2  ;;  %2202 = vmatmul.f32.vlgmr.msra.gmra.mxu3 %v1091_v3  ;;  %v1223_v2 = vpop.f32.mrf.mxu2  ;;  %v869_v3 = vld [vmem:[%s5561_s1 + $0x1a00] sm:$0xff]  ;;  %v971_v62 = vld [vmem:[%s5561_s1 + $0x1d30] sm:$0xff] }
 0x1be   :  { %2207 = vmatpush.msrb.mxu0 %v883_v4  ;;  %2226 = vmatpush.msrb.mxu1 %v900_v5  ;;  %v886_v4 = vld [vmem:[%s5561_s1 + $0x1a88] sm:$0xff]  ;;  %v901_v5 = vld [vmem:[%s5561_s1 + $0x1b00] sm:$0xff] }
 0x1bf   :  { %2247 = vmatpush.msrb.mxu2 %v915_v6  ;;  %2266 = vmatpush.msrb.mxu3 %v932_v7  ;;  %v918_v6 = vld [vmem:[%s5561_s1 + $0x1b88] sm:$0xff]  ;;  %v1092_v7 = vld.sshfl [vmem:[#allocation1 + $0x20] sm:$0xff pattern:$0x73625140] }
 0x1c0   :  { %2208 = vmatpush.msrb.mxu0 %v882_v8  ;;  %2227 = vmatpush.msrb.mxu1 %v899_v9  ;;  %v1094_v8 = vld.sshfl [vmem:[#allocation1 + $0x30] sm:$0xff pattern:$0x73625140]  ;;  %v1224_v9 = vadd.f32 %v1223_v2, %v1204_v63  ;;  %v988_v63 = vld [vmem:[%s5561_s1 + $0x1db8] sm:$0xff] }
 0x1c1   :  { %2248 = vmatpush.msrb.mxu2 %v914_v10  ;;  %2267 = vmatpush.msrb.mxu3 %v931_v11  ;;  %v948_v10 = vld [vmem:[%s5561_s1 + $0x1c78] sm:$0xff] }
 0x1c2   :  { %2209 = vmatpush.msrb.mxu0 %v881_v12  ;;  %2228 = vmatpush.msrb.mxu1 %v898_v13  ;;  %v980_v11 = vld [vmem:[%s5561_s1 + $0x1d78] sm:$0xff]  ;;  %v1243_v12 = vpop.f32.mrf.mxu3  ;;  %v885_v13 = vld [vmem:[%s5561_s1 + $0x1a80] sm:$0xff] }
 0x1c3   :  { %2249 = vmatpush.msrb.mxu2 %v913_v14  ;;  %2268 = vmatpush.msrb.mxu3 %v930_v15  ;;  %v917_v14 = vld [vmem:[%s5561_s1 + $0x1b80] sm:$0xff]  ;;  %v1093_v15 = vld.sshfl [vmem:[#allocation1 + $0x28] sm:$0xff pattern:$0x73625140] }
 0x1c4   :  { %2210 = vmatpush.msrb.mxu0 %v880_v16  ;;  %2229 = vmatpush.msrb.mxu1 %v897_v17  ;;  %v1095_v16 = vld.sshfl [vmem:[#allocation1 + $0x38] sm:$0xff pattern:$0x73625140]  ;;  %v947_v17 = vld [vmem:[%s5561_s1 + $0x1c70] sm:$0xff] }
 0x1c5   :  { %2250 = vmatpush.msrb.mxu2 %v912_v18  ;;  %2269 = vmatpush.msrb.mxu3 %v929_v19  ;;  %v964_v18 = vld [vmem:[%s5561_s1 + $0x1cf8] sm:$0xff]  ;;  %v1244_v19 = vadd.f32 %v1243_v12, %v1224_v9  ;;  %v986_v9 = vld [vmem:[%s5561_s1 + $0x1da8] sm:$0xff]  ;;  %v953_v12 = vld [vmem:[%s5561_s1 + $0x1ca0] sm:$0xff] }
 0x1c6   :  { %2211 = vmatpush.msrb.mxu0 %v879_v20  ;;  %2230 = vmatpush.msrb.mxu1 %v896_v21  ;;  %v979_v20 = vld [vmem:[%s5561_s1 + $0x1d70] sm:$0xff]  ;;  %v996_v21 = vld [vmem:[%s5561_s1 + $0x1df8] sm:$0xff] }
 0x1c7   :  { %2251 = vmatpush.msrb.mxu2 %v911_v22  ;;  %2270 = vmatpush.msrb.mxu3 %v928_v23  ;;  %v1263_v22 = vpop.f32.mrf.mxu0  ;;  %v946_v23 = vld [vmem:[%s5561_s1 + $0x1c68] sm:$0xff] }
 0x1c8   :  { %2212 = vmatpush.msrb.mxu0 %v878_v24  ;;  %2231 = vmatpush.msrb.mxu1 %v895_v25  ;;  %v963_v24 = vld [vmem:[%s5561_s1 + $0x1cf0] sm:$0xff]  ;;  %v978_v25 = vld [vmem:[%s5561_s1 + $0x1d68] sm:$0xff] }
 0x1c9   :  { %2252 = vmatpush.msrb.mxu2 %v910_v26  ;;  %2271 = vmatpush.msrb.mxu3 %v927_v28  ;;  %v995_v26 = vld [vmem:[%s5561_s1 + $0x1df0] sm:$0xff]  ;;  %v945_v28 = vld [vmem:[%s5561_s1 + $0x1c60] sm:$0xff] }
 0x1ca   :  { %2213 = vmatpush.msrb.mxu0 %v877_v29  ;;  %2232 = vmatpush.msrb.mxu1 %v894_v31  ;;  %v962_v29 = vld [vmem:[%s5561_s1 + $0x1ce8] sm:$0xff]  ;;  %v1264_v31 = vadd.f32 %v1263_v22, %v1244_v19  ;;  %v967_v19 = vld [vmem:[%s5561_s1 + $0x1d10] sm:$0xff] }
 0x1cb   :  { %2253 = vmatpush.msrb.mxu2 %v909_v27  ;;  %2272 = vmatpush.msrb.mxu3 %v926_v32  ;;  %v977_v27 = vld [vmem:[%s5561_s1 + $0x1d60] sm:$0xff]  ;;  %v994_v32 = vld [vmem:[%s5561_s1 + $0x1de8] sm:$0xff] }
 0x1cc   :  { %2214 = vmatpush.msrb.mxu0 %v876_v30  ;;  %2233 = vmatpush.msrb.mxu1 %v893_v33  ;;  %v1283_v30 = vpop.f32.mrf.mxu1  ;;  %v944_v33 = vld [vmem:[%s5561_s1 + $0x1c58] sm:$0xff]  ;;  %v934_v22 = vld [vmem:[%s5561_s1 + $0x1c08] sm:$0xff] }
 0x1cd   :  { %2254 = vmatpush.msrb.mxu2 %v908_v34  ;;  %2273 = vmatpush.msrb.mxu3 %v925_v35  ;;  %v961_v34 = vld [vmem:[%s5561_s1 + $0x1ce0] sm:$0xff]  ;;  %v976_v35 = vld [vmem:[%s5561_s1 + $0x1d58] sm:$0xff] }
 0x1ce   :  { %2215 = vmatpush.msrb.mxu0 %v875_v36  ;;  %2234 = vmatpush.msrb.mxu1 %v892_v37  ;;  %v993_v36 = vld [vmem:[%s5561_s1 + $0x1de0] sm:$0xff]  ;;  %v943_v37 = vld [vmem:[%s5561_s1 + $0x1c50] sm:$0xff] }
 0x1cf   :  { %2255 = vmatpush.msrb.mxu2 %v907_v38  ;;  %2274 = vmatpush.msrb.mxu3 %v924_v39  ;;  %v960_v38 = vld [vmem:[%s5561_s1 + $0x1cd8] sm:$0xff] }
 0x1d0   :  { %2216 = vmatpush.msrb.mxu0 %v874_v40  ;;  %2235 = vmatpush.msrb.mxu1 %v891_v41  ;;  %v36_v39 = vld [vmem:[%s5560_s0 + $0x78] sm:$0x3]  ;;  %v1284_v40 = vadd.f32 %v1283_v30, %v1264_v31  ;;  %v975_v41 = vld [vmem:[%s5561_s1 + $0x1d50] sm:$0xff]  ;;  %v1098_v30 = vld.sshfl [vmem:[#allocation1] sm:$0xff pattern:$0x73625140] }
 0x1d1   :  { %2256 = vmatpush.msrb.mxu2 %v906_v43  ;;  %2275 = vmatpush.msrb.mxu3 %v923_v44  ;;  %1097 = vst [vmem:[#allocation1 + $0x20] ss:$4 sm:$0xff] %v36_v39  ;;  %v1303_v43 = vpop.f32.mrf.mxu2  ;;  %v942_v44 = vld [vmem:[%s5561_s1 + $0x1c48] sm:$0xff] }
 0x1d2   :  { %2217 = vmatpush.msrb.mxu0 %v873_v46  ;;  %2236 = vmatpush.msrb.mxu1 %v890_v47  ;;  %v974_v46 = vld [vmem:[%s5561_s1 + $0x1d48] sm:$0xff]  ;;  %v991_v47 = vld [vmem:[%s5561_s1 + $0x1dd0] sm:$0xff] }
 0x1d3   :  { %2257 = vmatpush.msrb.mxu2 %v905_v48  ;;  %2276 = vmatpush.msrb.mxu3 %v922_v49  ;;  %v941_v48 = vld [vmem:[%s5561_s1 + $0x1c40] sm:$0xff]  ;;  %v958_v49 = vld [vmem:[%s5561_s1 + $0x1cc8] sm:$0xff] }
 0x1d4   :  { %2218 = vmatpush.msrb.mxu0 %v872_v50  ;;  %2237 = vmatpush.msrb.mxu1 %v889_v51  ;;  %v1304_v50 = vadd.f32 %v1303_v43, %v1284_v40  ;;  %v973_v51 = vld [vmem:[%s5561_s1 + $0x1d40] sm:$0xff]  ;;  %v1099_v39 = vld.sshfl [vmem:[#allocation1 + $0x8] sm:$0xff pattern:$0x73625140] }
 0x1d5   :  { %2258 = vmatpush.msrb.mxu2 %v904_v53  ;;  %2277 = vmatpush.msrb.mxu3 %v921_v54  ;;  %v1323_v53 = vpop.f32.mrf.mxu3  ;;  %v940_v54 = vld [vmem:[%s5561_s1 + $0x1c38] sm:$0xff] }
 0x1d6   :  { %2219 = vmatpush.msrb.mxu0 %v871_v56  ;;  %2238 = vmatpush.msrb.mxu1 %v888_v57  ;;  %v972_v56 = vld [vmem:[%s5561_s1 + $0x1d38] sm:$0xff]  ;;  %v989_v57 = vld [vmem:[%s5561_s1 + $0x1dc0] sm:$0xff] }
 0x1d7   :  { %2259 = vmatpush.msrb.mxu2 %v903_v58  ;;  %2278 = vmatpush.msrb.mxu3 %v920_v59  ;;  %v1343_v58 = vpop.f32.mrf.mxu0  ;;  %v939_v59 = vld [vmem:[%s5561_s1 + $0x1c30] sm:$0xff]  ;;  %v1101_v40 = vld.sshfl [vmem:[#allocation1 + $0x18] sm:$0xff pattern:$0x73625140] }
 0x1d8   :  { %2220 = vmatpush.msrb.mxu0 %v870_v60  ;;  %2239 = vmatpush.msrb.mxu1 %v887_v61  ;;  %v956_v60 = vld [vmem:[%s5561_s1 + $0x1cb8] sm:$0xff]  ;;  %v1324_v61 = vadd.f32 %v1323_v53, %v1304_v50  ;;  %v998_v53 = vld [vmem:[%s5561_s1 + $0x1e08] sm:$0xff] }
 0x1d9   :  { %2260 = vmatpush.msrb.mxu2 %v902_v0  ;;  %2279 = vmatpush.msrb.mxu3 %v919_v1  ;;  %v938_v0 = vld [vmem:[%s5561_s1 + $0x1c28] sm:$0xff]  ;;  %v955_v1 = vld [vmem:[%s5561_s1 + $0x1cb0] sm:$0xff] }
 0x1da   :  { %2221 = vmatpush.msrb.mxu0 %v869_v3  ;;  %2240 = vmatpush.msrb.mxu1 %v886_v4  ;;  %v1344_v2 = vadd.f32 %v1343_v58, %v1324_v61  ;;  %v970_v3 = vld [vmem:[%s5561_s1 + $0x1d28] sm:$0xff]  ;;  %v987_v4 = vld [vmem:[%s5561_s1 + $0x1db0] sm:$0xff] }
 0x1db   :  { %2261 = vmatpush.msrb.mxu2 %v901_v5  ;;  %2280 = vmatpush.msrb.mxu3 %v918_v6  ;;  %v1363_v5 = vpop.f32.mrf.mxu1  ;;  %v937_v6 = vld [vmem:[%s5561_s1 + $0x1c20] sm:$0xff] }
 0x1dc   :  { %2222 = vmatmul.f32.vlgmr.msrb.gmra.mxu0 %v1092_v7  ;;  %2262 = vmatmul.f32.vlgmr.msrb.gmra.mxu2 %v1094_v8  ;;  %v954_v7 = vld [vmem:[%s5561_s1 + $0x1ca8] sm:$0xff]  ;;  %v969_v8 = vld [vmem:[%s5561_s1 + $0x1d20] sm:$0xff] }
 0x1dd   :  { %2286 = vmatpush.msra.mxu0 %v948_v10  ;;  %2326 = vmatpush.msra.mxu2 %v980_v11  ;;  %v1383_v10 = vpop.f32.mrf.mxu2  ;;  %v936_v11 = vld [vmem:[%s5561_s1 + $0x1c18] sm:$0xff] }
 0x1de   :  { %2241 = vmatpush.msrb.mxu1 %v885_v13  ;;  %2281 = vmatpush.msrb.mxu3 %v917_v14  ;;  %v1364_v13 = vadd.f32 %v1363_v5, %v1344_v2  ;;  %v968_v14 = vld [vmem:[%s5561_s1 + $0x1d18] sm:$0xff] }
 0x1df   :  { %2242 = vmatmul.f32.vlgmr.msrb.gmra.mxu1 %v1093_v15  ;;  %2282 = vmatmul.f32.vlgmr.msrb.gmra.mxu3 %v1095_v16  ;;  %v985_v15 = vld [vmem:[%s5561_s1 + $0x1da0] sm:$0xff]  ;;  %v935_v16 = vld [vmem:[%s5561_s1 + $0x1c10] sm:$0xff] }
 0x1e0   :  { %2287 = vmatpush.msra.mxu0 %v947_v17  ;;  %2306 = vmatpush.msra.mxu1 %v964_v18  ;;  %v952_v17 = vld [vmem:[%s5561_s1 + $0x1c98] sm:$0xff]  ;;  %v1384_v18 = vadd.f32 %v1383_v10, %v1364_v13 }
 0x1e1   :  { %2327 = vmatpush.msra.mxu2 %v979_v20  ;;  %2346 = vmatpush.msra.mxu3 %v996_v21  ;;  %v984_v20 = vld [vmem:[%s5561_s1 + $0x1d98] sm:$0xff]  ;;  %v1403_v21 = vpop.f32.mrf.mxu3 }
 0x1e2   :  { %2288 = vmatpush.msra.mxu0 %v946_v23  ;;  %2307 = vmatpush.msra.mxu1 %v963_v24  ;;  %v951_v23 = vld [vmem:[%s5561_s1 + $0x1c90] sm:$0xff]  ;;  %v966_v24 = vld [vmem:[%s5561_s1 + $0x1d08] sm:$0xff]  ;;  %v1404_v31 = vadd.f32 %v1403_v21, %v1384_v18 }
 0x1e3   :  { %2328 = vmatpush.msra.mxu2 %v978_v25  ;;  %2347 = vmatpush.msra.mxu3 %v995_v26  ;;  %v983_v25 = vld [vmem:[%s5561_s1 + $0x1d90] sm:$0xff]  ;;  %v1423_v26 = vpop.f32.mrf.mxu0 }
 0x1e4   :  { %2289 = vmatpush.msra.mxu0 %v945_v28  ;;  %2308 = vmatpush.msra.mxu1 %v962_v29  ;;  %v933_v28 = vld [vmem:[%s5561_s1 + $0x1c00] sm:$0xff]  ;;  %v950_v29 = vld [vmem:[%s5561_s1 + $0x1c88] sm:$0xff] }
 0x1e5   :  { %2329 = vmatpush.msra.mxu2 %v977_v27  ;;  %2348 = vmatpush.msra.mxu3 %v994_v32  ;;  %v965_v27 = vld [vmem:[%s5561_s1 + $0x1d00] sm:$0xff]  ;;  %v982_v32 = vld [vmem:[%s5561_s1 + $0x1d88] sm:$0xff] }
 0x1e6   :  { %2290 = vmatpush.msra.mxu0 %v944_v33  ;;  %2309 = vmatpush.msra.mxu1 %v961_v34  ;;  %v1100_v33 = vld.sshfl [vmem:[#allocation1 + $0x10] sm:$0xff pattern:$0x73625140]  ;;  %v1424_v34 = vadd.f32 %v1423_v26, %v1404_v31 }
 0x1e7   :  { %2330 = vmatpush.msra.mxu2 %v976_v35  ;;  %2349 = vmatpush.msra.mxu3 %v993_v36  ;;  %v1004_v35 = vld [vmem:[%s5561_s1 + $0x1e38] sm:$0xff]  ;;  %v949_v36 = vld [vmem:[%s5561_s1 + $0x1c80] sm:$0xff] }
 0x1e8   :  { %2291 = vmatpush.msra.mxu0 %v943_v37  ;;  %2310 = vmatpush.msra.mxu1 %v960_v38  ;;  %v1443_v37 = vpop.f32.mrf.mxu1  ;;  %v981_v38 = vld [vmem:[%s5561_s1 + $0x1d80] sm:$0xff] }
 0x1e9   :  { %2331 = vmatpush.msra.mxu2 %v975_v41  ;;  %2350 = vmatpush.msra.mxu3 %v992_v42  ;;  %v1003_v41 = vld [vmem:[%s5561_s1 + $0x1e30] sm:$0xff]  ;;  %v1463_v42 = vpop.f32.mrf.mxu2  ;;  %v1444_v43 = vadd.f32 %v1443_v37, %v1424_v34  ;;  %v2399_v37 = vld [vmem:[%s5563_s3 + $0x60] sm:$0xff] }
 0x1ea   :  { %2292 = vmatpush.msra.mxu0 %v942_v44  ;;  %2311 = vmatpush.msra.mxu1 %v959_v45  ;;  %v1002_v44 = vld [vmem:[%s5561_s1 + $0x1e28] sm:$0xff] }
 0x1eb   :  { %2332 = vmatpush.msra.mxu2 %v974_v46  ;;  %2351 = vmatpush.msra.mxu3 %v991_v47  ;;  %v1464_v45 = vadd.f32 %v1463_v42, %v1444_v43  ;;  %v1001_v46 = vld [vmem:[%s5561_s1 + $0x1e20] sm:$0xff]  ;;  %v1483_v47 = vpop.f32.mrf.mxu3  ;;  %v2397_v42 = vld [vmem:[%s5563_s3 + $0x50] sm:$0xff] }
 0x1ec   :  { %2293 = vmatpush.msra.mxu0 %v941_v48  ;;  %2312 = vmatpush.msra.mxu1 %v958_v49  ;;  %v1000_v48 = vld [vmem:[%s5561_s1 + $0x1e18] sm:$0xff]  ;;  %v1503_v49 = vpop.f32.mrf.mxu0 }
 0x1ed   :  { %2333 = vmatpush.msra.mxu2 %v973_v51  ;;  %2352 = vmatpush.msra.mxu3 %v990_v52  ;;  %v1484_v50 = vadd.f32 %v1483_v47, %v1464_v45  ;;  %v999_v51 = vld [vmem:[%s5561_s1 + $0x1e10] sm:$0xff] }
 0x1ee   :  { %2294 = vmatpush.msra.mxu0 %v940_v54  ;;  %2313 = vmatpush.msra.mxu1 %v957_v55  ;;  %v997_v55 = vld [vmem:[%s5561_s1 + $0x1e00] sm:$0xff] }
 0x1ef   :  { %2334 = vmatpush.msra.mxu2 %v972_v56  ;;  %2353 = vmatpush.msra.mxu3 %v989_v57  ;;  %v1504_v52 = vadd.f32 %v1503_v49, %v1484_v50  ;;  %v1102_v57 = vld.sshfl [vmem:[#allocation1 + $0x20] sm:$0xff pattern:$0x73625140] }
 0x1f0   :  { %2295 = vmatpush.msra.mxu0 %v939_v59  ;;  %2314 = vmatpush.msra.mxu1 %v956_v60  ;;  %v1523_v54 = vpop.f32.mrf.mxu1 }
 0x1f1   :  { %2335 = vmatpush.msra.mxu2 %v971_v62  ;;  %2354 = vmatpush.msra.mxu3 %v988_v63  ;;  %v1543_v56 = vpop.f32.mrf.mxu2  ;;  %v1524_v58 = vadd.f32 %v1523_v54, %v1504_v52  ;;  %v2396_v54 = vld [vmem:[%s5563_s3 + $0x48] sm:$0xff] }
 0x1f2   :  { %2296 = vmatpush.msra.mxu0 %v938_v0  ;;  %2315 = vmatpush.msra.mxu1 %v955_v1 }
 0x1f3   :  { %2336 = vmatpush.msra.mxu2 %v970_v3  ;;  %2355 = vmatpush.msra.mxu3 %v987_v4  ;;  %v1544_v59 = vadd.f32 %v1543_v56, %v1524_v58  ;;  %v1563_v60 = vpop.f32.mrf.mxu3  ;;  %v2395_v56 = vld [vmem:[%s5563_s3 + $0x40] sm:$0xff] }
 0x1f4   :  { %2297 = vmatpush.msra.mxu0 %v937_v6  ;;  %2316 = vmatpush.msra.mxu1 %v954_v7  ;;  %v1583_v61 = vpop.f32.mrf.mxu0 }
 0x1f5   :  { %2337 = vmatpush.msra.mxu2 %v969_v8  ;;  %2356 = vmatpush.msra.mxu3 %v986_v9  ;;  %v1564_v62 = vadd.f32 %v1563_v60, %v1544_v59 }
 0x1f6   :  { %2298 = vmatpush.msra.mxu0 %v936_v11  ;;  %2317 = vmatpush.msra.mxu1 %v953_v12 }
 0x1f7   :  { %2338 = vmatpush.msra.mxu2 %v968_v14  ;;  %2357 = vmatpush.msra.mxu3 %v985_v15  ;;  %v1584_v63 = vadd.f32 %v1583_v61, %v1564_v62  ;;  %v2393_v61 = vld [vmem:[%s5563_s3 + $0x30] sm:$0xff] }
 0x1f8   :  { %2299 = vmatpush.msra.mxu0 %v935_v16  ;;  %2318 = vmatpush.msra.mxu1 %v952_v17  ;;  %v1603_v0 = vpop.f32.mrf.mxu1 }
 0x1f9   :  { %2339 = vmatpush.msra.mxu2 %v967_v19  ;;  %2358 = vmatpush.msra.mxu3 %v984_v20  ;;  %v1623_v1 = vpop.f32.mrf.mxu2  ;;  %v1604_v2 = vadd.f32 %v1603_v0, %v1584_v63  ;;  %v2392_v63 = vld [vmem:[%s5563_s3 + $0x28] sm:$0xff] }
 0x1fa   :  { %2300 = vmatpush.msra.mxu0 %v934_v22  ;;  %2319 = vmatpush.msra.mxu1 %v951_v23 }
 0x1fb   :  { %2340 = vmatpush.msra.mxu2 %v966_v24  ;;  %2359 = vmatpush.msra.mxu3 %v983_v25  ;;  %v1624_v3 = vadd.f32 %v1623_v1, %v1604_v2  ;;  %v1643_v4 = vpop.f32.mrf.mxu3  ;;  %v2391_v1 = vld [vmem:[%s5563_s3 + $0x20] sm:$0xff] }
 0x1fc   :  { %2301 = vmatpush.msra.mxu0 %v933_v28  ;;  %2320 = vmatpush.msra.mxu1 %v950_v29  ;;  %v1663_v5 = vpop.f32.mrf.mxu0 }
 0x1fd   :  { %2341 = vmatpush.msra.mxu2 %v965_v27  ;;  %2360 = vmatpush.msra.mxu3 %v982_v32  ;;  %v1644_v6 = vadd.f32 %v1643_v4, %v1624_v3  ;;  %v2402_v32 = vld [vmem:[%s5563_s3 + $0x78] sm:$0xff] }
 0x1fe   :  { %2302 = vmatmul.f32.vlgmr.msra.gmra.mxu0 %v1098_v30  ;;  %2342 = vmatmul.f32.vlgmr.msra.gmra.mxu2 %v1100_v33  ;;  %v2401_v30 = vld [vmem:[%s5563_s3 + $0x70] sm:$0xff]  ;;  %v2390_v3 = vld [vmem:[%s5563_s3 + $0x18] sm:$0xff] }
 0x1ff   :  { %2374 = vmatpush.msrb.mxu0 %v1004_v35  ;;  %2321 = vmatpush.msra.mxu1 %v949_v36  ;;  %v1664_v7 = vadd.f32 %v1663_v5, %v1644_v6  ;;  %v2400_v35 = vld [vmem:[%s5563_s3 + $0x68] sm:$0xff]  ;;  %v2389_v6 = vld [vmem:[%s5563_s3 + $0x10] sm:$0xff] }
 0x200   :  { %2361 = vmatpush.msra.mxu3 %v981_v38  ;;  %2322 = vmatmul.f32.vlgmr.msra.gmra.mxu1 %v1099_v39  ;;  %v1683_v8 = vpop.f32.mrf.mxu1  ;;  %v2398_v39 = vld [vmem:[%s5563_s3 + $0x58] sm:$0xff] }
 0x201   :  { %2362 = vmatmul.f32.vlgmr.msra.gmra.mxu3 %v1101_v40  ;;  %2375 = vmatpush.msrb.mxu0 %v1003_v41  ;;  %v1703_v9 = vpop.f32.mrf.mxu2  ;;  %v1684_v10 = vadd.f32 %v1683_v8, %v1664_v7 }
 0x202   :  { %2407 = vmatpush.msrb.mxu1 %v2402_v32 }
 0x203   :  { %2376 = vmatpush.msrb.mxu0 %v1002_v44  ;;  %v1704_v11 = vadd.f32 %v1703_v9, %v1684_v10  ;;  %v1723_v12 = vpop.f32.mrf.mxu3  ;;  %v2388_v9 = vld [vmem:[%s5563_s3 + $0x8] sm:$0xff] }
 0x204   :  { %v1743_v13 = vpop.f32.mrf.mxu0  ;;  %2408 = vmatpush.msrb.mxu1 %v2401_v30 }
 0x205   :  { %2377 = vmatpush.msrb.mxu0 %v1001_v46  ;;  %v1724_v14 = vadd.f32 %v1723_v12, %v1704_v11  ;;  %v2387_v11 = vld [vmem:[%s5563_s3] sm:$0xff] }
 0x206   :  { %2409 = vmatpush.msrb.mxu1 %v2400_v35 }
 0x207   :  { %2378 = vmatpush.msrb.mxu0 %v1000_v48  ;;  %v1744_v15 = vadd.f32 %v1743_v13, %v1724_v14 }
 0x208   :  { %v1763_v16 = vpop.f32.mrf.mxu1  ;;  %2410 = vmatpush.msrb.mxu1 %v2399_v37 }
 0x209   :  { %2379 = vmatpush.msrb.mxu0 %v999_v51  ;;  %v1783_v17 = vpop.f32.mrf.mxu2  ;;  %v1764_v18 = vadd.f32 %v1763_v16, %v1744_v15 }
 0x20a   :  { %2411 = vmatpush.msrb.mxu1 %v2398_v39 }
 0x20b   :  { %2380 = vmatpush.msrb.mxu0 %v998_v53  ;;  %v1784_v19 = vadd.f32 %v1783_v17, %v1764_v18  ;;  %v1803_v20 = vpop.f32.mrf.mxu3 }
 0x20c   :  { %v1823_v21 = vpop.f32.mrf.mxu0  ;;  %2412 = vmatpush.msrb.mxu1 %v2397_v42 }
 0x20d   :  { %2381 = vmatpush.msrb.mxu0 %v997_v55  ;;  %v1804_v22 = vadd.f32 %v1803_v20, %v1784_v19 }
 0x20e   :  { %2445 = vmatmul.msk.f32.vlgmr.msrb.gmra.mxu0 %vm1163_vm0, %v1102_v57  ;;  %2413 = vmatpush.msrb.mxu1 %v2396_v54  ;;  %v2394_v57 = vld [vmem:[%s5563_s3 + $0x38] sm:$0xff] }
 0x20f   :  { %v1824_v23 = vadd.f32 %v1823_v21, %v1804_v22 }
 0x210   :  { %v1843_v24 = vpop.f32.mrf.mxu1  ;;  %2414 = vmatpush.msrb.mxu1 %v2395_v56 }
 0x211   :  { %v1863_v25 = vpop.f32.mrf.mxu2  ;;  %v1844_v26 = vadd.f32 %v1843_v24, %v1824_v23 }
 0x212   :  { %2415 = vmatpush.msrb.mxu1 %v2394_v57 }
 0x213   :  { %v1864_v28 = vadd.f32 %v1863_v25, %v1844_v26  ;;  %v1883_v29 = vpop.f32.mrf.mxu3 }
 0x214   :  { %v1903_v31 = vpop.f32.mrf.mxu0  ;;  %2416 = vmatpush.msrb.mxu1 %v2393_v61 }
 0x215   :  { %v1884_v27 = vadd.f32 %v1883_v29, %v1864_v28 }
 0x216   :  { %2417 = vmatpush.msrb.mxu1 %v2392_v63 }
 0x217   :  { %v1904_v33 = vadd.f32 %v1903_v31, %v1884_v27 }
 0x218   :  { %v1923_v34 = vpop.f32.mrf.mxu1  ;;  %2418 = vmatpush.msrb.mxu1 %v2391_v1 }
 0x219   :  { %v1943_v36 = vpop.f32.mrf.mxu2  ;;  %v1924_v38 = vadd.f32 %v1923_v34, %v1904_v33  ;;  %v2448_v33 = vld [vmem:[%s5564_s4] ss:$0 sm:$0xff] }
 0x21a   :  { %2419 = vmatpush.msrb.mxu1 %v2390_v3 }
 0x21b   :  { %v1944_v40 = vadd.f32 %v1943_v36, %v1924_v38  ;;  %v1963_v41 = vpop.f32.mrf.mxu3 }
 0x21c   :  { %v1983_v43 = vpop.f32.mrf.mxu0  ;;  %2420 = vmatpush.msrb.mxu1 %v2389_v6 }
 0x21d   :  { %v1964_v44 = vadd.f32 %v1963_v41, %v1944_v40 }
 0x21e   :  { %2421 = vmatpush.msrb.mxu1 %v2388_v9 }
 0x21f   :  { %v1984_v45 = vadd.f32 %v1983_v43, %v1964_v44 }
 0x220   :  { %v2003_v46 = vpop.f32.mrf.mxu1  ;;  %2422 = vmatpush.msrb.mxu1 %v2387_v11 }
 0x221   :  { %v2023_v47 = vpop.f32.mrf.mxu2  ;;  %v2004_v48 = vadd.f32 %v2003_v46, %v1984_v45 }
 0x223   :  { %v2024_v49 = vadd.f32 %v2023_v47, %v2004_v48  ;;  %v2043_v50 = vpop.f32.mrf.mxu3 }
 0x224   :  { %v2063_v51 = vpop.f32.mrf.mxu0 }
 0x225   :  { %v2044_v52 = vadd.f32 %v2043_v50, %v2024_v49 }
 0x227   :  { %v2064_v53 = vadd.f32 %v2063_v51, %v2044_v52 }
 0x228   :  { %v2083_v55 = vpop.f32.mrf.mxu1 }
 0x229   :  { %v2103_v58 = vpop.f32.mrf.mxu2  ;;  %v2084_v59 = vadd.f32 %v2083_v55, %v2064_v53 }
 0x22b   :  { %v2104_v60 = vadd.f32 %v2103_v58, %v2084_v59  ;;  %v2123_v62 = vpop.f32.mrf.mxu3 }
 0x22d   :  { %v2124_v2 = vadd.f32 %v2123_v62, %v2104_v60 }
 0x237   :  { %v2143_v0 = vpop.f32.mrf.mxu0 }
 0x238   :  { %v2144_v4 = vadd.f32 %v2143_v0, %v2124_v2 }
 0x23a   :  { %v2163_v5 = vpop.f32.mrf.mxu1 }
 0x23b   :  { %v2164_v8 = vadd.f32 %v2163_v5, %v2144_v4 }
 0x23d   :  { %v2183_v7 = vpop.f32.mrf.mxu2 }
 0x23e   :  { %v2184_v10 = vadd.f32 %v2183_v7, %v2164_v8 }
 0x240   :  { %v2203_v12 = vpop.f32.mrf.mxu3 }
 0x241   :  { %v2204_v14 = vadd.f32 %v2203_v12, %v2184_v10 }
 0x259   :  { %v2223_v13 = vpop.f32.mrf.mxu0 }
 0x25a   :  { %v2224_v15 = vadd.f32 %v2223_v13, %v2204_v14 }
 0x25c   :  { %v2243_v16 = vpop.f32.mrf.mxu1 }
 0x25d   :  { %v2244_v18 = vadd.f32 %v2243_v16, %v2224_v15 }
 0x25f   :  { %v2263_v17 = vpop.f32.mrf.mxu2 }
 0x260   :  { %v2264_v19 = vadd.f32 %v2263_v17, %v2244_v18 }
 0x262   :  { %v2283_v20 = vpop.f32.mrf.mxu3 }
 0x263   :  { %v2284_v22 = vadd.f32 %v2283_v20, %v2264_v19 }
 0x27b   :  { %v2303_v21 = vpop.f32.mrf.mxu0 }
 0x27c   :  { %v2304_v23 = vadd.f32 %v2303_v21, %v2284_v22 }
 0x27d   :  { %v2323_v24 = vpop.f32.mrf.mxu1 }
 0x27e   :  { %v2324_v26 = vadd.f32 %v2323_v24, %v2304_v23 }
 0x281   :  { %v2343_v25 = vpop.f32.mrf.mxu2 }
 0x282   :  { %v2344_v28 = vadd.f32 %v2343_v25, %v2324_v26 }
 0x284   :  { %v2363_v29 = vpop.f32.mrf.mxu3 }
 0x285   :  { %v2364_v31 = vadd.f32 %v2363_v29, %v2344_v28 }
 0x28b   :  { %v2383_v27 = vpop.f32.mrf.mxu0 }
 0x28c   :  { %v2384_v32 = vadd.f32 %v2383_v27, %v2364_v31 }
 0x28e   :  { %v2386_v30 = vmax.f32 %v2384_v32, 0.0 }
 0x290   :  { %2423 = vmatmul.f32.vlgmr.msrb.gmra.mxu1 %v2386_v30 }
 0x30d   :  { %v2424_v34 = vpop.f32.mrf.mxu1 }
 0x30e   :  { %v2425_v35 = vadd.f32 %v2448_v33, %v2424_v34 }
 0x310   :  { %2428 = vst.msk [vmem:[#allocation2] sm:$0x3] %vm2427_vm1, %v2425_v35 }
 0x311   :  { %2439 = dma.vmem_to_hbm [thread:$0]  %s2435_s6, 32, %s2437_s9, [#allocation3]  }
 0x312   :  { %2473 = dma.done.wait [#allocation3], 32  }
 0x313   :  { %2474 = vsyncadd [#allocation3], 4294967264 }
 0x314   :  { %2444 = vsyncpa [#allocation3], 1 }

</bundles_post_ra>
